<compile_context>
chip_gen: v7x
topology: tpu7x:2x2x1
jax: 0.10.0
libtpu: 0.0.40
codegen_flags: <defaults>
</compile_context>

<pallas_src>
import math
from functools import partial

import jax
import jax.numpy as jnp
import numpy as np
from jax import lax
from jax.experimental import pallas as pl
from jax.experimental.pallas import tpu as pltpu


_NEG_INF = -1e18

# Small per-feature f32 vectors packed into a single (11, d_model) slab.
MAIN_VEC_NAMES = ("ln1_g", "ln1_b", "ln2_g", "ln2_b", "fln_g", "fln_b",
                  "sbq", "sbo", "cbq", "cbo", "fb2")


# ---------------------------------------------------------------------------
# Small helpers
# ---------------------------------------------------------------------------
def _round_up(x, m):
    return ((x + m - 1) // m) * m


def _nbytes(arrs):
    return sum(int(a.size) * int(a.dtype.itemsize) for a in arrs)


def _pick_vmem_limit(request_bytes):
    """Generation-aware VMEM limit: cover the estimated need (with margin) but
    never exceed 75% of physical VMEM (<=48 MiB on v7x's 64 MiB, <=96 MiB on
    v5e/v6e's 128 MiB), leaving headroom for Mosaic internal scratch."""
    cap = 128 * 1024 * 1024
    try:
        cap = int(getattr(pltpu.get_tpu_info(), "vmem_capacity_bytes", cap))
    except Exception:
        pass
    want = max(int(request_bytes * 1.5), 16 * 1024 * 1024)
    return int(min(want, cap * 3 // 4))


# ---------------------------------------------------------------------------
# Math shared by the kernel bodies and the pure-JAX reference.
# ---------------------------------------------------------------------------
def _mm(a, b):
    """bf16 matmul with f32 accumulation (MXU-friendly on v5e/v6e/v7x)."""
    return jnp.dot(a.astype(jnp.bfloat16), b.astype(jnp.bfloat16),
                   preferred_element_type=jnp.float32)


def _layer_norm(x, g, b, eps=1e-6):
    mu = jnp.mean(x, axis=-1, keepdims=True)
    var = jnp.mean((x - mu) ** 2, axis=-1, keepdims=True)
    return (x - mu) * lax.rsqrt(var + eps) * g + b


def _softmax_last(x, approx_recip):
    m = jnp.max(x, axis=-1, keepdims=True)
    e = jnp.exp(x - m)
    s = jnp.sum(e, axis=-1, keepdims=True)
    if approx_recip:
        return e * pl.reciprocal(s, approx=True)   # EUP slot, nearly free
    return e / s


def _split_heads(x, heads):
    """(T, D) -> (heads, T, dph) in bf16; dph stays on the lane dimension."""
    t, d = x.shape
    return jnp.swapaxes(x.astype(jnp.bfloat16).reshape(t, heads, d // heads),
                        0, 1)


def _merge_heads(x):
    """(heads, T, dph) -> (T, heads*dph)."""
    h, t, dph = x.shape
    return jnp.swapaxes(x, 0, 1).reshape(t, h * dph)


def _attention(q, k, v, mask, Wo, bo, heads, approx_recip, attn_impl):
    """Multi-head scaled-dot attention (q already carries the 1/sqrt(dph) scale).

    q: (Tq, D) f32; k, v: (Tk, D) f32/bf16; mask broadcastable to (Tq, Tk) with
    True = masked; Wo: (D, D) bf16; bo: (1, D) f32.
    Returns (out (Tq, D) f32, head-0 attention (Tq, Tk) f32).
    """
    Tq, D = q.shape
    dph = D // heads

    if attn_impl == "looped":
        # Conservative per-head fallback (2-D matmuls only).
        acc = None
        attn0 = None
        for h in range(heads):
            lo, hi = h * dph, (h + 1) * dph
            qh = q[:, lo:hi].astype(jnp.bfloat16)
            kh = k[:, lo:hi].astype(jnp.bfloat16)
            vh = v[:, lo:hi].astype(jnp.bfloat16)
            s = lax.dot_general(qh, kh, (((1,), (1,)), ((), ())),
                                preferred_element_type=jnp.float32)
            s = jnp.where(mask, _NEG_INF, s)
            a = _softmax_last(s, approx_recip)
            if h == 0:
                attn0 = a
            ctx = jnp.dot(a.astype(jnp.bfloat16), vh,
                          preferred_element_type=jnp.float32)
            contrib = _mm(ctx, Wo[lo:hi, :])
            acc = contrib if acc is None else acc + contrib
        return acc + bo, attn0

    # Fused path: all heads as batched einsums; heads are merged back to a
    # single (Tq, D) slab before the output projection so the MXU sees one
    # K=D contraction instead of `heads` independent K=dph contractions.
    qh = _split_heads(q, heads)        # (H, Tq, dph) bf16
    kh = _split_heads(k, heads)        # (H, Tk, dph) bf16
    vh = _split_heads(v, heads)        # (H, Tk, dph) bf16
    scores = jnp.einsum("hqd,hkd->hqk", qh, kh,
                        preferred_element_type=jnp.float32)   # (H, Tq, Tk)
    scores = jnp.where(mask[None, :, :], _NEG_INF, scores)
    attn = _softmax_last(scores, approx_recip)                # (H, Tq, Tk) f32
    ctx = jnp.einsum("hqk,hkd->hqd", attn.astype(jnp.bfloat16), vh,
                     preferred_element_type=jnp.float32)      # (H, Tq, dph)
    out = _mm(_merge_heads(ctx.astype(jnp.bfloat16)), Wo) + bo
    return out, attn[0]


def _kv_project(x, mem, p):
    """Grid-invariant K/V projections (hoisted out of the query-block loop)."""
    xn = _layer_norm(x, p["ln1_g"], p["ln1_b"])
    self_kv = _mm(xn, p["sWkv"]) + p["sbkv"]    # (T, 2D) = [K | V] self-attn
    ctx_kv = _mm(mem, p["cWkv"]) + p["cbkv"]    # (S, 2D) = [K | V] ctx-attn
    return self_kv, ctx_kv


def _decoder_block(x_blk, self_kv, ctx_kv, src_pad, tgt_pad, q_start, p, heads,
                   approx_recip, attn_impl):
    """One (batch, query-block) slab.

    x_blk: (TQ, D) query rows (f32), self_kv: (T, 2D), ctx_kv: (S, 2D),
    src_pad: (1, S) int, tgt_pad: (1, T) int; q_start = global index of row 0.
    """
    TQ, D = x_blk.shape
    T = self_kv.shape[0]
    dph = D // heads
    scale = 1.0 / math.sqrt(dph)

    # dec_mask[q, k] = tgt_pad[k] or (k > global query index)   (True = masked)
    rows = lax.broadcasted_iota(jnp.int32, (TQ, T), 0) + q_start
    cols = lax.broadcasted_iota(jnp.int32, (TQ, T), 1)
    dec_mask = (tgt_pad + (cols > rows).astype(jnp.int32)) > 0   # (TQ, T)
    src_mask = src_pad > 0                                       # (1, S)

    # ---- masked multi-head self-attention ---------------------------------
    xq_norm = _layer_norm(x_blk, p["ln1_g"], p["ln1_b"])
    q = (_mm(xq_norm, p["sWq"]) + p["sbq"]) * scale              # (TQ, D)
    self_out, _ = _attention(q, self_kv[:, :D], self_kv[:, D:], dec_mask,
                             p["sWo"], p["sbo"], heads, approx_recip, attn_impl)
    query = self_out + x_blk                     # dropout = identity (eval)

    # ---- context attention over memory_bank --------------------------------
    qn = _layer_norm(query, p["ln2_g"], p["ln2_b"])
    cq = (_mm(qn, p["cWq"]) + p["cbq"]) * scale                  # (TQ, D)
    mid, top_attn = _attention(cq, ctx_kv[:, :D], ctx_kv[:, D:], src_mask,
                               p["cWo"], p["cbo"], heads, approx_recip,
                               attn_impl)

    # ---- PositionwiseFeedForward --------------------------------------------
    y = mid + query
    hn = _layer_norm(y, p["fln_g"], p["fln_b"])
    h1 = jnp.maximum(_mm(hn, p["fW1"]) + p["fb1"], 0.0)
    out = _mm(h1, p["fW2"]) + p["fb2"] + y
    return out, top_attn


def _unpack_vecs(vecs):
    """(11, D) packed slab -> dict of (1, D) vectors."""
    return {name: vecs[i:i + 1, :] for i, name in enumerate(MAIN_VEC_NAMES)}


# ---------------------------------------------------------------------------
# Pallas kernels
# ---------------------------------------------------------------------------
def kv_project_kernel(x_ref, mem_ref, vecs_ref, kvb_ref, sWkv_ref, cWkv_ref,
                      skv_ref, ckv_ref):
    p = _unpack_vecs(vecs_ref[...])
    kvb = kvb_ref[...]
    p.update(sWkv=sWkv_ref[...], sbkv=kvb[0:1, :],
             cWkv=cWkv_ref[...], cbkv=kvb[1:2, :])
    skv, ckv = _kv_project(x_ref[0].astype(jnp.float32),
                           mem_ref[0].astype(jnp.float32), p)
    skv_ref[0] = skv.astype(skv_ref.dtype)
    ckv_ref[0] = ckv.astype(ckv_ref.dtype)


def decoder_layer_kernel(x_ref, skv_ref, ckv_ref, src_ref, tgt_ref,
                         vecs_ref, fb1_ref, sWq_ref, sWo_ref, cWq_ref, cWo_ref,
                         fW1_ref, fW2_ref, out_ref, top_ref,
                         *, heads, block_q, approx_recip, attn_impl):
    p = _unpack_vecs(vecs_ref[...])
    p.update(fb1=fb1_ref[...], sWq=sWq_ref[...], sWo=sWo_ref[...],
             cWq=cWq_ref[...], cWo=cWo_ref[...],
             fW1=fW1_ref[...], fW2=fW2_ref[...])
    q_start = pl.program_id(1) * block_q
    out, top = _decoder_block(x_ref[0].astype(jnp.float32),
                              skv_ref[0], ckv_ref[0],
                              src_ref[0], tgt_ref[0], q_start,
                              p, heads, approx_recip, attn_impl)
    out_ref[0] = out.astype(out_ref.dtype)
    top_ref[0] = top.astype(top_ref.dtype)


# ---------------------------------------------------------------------------
# Wrapper
# ---------------------------------------------------------------------------
def transformer_decoder_layer(inputs, memory_bank, src_pad_mask, tgt_pad_mask,
                              kparams, heads, *, block_q=None,
                              attn_impl="fused", single_buffer_weights=True,
                              approx_recip=True, top_attn_dtype=jnp.bfloat16):
    """Matches TransformerDecoderLayer.forward (eval mode, step=None,
    with_align=False).  Activations are quantized to bf16 at the kernel
    boundary; top_attn is emitted in `top_attn_dtype` (bf16 by default to
    halve the (B,T,S) writeback).

    Returns (output (B,T,D) f32, top_attn (B,T,S), attn_align=None).
    """
    B, T, D = inputs.shape
    S = memory_bank.shape[1]
    d_ff = kparams["fW1"].shape[1]
    assert D % heads == 0

    # Query tile: >=128 rows keeps the MXU M dimension full and amortizes the
    # ~0.35us/grid-step pipeline overhead; T is padded to a block_q multiple.
    if block_q is None:
        block_q = 256 if T >= 256 else (128 if T >= 128 else _round_up(T, 8))
    block_q = max(8, _round_up(block_q, 8))
    T_pad = _round_up(T, block_q)
    n_q = T_pad // block_q
    # Lane-dense top_attn writeback wants S % 128 == 0; only pad that far for
    # already-large S so tiny test shapes stay tiny.
    S_pad = _round_up(S, 128) if S >= 128 else _round_up(S, 8)

    def pad_seq(x, axis, new, value=0):
        if x.shape[axis] == new:
            return x
        widths = [(0, 0)] * x.ndim
        widths[axis] = (0, new - x.shape[axis])
        return jnp.pad(x, widths, constant_values=value)

    x_bf = pad_seq(inputs, 1, T_pad).astype(jnp.bfloat16)
    mem_bf = pad_seq(memory_bank, 1, S_pad).astype(jnp.bfloat16)
    src_m = pad_seq(src_pad_mask.astype(jnp.int32), 2, S_pad, value=1)
    tgt_m = pad_seq(tgt_pad_mask.astype(jnp.int32), 2, T_pad, value=1)

    vecs_d = jnp.concatenate([kparams[n] for n in MAIN_VEC_NAMES],
                             axis=0).astype(jnp.float32)          # (11, D)
    kv_b = jnp.concatenate([kparams["sbkv"], kparams["cbkv"]],
                           axis=0).astype(jnp.float32)            # (2, 2D)

    def wspec(shape, grid_rank):
        zero = (0,) * len(shape)
        idx = (lambda b: zero) if grid_rank == 1 else (lambda b, t: zero)
        if single_buffer_weights:
            # Grid-invariant: one VMEM buffer is enough (fetched exactly once).
            return pl.BlockSpec(shape, idx,
                                pipeline_mode=pl.Buffered(buffer_count=1))
        return pl.BlockSpec(shape, idx)

    wbuf = 1 if single_buffer_weights else 2

    # ---- stage 1: grid-invariant K/V projections, once per batch row --------
    kv_weights = [vecs_d, kv_b, kparams["sWkv"], kparams["cWkv"]]
    kv_vmem = _pick_vmem_limit(
        _nbytes(kv_weights) * wbuf
        + 2 * (T_pad + S_pad) * D * 2            # input slabs (bf16, 2 bufs)
        + 2 * (T_pad + S_pad) * 2 * D * 2        # output slabs (bf16, 2 bufs)
        + (T_pad + S_pad) * 3 * D * 4)           # f32 intermediates
    self_kv, ctx_kv = pl.pallas_call(
        kv_project_kernel,
        grid=(B,),
        in_specs=[pl.BlockSpec((1, T_pad, D), lambda b: (b, 0, 0)),
                  pl.BlockSpec((1, S_pad, D), lambda b: (b, 0, 0))]
                 + [wspec(w.shape, 1) for w in kv_weights],
        out_specs=[pl.BlockSpec((1, T_pad, 2 * D), lambda b: (b, 0, 0)),
                   pl.BlockSpec((1, S_pad, 2 * D), lambda b: (b, 0, 0))],
        out_shape=(jax.ShapeDtypeStruct((B, T_pad, 2 * D), jnp.bfloat16),
                   jax.ShapeDtypeStruct((B, S_pad, 2 * D), jnp.bfloat16)),
        compiler_params=pltpu.CompilerParams(
            dimension_semantics=("parallel",),
            vmem_limit_bytes=kv_vmem),
    )(x_bf, mem_bf, *kv_weights)

    # ---- stage 2: per-(batch, query-block) decoder layer --------------------
    main_weights = [vecs_d, kparams["fb1"], kparams["sWq"], kparams["sWo"],
                    kparams["cWq"], kparams["cWo"], kparams["fW1"],
                    kparams["fW2"]]
    top_isz = int(np.dtype(top_attn_dtype).itemsize)
    main_vmem = _pick_vmem_limit(
        _nbytes(main_weights) * wbuf
        + 2 * (block_q * D * 2 + (T_pad + S_pad) * 2 * D * 2
               + (T_pad + S_pad) * 4
               + block_q * D * 4 + block_q * S_pad * top_isz)
        + heads * block_q * max(T_pad, S_pad) * 4 * 3     # scores / attn slabs
        + block_q * d_ff * 4 * 2 + block_q * D * 4 * 10)  # FFN / misc f32
    out, top = pl.pallas_call(
        partial(decoder_layer_kernel, heads=heads, block_q=block_q,
                approx_recip=approx_recip, attn_impl=attn_impl),
        grid=(B, n_q),
        in_specs=[pl.BlockSpec((1, block_q, D), lambda b, t: (b, t, 0)),
                  pl.BlockSpec((1, T_pad, 2 * D), lambda b, t: (b, 0, 0)),
                  pl.BlockSpec((1, S_pad, 2 * D), lambda b, t: (b, 0, 0)),
                  pl.BlockSpec((1, 1, S_pad), lambda b, t: (b, 0, 0)),
                  pl.BlockSpec((1, 1, T_pad), lambda b, t: (b, 0, 0))]
                 + [wspec(w.shape, 2) for w in main_weights],
        out_specs=[pl.BlockSpec((1, block_q, D), lambda b, t: (b, t, 0)),
                   pl.BlockSpec((1, block_q, S_pad), lambda b, t: (b, t, 0))],
        out_shape=(jax.ShapeDtypeStruct((B, T_pad, D), jnp.float32),
                   jax.ShapeDtypeStruct((B, T_pad, S_pad), top_attn_dtype)),
        compiler_params=pltpu.CompilerParams(
            dimension_semantics=("parallel", "parallel"),
            vmem_limit_bytes=main_vmem),
    )(x_bf, self_kv, ctx_kv, src_m, tgt_m, *main_weights)

    return out[:, :T, :], top[:, :T, :S], None


# ---------------------------------------------------------------------------
# Deterministic parameter init (synthetic) + kernel-side packing.
# ---------------------------------------------------------------------------
def init_params(key, d_model, d_ff):
    keys = jax.random.split(key, 26)
    ws = 0.05

    def w(k, shape):
        return ws * jax.random.normal(k, shape, jnp.float32)

    def b(k, n):
        return 0.02 * jax.random.normal(k, (1, n), jnp.float32)

    return {
        "ln1_g": 1.0 + 0.02 * jax.random.normal(keys[0], (1, d_model), jnp.float32),
        "ln1_b": b(keys[1], d_model),
        "ln2_g": 1.0 + 0.02 * jax.random.normal(keys[2], (1, d_model), jnp.float32),
        "ln2_b": b(keys[3], d_model),
        "fln_g": 1.0 + 0.02 * jax.random.normal(keys[4], (1, d_model), jnp.float32),
        "fln_b": b(keys[5], d_model),
        "sWq": w(keys[6], (d_model, d_model)), "sbq": b(keys[7], d_model),
        "sWk": w(keys[8], (d_model, d_model)), "sbk": b(keys[9], d_model),
        "sWv": w(keys[10], (d_model, d_model)), "sbv": b(keys[11], d_model),
        "sWo": w(keys[12], (d_model, d_model)), "sbo": b(keys[13], d_model),
        "cWq": w(keys[14], (d_model, d_model)), "cbq": b(keys[15], d_model),
        "cWk": w(keys[16], (d_model, d_model)), "cbk": b(keys[17], d_model),
        "cWv": w(keys[18], (d_model, d_model)), "cbv": b(keys[19], d_model),
        "cWo": w(keys[20], (d_model, d_model)), "cbo": b(keys[21], d_model),
        "fW1": w(keys[22], (d_model, d_ff)), "fb1": b(keys[23], d_ff),
        "fW2": w(keys[24], (d_ff, d_model)), "fb2": b(keys[25], d_model),
    }


def prepare_kernel_params(p):
    """Fuse the K/V projections into a single (D, 2D) matmul each and cast the
    big matmul weights to bf16; biases / LayerNorm params stay f32.  The output
    projections stay unsplit (D, D) so the MXU contraction depth is K=D."""
    bf = lambda x: x.astype(jnp.bfloat16)
    return {
        "ln1_g": p["ln1_g"], "ln1_b": p["ln1_b"],
        "ln2_g": p["ln2_g"], "ln2_b": p["ln2_b"],
        "fln_g": p["fln_g"], "fln_b": p["fln_b"],
        "sWq": bf(p["sWq"]), "sbq": p["sbq"],
        "sWkv": bf(jnp.concatenate([p["sWk"], p["sWv"]], axis=1)),
        "sbkv": jnp.concatenate([p["sbk"], p["sbv"]], axis=1),
        "sWo": bf(p["sWo"]), "sbo": p["sbo"],
        "cWq": bf(p["cWq"]), "cbq": p["cbq"],
        "cWkv": bf(jnp.concatenate([p["cWk"], p["cWv"]], axis=1)),
        "cbkv": jnp.concatenate([p["cbk"], p["cbv"]], axis=1),
        "cWo": bf(p["cWo"]), "cbo": p["cbo"],
        "fW1": bf(p["fW1"]), "fb1": p["fb1"],
        "fW2": bf(p["fW2"]), "fb2": p["fb2"],
    }


if __name__ == "__main__":
    # Small but representative shapes: S is a multiple of 128 (lane-dense
    # top_attn writeback) and the query dimension is tiled at 128 rows.
    B, T, S, D, H, F = 2, 256, 128, 128, 4, 256
    BLOCK_Q = 128

    key = jax.random.PRNGKey(0)
    k_in, k_mem, k_par = jax.random.split(key, 3)

    inputs = jax.random.normal(k_in, (B, T, D), jnp.float32)
    memory_bank = jax.random.normal(k_mem, (B, S, D), jnp.float32)

    # pad masks: 1 (True) = padded position
    src_lens = jnp.array([S, S - 19])
    tgt_lens = jnp.array([T, T - 37])
    src_pad_mask = (jnp.arange(S)[None, :] >= src_lens[:, None]
                    ).astype(jnp.int32)[:, None, :]
    tgt_pad_mask = (jnp.arange(T)[None, :] >= tgt_lens[:, None]
                    ).astype(jnp.int32)[:, None, :]

    raw_params = init_params(k_par, D, F)
    kparams = prepare_kernel_params(raw_params)

    # Pure-JAX reference on the same bf16-quantized activations the kernels see.
    xq = inputs.astype(jnp.bfloat16).astype(jnp.float32)
    memq = memory_bank.astype(jnp.bfloat16).astype(jnp.float32)

    def reference(x, mem, sp, tp):
        skv, ckv = _kv_project(x, mem, kparams)
        return _decoder_block(x, skv, ckv, sp, tp, 0, kparams, H,
                              approx_recip=False, attn_impl="fused")

    ref_out, ref_top = jax.vmap(reference)(xq, memq, src_pad_mask, tgt_pad_mask)
    jax.block_until_ready((ref_out, ref_top))

    # Try the most optimized kernel configuration first; degrade gracefully if
    # a lowering path is unavailable on this jax/libtpu build.  Every attempt
    # is validated against the reference before being accepted.
    configs = (
        ("fused", True, True),     # merged heads, single-buffered weights, approx recip
        ("fused", False, True),
        ("fused", False, False),
        ("looped", False, False),  # conservative per-head fallback
    )
    out = top_attn = None
    last_err = None
    for attn_impl, single_buf, approx in configs:
        try:
            out, top_attn, _ = transformer_decoder_layer(
                inputs, memory_bank, src_pad_mask, tgt_pad_mask, kparams, H,
                block_q=BLOCK_Q, attn_impl=attn_impl,
                single_buffer_weights=single_buf, approx_recip=approx)
            jax.block_until_ready((out, top_attn))
            np.testing.assert_allclose(np.asarray(out), np.asarray(ref_out),
                                       rtol=2e-2, atol=2e-2)
            np.testing.assert_allclose(np.asarray(top_attn.astype(jnp.float32)),
                                       np.asarray(ref_top),
                                       rtol=2e-2, atol=2e-2)
            break
        except Exception as e:  # fall back to a more conservative configuration
            last_err = e
            out = None
    if out is None:
        raise last_err

    print("KERNEL_OK")
</pallas_src>

<mosaic_0001>
module attributes {stable_mosaic.version = 11 : i64} {
  func.func @kv_project_kernel(%arg0: i32, %arg1: memref<1x256x128xbf16, #tpu.memory_space<vmem>>, %arg2: memref<1x128x128xbf16, #tpu.memory_space<vmem>>, %arg3: memref<11x128xf32, #tpu.memory_space<vmem>>, %arg4: memref<2x256xf32, #tpu.memory_space<vmem>>, %arg5: memref<128x256xbf16, #tpu.memory_space<vmem>>, %arg6: memref<128x256xbf16, #tpu.memory_space<vmem>>, %arg7: memref<1x256x256xbf16, #tpu.memory_space<vmem>>, %arg8: memref<1x128x256xbf16, #tpu.memory_space<vmem>>) attributes {dimension_semantics = [#tpu.dimension_semantics<parallel>], iteration_bounds = array<i64: 2>, scalar_prefetch = 0 : i64, scratch_operands = 0 : i64, tpu.core_type = #tpu.core_type<tc>, window_params = [{transform_indices = @transform_0, window_bounds = array<i64: 1, 256, 128>}, {transform_indices = @transform_1, window_bounds = array<i64: 1, 128, 128>}, {pipeline_mode = #tpu.pipeline_mode<synchronous>, transform_indices = @transform_2, window_bounds = array<i64: 11, 128>}, {pipeline_mode = #tpu.pipeline_mode<synchronous>, transform_indices = @transform_3, window_bounds = array<i64: 2, 256>}, {pipeline_mode = #tpu.pipeline_mode<synchronous>, transform_indices = @transform_4, window_bounds = array<i64: 128, 256>}, {pipeline_mode = #tpu.pipeline_mode<synchronous>, transform_indices = @transform_5, window_bounds = array<i64: 128, 256>}, {transform_indices = @transform_6, window_bounds = array<i64: 1, 256, 256>}, {transform_indices = @transform_7, window_bounds = array<i64: 1, 128, 256>}]} {
    %c0 = arith.constant 0 : index
    %c0_0 = arith.constant 0 : index
    %0 = vector.load %arg3[%c0, %c0_0] : memref<11x128xf32, #tpu.memory_space<vmem>>, vector<11x128xf32>
    %1 = vector.extract_strided_slice %0 {offsets = [0, 0], sizes = [1, 128], strides = [1, 1]} : vector<11x128xf32> to vector<1x128xf32>
    %2 = vector.extract_strided_slice %0 {offsets = [1, 0], sizes = [1, 128], strides = [1, 1]} : vector<11x128xf32> to vector<1x128xf32>
    %c0_1 = arith.constant 0 : index
    %c0_2 = arith.constant 0 : index
    %3 = vector.load %arg4[%c0_1, %c0_2] : memref<2x256xf32, #tpu.memory_space<vmem>>, vector<2x256xf32>
    %c0_3 = arith.constant 0 : index
    %c0_4 = arith.constant 0 : index
    %4 = vector.load %arg5[%c0_3, %c0_4] : memref<128x256xbf16, #tpu.memory_space<vmem>>, vector<128x256xbf16>
    %5 = vector.extract_strided_slice %3 {offsets = [0, 0], sizes = [1, 256], strides = [1, 1]} : vector<2x256xf32> to vector<1x256xf32>
    %c0_5 = arith.constant 0 : index
    %c0_6 = arith.constant 0 : index
    %6 = vector.load %arg6[%c0_5, %c0_6] : memref<128x256xbf16, #tpu.memory_space<vmem>>, vector<128x256xbf16>
    %7 = vector.extract_strided_slice %3 {offsets = [1, 0], sizes = [1, 256], strides = [1, 1]} : vector<2x256xf32> to vector<1x256xf32>
    %c0_7 = arith.constant 0 : index
    %c0_8 = arith.constant 0 : index
    %c0_9 = arith.constant 0 : index
    %8 = vector.load %arg1[%c0_7, %c0_8, %c0_9] : memref<1x256x128xbf16, #tpu.memory_space<vmem>>, vector<1x256x128xbf16>
    %9 = vector.shape_cast %8 : vector<1x256x128xbf16> to vector<256x128xbf16>
    %10 = arith.extf %9 : vector<256x128xbf16> to vector<256x128xf32>
    %c0_10 = arith.constant 0 : index
    %c0_11 = arith.constant 0 : index
    %c0_12 = arith.constant 0 : index
    %11 = vector.load %arg2[%c0_10, %c0_11, %c0_12] : memref<1x128x128xbf16, #tpu.memory_space<vmem>>, vector<1x128x128xbf16>
    %12 = vector.shape_cast %11 : vector<1x128x128xbf16> to vector<128x128xbf16>
    %13 = arith.extf %12 : vector<128x128xbf16> to vector<128x128xf32>
    %cst = arith.constant dense<0.000000e+00> : vector<256xf32>
    %14 = vector.multi_reduction <add>, %10, %cst [1] : vector<256x128xf32> to vector<256xf32>
    %15 = vector.shape_cast %14 : vector<256xf32> to vector<256x1xf32>
    %cst_13 = arith.constant 1.280000e+02 : f32
    %16 = vector.broadcast %cst_13 : f32 to vector<256x1xf32>
    %17 = arith.divf %15, %16 : vector<256x1xf32>
    %18 = vector.broadcast %17 : vector<256x1xf32> to vector<256x128xf32>
    %19 = arith.subf %10, %18 : vector<256x128xf32>
    %20 = arith.mulf %19, %19 : vector<256x128xf32>
    %cst_14 = arith.constant dense<0.000000e+00> : vector<256xf32>
    %21 = vector.multi_reduction <add>, %20, %cst_14 [1] : vector<256x128xf32> to vector<256xf32>
    %22 = vector.shape_cast %21 : vector<256xf32> to vector<256x1xf32>
    %cst_15 = arith.constant 1.280000e+02 : f32
    %23 = vector.broadcast %cst_15 : f32 to vector<256x1xf32>
    %24 = arith.divf %22, %23 : vector<256x1xf32>
    %25 = vector.broadcast %17 : vector<256x1xf32> to vector<256x128xf32>
    %26 = arith.subf %10, %25 : vector<256x128xf32>
    %cst_16 = arith.constant 9.99999997E-7 : f32
    %27 = vector.broadcast %cst_16 : f32 to vector<256x1xf32>
    %28 = arith.addf %24, %27 : vector<256x1xf32>
    %29 = math.rsqrt %28 : vector<256x1xf32>
    %30 = vector.broadcast %29 : vector<256x1xf32> to vector<256x128xf32>
    %31 = arith.mulf %26, %30 : vector<256x128xf32>
    %32 = vector.broadcast %1 : vector<1x128xf32> to vector<256x128xf32>
    %33 = arith.mulf %31, %32 : vector<256x128xf32>
    %34 = vector.broadcast %2 : vector<1x128xf32> to vector<256x128xf32>
    %35 = arith.addf %33, %34 : vector<256x128xf32>
    %36 = arith.truncf %35 : vector<256x128xf32> to vector<256x128xbf16>
    %cst_17 = arith.constant dense<0.000000e+00> : vector<256x256xf32>
    %37 = tpu.matmul %36, %4, %cst_17 {dimension_numbers = #tpu.dot_dimension_numbers<[1], [0], [0], [1], [0, 0, 1, 1], [], []>} : vector<256x128xbf16>, vector<128x256xbf16>, vector<256x256xf32> -> vector<256x256xf32>
    %38 = vector.broadcast %5 : vector<1x256xf32> to vector<256x256xf32>
    %39 = arith.addf %37, %38 : vector<256x256xf32>
    %40 = arith.truncf %13 : vector<128x128xf32> to vector<128x128xbf16>
    %cst_18 = arith.constant dense<0.000000e+00> : vector<128x256xf32>
    %41 = tpu.matmul %40, %6, %cst_18 {dimension_numbers = #tpu.dot_dimension_numbers<[1], [0], [0], [1], [0, 0, 1, 1], [], []>} : vector<128x128xbf16>, vector<128x256xbf16>, vector<128x256xf32> -> vector<128x256xf32>
    %42 = vector.broadcast %7 : vector<1x256xf32> to vector<128x256xf32>
    %43 = arith.addf %41, %42 : vector<128x256xf32>
    %44 = arith.truncf %39 : vector<256x256xf32> to vector<256x256xbf16>
    %c0_19 = arith.constant 0 : index
    %c0_20 = arith.constant 0 : index
    %c0_21 = arith.constant 0 : index
    %45 = vector.load %arg7[%c0_19, %c0_20, %c0_21] : memref<1x256x256xbf16, #tpu.memory_space<vmem>>, vector<1x256x256xbf16>
    %46 = vector.shape_cast %45 : vector<1x256x256xbf16> to vector<256x256xbf16>
    %47 = vector.shape_cast %44 : vector<256x256xbf16> to vector<1x256x256xbf16>
    tpu.vector_store %arg7[%c0_19, %c0_20, %c0_21], %47 {strides = array<i32>} : memref<1x256x256xbf16, #tpu.memory_space<vmem>>, vector<1x256x256xbf16>,
    %48 = arith.truncf %43 : vector<128x256xf32> to vector<128x256xbf16>
    %c0_22 = arith.constant 0 : index
    %c0_23 = arith.constant 0 : index
    %c0_24 = arith.constant 0 : index
    %49 = vector.load %arg8[%c0_22, %c0_23, %c0_24] : memref<1x128x256xbf16, #tpu.memory_space<vmem>>, vector<1x128x256xbf16>
    %50 = vector.shape_cast %49 : vector<1x128x256xbf16> to vector<128x256xbf16>
    %51 = vector.shape_cast %48 : vector<128x256xbf16> to vector<1x128x256xbf16>
    tpu.vector_store %arg8[%c0_22, %c0_23, %c0_24], %51 {strides = array<i32>} : memref<1x128x256xbf16, #tpu.memory_space<vmem>>, vector<1x128x256xbf16>,
    return
  }
  func.func @transform_0(%arg0: i32) -> (i32, i32, i32) {
    %c0_i32 = arith.constant 0 : i32
    %c0_i32_0 = arith.constant 0 : i32
    %c0_i32_1 = arith.constant 0 : i32
    return %arg0, %c0_i32, %c0_i32_0 : i32, i32, i32
  }
  func.func @transform_1(%arg0: i32) -> (i32, i32, i32) {
    %c0_i32 = arith.constant 0 : i32
    %c0_i32_0 = arith.constant 0 : i32
    %c0_i32_1 = arith.constant 0 : i32
    return %arg0, %c0_i32, %c0_i32_0 : i32, i32, i32
  }
  func.func @transform_2(%arg0: i32) -> (i32, i32) {
    %c0_i32 = arith.constant 0 : i32
    %c0_i32_0 = arith.constant 0 : i32
    %c0_i32_1 = arith.constant 0 : i32
    return %c0_i32, %c0_i32_0 : i32, i32
  }
  func.func @transform_3(%arg0: i32) -> (i32, i32) {
    %c0_i32 = arith.constant 0 : i32
    %c0_i32_0 = arith.constant 0 : i32
    %c0_i32_1 = arith.constant 0 : i32
    return %c0_i32, %c0_i32_0 : i32, i32
  }
  func.func @transform_4(%arg0: i32) -> (i32, i32) {
    %c0_i32 = arith.constant 0 : i32
    %c0_i32_0 = arith.constant 0 : i32
    %c0_i32_1 = arith.constant 0 : i32
    return %c0_i32, %c0_i32_0 : i32, i32
  }
  func.func @transform_5(%arg0: i32) -> (i32, i32) {
    %c0_i32 = arith.constant 0 : i32
    %c0_i32_0 = arith.constant 0 : i32
    %c0_i32_1 = arith.constant 0 : i32
    return %c0_i32, %c0_i32_0 : i32, i32
  }
  func.func @transform_6(%arg0: i32) -> (i32, i32, i32) {
    %c0_i32 = arith.constant 0 : i32
    %c0_i32_0 = arith.constant 0 : i32
    %c0_i32_1 = arith.constant 0 : i32
    return %arg0, %c0_i32, %c0_i32_0 : i32, i32, i32
  }
  func.func @transform_7(%arg0: i32) -> (i32, i32, i32) {
    %c0_i32 = arith.constant 0 : i32
    %c0_i32_0 = arith.constant 0 : i32
    %c0_i32_1 = arith.constant 0 : i32
    return %arg0, %c0_i32, %c0_i32_0 : i32, i32, i32
  }
}

module attributes {stable_mosaic.version = 11 : i64} {
  func.func @kv_project_kernel(%arg0: i32, %arg1: memref<1x256x128xbf16, #tpu.memory_space<vmem>>, %arg2: memref<1x128x128xbf16, #tpu.memory_space<vmem>>, %arg3: memref<11x128xf32, #tpu.memory_space<vmem>>, %arg4: memref<2x256xf32, #tpu.memory_space<vmem>>, %arg5: memref<128x256xbf16, #tpu.memory_space<vmem>>, %arg6: memref<128x256xbf16, #tpu.memory_space<vmem>>, %arg7: memref<1x256x256xbf16, #tpu.memory_space<vmem>>, %arg8: memref<1x128x256xbf16, #tpu.memory_space<vmem>>) attributes {dimension_semantics = [#tpu.dimension_semantics<parallel>], iteration_bounds = array<i64: 2>, scalar_prefetch = 0 : i64, scratch_operands = 0 : i64, tpu.core_type = #tpu.core_type<tc>, window_params = [{transform_indices = @transform_0, window_bounds = array<i64: 1, 256, 128>}, {transform_indices = @transform_1, window_bounds = array<i64: 1, 128, 128>}, {pipeline_mode = #tpu.pipeline_mode<synchronous>, transform_indices = @transform_2, window_bounds = array<i64: 11, 128>}, {pipeline_mode = #tpu.pipeline_mode<synchronous>, transform_indices = @transform_3, window_bounds = array<i64: 2, 256>}, {pipeline_mode = #tpu.pipeline_mode<synchronous>, transform_indices = @transform_4, window_bounds = array<i64: 128, 256>}, {pipeline_mode = #tpu.pipeline_mode<synchronous>, transform_indices = @transform_5, window_bounds = array<i64: 128, 256>}, {transform_indices = @transform_6, window_bounds = array<i64: 1, 256, 256>}, {transform_indices = @transform_7, window_bounds = array<i64: 1, 128, 256>}]} {
    %c0 = arith.constant 0 : index
    %c0_0 = arith.constant 0 : index
    %0 = vector.load %arg3[%c0, %c0_0] : memref<11x128xf32, #tpu.memory_space<vmem>>, vector<11x128xf32>
    %1 = vector.extract_strided_slice %0 {offsets = [0, 0], sizes = [1, 128], strides = [1, 1]} : vector<11x128xf32> to vector<1x128xf32>
    %2 = vector.extract_strided_slice %0 {offsets = [1, 0], sizes = [1, 128], strides = [1, 1]} : vector<11x128xf32> to vector<1x128xf32>
    %c0_1 = arith.constant 0 : index
    %c0_2 = arith.constant 0 : index
    %3 = vector.load %arg4[%c0_1, %c0_2] : memref<2x256xf32, #tpu.memory_space<vmem>>, vector<2x256xf32>
    %c0_3 = arith.constant 0 : index
    %c0_4 = arith.constant 0 : index
    %4 = vector.load %arg5[%c0_3, %c0_4] : memref<128x256xbf16, #tpu.memory_space<vmem>>, vector<128x256xbf16>
    %5 = vector.extract_strided_slice %3 {offsets = [0, 0], sizes = [1, 256], strides = [1, 1]} : vector<2x256xf32> to vector<1x256xf32>
    %c0_5 = arith.constant 0 : index
    %c0_6 = arith.constant 0 : index
    %6 = vector.load %arg6[%c0_5, %c0_6] : memref<128x256xbf16, #tpu.memory_space<vmem>>, vector<128x256xbf16>
    %7 = vector.extract_strided_slice %3 {offsets = [1, 0], sizes = [1, 256], strides = [1, 1]} : vector<2x256xf32> to vector<1x256xf32>
    %c0_7 = arith.constant 0 : index
    %c0_8 = arith.constant 0 : index
    %c0_9 = arith.constant 0 : index
    %8 = vector.load %arg1[%c0_7, %c0_8, %c0_9] : memref<1x256x128xbf16, #tpu.memory_space<vmem>>, vector<1x256x128xbf16>
    %9 = vector.shape_cast %8 : vector<1x256x128xbf16> to vector<256x128xbf16>
    %10 = arith.extf %9 : vector<256x128xbf16> to vector<256x128xf32>
    %c0_10 = arith.constant 0 : index
    %c0_11 = arith.constant 0 : index
    %c0_12 = arith.constant 0 : index
    %11 = vector.load %arg2[%c0_10, %c0_11, %c0_12] : memref<1x128x128xbf16, #tpu.memory_space<vmem>>, vector<1x128x128xbf16>
    %12 = vector.shape_cast %11 : vector<1x128x128xbf16> to vector<128x128xbf16>
    %13 = arith.extf %12 : vector<128x128xbf16> to vector<128x128xf32>
    %cst = arith.constant dense<0.000000e+00> : vector<256xf32>
    %14 = vector.multi_reduction <add>, %10, %cst [1] : vector<256x128xf32> to vector<256xf32>
    %15 = vector.shape_cast %14 : vector<256xf32> to vector<256x1xf32>
    %cst_13 = arith.constant 1.280000e+02 : f32
    %16 = vector.broadcast %cst_13 : f32 to vector<256x1xf32>
    %17 = arith.divf %15, %16 : vector<256x1xf32>
    %18 = vector.broadcast %17 : vector<256x1xf32> to vector<256x128xf32>
    %19 = arith.subf %10, %18 : vector<256x128xf32>
    %20 = arith.mulf %19, %19 : vector<256x128xf32>
    %cst_14 = arith.constant dense<0.000000e+00> : vector<256xf32>
    %21 = vector.multi_reduction <add>, %20, %cst_14 [1] : vector<256x128xf32> to vector<256xf32>
    %22 = vector.shape_cast %21 : vector<256xf32> to vector<256x1xf32>
    %cst_15 = arith.constant 1.280000e+02 : f32
    %23 = vector.broadcast %cst_15 : f32 to vector<256x1xf32>
    %24 = arith.divf %22, %23 : vector<256x1xf32>
    %25 = vector.broadcast %17 : vector<256x1xf32> to vector<256x128xf32>
    %26 = arith.subf %10, %25 : vector<256x128xf32>
    %cst_16 = arith.constant 9.99999997E-7 : f32
    %27 = vector.broadcast %cst_16 : f32 to vector<256x1xf32>
    %28 = arith.addf %24, %27 : vector<256x1xf32>
    %29 = math.rsqrt %28 : vector<256x1xf32>
    %30 = vector.broadcast %29 : vector<256x1xf32> to vector<256x128xf32>
    %31 = arith.mulf %26, %30 : vector<256x128xf32>
    %32 = vector.broadcast %1 : vector<1x128xf32> to vector<256x128xf32>
    %33 = arith.mulf %31, %32 : vector<256x128xf32>
    %34 = vector.broadcast %2 : vector<1x128xf32> to vector<256x128xf32>
    %35 = arith.addf %33, %34 : vector<256x128xf32>
    %36 = arith.truncf %35 : vector<256x128xf32> to vector<256x128xbf16>
    %cst_17 = arith.constant dense<0.000000e+00> : vector<256x256xf32>
    %37 = tpu.matmul %36, %4, %cst_17 {dimension_numbers = #tpu.dot_dimension_numbers<[1], [0], [0], [1], [0, 0, 1, 1], [], []>} : vector<256x128xbf16>, vector<128x256xbf16>, vector<256x256xf32> -> vector<256x256xf32>
    %38 = vector.broadcast %5 : vector<1x256xf32> to vector<256x256xf32>
    %39 = arith.addf %37, %38 : vector<256x256xf32>
    %40 = arith.truncf %13 : vector<128x128xf32> to vector<128x128xbf16>
    %cst_18 = arith.constant dense<0.000000e+00> : vector<128x256xf32>
    %41 = tpu.matmul %40, %6, %cst_18 {dimension_numbers = #tpu.dot_dimension_numbers<[1], [0], [0], [1], [0, 0, 1, 1], [], []>} : vector<128x128xbf16>, vector<128x256xbf16>, vector<128x256xf32> -> vector<128x256xf32>
    %42 = vector.broadcast %7 : vector<1x256xf32> to vector<128x256xf32>
    %43 = arith.addf %41, %42 : vector<128x256xf32>
    %44 = arith.truncf %39 : vector<256x256xf32> to vector<256x256xbf16>
    %c0_19 = arith.constant 0 : index
    %c0_20 = arith.constant 0 : index
    %c0_21 = arith.constant 0 : index
    %45 = vector.load %arg7[%c0_19, %c0_20, %c0_21] : memref<1x256x256xbf16, #tpu.memory_space<vmem>>, vector<1x256x256xbf16>
    %46 = vector.shape_cast %45 : vector<1x256x256xbf16> to vector<256x256xbf16>
    %47 = vector.shape_cast %44 : vector<256x256xbf16> to vector<1x256x256xbf16>
    tpu.vector_store %arg7[%c0_19, %c0_20, %c0_21], %47 {strides = array<i32>} : memref<1x256x256xbf16, #tpu.memory_space<vmem>>, vector<1x256x256xbf16>,
    %48 = arith.truncf %43 : vector<128x256xf32> to vector<128x256xbf16>
    %c0_22 = arith.constant 0 : index
    %c0_23 = arith.constant 0 : index
    %c0_24 = arith.constant 0 : index
    %49 = vector.load %arg8[%c0_22, %c0_23, %c0_24] : memref<1x128x256xbf16, #tpu.memory_space<vmem>>, vector<1x128x256xbf16>
    %50 = vector.shape_cast %49 : vector<1x128x256xbf16> to vector<128x256xbf16>
    %51 = vector.shape_cast %48 : vector<128x256xbf16> to vector<1x128x256xbf16>
    tpu.vector_store %arg8[%c0_22, %c0_23, %c0_24], %51 {strides = array<i32>} : memref<1x128x256xbf16, #tpu.memory_space<vmem>>, vector<1x128x256xbf16>,
    return
  }
  func.func @transform_0(%arg0: i32) -> (i32, i32, i32) {
    %c0_i32 = arith.constant 0 : i32
    %c0_i32_0 = arith.constant 0 : i32
    %c0_i32_1 = arith.constant 0 : i32
    return %arg0, %c0_i32, %c0_i32_0 : i32, i32, i32
  }
  func.func @transform_1(%arg0: i32) -> (i32, i32, i32) {
    %c0_i32 = arith.constant 0 : i32
    %c0_i32_0 = arith.constant 0 : i32
    %c0_i32_1 = arith.constant 0 : i32
    return %arg0, %c0_i32, %c0_i32_0 : i32, i32, i32
  }
  func.func @transform_2(%arg0: i32) -> (i32, i32) {
    %c0_i32 = arith.constant 0 : i32
    %c0_i32_0 = arith.constant 0 : i32
    %c0_i32_1 = arith.constant 0 : i32
    return %c0_i32, %c0_i32_0 : i32, i32
  }
  func.func @transform_3(%arg0: i32) -> (i32, i32) {
    %c0_i32 = arith.constant 0 : i32
    %c0_i32_0 = arith.constant 0 : i32
    %c0_i32_1 = arith.constant 0 : i32
    return %c0_i32, %c0_i32_0 : i32, i32
  }
  func.func @transform_4(%arg0: i32) -> (i32, i32) {
    %c0_i32 = arith.constant 0 : i32
    %c0_i32_0 = arith.constant 0 : i32
    %c0_i32_1 = arith.constant 0 : i32
    return %c0_i32, %c0_i32_0 : i32, i32
  }
  func.func @transform_5(%arg0: i32) -> (i32, i32) {
    %c0_i32 = arith.constant 0 : i32
    %c0_i32_0 = arith.constant 0 : i32
    %c0_i32_1 = arith.constant 0 : i32
    return %c0_i32, %c0_i32_0 : i32, i32
  }
  func.func @transform_6(%arg0: i32) -> (i32, i32, i32) {
    %c0_i32 = arith.constant 0 : i32
    %c0_i32_0 = arith.constant 0 : i32
    %c0_i32_1 = arith.constant 0 : i32
    return %arg0, %c0_i32, %c0_i32_0 : i32, i32, i32
  }
  func.func @transform_7(%arg0: i32) -> (i32, i32, i32) {
    %c0_i32 = arith.constant 0 : i32
    %c0_i32_0 = arith.constant 0 : i32
    %c0_i32_1 = arith.constant 0 : i32
    return %arg0, %c0_i32, %c0_i32_0 : i32, i32, i32
  }
}

module attributes {stable_mosaic.version = 11 : i64} {
  func.func @kv_project_kernel(%arg0: i32, %arg1: memref<1x256x128xbf16, #tpu.memory_space<vmem>>, %arg2: memref<1x128x128xbf16, #tpu.memory_space<vmem>>, %arg3: memref<11x128xf32, #tpu.memory_space<vmem>>, %arg4: memref<2x256xf32, #tpu.memory_space<vmem>>, %arg5: memref<128x256xbf16, #tpu.memory_space<vmem>>, %arg6: memref<128x256xbf16, #tpu.memory_space<vmem>>, %arg7: memref<1x256x256xbf16, #tpu.memory_space<vmem>>, %arg8: memref<1x128x256xbf16, #tpu.memory_space<vmem>>) attributes {dimension_semantics = [#tpu.dimension_semantics<parallel>], iteration_bounds = array<i64: 2>, scalar_prefetch = 0 : i64, scratch_operands = 0 : i64, tpu.core_type = #tpu.core_type<tc>, window_params = [{transform_indices = @transform_0, window_bounds = array<i64: 1, 256, 128>}, {transform_indices = @transform_1, window_bounds = array<i64: 1, 128, 128>}, {pipeline_mode = #tpu.pipeline_mode<synchronous>, transform_indices = @transform_2, window_bounds = array<i64: 11, 128>}, {pipeline_mode = #tpu.pipeline_mode<synchronous>, transform_indices = @transform_3, window_bounds = array<i64: 2, 256>}, {pipeline_mode = #tpu.pipeline_mode<synchronous>, transform_indices = @transform_4, window_bounds = array<i64: 128, 256>}, {pipeline_mode = #tpu.pipeline_mode<synchronous>, transform_indices = @transform_5, window_bounds = array<i64: 128, 256>}, {transform_indices = @transform_6, window_bounds = array<i64: 1, 256, 256>}, {transform_indices = @transform_7, window_bounds = array<i64: 1, 128, 256>}]} {
    %c0 = arith.constant 0 : index
    %c0_0 = arith.constant 0 : index
    %0 = vector.load %arg3[%c0, %c0_0] : memref<11x128xf32, #tpu.memory_space<vmem>>, vector<11x128xf32>
    %1 = vector.extract_strided_slice %0 {offsets = [0, 0], sizes = [1, 128], strides = [1, 1]} : vector<11x128xf32> to vector<1x128xf32>
    %2 = vector.extract_strided_slice %0 {offsets = [1, 0], sizes = [1, 128], strides = [1, 1]} : vector<11x128xf32> to vector<1x128xf32>
    %c0_1 = arith.constant 0 : index
    %c0_2 = arith.constant 0 : index
    %3 = vector.load %arg4[%c0_1, %c0_2] : memref<2x256xf32, #tpu.memory_space<vmem>>, vector<2x256xf32>
    %c0_3 = arith.constant 0 : index
    %c0_4 = arith.constant 0 : index
    %4 = vector.load %arg5[%c0_3, %c0_4] : memref<128x256xbf16, #tpu.memory_space<vmem>>, vector<128x256xbf16>
    %5 = vector.extract_strided_slice %3 {offsets = [0, 0], sizes = [1, 256], strides = [1, 1]} : vector<2x256xf32> to vector<1x256xf32>
    %c0_5 = arith.constant 0 : index
    %c0_6 = arith.constant 0 : index
    %6 = vector.load %arg6[%c0_5, %c0_6] : memref<128x256xbf16, #tpu.memory_space<vmem>>, vector<128x256xbf16>
    %7 = vector.extract_strided_slice %3 {offsets = [1, 0], sizes = [1, 256], strides = [1, 1]} : vector<2x256xf32> to vector<1x256xf32>
    %c0_7 = arith.constant 0 : index
    %c0_8 = arith.constant 0 : index
    %c0_9 = arith.constant 0 : index
    %8 = vector.load %arg1[%c0_7, %c0_8, %c0_9] : memref<1x256x128xbf16, #tpu.memory_space<vmem>>, vector<1x256x128xbf16>
    %9 = vector.shape_cast %8 : vector<1x256x128xbf16> to vector<256x128xbf16>
    %10 = arith.extf %9 : vector<256x128xbf16> to vector<256x128xf32>
    %c0_10 = arith.constant 0 : index
    %c0_11 = arith.constant 0 : index
    %c0_12 = arith.constant 0 : index
    %11 = vector.load %arg2[%c0_10, %c0_11, %c0_12] : memref<1x128x128xbf16, #tpu.memory_space<vmem>>, vector<1x128x128xbf16>
    %12 = vector.shape_cast %11 : vector<1x128x128xbf16> to vector<128x128xbf16>
    %13 = arith.extf %12 : vector<128x128xbf16> to vector<128x128xf32>
    %cst = arith.constant dense<0.000000e+00> : vector<256xf32>
    %14 = vector.multi_reduction <add>, %10, %cst [1] : vector<256x128xf32> to vector<256xf32>
    %15 = vector.shape_cast %14 : vector<256xf32> to vector<256x1xf32>
    %cst_13 = arith.constant 1.280000e+02 : f32
    %16 = vector.broadcast %cst_13 : f32 to vector<256x1xf32>
    %17 = arith.divf %15, %16 : vector<256x1xf32>
    %18 = vector.broadcast %17 : vector<256x1xf32> to vector<256x128xf32>
    %19 = arith.subf %10, %18 : vector<256x128xf32>
    %20 = arith.mulf %19, %19 : vector<256x128xf32>
    %cst_14 = arith.constant dense<0.000000e+00> : vector<256xf32>
    %21 = vector.multi_reduction <add>, %20, %cst_14 [1] : vector<256x128xf32> to vector<256xf32>
    %22 = vector.shape_cast %21 : vector<256xf32> to vector<256x1xf32>
    %cst_15 = arith.constant 1.280000e+02 : f32
    %23 = vector.broadcast %cst_15 : f32 to vector<256x1xf32>
    %24 = arith.divf %22, %23 : vector<256x1xf32>
    %25 = vector.broadcast %17 : vector<256x1xf32> to vector<256x128xf32>
    %26 = arith.subf %10, %25 : vector<256x128xf32>
    %cst_16 = arith.constant 9.99999997E-7 : f32
    %27 = vector.broadcast %cst_16 : f32 to vector<256x1xf32>
    %28 = arith.addf %24, %27 : vector<256x1xf32>
    %29 = math.rsqrt %28 : vector<256x1xf32>
    %30 = vector.broadcast %29 : vector<256x1xf32> to vector<256x128xf32>
    %31 = arith.mulf %26, %30 : vector<256x128xf32>
    %32 = vector.broadcast %1 : vector<1x128xf32> to vector<256x128xf32>
    %33 = arith.mulf %31, %32 : vector<256x128xf32>
    %34 = vector.broadcast %2 : vector<1x128xf32> to vector<256x128xf32>
    %35 = arith.addf %33, %34 : vector<256x128xf32>
    %36 = arith.truncf %35 : vector<256x128xf32> to vector<256x128xbf16>
    %cst_17 = arith.constant dense<0.000000e+00> : vector<256x256xf32>
    %37 = tpu.matmul %36, %4, %cst_17 {dimension_numbers = #tpu.dot_dimension_numbers<[1], [0], [0], [1], [0, 0, 1, 1], [], []>} : vector<256x128xbf16>, vector<128x256xbf16>, vector<256x256xf32> -> vector<256x256xf32>
    %38 = vector.broadcast %5 : vector<1x256xf32> to vector<256x256xf32>
    %39 = arith.addf %37, %38 : vector<256x256xf32>
    %40 = arith.truncf %13 : vector<128x128xf32> to vector<128x128xbf16>
    %cst_18 = arith.constant dense<0.000000e+00> : vector<128x256xf32>
    %41 = tpu.matmul %40, %6, %cst_18 {dimension_numbers = #tpu.dot_dimension_numbers<[1], [0], [0], [1], [0, 0, 1, 1], [], []>} : vector<128x128xbf16>, vector<128x256xbf16>, vector<128x256xf32> -> vector<128x256xf32>
    %42 = vector.broadcast %7 : vector<1x256xf32> to vector<128x256xf32>
    %43 = arith.addf %41, %42 : vector<128x256xf32>
    %44 = arith.truncf %39 : vector<256x256xf32> to vector<256x256xbf16>
    %c0_19 = arith.constant 0 : index
    %c0_20 = arith.constant 0 : index
    %c0_21 = arith.constant 0 : index
    %45 = vector.load %arg7[%c0_19, %c0_20, %c0_21] : memref<1x256x256xbf16, #tpu.memory_space<vmem>>, vector<1x256x256xbf16>
    %46 = vector.shape_cast %45 : vector<1x256x256xbf16> to vector<256x256xbf16>
    %47 = vector.shape_cast %44 : vector<256x256xbf16> to vector<1x256x256xbf16>
    tpu.vector_store %arg7[%c0_19, %c0_20, %c0_21], %47 {strides = array<i32>} : memref<1x256x256xbf16, #tpu.memory_space<vmem>>, vector<1x256x256xbf16>,
    %48 = arith.truncf %43 : vector<128x256xf32> to vector<128x256xbf16>
    %c0_22 = arith.constant 0 : index
    %c0_23 = arith.constant 0 : index
    %c0_24 = arith.constant 0 : index
    %49 = vector.load %arg8[%c0_22, %c0_23, %c0_24] : memref<1x128x256xbf16, #tpu.memory_space<vmem>>, vector<1x128x256xbf16>
    %50 = vector.shape_cast %49 : vector<1x128x256xbf16> to vector<128x256xbf16>
    %51 = vector.shape_cast %48 : vector<128x256xbf16> to vector<1x128x256xbf16>
    tpu.vector_store %arg8[%c0_22, %c0_23, %c0_24], %51 {strides = array<i32>} : memref<1x128x256xbf16, #tpu.memory_space<vmem>>, vector<1x128x256xbf16>,
    return
  }
  func.func @transform_0(%arg0: i32) -> (i32, i32, i32) {
    %c0_i32 = arith.constant 0 : i32
    %c0_i32_0 = arith.constant 0 : i32
    %c0_i32_1 = arith.constant 0 : i32
    return %arg0, %c0_i32, %c0_i32_0 : i32, i32, i32
  }
  func.func @transform_1(%arg0: i32) -> (i32, i32, i32) {
    %c0_i32 = arith.constant 0 : i32
    %c0_i32_0 = arith.constant 0 : i32
    %c0_i32_1 = arith.constant 0 : i32
    return %arg0, %c0_i32, %c0_i32_0 : i32, i32, i32
  }
  func.func @transform_2(%arg0: i32) -> (i32, i32) {
    %c0_i32 = arith.constant 0 : i32
    %c0_i32_0 = arith.constant 0 : i32
    %c0_i32_1 = arith.constant 0 : i32
    return %c0_i32, %c0_i32_0 : i32, i32
  }
  func.func @transform_3(%arg0: i32) -> (i32, i32) {
    %c0_i32 = arith.constant 0 : i32
    %c0_i32_0 = arith.constant 0 : i32
    %c0_i32_1 = arith.constant 0 : i32
    return %c0_i32, %c0_i32_0 : i32, i32
  }
  func.func @transform_4(%arg0: i32) -> (i32, i32) {
    %c0_i32 = arith.constant 0 : i32
    %c0_i32_0 = arith.constant 0 : i32
    %c0_i32_1 = arith.constant 0 : i32
    return %c0_i32, %c0_i32_0 : i32, i32
  }
  func.func @transform_5(%arg0: i32) -> (i32, i32) {
    %c0_i32 = arith.constant 0 : i32
    %c0_i32_0 = arith.constant 0 : i32
    %c0_i32_1 = arith.constant 0 : i32
    return %c0_i32, %c0_i32_0 : i32, i32
  }
  func.func @transform_6(%arg0: i32) -> (i32, i32, i32) {
    %c0_i32 = arith.constant 0 : i32
    %c0_i32_0 = arith.constant 0 : i32
    %c0_i32_1 = arith.constant 0 : i32
    return %arg0, %c0_i32, %c0_i32_0 : i32, i32, i32
  }
  func.func @transform_7(%arg0: i32) -> (i32, i32, i32) {
    %c0_i32 = arith.constant 0 : i32
    %c0_i32_0 = arith.constant 0 : i32
    %c0_i32_1 = arith.constant 0 : i32
    return %arg0, %c0_i32, %c0_i32_0 : i32, i32, i32
  }
}

module attributes {stable_mosaic.version = 11 : i64} {
  func.func @kv_project_kernel(%arg0: i32, %arg1: memref<1x256x128xbf16, #tpu.memory_space<vmem>>, %arg2: memref<1x128x128xbf16, #tpu.memory_space<vmem>>, %arg3: memref<11x128xf32, #tpu.memory_space<vmem>>, %arg4: memref<2x256xf32, #tpu.memory_space<vmem>>, %arg5: memref<128x256xbf16, #tpu.memory_space<vmem>>, %arg6: memref<128x256xbf16, #tpu.memory_space<vmem>>, %arg7: memref<1x256x256xbf16, #tpu.memory_space<vmem>>, %arg8: memref<1x128x256xbf16, #tpu.memory_space<vmem>>) attributes {dimension_semantics = [#tpu.dimension_semantics<parallel>], iteration_bounds = array<i64: 2>, scalar_prefetch = 0 : i64, scratch_operands = 0 : i64, tpu.core_type = #tpu.core_type<tc>, window_params = [{transform_indices = @transform_0, window_bounds = array<i64: 1, 256, 128>}, {transform_indices = @transform_1, window_bounds = array<i64: 1, 128, 128>}, {pipeline_mode = #tpu.pipeline_mode<synchronous>, transform_indices = @transform_2, window_bounds = array<i64: 11, 128>}, {pipeline_mode = #tpu.pipeline_mode<synchronous>, transform_indices = @transform_3, window_bounds = array<i64: 2, 256>}, {pipeline_mode = #tpu.pipeline_mode<synchronous>, transform_indices = @transform_4, window_bounds = array<i64: 128, 256>}, {pipeline_mode = #tpu.pipeline_mode<synchronous>, transform_indices = @transform_5, window_bounds = array<i64: 128, 256>}, {transform_indices = @transform_6, window_bounds = array<i64: 1, 256, 256>}, {transform_indices = @transform_7, window_bounds = array<i64: 1, 128, 256>}]} {
    %c0 = arith.constant 0 : index
    %c0_0 = arith.constant 0 : index
    %0 = vector.load %arg3[%c0, %c0_0] : memref<11x128xf32, #tpu.memory_space<vmem>>, vector<11x128xf32>
    %1 = vector.extract_strided_slice %0 {offsets = [0, 0], sizes = [1, 128], strides = [1, 1]} : vector<11x128xf32> to vector<1x128xf32>
    %2 = vector.extract_strided_slice %0 {offsets = [1, 0], sizes = [1, 128], strides = [1, 1]} : vector<11x128xf32> to vector<1x128xf32>
    %c0_1 = arith.constant 0 : index
    %c0_2 = arith.constant 0 : index
    %3 = vector.load %arg4[%c0_1, %c0_2] : memref<2x256xf32, #tpu.memory_space<vmem>>, vector<2x256xf32>
    %c0_3 = arith.constant 0 : index
    %c0_4 = arith.constant 0 : index
    %4 = vector.load %arg5[%c0_3, %c0_4] : memref<128x256xbf16, #tpu.memory_space<vmem>>, vector<128x256xbf16>
    %5 = vector.extract_strided_slice %3 {offsets = [0, 0], sizes = [1, 256], strides = [1, 1]} : vector<2x256xf32> to vector<1x256xf32>
    %c0_5 = arith.constant 0 : index
    %c0_6 = arith.constant 0 : index
    %6 = vector.load %arg6[%c0_5, %c0_6] : memref<128x256xbf16, #tpu.memory_space<vmem>>, vector<128x256xbf16>
    %7 = vector.extract_strided_slice %3 {offsets = [1, 0], sizes = [1, 256], strides = [1, 1]} : vector<2x256xf32> to vector<1x256xf32>
    %c0_7 = arith.constant 0 : index
    %c0_8 = arith.constant 0 : index
    %c0_9 = arith.constant 0 : index
    %8 = vector.load %arg1[%c0_7, %c0_8, %c0_9] : memref<1x256x128xbf16, #tpu.memory_space<vmem>>, vector<1x256x128xbf16>
    %9 = vector.shape_cast %8 : vector<1x256x128xbf16> to vector<256x128xbf16>
    %10 = arith.extf %9 : vector<256x128xbf16> to vector<256x128xf32>
    %c0_10 = arith.constant 0 : index
    %c0_11 = arith.constant 0 : index
    %c0_12 = arith.constant 0 : index
    %11 = vector.load %arg2[%c0_10, %c0_11, %c0_12] : memref<1x128x128xbf16, #tpu.memory_space<vmem>>, vector<1x128x128xbf16>
    %12 = vector.shape_cast %11 : vector<1x128x128xbf16> to vector<128x128xbf16>
    %13 = arith.extf %12 : vector<128x128xbf16> to vector<128x128xf32>
    %cst = arith.constant dense<0.000000e+00> : vector<256xf32>
    %14 = vector.multi_reduction <add>, %10, %cst [1] : vector<256x128xf32> to vector<256xf32>
    %15 = vector.shape_cast %14 : vector<256xf32> to vector<256x1xf32>
    %cst_13 = arith.constant 1.280000e+02 : f32
    %16 = vector.broadcast %cst_13 : f32 to vector<256x1xf32>
    %17 = arith.divf %15, %16 : vector<256x1xf32>
    %18 = vector.broadcast %17 : vector<256x1xf32> to vector<256x128xf32>
    %19 = arith.subf %10, %18 : vector<256x128xf32>
    %20 = arith.mulf %19, %19 : vector<256x128xf32>
    %cst_14 = arith.constant dense<0.000000e+00> : vector<256xf32>
    %21 = vector.multi_reduction <add>, %20, %cst_14 [1] : vector<256x128xf32> to vector<256xf32>
    %22 = vector.shape_cast %21 : vector<256xf32> to vector<256x1xf32>
    %cst_15 = arith.constant 1.280000e+02 : f32
    %23 = vector.broadcast %cst_15 : f32 to vector<256x1xf32>
    %24 = arith.divf %22, %23 : vector<256x1xf32>
    %25 = vector.broadcast %17 : vector<256x1xf32> to vector<256x128xf32>
    %26 = arith.subf %10, %25 : vector<256x128xf32>
    %cst_16 = arith.constant 9.99999997E-7 : f32
    %27 = vector.broadcast %cst_16 : f32 to vector<256x1xf32>
    %28 = arith.addf %24, %27 : vector<256x1xf32>
    %29 = math.rsqrt %28 : vector<256x1xf32>
    %30 = vector.broadcast %29 : vector<256x1xf32> to vector<256x128xf32>
    %31 = arith.mulf %26, %30 : vector<256x128xf32>
    %32 = vector.broadcast %1 : vector<1x128xf32> to vector<256x128xf32>
    %33 = arith.mulf %31, %32 : vector<256x128xf32>
    %34 = vector.broadcast %2 : vector<1x128xf32> to vector<256x128xf32>
    %35 = arith.addf %33, %34 : vector<256x128xf32>
    %36 = arith.truncf %35 : vector<256x128xf32> to vector<256x128xbf16>
    %cst_17 = arith.constant dense<0.000000e+00> : vector<256x256xf32>
    %37 = tpu.matmul %36, %4, %cst_17 {dimension_numbers = #tpu.dot_dimension_numbers<[1], [0], [0], [1], [0, 0, 1, 1], [], []>} : vector<256x128xbf16>, vector<128x256xbf16>, vector<256x256xf32> -> vector<256x256xf32>
    %38 = vector.broadcast %5 : vector<1x256xf32> to vector<256x256xf32>
    %39 = arith.addf %37, %38 : vector<256x256xf32>
    %40 = arith.truncf %13 : vector<128x128xf32> to vector<128x128xbf16>
    %cst_18 = arith.constant dense<0.000000e+00> : vector<128x256xf32>
    %41 = tpu.matmul %40, %6, %cst_18 {dimension_numbers = #tpu.dot_dimension_numbers<[1], [0], [0], [1], [0, 0, 1, 1], [], []>} : vector<128x128xbf16>, vector<128x256xbf16>, vector<128x256xf32> -> vector<128x256xf32>
    %42 = vector.broadcast %7 : vector<1x256xf32> to vector<128x256xf32>
    %43 = arith.addf %41, %42 : vector<128x256xf32>
    %44 = arith.truncf %39 : vector<256x256xf32> to vector<256x256xbf16>
    %c0_19 = arith.constant 0 : index
    %c0_20 = arith.constant 0 : index
    %c0_21 = arith.constant 0 : index
    %45 = vector.load %arg7[%c0_19, %c0_20, %c0_21] : memref<1x256x256xbf16, #tpu.memory_space<vmem>>, vector<1x256x256xbf16>
    %46 = vector.shape_cast %45 : vector<1x256x256xbf16> to vector<256x256xbf16>
    %47 = vector.shape_cast %44 : vector<256x256xbf16> to vector<1x256x256xbf16>
    tpu.vector_store %arg7[%c0_19, %c0_20, %c0_21], %47 {strides = array<i32>} : memref<1x256x256xbf16, #tpu.memory_space<vmem>>, vector<1x256x256xbf16>,
    %48 = arith.truncf %43 : vector<128x256xf32> to vector<128x256xbf16>
    %c0_22 = arith.constant 0 : index
    %c0_23 = arith.constant 0 : index
    %c0_24 = arith.constant 0 : index
    %49 = vector.load %arg8[%c0_22, %c0_23, %c0_24] : memref<1x128x256xbf16, #tpu.memory_space<vmem>>, vector<1x128x256xbf16>
    %50 = vector.shape_cast %49 : vector<1x128x256xbf16> to vector<128x256xbf16>
    %51 = vector.shape_cast %48 : vector<128x256xbf16> to vector<1x128x256xbf16>
    tpu.vector_store %arg8[%c0_22, %c0_23, %c0_24], %51 {strides = array<i32>} : memref<1x128x256xbf16, #tpu.memory_space<vmem>>, vector<1x128x256xbf16>,
    return
  }
  func.func @transform_0(%arg0: i32) -> (i32, i32, i32) {
    %c0_i32 = arith.constant 0 : i32
    %c0_i32_0 = arith.constant 0 : i32
    %c0_i32_1 = arith.constant 0 : i32
    return %arg0, %c0_i32, %c0_i32_0 : i32, i32, i32
  }
  func.func @transform_1(%arg0: i32) -> (i32, i32, i32) {
    %c0_i32 = arith.constant 0 : i32
    %c0_i32_0 = arith.constant 0 : i32
    %c0_i32_1 = arith.constant 0 : i32
    return %arg0, %c0_i32, %c0_i32_0 : i32, i32, i32
  }
  func.func @transform_2(%arg0: i32) -> (i32, i32) {
    %c0_i32 = arith.constant 0 : i32
    %c0_i32_0 = arith.constant 0 : i32
    %c0_i32_1 = arith.constant 0 : i32
    return %c0_i32, %c0_i32_0 : i32, i32
  }
  func.func @transform_3(%arg0: i32) -> (i32, i32) {
    %c0_i32 = arith.constant 0 : i32
    %c0_i32_0 = arith.constant 0 : i32
    %c0_i32_1 = arith.constant 0 : i32
    return %c0_i32, %c0_i32_0 : i32, i32
  }
  func.func @transform_4(%arg0: i32) -> (i32, i32) {
    %c0_i32 = arith.constant 0 : i32
    %c0_i32_0 = arith.constant 0 : i32
    %c0_i32_1 = arith.constant 0 : i32
    return %c0_i32, %c0_i32_0 : i32, i32
  }
  func.func @transform_5(%arg0: i32) -> (i32, i32) {
    %c0_i32 = arith.constant 0 : i32
    %c0_i32_0 = arith.constant 0 : i32
    %c0_i32_1 = arith.constant 0 : i32
    return %c0_i32, %c0_i32_0 : i32, i32
  }
  func.func @transform_6(%arg0: i32) -> (i32, i32, i32) {
    %c0_i32 = arith.constant 0 : i32
    %c0_i32_0 = arith.constant 0 : i32
    %c0_i32_1 = arith.constant 0 : i32
    return %arg0, %c0_i32, %c0_i32_0 : i32, i32, i32
  }
  func.func @transform_7(%arg0: i32) -> (i32, i32, i32) {
    %c0_i32 = arith.constant 0 : i32
    %c0_i32_0 = arith.constant 0 : i32
    %c0_i32_1 = arith.constant 0 : i32
    return %arg0, %c0_i32, %c0_i32_0 : i32, i32, i32
  }
}

</mosaic_0001>

<bundles_post_ra>
// kernel: tpu_custom_call.1
= control target key start
LH: loop header
LB: loop body
LE: loop exit
PB: predicated region body
PF: predicated region fallthrough
CT: control target
= control target key end

     0   :  { %s3835_s0 = inlined_call_operand.hbm [shape: bf16[2,256,128], index: 0, kind: input, shape index: {}]   ;;  %s3836_s1 = inlined_call_operand.hbm [shape: bf16[2,128,128], index: 1, kind: input, shape index: {}]   ;;  %s3837_s2 = inlined_call_operand.hbm [shape: f32[11,128], index: 2, kind: input, shape index: {}]   ;;  %s3838_s3 = inlined_call_operand.vmem [shape: f32[2,256], index: 3, kind: input, shape index: {}]   ;;  %s3839_s4 = inlined_call_operand.hbm [shape: bf16[128,256], index: 4, kind: input, shape index: {}]   ;;  %s3840_s5 = inlined_call_operand.hbm [shape: bf16[128,256], index: 5, kind: input, shape index: {}]   ;;  %s3841_s6 = inlined_call_operand.hbm [shape: bf16[2,256,256], index: 6, kind: output, shape index: {0}]   ;;  %s3842_s7 = inlined_call_operand.hbm [shape: bf16[2,128,256], index: 7, kind: output, shape index: {1}]  }
   0x1   :  { %3847 = sst [smem:[#allocation21_spill]] %s3835_s0 }
   0x2   :  { %3848 = sst [smem:[#allocation22_spill]] %s3837_s2 }
   0x3   :  { %3849 = sst [smem:[#allocation23_spill]] %s3839_s4 }
   0x4   :  { %3850 = sst [smem:[#allocation24_spill]] %s3840_s5 }
   0x5   :  { %13 = vsyncpa [#allocation3], 0 }
   0x6   :  { %15 = vsyncpa [#allocation3 + $0x1], 0 }
   0x7   :  { %16 = vsyncpa [#allocation6], 0 }
   0x8   :  { %18 = vsyncpa [#allocation6 + $0x1], 0 }
   0x9   :  { %19 = vsyncpa [#allocation9], 0 }
   0xa   :  { %20 = vsyncpa [#allocation4], 0 }
   0xb   :  { %22 = vsyncpa [#allocation4 + $0x1], 0 }
   0xc   :  { %23 = vsyncpa [#allocation13], 0 }
   0xd   :  { %25 = vsyncpa [#allocation13 + $0x1], 0  ;;  %s2812_s24 = smov 0   ;;  %s2814_s25 = smov 0  }
   0xe   :  { %s2816_s26 = smov 0   ;;  %s2818_s27 = smov 0  }
   0xf LB: > { %s2833_s28 = sadd.s32 4294967295, %s2756_s27   ;;  %s2025_s29 = sadd.s32 4294967294, %s2756_s27   ;;  %s2756_s27 = sphi %s2818_s27, %s3876_s27   ;;  %s2752_s26 = sphi %s2816_s26, %s3875_s26   ;;  %s2748_s25 = sphi %s2814_s25, %s3874_s25   ;;  %s2744_s24 = sphi %s2812_s24, %s3873_s24  }
  0x10   : > { %p51_p0 = scmp.ne.s32.totalorder %s2748_s25, %s2744_s24  ;;  %p3843_p1 = scmp.eq.s32.totalorder %s2833_s28, 0 }
  0x11   : > { %p191_p3 = scmp.eq.s32.totalorder %s2025_s29, 1  ;;  %p2026_p5 = scmp.ge.s32.totalorder %s2756_s27, 1 }
  0x12   : > { %p2842_p4 = por %p3843_p1, %p51_p0  ;;  %p224_p7 = scmp.lt.s32.totalorder %s2756_s27, 3 }
  0x13   : > { %p2847_p6 = por %p191_p3, %p51_p0  ;;  %s2758_s10 = smov [#allocation7]  }
  0x14   : > { %s3851_s30 = scalar_select %p2842_p4, 1, 0 }
  0x15   : > { %s3852_s8 = scalar_select %p2847_p6, 1, 0 }
  0x16   : > { %p2852_p8 = pnand %p2026_p5, %p224_p7  ;;  %s236_s11 = sshll.u32 %s2758_s10, 4  ;;  %s2856_s11 = int_to_ptr.vmem [resolvable:$true] %s236_s11 }
  0x17   : > { %3853 = sst [smem:[#allocation20_spill]] %s3852_s8  ;;  %s2759_s13 = smov [#allocation8]  }
  0x18   : > { %s3854_s9 = scalar_select %p2852_p8, 1, 0 }
  0x19   : > { %p2308_p9 = pneg %p2852_p8  ;;  %s252_s14 = sshll.u32 %s2759_s13, 4  ;;  %s2867_s14 = int_to_ptr.vmem [resolvable:$true] %s252_s14 }
  0x1a   : > { %s2760_s15 = smov [#allocation10]   ;;  %s3856_s2 = sld [smem:[#allocation22_spill]] }
  0x1b   : > { %p2863_p11 = pnand %p2308_p9, %p3843_p1  ;;  %s2869_s16 = sshll.u32 %s2760_s15, 4  ;;  %s266_s16 = int_to_ptr.vmem [resolvable:$true] %s2869_s16 }
  0x1d   : > { %p2879_p13 = pneg %p2863_p11 }
  0x20   : > { %s2502_s19 = scalar_lea.hbm %s3856_s2, 256 }
  0x21   : > { %p2503_p12 = scmp.ne.s32.totalorder %s3856_s2, %s2502_s19  ;;  %p2509_p5 = scmp.lt.u32.totalorder %s2502_s19, %s3856_s2 }
  0x23   : > { %p2505_p0 = pnand %p2879_p13, %p2503_p12 }
  0x25   : > { %p2506_p3 = pneg %p2505_p0 }
  0x27   : > { %p2511_p7 = pnand %p2509_p5, %p2506_p3 }
  0x29   : > { %2514 = shalt.err (!%p2511_p7)
}
  0x2a   : > { %s2515_s10 = scalar_lea.vmem %s2856_s11, 256  ;;  %p2523_p2 = scmp.lt.s32.totalorder %s2856_s11, %s2856_s11 }
  0x2b   : > { %p2516_p9 = scmp.ne.s32.totalorder %s2856_s11, %s2515_s10  ;;  %p2524_p6 = scmp.lt.s32.totalorder %s2515_s10, %s2515_s10 }
  0x2d   : > { %p2518_p10 = pnand %p2516_p9, %p2879_p13  ;;  %p2525_p12 = por %p2524_p6, %p2523_p2 }
  0x2f   : > { %p2519_p1 = pneg %p2518_p10 }
  0x31   : > { %p2526_p0 = pnand %p2525_p12, %p2519_p1 }
  0x33   : > { %2529 = shalt.err (!%p2526_p0)
}
  0x34   : > { %s2761_s13 = smov 128   ;;  %s2762_s15 = smov 8  }
  0x35   : > { %2311 = dma.hbm_to_vmem [thread:$0]  (!%p2863_p11), %s3856_s2, 256, %s2856_s11, [#allocation6], %s2761_s13, %s2761_s13, %s2762_s15  }
  0x36   : > { %s3858_s4 = sld [smem:[#allocation23_spill]] }
  0x3c   : > { %s2530_s21 = scalar_lea.hbm %s3858_s4, 2048 }
  0x3d   : > { %p2531_p1 = scmp.ne.s32.totalorder %s3858_s4, %s2530_s21  ;;  %p2537_p10 = scmp.lt.u32.totalorder %s2530_s21, %s3858_s4 }
  0x3f   : > { %p2533_p2 = pnand %p2531_p1, %p2879_p13 }
  0x41   : > { %p2534_p6 = pneg %p2533_p2 }
  0x43   : > { %p2539_p3 = pnand %p2537_p10, %p2534_p6 }
  0x45   : > { %2542 = shalt.err (!%p2539_p3)
}
  0x46   : > { %s2543_s11 = scalar_lea.vmem %s2867_s14, 2048  ;;  %p2551_p12 = scmp.lt.s32.totalorder %s2867_s14, %s2867_s14 }
  0x47   : > { %p2544_p5 = scmp.ne.s32.totalorder %s2867_s14, %s2543_s11  ;;  %p2552_p0 = scmp.lt.s32.totalorder %s2543_s11, %s2543_s11 }
  0x49   : > { %p2546_p7 = pnand %p2544_p5, %p2879_p13  ;;  %p2553_p1 = por %p2552_p0, %p2551_p12 }
  0x4b   : > { %p2547_p9 = pneg %p2546_p7 }
  0x4d   : > { %p2554_p2 = pnand %p2553_p1, %p2547_p9 }
  0x4f   : > { %2557 = shalt.err (!%p2554_p2)
}
  0x50   : > { %2314 = dma.hbm_to_vmem [thread:$0]  (!%p2863_p11), %s3858_s4, 2048, %s2867_s14, [#allocation9], %s2761_s13, %s2761_s13, %s2762_s15  }
  0x51   : > { %s3859_s5 = sld [smem:[#allocation24_spill]] }
  0x57   : > { %s2558_s20 = scalar_lea.hbm %s3859_s5, 2048 }
  0x58   : > { %p2559_p6 = scmp.ne.s32.totalorder %s3859_s5, %s2558_s20  ;;  %p2565_p5 = scmp.lt.u32.totalorder %s2558_s20, %s3859_s5 }
  0x5a   : > { %p2561_p10 = pnand %p2559_p6, %p2879_p13 }
  0x5c   : > { %p2562_p3 = pneg %p2561_p10 }
  0x5e   : > { %p2567_p7 = pnand %p2565_p5, %p2562_p3 }
  0x60   : > { %2570 = shalt.err (!%p2567_p7)
}
  0x61   : > { %s2571_s11 = scalar_lea.vmem %s266_s16, 2048  ;;  %p2579_p1 = scmp.lt.s32.totalorder %s266_s16, %s266_s16 }
  0x62   : > { %p2572_p9 = scmp.ne.s32.totalorder %s266_s16, %s2571_s11  ;;  %p2580_p2 = scmp.lt.s32.totalorder %s2571_s11, %s2571_s11 }
  0x64   : > { %p2574_p12 = pnand %p2572_p9, %p2879_p13  ;;  %p2581_p4 = por %p2580_p2, %p2579_p1 }
  0x66   : > { %p2575_p0 = pneg %p2574_p12 }
  0x68   : > { %p2582_p8 = pnand %p2581_p4, %p2575_p0 }
  0x6a   : > { %2585 = shalt.err (!%p2582_p8)
}
  0x6b   : > { %2317 = dma.hbm_to_vmem [thread:$0]  (!%p2863_p11), %s3859_s5, 2048, %s266_s16, [#allocation9], %s2761_s13, %s2761_s13, %s2762_s15  }
  0x6c   : > { %s2952_s22 = sadd.s32 1, %s2756_s27   ;;  %s38_s17 = sadd.s32 1, %s2752_s26 }
  0x6d   : > { %s35_s12 = ssub.s32 %s2756_s27, %s2952_s22  ;;  %p45_p8 = scmp.ne.s32.totalorder %s2752_s26, %s2748_s25 }
  0x6e   : > { %p36_p4 = scmp.eq.s32.totalorder %s35_s12, 0  ;;  %p46_p13 = scmp.eq.s32.totalorder %s2756_s27, 0 }
  0x6f   : > { %p2335_p6 = scmp.lt.s32.totalorder %s2756_s27, 2  ;;  %p3860_p3 = scmp.eq.s32.totalorder %s2833_s28, 1 }
  0x70   : > { %s2962_s18 = scalar_select %p36_p4, %s2752_s26, %s38_s17  }
  0x71   : > { %p47_p10 = por %p46_p13, %p45_p8  ;;  %p2966_p5 = por %p3860_p3, %p45_p8 }
  0x72   : > { %s2971_s20 = sand.u32 1, %s2752_s26   ;;  %s2141_s16 = sshll.u32 %s2756_s27, 11 }
  0x73   : > { %s2031_s13 = sshll.u32 %s2971_s20, 7  ;;  %s3862_s0 = sld [smem:[#allocation21_spill]] }
  0x74   : > { %s283_s29 = scalar_lea.vmem [#allocation2], %s2031_s13  ;;  %p2980_p11 = pnand %p2335_p6, %p47_p10 }
  0x75   : > { %s290_s10 = sshll.u32 %s283_s29, 4  ;;  %s280_s14 = scalar_lea.sflag [#allocation3], %s2971_s20  ;;  %s2984_s10 = int_to_ptr.vmem [resolvable:$true] %s290_s10 }
  0x76   : > { %p2588_p9 = pneg %p2980_p11 }
  0x79   : > { %s2978_s23 = scalar_lea.hbm %s3862_s0, %s2141_s16  ;;  %s2591_s16 = scalar_lea.hbm %s3862_s0, 4096 }
  0x7a   : > { %s2586_s8 = scalar_lea.hbm %s2978_s23, 2048  ;;  %p2592_p1 = scmp.lt.u32.totalorder %s2978_s23, %s3862_s0 }
  0x7b   : > { %p2587_p7 = scmp.ne.s32.totalorder %s2978_s23, %s2586_s8  ;;  %p2593_p2 = scmp.lt.u32.totalorder %s2591_s16, %s2586_s8 }
  0x7c   : > { %p2595_p8 = scmp.lt.u32.totalorder %s2586_s8, %s2978_s23 }
  0x7d   : > { %p2589_p12 = pnand %p2588_p9, %p2587_p7  ;;  %p2594_p4 = por %p2593_p2, %p2592_p1 }
  0x7f   : > { %p2590_p0 = pneg %p2589_p12  ;;  %p2596_p13 = por %p2595_p8, %p2594_p4 }
  0x81   : > { %p2597_p6 = pnand %p2596_p13, %p2590_p0 }
  0x83   : > { %2600 = shalt.err (!%p2597_p6)
}
  0x84   : > { %s2601_s21 = scalar_lea.vmem %s2984_s10, 2048  ;;  %s2763_s29 = smov [#allocation2]  }
  0x85   : > { %p2602_p10 = scmp.ne.s32.totalorder %s2984_s10, %s2601_s21  ;;  %s2606_s12 = sshll.u32 %s2763_s29, 4  ;;  %s2607_s12 = int_to_ptr.vmem [resolvable:$false] %s2606_s12 }
  0x86   : > { %s2608_s17 = scalar_lea.vmem %s2607_s12, 4096  ;;  %p2609_p12 = scmp.lt.s32.totalorder %s2984_s10, %s2607_s12 }
  0x87   : > { %p2604_p3 = pnand %p2602_p10, %p2588_p9  ;;  %p2610_p1 = scmp.lt.s32.totalorder %s2608_s17, %s2601_s21 }
  0x89   : > { %p2605_p7 = pneg %p2604_p3  ;;  %p2611_p2 = por %p2610_p1, %p2609_p12 }
  0x8b   : > { %p2612_p4 = pnand %p2611_p2, %p2605_p7 }
  0x8d   : > { %2615 = shalt.err (!%p2612_p4)
}
  0x8e   : > { %s2764_s8 = smov 64   ;;  %s2765_s16 = smov 4  }
  0x8f   : > { %2321 = dma.hbm_to_vmem [thread:$0]  (!%p2980_p11), %s2978_s23, 2048, %s2984_s10, %s280_s14, %s2764_s8, %s2764_s8, %s2765_s16  }
  0x90   : > { %s300_s13 = sand.u32 1, %s2756_s27   ;;  %s2034_s15 = sshll.u32 %s2971_s20, 6 }
  0x91   : > { %s2142_s21 = sshll.u32 %s2756_s27, 10  ;;  %s304_s29 = scalar_lea.vmem [#allocation5], %s2034_s15 }
  0x92   : > { %s311_s12 = sshll.u32 %s304_s29, 4  ;;  %s3023_s2 = scalar_lea.hbm %s3836_s1, %s2142_s21  ;;  %s3025_s12 = int_to_ptr.vmem [resolvable:$true] %s311_s12 }
  0x93   : > { %s3027_s4 = scalar_lea.sflag [#allocation6], %s300_s13  ;;  %s2616_s5 = scalar_lea.hbm %s3023_s2, 1024 }
  0x94   : > { %p2617_p0 = scmp.ne.s32.totalorder %s3023_s2, %s2616_s5  ;;  %s2621_s0 = scalar_lea.hbm %s3836_s1, 2048 }
  0x95   : > { %p2622_p6 = scmp.lt.u32.totalorder %s3023_s2, %s3836_s1  ;;  %p2623_p10 = scmp.lt.u32.totalorder %s2621_s0, %s2616_s5 }
  0x96   : > { %p2619_p8 = pnand %p2617_p0, %p2588_p9  ;;  %p2625_p7 = scmp.lt.u32.totalorder %s2616_s5, %s3023_s2 }
  0x97   : > { %p2624_p3 = por %p2623_p10, %p2622_p6 }
  0x98   : > { %p2620_p13 = pneg %p2619_p8 }
  0x99   : > { %p2626_p12 = por %p2625_p7, %p2624_p3 }
  0x9b   : > { %p2627_p1 = pnand %p2626_p12, %p2620_p13 }
  0x9d   : > { %2630 = shalt.err (!%p2627_p1)
}
  0x9e   : > { %s2631_s13 = scalar_lea.vmem %s3025_s12, 1024  ;;  %s2766_s15 = smov [#allocation5]  }
  0x9f   : > { %p2632_p2 = scmp.ne.s32.totalorder %s3025_s12, %s2631_s13  ;;  %s2636_s21 = sshll.u32 %s2766_s15, 4  ;;  %s2637_s21 = int_to_ptr.vmem [resolvable:$false] %s2636_s21 }
  0xa0   : > { %s2638_s29 = scalar_lea.vmem %s2637_s21, 2048  ;;  %p2639_p8 = scmp.lt.s32.totalorder %s3025_s12, %s2637_s21 }
  0xa1   : > { %p2634_p4 = pnand %p2632_p2, %p2588_p9  ;;  %p2640_p6 = scmp.lt.s32.totalorder %s2638_s29, %s2631_s13 }
  0xa3   : > { %p2635_p0 = pneg %p2634_p4  ;;  %p2641_p10 = por %p2640_p6, %p2639_p8 }
  0xa5   : > { %p2642_p3 = pnand %p2641_p10, %p2635_p0 }
  0xa7   : > { %2645 = shalt.err (!%p2642_p3)
}
  0xa8   : > { %2324 = dma.hbm_to_vmem [thread:$0]  (!%p2980_p11), %s3023_s2, 1024, %s3025_s12, %s3027_s4, %s2764_s8, %s2764_s8, %s2765_s16  }
  0xa9   : > { %p3864_p9 = scmp.ne.s32.totalorder %s3854_s9, 0 }
  0xaa   : > { %s3059_s5 = sand.u32 (!%p3864_p9), 1, %s2748_s25   ;;  %p3865_p13 = scmp.ne.s32.totalorder (!%p3864_p9), %s3851_s30, 0 }
  0xab   : > { %323 = sbr.rel (%p3864_p9) target bundleno = 854 (0x356), region = 44  ;;  %s2038_s17 = sshll.u32 (!%p3864_p9), %s3059_s5, 7 }
  0xac   : > { %s326_s20 = scalar_lea.sflag (!%p3864_p9), [#allocation3], %s3059_s5  ;;  %s3065_s11 = scalar_lea.vmem (!%p3864_p9), [#allocation2], %s2038_s17 }
  0xb2   : > { %2719 = dma.done.wait (%p3865_p13), %s326_s20, 2048  }
  0xb3   : > { %2721 = vsyncadd (%p3865_p13), %s326_s20, 4294965248  ;;  %s334_s2 = sand.u32 1, %s2833_s28   ;;  %s2039_s4 = sshll.u32 %s3059_s5, 6 }
  0xb4   : > { %s335_s9 = scalar_lea.sflag [#allocation6], %s334_s2  ;;  %s3073_s8 = scalar_lea.vmem [#allocation5], %s2039_s4 }
  0xb5   : > { %2723 = dma.done.wait (%p3865_p13), %s335_s9, 1024  }
  0xb6   : > { %2725 = vsyncadd (%p3865_p13), %s335_s9, 4294966272  ;;  %p3866_p11 = scmp.eq.s32.totalorder %s2833_s28, 0 }
  0xb8   : > { %2727 = dma.done.wait (%p3866_p11), [#allocation6], 256   ;;  %p3867_p7 = pmov %p3866_p11 }
  0xba   : > { %2729 = vsyncadd (%p3867_p7), [#allocation6], 4294967040  ;;  %p3868_p12 = pmov %p3867_p7 }
  0xbb   : > { %p3869_p1 = pmov %p3867_p7 }
  0xbc   : > { %2731 = dma.done.wait (%p3868_p12), [#allocation9], 4096  }
  0xbd   : > { %2733 = vsyncadd (%p3869_p1), [#allocation9], 4294963200  ;;  %v3088_v0 = vld [vmem:[%s3065_s11] sm:$0xff]   ;;  %v3102_v6 = vld [vmem:[%s3065_s11 + $0x8] sm:$0xff]   ;;  %s2043_s12 = sshll.u32 %s3059_s5, 8  ;;  %s3654_s0 = scalar_lea.vmem [#allocation12], %s2038_s17 }
  0xbe   : > { %v3091_v1 = vld [vmem:[%s3065_s11 + $0x60] sm:$0xff]   ;;  %v2195_v2 = vunpack.c.l.bf16 %v3088_v0  ;;  %v2196_v4 = vunpack.c.h.bf16 %v3088_v0  ;;  %v3105_v7 = vld [vmem:[%s3065_s11 + $0x68] sm:$0xff]   ;;  %v2199_v8 = vunpack.c.l.bf16 %v3102_v6  ;;  %v2200_v9 = vunpack.c.h.bf16 %v3102_v6  ;;  %v3114_v10 = vld [vmem:[%s3065_s11 + $0x10] sm:$0xff]   ;;  %s3586_s23 = scalar_lea.vmem [#allocation11], %s2043_s12  ;;  %s2191_s10 = sshll.u32 %s2833_s28, 12 }
  0xbf   : > { %v2243_v3 = vunpack.c.l.bf16 %v3091_v1  ;;  %v2244_v5 = vunpack.c.h.bf16 %v3091_v1  ;;  %v2247_v11 = vunpack.c.l.bf16 %v3105_v7  ;;  %v2248_v12 = vunpack.c.h.bf16 %v3105_v7  ;;  %v3123_v13 = vld [vmem:[%s3065_s11 + $0x70] sm:$0xff]   ;;  %v3132_v16 = vld [vmem:[%s3065_s11 + $0x18] sm:$0xff]   ;;  %v3156_v24 = vld [vmem:[%s3065_s11 + $0x20] sm:$0xff]   ;;  %s1853_s14 = sshll.u32 %s3586_s23, 4  ;;  %s3739_s21 = scalar_lea.hbm %s3841_s6, %s2191_s10  ;;  %s3741_s14 = int_to_ptr.vmem [resolvable:$true] %s1853_s14 }
  0xc0   : > { %506 = vadd.xlane.f32.xlu0 %v2195_v2  ;;  %v2203_v14 = vunpack.c.l.bf16 %v3114_v10  ;;  %v2204_v15 = vunpack.c.h.bf16 %v3114_v10  ;;  %v2251_v17 = vunpack.c.l.bf16 %v3123_v13  ;;  %v2252_v18 = vunpack.c.h.bf16 %v3123_v13  ;;  %v3147_v21 = vld [vmem:[%s3065_s11 + $0x78] sm:$0xff]   ;;  %v3165_v27 = vld [vmem:[%s3065_s11 + $0x28] sm:$0xff]   ;;  %v3174_v30 = vld [vmem:[%s3065_s11 + $0x30] sm:$0xff]   ;;  %s2192_s29 = sshll.u32 %s2833_s28, 11  ;;  %s1869_s17 = sshll.u32 %s3654_s0, 4  ;;  %s3787_s17 = int_to_ptr.vmem [resolvable:$true] %s1869_s17 }
  0xc1   : > { %554 = vadd.xlane.f32.xlu1 %v2243_v3  ;;  %v2207_v19 = vunpack.c.l.bf16 %v3132_v16  ;;  %v2208_v20 = vunpack.c.h.bf16 %v3132_v16  ;;  %v2255_v22 = vunpack.c.l.bf16 %v3147_v21  ;;  %v2256_v23 = vunpack.c.h.bf16 %v3147_v21  ;;  %v3183_v33 = vld [vmem:[%s3065_s11 + $0x38] sm:$0xff]   ;;  %v3192_v36 = vld [vmem:[%s3065_s11 + $0x40] sm:$0xff]   ;;  %v3201_v39 = vld [vmem:[%s3065_s11 + $0x48] sm:$0xff]   ;;  %s1835_s20 = scalar_lea.sflag [#allocation4], %s3059_s5  ;;  %s2768_s2 = smov [#allocation11]  }
  0xc2   : > { %v2211_v25 = vunpack.c.l.bf16 %v3156_v24  ;;  %v2212_v26 = vunpack.c.h.bf16 %v3156_v24  ;;  %v2215_v28 = vunpack.c.l.bf16 %v3165_v27  ;;  %v2216_v29 = vunpack.c.h.bf16 %v3165_v27  ;;  %v3210_v42 = vld [vmem:[%s3065_s11 + $0x50] sm:$0xff]   ;;  %v3219_v45 = vld [vmem:[%s3065_s11 + $0x58] sm:$0xff]   ;;  %s2646_s11 = scalar_lea.vmem %s3741_s14, 4096  ;;  %s2650_s4 = sshll.u32 %s2768_s2, 4  ;;  %s2651_s4 = int_to_ptr.vmem [resolvable:$false] %s2650_s4 }
  0xc3   : > { %v2219_v31 = vunpack.c.l.bf16 %v3174_v30  ;;  %v2220_v32 = vunpack.c.h.bf16 %v3174_v30  ;;  %v2223_v34 = vunpack.c.l.bf16 %v3183_v33  ;;  %v2224_v35 = vunpack.c.h.bf16 %v3183_v33  ;;  %v2382_v48 = vld [vmem:[#allocation8 + $0x4] ss:$8 sps:$4 sm:$0xff]   ;;  %v2384_v49 = vld [vmem:[#allocation8] ss:$8 sps:$4 sm:$0xff]   ;;  %p2647_p2 = scmp.ne.s32.totalorder %s3741_s14, %s2646_s11  ;;  %s2652_s9 = scalar_lea.vmem %s2651_s4, 8192 }
  0xc4   : > { %508 = vadd.xlane.f32.xlu0 %v2196_v4  ;;  %v2227_v37 = vunpack.c.l.bf16 %v3192_v36  ;;  %v2228_v38 = vunpack.c.h.bf16 %v3192_v36  ;;  %v2231_v40 = vunpack.c.l.bf16 %v3201_v39  ;;  %v2232_v41 = vunpack.c.h.bf16 %v3201_v39  ;;  %1046 = vmatprep.subr.bf16.mxu0 %v2382_v48  ;;  %p2653_p8 = scmp.lt.s32.totalorder %s3741_s14, %s2651_s4  ;;  %p2654_p6 = scmp.lt.s32.totalorder %s2652_s9, %s2646_s11 }
  0xc5   : > { %556 = vadd.xlane.f32.xlu1 %v2244_v5  ;;  %v2235_v43 = vunpack.c.l.bf16 %v3210_v42  ;;  %v2236_v44 = vunpack.c.h.bf16 %v3210_v42  ;;  %v2239_v46 = vunpack.c.l.bf16 %v3219_v45  ;;  %v2240_v47 = vunpack.c.h.bf16 %v3219_v45  ;;  %2272 = vmatprep.subr.bf16.mxu1 %v2382_v48  ;;  %p2648_p4 = pnand %p2647_p2, %p2966_p5 }
  0xc6   : > { %1047 = vmatpush1.bf16.msra.mxu0 %v2384_v49  ;;  %2280 = vmatpush1.bf16.msra.mxu1 %v2384_v49  ;;  %v859_v45 = vlaneseq  ;;  %p2655_p10 = por %p2654_p6, %p2653_p8 }
  0xc7   : > { %p2649_p0 = pneg %p2648_p4 }
  0xc8   : > { %510 = vadd.xlane.f32.xlu0 %v2199_v8 }
  0xc9   : > { %512 = vadd.xlane.f32.xlu1 %v2200_v9  ;;  %p2656_p3 = pnand %p2655_p10, %p2649_p0 }
  0xcc   : > { %558 = vadd.xlane.f32.xlu0 %v2247_v11 }
  0xcd   : > { %560 = vadd.xlane.f32.xlu1 %v2248_v12 }
  0xd0   : > { %514 = vadd.xlane.f32.xlu0 %v2203_v14 }
  0xd1   : > { %516 = vadd.xlane.f32.xlu1 %v2204_v15 }
  0xd4   : > { %562 = vadd.xlane.f32.xlu0 %v2251_v17 }
  0xd5   : > { %564 = vadd.xlane.f32.xlu1 %v2252_v18 }
  0xd8   : > { %518 = vadd.xlane.f32.xlu0 %v2207_v19 }
  0xd9   : > { %520 = vadd.xlane.f32.xlu1 %v2208_v20 }
  0xdc   : > { %566 = vadd.xlane.f32.xlu0 %v2255_v22 }
  0xdd   : > { %568 = vadd.xlane.f32.xlu1 %v2256_v23 }
  0xe0   : > { %522 = vadd.xlane.f32.xlu0 %v2211_v25 }
  0xe1   : > { %524 = vadd.xlane.f32.xlu1 %v2212_v26 }
  0xe4   : > { %526 = vadd.xlane.f32.xlu0 %v2215_v28 }
  0xe5   : > { %528 = vadd.xlane.f32.xlu1 %v2216_v29 }
  0xe8   : > { %530 = vadd.xlane.f32.xlu0 %v2219_v31 }
  0xe9   : > { %532 = vadd.xlane.f32.xlu1 %v2220_v32 }
  0xec   : > { %534 = vadd.xlane.f32.xlu0 %v2223_v34 }
  0xed   : > { %536 = vadd.xlane.f32.xlu1 %v2224_v35 }
  0xf0   : > { %538 = vadd.xlane.f32.xlu0 %v2227_v37 }
  0xf1   : > { %540 = vadd.xlane.f32.xlu1 %v2228_v38 }
  0xf4   : > { %542 = vadd.xlane.f32.xlu0 %v2231_v40 }
  0xf5   : > { %544 = vadd.xlane.f32.xlu1 %v2232_v41 }
  0xf8   : > { %546 = vadd.xlane.f32.xlu0 %v2235_v43 }
  0xf9   : > { %548 = vadd.xlane.f32.xlu1 %v2236_v44 }
  0xfc   : > { %550 = vadd.xlane.f32.xlu0 %v2239_v46 }
  0xfd   : > { %552 = vadd.xlane.f32.xlu1 %v2240_v47 }
 0x14d   : > { %v507_v50 = vpop.xlane.xlu0 %506 }
 0x14e   : > { %v555_v51 = vpop.xlane.xlu1 %554  ;;  %v571_v52 = vmul.f32 0.0078125, %v507_v50 }
 0x14f   : > { %v595_v53 = vmul.f32 0.0078125, %v555_v51 }
 0x150   : > { %v3233_v54 = vsub.f32 %v2195_v2, %v571_v52 }
 0x151   : > { %v3237_v55 = vsub.f32 %v2243_v3, %v595_v53  ;;  %v509_v56 = vpop.xlane.xlu0 %508 }
 0x152   : > { %v557_v57 = vpop.xlane.xlu1 %556  ;;  %v572_v58 = vmul.f32 0.0078125, %v509_v56  ;;  %v635_v59 = vmul.f32 %v3233_v54, %v3233_v54 }
 0x153   : > { %v596_v60 = vmul.f32 0.0078125, %v557_v57  ;;  %v659_v63 = vmul.f32 %v3237_v55, %v3237_v55 }
 0x154   : > { %v3243_v61 = vsub.f32 %v2196_v4, %v572_v58  ;;  %667 = vadd.xlane.f32.xlu0 %v635_v59 }
 0x155   : > { %v3247_v62 = vsub.f32 %v2244_v5, %v596_v60  ;;  %v511_v2 = vpop.xlane.xlu0 %510 }
 0x156   : > { %v513_v3 = vpop.xlane.xlu1 %512  ;;  %v573_v48 = vmul.f32 0.0078125, %v511_v2  ;;  %v636_v49 = vmul.f32 %v3243_v61, %v3243_v61  ;;  %v2385_v2 = vld [vmem:[#allocation8 + $0x14] ss:$8 sps:$4 sm:$0xff]  }
 0x157   : > { %v574_v50 = vmul.f32 0.0078125, %v513_v3  ;;  %v660_v4 = vmul.f32 %v3247_v62, %v3247_v62  ;;  %v2387_v3 = vld [vmem:[#allocation8 + $0x10] ss:$8 sps:$4 sm:$0xff]   ;;  %1048 = vmatprep.subr.bf16.mxu0 %v2385_v2  ;;  %2273 = vmatprep.subr.bf16.mxu1 %v2385_v2 }
 0x158   : > { %v3255_v0 = vsub.f32 %v2199_v8, %v573_v48  ;;  %715 = vadd.xlane.f32.xlu0 %v659_v63  ;;  %669 = vadd.xlane.f32.xlu1 %v636_v49  ;;  %v2393_v2 = vld [vmem:[#allocation8 + $0x30] ss:$8 sps:$4 sm:$0xff]  }
 0x159   : > { %v3259_v1 = vsub.f32 %v2200_v9, %v574_v50  ;;  %v559_v5 = vpop.xlane.xlu0 %558  ;;  %1049 = vmatpush1.bf16.msra.mxu0 %v2387_v3  ;;  %2281 = vmatpush1.bf16.msra.mxu1 %v2387_v3 }
 0x15a   : > { %v561_v51 = vpop.xlane.xlu1 %560  ;;  %v597_v52 = vmul.f32 0.0078125, %v559_v5  ;;  %v637_v53 = vmul.f32 %v3255_v0, %v3255_v0 }
 0x15b   : > { %v598_v56 = vmul.f32 0.0078125, %v561_v51  ;;  %v638_v9 = vmul.f32 %v3259_v1, %v3259_v1  ;;  %v2388_v51 = vld [vmem:[#allocation8 + $0x24] ss:$8 sps:$4 sm:$0xff]  }
 0x15c   : > { %v3267_v8 = vsub.f32 %v2247_v11, %v597_v52  ;;  %717 = vadd.xlane.f32.xlu1 %v660_v4  ;;  %671 = vadd.xlane.f32.xlu0 %v637_v53 }
 0x15d   : > { %v3271_v6 = vsub.f32 %v2248_v12, %v598_v56  ;;  %v515_v57 = vpop.xlane.xlu0 %514  ;;  %v2390_v56 = vld [vmem:[#allocation8 + $0x20] ss:$8 sps:$4 sm:$0xff]   ;;  %1050 = vmatprep.subr.bf16.mxu0 %v2388_v51  ;;  %2274 = vmatprep.subr.bf16.mxu1 %v2388_v51 }
 0x15e   : > { %v517_v58 = vpop.xlane.xlu1 %516  ;;  %v575_v59 = vmul.f32 0.0078125, %v515_v57  ;;  %v661_v60 = vmul.f32 %v3267_v8, %v3267_v8  ;;  %1051 = vmatpush1.bf16.msra.mxu0 %v2390_v56  ;;  %2282 = vmatpush1.bf16.msra.mxu1 %v2390_v56 }
 0x15f   : > { %v576_v63 = vmul.f32 0.0078125, %v517_v58  ;;  %v662_v12 = vmul.f32 %v3271_v6, %v3271_v6 }
 0x160   : > { %v3279_v11 = vsub.f32 %v2203_v14, %v575_v59  ;;  %673 = vadd.xlane.f32.xlu1 %v638_v9  ;;  %719 = vadd.xlane.f32.xlu0 %v661_v60  ;;  %v2391_v59 = vld [vmem:[#allocation8 + $0x34] ss:$8 sps:$4 sm:$0xff]  }
 0x161   : > { %v3283_v7 = vsub.f32 %v2204_v15, %v576_v63  ;;  %v563_v48 = vpop.xlane.xlu0 %562  ;;  %1052 = vmatprep.subr.bf16.mxu0 %v2391_v59  ;;  %2275 = vmatprep.subr.bf16.mxu1 %v2391_v59 }
 0x162   : > { %v565_v49 = vpop.xlane.xlu1 %564  ;;  %v599_v50 = vmul.f32 0.0078125, %v563_v48  ;;  %v639_v4 = vmul.f32 %v3279_v11, %v3279_v11  ;;  %1053 = vmatpush1.bf16.msra.mxu0 %v2393_v2  ;;  %2283 = vmatpush1.bf16.msra.mxu1 %v2393_v2 }
 0x163   : > { %v600_v14 = vmul.f32 0.0078125, %v565_v49  ;;  %v640_v5 = vmul.f32 %v3283_v7, %v3283_v7  ;;  %v2394_v49 = vld [vmem:[#allocation8 + $0x44] ss:$8 sps:$4 sm:$0xff]  }
 0x164   : > { %v3291_v10 = vsub.f32 %v2251_v17, %v599_v50  ;;  %721 = vadd.xlane.f32.xlu1 %v662_v12  ;;  %675 = vadd.xlane.f32.xlu0 %v639_v4 }
 0x165   : > { %v3295_v15 = vsub.f32 %v2252_v18, %v600_v14  ;;  %v519_v52 = vpop.xlane.xlu0 %518  ;;  %v2396_v14 = vld [vmem:[#allocation8 + $0x40] ss:$8 sps:$4 sm:$0xff]   ;;  %1054 = vmatprep.subr.bf16.mxu0 %v2394_v49  ;;  %2276 = vmatprep.subr.bf16.mxu1 %v2394_v49  ;;  %v2403_v49 = vld [vmem:[#allocation8 + $0x74] ss:$8 sps:$4 sm:$0xff]  }
 0x166   : > { %v521_v53 = vpop.xlane.xlu1 %520  ;;  %v577_v9 = vmul.f32 0.0078125, %v519_v52  ;;  %v663_v57 = vmul.f32 %v3291_v10, %v3291_v10  ;;  %1055 = vmatpush1.bf16.msra.mxu0 %v2396_v14  ;;  %2284 = vmatpush1.bf16.msra.mxu1 %v2396_v14  ;;  %v2405_v14 = vld [vmem:[#allocation8 + $0x70] ss:$8 sps:$4 sm:$0xff]  }
 0x167   : > { %v578_v58 = vmul.f32 0.0078125, %v521_v53  ;;  %v664_v18 = vmul.f32 %v3295_v15, %v3295_v15  ;;  %v2397_v53 = vld [vmem:[#allocation8 + $0x54] ss:$8 sps:$4 sm:$0xff]  }
 0x168   : > { %v3303_v13 = vsub.f32 %v2207_v19, %v577_v9  ;;  %677 = vadd.xlane.f32.xlu1 %v640_v5  ;;  %723 = vadd.xlane.f32.xlu0 %v663_v57  ;;  %v2399_v57 = vld [vmem:[#allocation8 + $0x50] ss:$8 sps:$4 sm:$0xff]  }
 0x169   : > { %v3307_v17 = vsub.f32 %v2208_v20, %v578_v58  ;;  %v567_v60 = vpop.xlane.xlu0 %566  ;;  %1056 = vmatprep.subr.bf16.mxu0 %v2397_v53  ;;  %2277 = vmatprep.subr.bf16.mxu1 %v2397_v53 }
 0x16a   : > { %v569_v63 = vpop.xlane.xlu1 %568  ;;  %v601_v12 = vmul.f32 0.0078125, %v567_v60  ;;  %v641_v3 = vmul.f32 %v3303_v13, %v3303_v13  ;;  %1057 = vmatpush1.bf16.msra.mxu0 %v2399_v57  ;;  %2285 = vmatpush1.bf16.msra.mxu1 %v2399_v57  ;;  %v2400_v60 = vld [vmem:[#allocation8 + $0x64] ss:$8 sps:$4 sm:$0xff]  }
 0x16b   : > { %v602_v48 = vmul.f32 0.0078125, %v569_v63  ;;  %v642_v20 = vmul.f32 %v3307_v17, %v3307_v17  ;;  %1058 = vmatprep.subr.bf16.mxu0 %v2400_v60  ;;  %2278 = vmatprep.subr.bf16.mxu1 %v2400_v60 }
 0x16c   : > { %v3315_v16 = vsub.f32 %v2255_v22, %v601_v12  ;;  %725 = vadd.xlane.f32.xlu1 %v664_v18  ;;  %679 = vadd.xlane.f32.xlu0 %v641_v3  ;;  %v2402_v12 = vld [vmem:[#allocation8 + $0x60] ss:$8 sps:$4 sm:$0xff]  }
 0x16d   : > { %v3319_v19 = vsub.f32 %v2256_v23, %v602_v48  ;;  %v523_v50 = vpop.xlane.xlu0 %522 }
 0x16e   : > { %v525_v4 = vpop.xlane.xlu1 %524  ;;  %v579_v5 = vmul.f32 0.0078125, %v523_v50  ;;  %v665_v51 = vmul.f32 %v3315_v16, %v3315_v16  ;;  %1059 = vmatpush1.bf16.msra.mxu0 %v2402_v12  ;;  %2286 = vmatpush1.bf16.msra.mxu1 %v2402_v12 }
 0x16f   : > { %v580_v52 = vmul.f32 0.0078125, %v525_v4  ;;  %v666_v23 = vmul.f32 %v3319_v19, %v3319_v19  ;;  %1060 = vmatprep.subr.bf16.mxu0 %v2403_v49  ;;  %2279 = vmatprep.subr.bf16.mxu1 %v2403_v49 }
 0x170   : > { %v3327_v21 = vsub.f32 %v2211_v25, %v579_v5  ;;  %681 = vadd.xlane.f32.xlu1 %v642_v20  ;;  %727 = vadd.xlane.f32.xlu0 %v665_v51 }
 0x171   : > { %v3331_v22 = vsub.f32 %v2212_v26, %v580_v52  ;;  %v527_v56 = vpop.xlane.xlu0 %526 }
 0x172   : > { %v529_v9 = vpop.xlane.xlu1 %528  ;;  %v581_v58 = vmul.f32 0.0078125, %v527_v56  ;;  %v643_v18 = vmul.f32 %v3327_v21, %v3327_v21  ;;  %1061 = vmatpush1.bf16.msra.mxu0 %v2405_v14  ;;  %2287 = vmatpush1.bf16.msra.mxu1 %v2405_v14  ;;  %v2767_v56 = vmov 0  }
 0x173   : > { %v582_v59 = vmul.f32 0.0078125, %v529_v9  ;;  %v644_v26 = vmul.f32 %v3331_v22, %v3331_v22  ;;  %1078 = vmatprep.mubr.bf16.mxu0 %v2767_v56  ;;  %1198 = vmatprep.mubr.bf16.mxu1 %v2767_v56 }
 0x174   : > { %v3339_v24 = vsub.f32 %v2215_v28, %v581_v58  ;;  %729 = vadd.xlane.f32.xlu1 %v666_v23  ;;  %683 = vadd.xlane.f32.xlu0 %v643_v18  ;;  %v2408_v18 = vld [vmem:[#allocation10 + $0x4] ss:$8 sps:$4 sm:$0xff]  }
 0x175   : > { %v3343_v25 = vsub.f32 %v2216_v29, %v582_v59  ;;  %v531_v63 = vpop.xlane.xlu0 %530  ;;  %1385 = vmatprep.subr.bf16.mxu1 %v2408_v18 }
 0x176   : > { %v533_v2 = vpop.xlane.xlu1 %532  ;;  %v583_v3 = vmul.f32 0.0078125, %v531_v63  ;;  %v645_v48 = vmul.f32 %v3339_v24, %v3339_v24 }
 0x177   : > { %v584_v20 = vmul.f32 0.0078125, %v533_v2  ;;  %v646_v29 = vmul.f32 %v3343_v25, %v3343_v25 }
 0x178   : > { %v3351_v27 = vsub.f32 %v2219_v31, %v583_v3  ;;  %685 = vadd.xlane.f32.xlu1 %v644_v26  ;;  %687 = vadd.xlane.f32.xlu0 %v645_v48 }
 0x179   : > { %v3355_v28 = vsub.f32 %v2220_v32, %v584_v20  ;;  %v535_v50 = vpop.xlane.xlu0 %534 }
 0x17a   : > { %v537_v4 = vpop.xlane.xlu1 %536  ;;  %v585_v5 = vmul.f32 0.0078125, %v535_v50  ;;  %v647_v51 = vmul.f32 %v3351_v27, %v3351_v27 }
 0x17b   : > { %v586_v52 = vmul.f32 0.0078125, %v537_v4  ;;  %v648_v32 = vmul.f32 %v3355_v28, %v3355_v28 }
 0x17c   : > { %v3363_v30 = vsub.f32 %v2223_v34, %v585_v5  ;;  %689 = vadd.xlane.f32.xlu1 %v646_v29  ;;  %691 = vadd.xlane.f32.xlu0 %v647_v51 }
 0x17d   : > { %v3367_v31 = vsub.f32 %v2224_v35, %v586_v52  ;;  %v539_v23 = vpop.xlane.xlu0 %538 }
 0x17e   : > { %v541_v53 = vpop.xlane.xlu1 %540  ;;  %v587_v9 = vmul.f32 0.0078125, %v539_v23  ;;  %v649_v34 = vmul.f32 %v3363_v30, %v3363_v30 }
 0x17f   : > { %v588_v57 = vmul.f32 0.0078125, %v541_v53  ;;  %v650_v58 = vmul.f32 %v3367_v31, %v3367_v31 }
 0x180   : > { %v3377_v33 = vsub.f32 %v2227_v37, %v587_v9  ;;  %693 = vadd.xlane.f32.xlu1 %v648_v32  ;;  %695 = vadd.xlane.f32.xlu0 %v649_v34 }
 0x181   : > { %v3381_v35 = vsub.f32 %v2228_v38, %v588_v57  ;;  %v543_v59 = vpop.xlane.xlu0 %542 }
 0x182   : > { %v545_v26 = vpop.xlane.xlu1 %544  ;;  %v589_v60 = vmul.f32 0.0078125, %v543_v59  ;;  %v651_v63 = vmul.f32 %v3377_v33, %v3377_v33 }
 0x183   : > { %v590_v2 = vmul.f32 0.0078125, %v545_v26  ;;  %v652_v38 = vmul.f32 %v3381_v35, %v3381_v35  ;;  %v3425_v26 = vshrl.u32 %v859_v45, 7 }
 0x184   : > { %v3389_v37 = vsub.f32 %v2231_v40, %v589_v60  ;;  %697 = vadd.xlane.f32.xlu1 %v650_v58  ;;  %699 = vadd.xlane.f32.xlu0 %v651_v63 }
 0x185   : > { %v3393_v36 = vsub.f32 %v2232_v41, %v590_v2  ;;  %v547_v12 = vpop.xlane.xlu0 %546 }
 0x186   : > { %v549_v3 = vpop.xlane.xlu1 %548  ;;  %v591_v48 = vmul.f32 0.0078125, %v547_v12  ;;  %v653_v20 = vmul.f32 %v3389_v37, %v3389_v37 }
 0x187   : > { %v592_v29 = vmul.f32 0.0078125, %v549_v3  ;;  %v654_v41 = vmul.f32 %v3393_v36, %v3393_v36 }
 0x188   : > { %v3401_v40 = vsub.f32 %v2235_v43, %v591_v48  ;;  %701 = vadd.xlane.f32.xlu1 %v652_v38  ;;  %703 = vadd.xlane.f32.xlu0 %v653_v20  ;;  %v3428_v48 = vsub.s32 0, %v3425_v26 }
 0x189   : > { %v3405_v39 = vsub.f32 %v2236_v44, %v592_v29  ;;  %v551_v49 = vpop.xlane.xlu0 %550 }
 0x18a   : > { %v553_v50 = vpop.xlane.xlu1 %552  ;;  %v593_v4 = vmul.f32 0.0078125, %v551_v49  ;;  %v655_v14 = vmul.f32 %v3401_v40, %v3401_v40 }
 0x18b   : > { %v594_v5 = vmul.f32 0.0078125, %v553_v50  ;;  %v656_v44 = vmul.f32 %v3405_v39, %v3405_v39 }
 0x18c   : > { %v3413_v43 = vsub.f32 %v2239_v46, %v593_v4  ;;  %705 = vadd.xlane.f32.xlu1 %v654_v41  ;;  %707 = vadd.xlane.f32.xlu0 %v655_v14  ;;  %v392_v41 = vld [vmem:[#allocation7] sm:$0xff] }
 0x18d   : > { %v3417_v42 = vsub.f32 %v2240_v47, %v594_v5 }
 0x18e   : > { %v657_v51 = vmul.f32 %v3413_v43, %v3413_v43 }
 0x18f   : > { %v658_v52 = vmul.f32 %v3417_v42, %v3417_v42 }
 0x190   : > { %709 = vadd.xlane.f32.xlu1 %v656_v44  ;;  %711 = vadd.xlane.f32.xlu0 %v657_v51  ;;  %v3432_v51 = vrot.slane %v392_v41, %v3428_v48 }
 0x194   : > { %713 = vadd.xlane.f32.xlu1 %v658_v52  ;;  %v3435_v52 = vsub.s32 1, %v3425_v26 }
 0x1e1   : > { %v668_v46 = vpop.xlane.xlu0 %667 }
 0x1e2   : > { %v731_v32 = vmul.f32 0.0078125, %v668_v46 }
 0x1e4   : > { %v763_v23 = vadd.f32 1e-06, %v731_v32 }
 0x1e5   : > { %v670_v53 = vpop.xlane.xlu1 %669  ;;  %v716_v9 = vpop.xlane.xlu0 %715 }
 0x1e6   : > { %2438 = vrsqrt.f32 %v763_v23  ;;  %v732_v47 = vmul.f32 0.0078125, %v670_v53  ;;  %v755_v34 = vmul.f32 0.0078125, %v716_v9 }
 0x1e8   : > { %v764_v57 = vadd.f32 1e-06, %v732_v47  ;;  %v787_v58 = vadd.f32 1e-06, %v755_v34 }
 0x1e9   : > { %v718_v18 = vpop.xlane.xlu1 %717  ;;  %v672_v59 = vpop.xlane.xlu0 %671 }
 0x1ea   : > { %2440 = vrsqrt.f32 %v764_v57  ;;  %v756_v60 = vmul.f32 0.0078125, %v718_v18  ;;  %v733_v63 = vmul.f32 0.0078125, %v672_v59 }
 0x1eb   : > { %2442 = vrsqrt.f32 %v787_v58  ;;  %v3440_v58 = vrot.slane %v392_v41, %v3435_v52 }
 0x1ec   : > { %v788_v2 = vadd.f32 1e-06, %v756_v60  ;;  %v765_v38 = vadd.f32 1e-06, %v733_v63 }
 0x1ed   : > { %v674_v12 = vpop.xlane.xlu1 %673  ;;  %v720_v3 = vpop.xlane.xlu0 %719 }
 0x1ee   : > { %2444 = vrsqrt.f32 %v788_v2  ;;  %v734_v20 = vmul.f32 0.0078125, %v674_v12  ;;  %v757_v29 = vmul.f32 0.0078125, %v720_v3 }
 0x1ef   : > { %2446 = vrsqrt.f32 %v765_v38 }
 0x1f0   : > { %v2439_v49 = vpop.eup %2438  ;;  %v766_v50 = vadd.f32 1e-06, %v734_v20  ;;  %v789_v4 = vadd.f32 1e-06, %v757_v29 }
 0x1f1   : > { %v722_v14 = vpop.xlane.xlu1 %721  ;;  %v676_v5 = vpop.xlane.xlu0 %675  ;;  %v827_v44 = vmul.f32 %v2439_v49, %v3233_v54 }
 0x1f2   : > { %2448 = vrsqrt.f32 %v766_v50  ;;  %v758_v46 = vmul.f32 0.0078125, %v722_v14  ;;  %v735_v32 = vmul.f32 0.0078125, %v676_v5 }
 0x1f3   : > { %2450 = vrsqrt.f32 %v789_v4  ;;  %v863_v54 = vmul.f32 %v3432_v51, %v827_v44 }
 0x1f4   : > { %v2441_v23 = vpop.eup %2440  ;;  %v790_v53 = vadd.f32 1e-06, %v758_v46  ;;  %v767_v9 = vadd.f32 1e-06, %v735_v32 }
 0x1f5   : > { %v2443_v45 = vpop.eup %2442  ;;  %v678_v47 = vpop.xlane.xlu1 %677  ;;  %v828_v57 = vmul.f32 %v2441_v23, %v3243_v61  ;;  %v899_v61 = vadd.f32 %v3440_v58, %v863_v54 }
 0x1f6   : > { %v724_v34 = vpop.xlane.xlu0 %723  ;;  %2452 = vrsqrt.f32 %v790_v53  ;;  %v736_v18 = vmul.f32 0.0078125, %v678_v47  ;;  %v851_v60 = vmul.f32 %v2443_v45, %v3237_v55 }
 0x1f7   : > { %v759_v59 = vmul.f32 0.0078125, %v724_v34  ;;  %2454 = vrsqrt.f32 %v767_v9  ;;  %v864_v63 = vmul.f32 %v3432_v51, %v828_v57 }
 0x1f8   : > { %v2445_v2 = vpop.eup %2444  ;;  %v768_v38 = vadd.f32 1e-06, %v736_v18  ;;  %v887_v50 = vmul.f32 %v3432_v51, %v851_v60 }
 0x1f9   : > { %v791_v12 = vadd.f32 1e-06, %v759_v59  ;;  %v2447_v3 = vpop.eup %2446  ;;  %v726_v20 = vpop.xlane.xlu1 %725  ;;  %v900_v49 = vadd.f32 %v3440_v58, %v864_v63  ;;  %v852_v41 = vmul.f32 %v2445_v2, %v3247_v62  ;;  %v2406_v59 = vld [vmem:[#allocation10] ss:$8 sps:$4 sm:$0xff]   ;;  %v2411_v63 = vld [vmem:[#allocation10 + $0x14] ss:$8 sps:$4 sm:$0xff]  }
 0x1fa   : > { %v680_v29 = vpop.xlane.xlu0 %679  ;;  %2456 = vrsqrt.f32 %v768_v38  ;;  %v760_v4 = vmul.f32 0.0078125, %v726_v20  ;;  %v829_v44 = vmul.f32 %v2447_v3, %v3255_v0  ;;  %v923_v62 = vadd.f32 %v3440_v58, %v887_v50 }
 0x1fb   : > { %v737_v55 = vmul.f32 0.0078125, %v680_v29  ;;  %2458 = vrsqrt.f32 %v791_v12  ;;  %v931_v14 = vpack.c.bf16 %v900_v49, %v899_v61  ;;  %v888_v5 = vmul.f32 %v3432_v51, %v852_v41 }
 0x1fc   : > { %v2449_v46 = vpop.eup %2448  ;;  %v792_v32 = vadd.f32 1e-06, %v760_v4  ;;  %v865_v57 = vmul.f32 %v3432_v51, %v829_v44 }
 0x1fd   : > { %v769_v23 = vadd.f32 1e-06, %v737_v55  ;;  %v2451_v53 = vpop.eup %2450  ;;  %v682_v9 = vpop.xlane.xlu1 %681  ;;  %1079 = vmatmul.mubr.bf16.vlgmr.msra.gmra.mrb[0].mxu0 %v931_v14  ;;  %v924_v47 = vadd.f32 %v3440_v58, %v888_v5  ;;  %v830_v34 = vmul.f32 %v2449_v46, %v3259_v1  ;;  %v2409_v55 = vld [vmem:[#allocation10 + $0x10] ss:$8 sps:$4 sm:$0xff]   ;;  %v2414_v5 = vld [vmem:[#allocation10 + $0x24] ss:$8 sps:$4 sm:$0xff]  }
 0x1fe   : > { %v728_v45 = vpop.xlane.xlu0 %727  ;;  %2460 = vrsqrt.f32 %v792_v32  ;;  %v738_v54 = vmul.f32 0.0078125, %v682_v9  ;;  %1088 = vmatprep.mubr.bf16.mxu0 %v2767_v56  ;;  %v853_v0 = vmul.f32 %v2451_v53, %v3267_v8  ;;  %v901_v61 = vadd.f32 %v3440_v58, %v865_v57 }
 0x1ff   : > { %v761_v18 = vmul.f32 0.0078125, %v728_v45  ;;  %2462 = vrsqrt.f32 %v769_v23  ;;  %v943_v60 = vpack.c.bf16 %v924_v47, %v923_v62  ;;  %v866_v2 = vmul.f32 %v3432_v51, %v830_v34 }
 0x200   : > { %v2453_v38 = vpop.eup %2452  ;;  %v770_v12 = vadd.f32 1e-06, %v738_v54  ;;  %v889_v8 = vmul.f32 %v3432_v51, %v853_v0 }
 0x201   : > { %v793_v3 = vadd.f32 1e-06, %v761_v18  ;;  %v2455_v20 = vpop.eup %2454  ;;  %v730_v1 = vpop.xlane.xlu1 %729  ;;  %1199 = vmatmul.mubr.bf16.vlgmr.msra.gmra.mrb[0].mxu1 %v943_v60  ;;  %v902_v49 = vadd.f32 %v3440_v58, %v866_v2  ;;  %v854_v41 = vmul.f32 %v2453_v38, %v3271_v6  ;;  %v2417_v60 = vld [vmem:[#allocation10 + $0x34] ss:$8 sps:$4 sm:$0xff]  }
 0x202   : > { %v684_v29 = vpop.xlane.xlu0 %683  ;;  %2464 = vrsqrt.f32 %v770_v12  ;;  %v762_v50 = vmul.f32 0.0078125, %v730_v1  ;;  %1386 = vmatpush1.bf16.msra.mxu1 %v2406_v59  ;;  %1208 = vmatprep.mubr.bf16.mxu1 %v2767_v56  ;;  %v831_v46 = vmul.f32 %v2455_v20, %v3279_v11  ;;  %v925_v62 = vadd.f32 %v3440_v58, %v889_v8  ;;  %v2412_v11 = vld [vmem:[#allocation10 + $0x20] ss:$8 sps:$4 sm:$0xff]  }
 0x203   : > { %v739_v4 = vmul.f32 0.0078125, %v684_v29  ;;  %2466 = vrsqrt.f32 %v793_v3  ;;  %1387 = vmatprep.subr.bf16.mxu1 %v2411_v63  ;;  %v932_v14 = vpack.c.bf16 %v902_v49, %v901_v61  ;;  %v890_v44 = vmul.f32 %v3432_v51, %v854_v41  ;;  %v2415_v41 = vld [vmem:[#allocation10 + $0x30] ss:$8 sps:$4 sm:$0xff]  }
 0x204   : > { %v2457_v32 = vpop.eup %2456  ;;  %v794_v23 = vadd.f32 1e-06, %v762_v50  ;;  %v867_v57 = vmul.f32 %v3432_v51, %v831_v46  ;;  %v2420_v50 = vld [vmem:[#allocation10 + $0x44] ss:$8 sps:$4 sm:$0xff]  }
 0x205   : > { %v771_v6 = vadd.f32 1e-06, %v739_v4  ;;  %v2459_v53 = vpop.eup %2458  ;;  %v686_v9 = vpop.xlane.xlu1 %685  ;;  %1089 = vmatmul.mubr.bf16.gmra.mrb[4].mxu0 %v932_v14  ;;  %v926_v47 = vadd.f32 %v3440_v58, %v890_v44  ;;  %v832_v34 = vmul.f32 %v2457_v32, %v3283_v7 }
 0x206   : > { %v688_v45 = vpop.xlane.xlu0 %687  ;;  %2468 = vrsqrt.f32 %v794_v23  ;;  %v740_v54 = vmul.f32 0.0078125, %v686_v9  ;;  %1388 = vmatpush1.bf16.msra.mxu1 %v2409_v55  ;;  %1098 = vmatprep.mubr.bf16.mxu0 %v2767_v56  ;;  %v855_v59 = vmul.f32 %v2459_v53, %v3291_v10  ;;  %v903_v1 = vadd.f32 %v3440_v58, %v867_v57 }
 0x207   : > { %v741_v18 = vmul.f32 0.0078125, %v688_v45  ;;  %2470 = vrsqrt.f32 %v771_v6  ;;  %1389 = vmatprep.subr.bf16.mxu1 %v2414_v5  ;;  %v944_v0 = vpack.c.bf16 %v926_v47, %v925_v62  ;;  %v868_v63 = vmul.f32 %v3432_v51, %v832_v34  ;;  %v2423_v34 = vld [vmem:[#allocation10 + $0x54] ss:$8 sps:$4 sm:$0xff]  }
 0x208   : > { %v2461_v2 = vpop.eup %2460  ;;  %v772_v38 = vadd.f32 1e-06, %v740_v54  ;;  %v891_v10 = vmul.f32 %v3432_v51, %v855_v59 }
 0x209   : > { %v773_v7 = vadd.f32 1e-06, %v741_v18  ;;  %v2463_v12 = vpop.eup %2462  ;;  %v690_v3 = vpop.xlane.xlu1 %689  ;;  %1209 = vmatmul.mubr.bf16.gmra.mrb[4].mxu1 %v944_v0  ;;  %v904_v29 = vadd.f32 %v3440_v58, %v868_v63  ;;  %v856_v61 = vmul.f32 %v2461_v2, %v3295_v15 }
 0x20a   : > { %v692_v20 = vpop.xlane.xlu0 %691  ;;  %2472 = vrsqrt.f32 %v772_v38  ;;  %v742_v49 = vmul.f32 0.0078125, %v690_v3  ;;  %1390 = vmatpush1.bf16.msra.mxu1 %v2412_v11  ;;  %1218 = vmatprep.mubr.bf16.mxu1 %v2767_v56  ;;  %v833_v55 = vmul.f32 %v2463_v12, %v3303_v13  ;;  %v927_v23 = vadd.f32 %v3440_v58, %v891_v10  ;;  %v2418_v13 = vld [vmem:[#allocation10 + $0x40] ss:$8 sps:$4 sm:$0xff]   ;;  %v2421_v12 = vld [vmem:[#allocation10 + $0x50] ss:$8 sps:$4 sm:$0xff]  }
 0x20b   : > { %1391 = vmatprep.subr.bf16.mxu1 %v2417_v60  ;;  %v933_v8 = vpack.c.bf16 %v904_v29, %v903_v1  ;;  %v892_v4 = vmul.f32 %v3432_v51, %v856_v61  ;;  %2474 = vrsqrt.f32 %v773_v7  ;;  %v743_v44 = vmul.f32 0.0078125, %v692_v20  ;;  %v2426_v20 = vld [vmem:[#allocation10 + $0x64] ss:$8 sps:$4 sm:$0xff]  }
 0x20c   : > { %v2465_v14 = vpop.eup %2464  ;;  %v774_v5 = vadd.f32 1e-06, %v742_v49  ;;  %v869_v9 = vmul.f32 %v3432_v51, %v833_v55 }
 0x20d   : > { %v2467_v15 = vpop.eup %2466  ;;  %v694_v46 = vpop.xlane.xlu1 %693  ;;  %1099 = vmatmul.mubr.bf16.gmra.mrb[8].mxu0 %v933_v8  ;;  %v928_v6 = vadd.f32 %v3440_v58, %v892_v4  ;;  %v834_v53 = vmul.f32 %v2465_v14, %v3307_v17  ;;  %v775_v18 = vadd.f32 1e-06, %v743_v44 }
 0x20e   : > { %v696_v32 = vpop.xlane.xlu0 %695  ;;  %2476 = vrsqrt.f32 %v774_v5  ;;  %v744_v45 = vmul.f32 0.0078125, %v694_v46  ;;  %1392 = vmatpush1.bf16.msra.mxu1 %v2415_v41  ;;  %1108 = vmatprep.mubr.bf16.mxu0 %v2767_v56  ;;  %v857_v62 = vmul.f32 %v2467_v15, %v3315_v16  ;;  %v905_v60 = vadd.f32 %v3440_v58, %v869_v9 }
 0x20f   : > { %1393 = vmatprep.subr.bf16.mxu1 %v2420_v50  ;;  %v945_v47 = vpack.c.bf16 %v928_v6, %v927_v23  ;;  %v870_v57 = vmul.f32 %v3432_v51, %v834_v53  ;;  %v745_v10 = vmul.f32 0.0078125, %v696_v32  ;;  %v2429_v32 = vld [vmem:[#allocation10 + $0x74] ss:$8 sps:$4 sm:$0xff]  }
 0x210   : > { %v2469_v54 = vpop.eup %2468  ;;  %v776_v11 = vadd.f32 1e-06, %v744_v45  ;;  %v893_v16 = vmul.f32 %v3432_v51, %v857_v62 }
 0x211   : > { %v2471_v59 = vpop.eup %2470  ;;  %v698_v17 = vpop.xlane.xlu1 %697  ;;  %1219 = vmatmul.mubr.bf16.gmra.mrb[8].mxu1 %v945_v47  ;;  %v906_v63 = vadd.f32 %v3440_v58, %v870_v57  ;;  %v858_v2 = vmul.f32 %v2469_v54, %v3319_v19  ;;  %v777_v53 = vadd.f32 1e-06, %v745_v10 }
 0x212   : > { %v700_v0 = vpop.xlane.xlu0 %699  ;;  %2478 = vrsqrt.f32 %v776_v11  ;;  %v746_v38 = vmul.f32 0.0078125, %v698_v17  ;;  %1394 = vmatpush1.bf16.msra.mxu1 %v2418_v13  ;;  %1228 = vmatprep.mubr.bf16.mxu1 %v2767_v56  ;;  %v835_v29 = vmul.f32 %v2471_v59, %v3327_v21  ;;  %v929_v50 = vadd.f32 %v3440_v58, %v893_v16  ;;  %v2424_v21 = vld [vmem:[#allocation10 + $0x60] ss:$8 sps:$4 sm:$0xff]   ;;  %v2427_v11 = vld [vmem:[#allocation10 + $0x70] ss:$8 sps:$4 sm:$0xff]  }
 0x213   : > { %v747_v7 = vmul.f32 0.0078125, %v700_v0  ;;  %1395 = vmatprep.subr.bf16.mxu1 %v2423_v34  ;;  %v934_v3 = vpack.c.bf16 %v906_v63, %v905_v60  ;;  %v894_v1 = vmul.f32 %v3432_v51, %v858_v2  ;;  %2480 = vrsqrt.f32 %v775_v18 }
 0x214   : > { %v2473_v61 = vpop.eup %2472  ;;  %v778_v19 = vadd.f32 1e-06, %v746_v38  ;;  %v871_v14 = vmul.f32 %v3432_v51, %v835_v29 }
 0x215   : > { %v779_v49 = vadd.f32 1e-06, %v747_v7  ;;  %v702_v41 = vpop.xlane.xlu1 %701  ;;  %1109 = vmatmul.mubr.bf16.gmra.mrb[12].mxu0 %v934_v3  ;;  %v930_v4 = vadd.f32 %v3440_v58, %v894_v1  ;;  %v836_v55 = vmul.f32 %v2473_v61, %v3331_v22  ;;  %v2475_v5 = vpop.eup %2474 }
 0x216   : > { %v704_v8 = vpop.xlane.xlu0 %703  ;;  %v748_v44 = vmul.f32 0.0078125, %v702_v41  ;;  %1396 = vmatpush1.bf16.msra.mxu1 %v2421_v12  ;;  %1118 = vmatprep.mubr.bf16.mxu0 %v2767_v56  ;;  %v907_v62 = vadd.f32 %v3440_v58, %v871_v14  ;;  %v837_v34 = vmul.f32 %v2475_v5, %v3339_v24 }
 0x217   : > { %v749_v15 = vmul.f32 0.0078125, %v704_v8  ;;  %2482 = vrsqrt.f32 %v779_v49  ;;  %1397 = vmatprep.subr.bf16.mxu1 %v2426_v20  ;;  %v946_v46 = vpack.c.bf16 %v930_v4, %v929_v50  ;;  %v872_v23 = vmul.f32 %v3432_v51, %v836_v55 }
 0x218   : > { %v2477_v6 = vpop.eup %2476  ;;  %2484 = vrsqrt.f32 %v778_v19  ;;  %v780_v9 = vadd.f32 1e-06, %v748_v44  ;;  %v873_v16 = vmul.f32 %v3432_v51, %v837_v34 }
 0x219   : > { %v781_v22 = vadd.f32 1e-06, %v749_v15  ;;  %v706_v45 = vpop.xlane.xlu1 %705  ;;  %1229 = vmatmul.mubr.bf16.gmra.mrb[12].mxu1 %v946_v46  ;;  %v908_v47 = vadd.f32 %v3440_v58, %v872_v23  ;;  %v838_v57 = vmul.f32 %v2477_v6, %v3343_v25  ;;  %v2430_v25 = vld [vmem:[%s3073_s8] sm:$0xff]   ;;  %v2431_v15 = vld [vmem:[%s3073_s8 + $0x8] sm:$0xff]  }
 0x21a   : > { %v708_v13 = vpop.xlane.xlu0 %707  ;;  %2486 = vrsqrt.f32 %v780_v9  ;;  %v750_v54 = vmul.f32 0.0078125, %v706_v45  ;;  %1398 = vmatpush1.bf16.msra.mxu1 %v2424_v21  ;;  %1417 = vmatprep.mubr.bf16.mxu1 %v2767_v56  ;;  %v909_v19 = vadd.f32 %v3440_v58, %v873_v16 }
 0x21b   : > { %v751_v18 = vmul.f32 0.0078125, %v708_v13  ;;  %2488 = vrsqrt.f32 %v781_v22  ;;  %1399 = vmatprep.subr.bf16.mxu1 %v2429_v32  ;;  %v935_v59 = vpack.c.bf16 %v908_v47, %v907_v62  ;;  %v874_v17 = vmul.f32 %v3432_v51, %v838_v57 }
 0x21c   : > { %v2479_v0 = vpop.eup %2478  ;;  %2490 = vrsqrt.f32 %v777_v53  ;;  %v782_v60 = vadd.f32 1e-06, %v750_v54 }
 0x21d   : > { %v783_v63 = vadd.f32 1e-06, %v751_v18  ;;  %v710_v24 = vpop.xlane.xlu1 %709  ;;  %1119 = vmatmul.mubr.bf16.gmra.mrb[16].mxu0 %v935_v59  ;;  %v2481_v38 = vpop.eup %2480  ;;  %v910_v3 = vadd.f32 %v3440_v58, %v874_v17  ;;  %v840_v20 = vmul.f32 %v2479_v0, %v3355_v28  ;;  %v2432_v17 = vld [vmem:[%s3073_s8 + $0x10] sm:$0xff]  }
 0x21e   : > { %v712_v2 = vpop.xlane.xlu0 %711  ;;  %2492 = vrsqrt.f32 %v782_v60  ;;  %v752_v7 = vmul.f32 0.0078125, %v710_v24  ;;  %1400 = vmatpush1.bf16.msra.mxu1 %v2427_v11  ;;  %1128 = vmatprep.mubr.bf16.mxu0 %v2767_v56  ;;  %v839_v49 = vmul.f32 %v2481_v38, %v3351_v27 }
 0x21f   : > { %v753_v12 = vmul.f32 0.0078125, %v712_v2  ;;  %2494 = vrsqrt.f32 %v783_v63  ;;  %v936_v4 = vpack.c.bf16 %v910_v3, %v909_v19  ;;  %v876_v28 = vmul.f32 %v3432_v51, %v840_v20  ;;  %v2437_v19 = vld [vmem:[%s3073_s8 + $0x38] sm:$0xff]  }
 0x220   : > { %v784_v1 = vadd.f32 1e-06, %v752_v7  ;;  %v875_v27 = vmul.f32 %v3432_v51, %v839_v49  ;;  %v3568_v49 = vld [vmem:[%s3838_s3] sm:$0xf] }
 0x221   : > { %v785_v29 = vadd.f32 1e-06, %v753_v12  ;;  %v2483_v61 = vpop.eup %2482  ;;  %v714_v10 = vpop.xlane.xlu1 %713  ;;  %1418 = vmatmul.mubr.bf16.vlgmr.msra.gmra.mrb[16].mxu1 %v2430_v25  ;;  %v912_v23 = vadd.f32 %v3440_v58, %v876_v28 }
 0x222   : > { %v2485_v41 = vpop.eup %2484  ;;  %2496 = vrsqrt.f32 %v784_v1  ;;  %v754_v8 = vmul.f32 0.0078125, %v714_v10  ;;  %1427 = vmatprep.mubr.bf16.mxu1 %v2767_v56  ;;  %v843_v50 = vmul.f32 %v2483_v61, %v3377_v33 }
 0x223   : > { %2498 = vrsqrt.f32 %v785_v29  ;;  %v842_v6 = vmul.f32 %v2485_v41, %v3367_v31  ;;  %v2433_v29 = vld [vmem:[%s3073_s8 + $0x18] sm:$0xff]   ;;  %v954_v41 = vsub.s32 2, %v3425_v26 }
 0x224   : > { %v2487_v55 = vpop.eup %2486  ;;  %v786_v14 = vadd.f32 1e-06, %v754_v8  ;;  %v879_v5 = vmul.f32 %v3432_v51, %v843_v50  ;;  %v951_v8 = vrot.slane %v3568_v49, %v3428_v48 }
 0x225   : > { %v2489_v44 = vpop.eup %2488  ;;  %1129 = vmatmul.mubr.bf16.gmra.mrb[20].mxu0 %v936_v4  ;;  %v844_v21 = vmul.f32 %v2487_v55, %v3381_v35  ;;  %v911_v35 = vadd.f32 %v3440_v58, %v875_v27  ;;  %v878_v57 = vmul.f32 %v3432_v51, %v842_v6  ;;  %v955_v50 = vrot.slane %v3568_v49, %v954_v41 }
 0x226   : > { %v2491_v46 = vpop.eup %2490  ;;  %2500 = vrsqrt.f32 %v786_v14  ;;  %1138 = vmatprep.mubr.bf16.mxu0 %v2767_v56  ;;  %v915_v33 = vadd.f32 %v3440_v58, %v879_v5  ;;  %v845_v32 = vmul.f32 %v2489_v44, %v3389_v37  ;;  %v3575_v4 = vrot.slane %v951_v8, %v3428_v48 }
 0x227   : > { %v880_v53 = vmul.f32 %v3432_v51, %v844_v21  ;;  %v841_v13 = vmul.f32 %v2491_v46, %v3363_v30  ;;  %v937_v34 = vpack.c.bf16 %v912_v23, %v911_v35  ;;  %v914_v24 = vadd.f32 %v3440_v58, %v878_v57 }
 0x228   : > { %v2493_v9 = vpop.eup %2492  ;;  %v881_v22 = vmul.f32 %v3432_v51, %v845_v32 }
 0x229   : > { %v2495_v45 = vpop.eup %2494  ;;  %1428 = vmatmul.mubr.bf16.gmra.mrb[20].mxu1 %v2431_v15  ;;  %v916_v62 = vadd.f32 %v3440_v58, %v880_v53  ;;  %v846_v37 = vmul.f32 %v2493_v9, %v3393_v36  ;;  %v877_v36 = vmul.f32 %v3432_v51, %v841_v13 }
 0x22a   : > { %1437 = vmatprep.mubr.bf16.mxu1 %v2767_v56  ;;  %v917_v31 = vadd.f32 %v3440_v58, %v881_v22  ;;  %v847_v47 = vmul.f32 %v2495_v45, %v3401_v40 }
 0x22b   : > { %v939_v54 = vpack.c.bf16 %v916_v62, %v915_v33  ;;  %v882_v18 = vmul.f32 %v3432_v51, %v846_v37  ;;  %v913_v7 = vadd.f32 %v3440_v58, %v877_v36 }
 0x22c   : > { %v2497_v11 = vpop.eup %2496  ;;  %v883_v59 = vmul.f32 %v3432_v51, %v847_v47 }
 0x22d   : > { %v2499_v30 = vpop.eup %2498  ;;  %1139 = vmatmul.mubr.bf16.gmra.mrb[24].mxu0 %v937_v34  ;;  %v918_v0 = vadd.f32 %v3440_v58, %v882_v18  ;;  %v848_v60 = vmul.f32 %v2497_v11, %v3405_v39  ;;  %v938_v3 = vpack.c.bf16 %v914_v24, %v913_v7 }
 0x22e   : > { %1148 = vmatprep.mubr.bf16.mxu0 %v2767_v56  ;;  %v919_v40 = vadd.f32 %v3440_v58, %v883_v59  ;;  %v849_v63 = vmul.f32 %v2499_v30, %v3413_v43 }
 0x22f   : > { %v940_v2 = vpack.c.bf16 %v918_v0, %v917_v31  ;;  %v884_v25 = vmul.f32 %v3432_v51, %v848_v60 }
 0x230   : > { %v2501_v16 = vpop.eup %2500  ;;  %v885_v38 = vmul.f32 %v3432_v51, %v849_v63 }
 0x231   : > { %1438 = vmatmul.mubr.bf16.gmra.mrb[24].mxu1 %v2432_v17  ;;  %v920_v39 = vadd.f32 %v3440_v58, %v884_v25  ;;  %v850_v12 = vmul.f32 %v2501_v16, %v3417_v42  ;;  %v2434_v42 = vld [vmem:[%s3073_s8 + $0x20] sm:$0xff]  }
 0x232   : > { %1447 = vmatprep.mubr.bf16.mxu1 %v2767_v56  ;;  %v921_v43 = vadd.f32 %v3440_v58, %v885_v38 }
 0x233   : > { %v941_v20 = vpack.c.bf16 %v920_v39, %v919_v40  ;;  %v886_v1 = vmul.f32 %v3432_v51, %v850_v12  ;;  %v2435_v51 = vld [vmem:[%s3073_s8 + $0x28] sm:$0xff]  }
 0x235   : > { %1149 = vmatmul.mubr.bf16.gmra.mrb[28].mxu0 %v938_v3  ;;  %v922_v61 = vadd.f32 %v3440_v58, %v886_v1  ;;  %v2436_v58 = vld [vmem:[%s3073_s8 + $0x30] sm:$0xff]  }
 0x236   : > { %1158 = vmatprep.mubr.bf16.mxu0 %v2767_v56 }
 0x237   : > { %v942_v10 = vpack.c.bf16 %v922_v61, %v921_v43 }
 0x239   : > { %1448 = vmatmul.mubr.bf16.gmra.mrb[28].mxu1 %v2433_v29 }
 0x23a   : > { %1457 = vmatprep.mubr.bf16.mxu1 %v2767_v56 }
 0x23d   : > { %1159 = vmatmul.mubr.bf16.gmra.mrb[32].mxu0 %v939_v54 }
 0x23e   : > { %1168 = vmatprep.mubr.bf16.mxu0 %v2767_v56 }
 0x241   : > { %1458 = vmatmul.mubr.bf16.gmra.mrb[32].mxu1 %v2434_v42 }
 0x242   : > { %1467 = vmatprep.mubr.bf16.mxu1 %v2767_v56 }
 0x245   : > { %1169 = vmatmul.mubr.bf16.gmra.mrb[36].mxu0 %v940_v2 }
 0x246   : > { %1178 = vmatprep.mubr.bf16.mxu0 %v2767_v56 }
 0x249   : > { %1468 = vmatmul.mubr.bf16.gmra.mrb[36].mxu1 %v2435_v51 }
 0x24a   : > { %1477 = vmatprep.mubr.bf16.mxu1 %v2767_v56 }
 0x24d   : > { %1179 = vmatmul.mubr.bf16.gmra.mrb[40].mxu0 %v941_v20 }
 0x24e   : > { %1188 = vmatprep.mubr.bf16.mxu0 %v2767_v56 }
 0x251   : > { %1478 = vmatmul.mubr.bf16.gmra.mrb[40].mxu1 %v2436_v58 }
 0x252   : > { %1487 = vmatprep.mubr.bf16.mxu1 %v2767_v56  ;;  %v3578_v56 = vrot.slane %v955_v50, %v3428_v48 }
 0x255   : > { %1189 = vmatmul.mubr.bf16.gmra.mrb[44].mxu0 %v942_v10 }
 0x259   : > { %1488 = vmatmul.mubr.bf16.gmra.mrb[44].mxu1 %v2437_v19 }
 0x2d0   : > { %v1080_v28 = vpop.f32.mrb[0].mxu0 }
 0x2d1   : > { %v1081_v55 = vadd.f32 %v1080_v28, %v3575_v4  ;;  %v1082_v14 = vpop.f32.mrb[1].mxu0 }
 0x2d2   : > { %v1083_v5 = vadd.f32 %v1082_v14, %v3578_v56  ;;  %v1084_v44 = vpop.f32.mrb[2].mxu0 }
 0x2d3   : > { %v1085_v15 = vadd.f32 %v1084_v44, %v3575_v4  ;;  %v1086_v27 = vpop.f32.mrb[3].mxu0 }
 0x2d4   : > { %v2143_v21 = vpack.c.bf16 %v1083_v5, %v1081_v55  ;;  %v1087_v46 = vadd.f32 %v1086_v27, %v3578_v56  ;;  %v1200_v33 = vpop.f32.mrb[0].mxu1  ;;  %v1245_v27 = vsub.s32 3, %v3425_v26 }
 0x2d5   : > { %v1201_v32 = vadd.f32 %v1200_v33, %v3575_v4  ;;  %v1202_v23 = vpop.f32.mrb[1].mxu1 }
 0x2d6   : > { %1690 = vst [vmem:[%s3586_s23] sm:$0xff] %v2143_v21  ;;  %v2144_v48 = vpack.c.bf16 %v1087_v46, %v1085_v15  ;;  %v1203_v6 = vadd.f32 %v1202_v23, %v3578_v56  ;;  %v1204_v53 = vpop.f32.mrb[2].mxu1 }
 0x2d7   : > { %v1205_v9 = vadd.f32 %v1204_v53, %v3575_v4  ;;  %v1206_v22 = vpop.f32.mrb[3].mxu1  ;;  %v1242_v53 = vrot.slane %v3568_v49, %v3435_v52 }
 0x2d8   : > { %1691 = vst [vmem:[%s3586_s23 + $0x8] sm:$0xff] %v2144_v48  ;;  %v2167_v45 = vpack.c.bf16 %v1203_v6, %v1201_v32  ;;  %v1207_v35 = vadd.f32 %v1206_v22, %v3578_v56  ;;  %v1090_v13 = vpop.f32.mrb[4].mxu0 }
 0x2d9   : > { %v1091_v62 = vadd.f32 %v1090_v13, %v3575_v4  ;;  %v1092_v37 = vpop.f32.mrb[5].mxu0 }
 0x2da   : > { %1714 = vst [vmem:[%s3586_s23 + $0xc0] sm:$0xff] %v2167_v45  ;;  %v2168_v31 = vpack.c.bf16 %v1207_v35, %v1205_v9  ;;  %v1093_v47 = vadd.f32 %v1092_v37, %v3578_v56  ;;  %v1094_v34 = vpop.f32.mrb[6].mxu0  ;;  %v1246_v45 = vrot.slane %v3568_v49, %v1245_v27 }
 0x2db   : > { %v1095_v57 = vadd.f32 %v1094_v34, %v3575_v4  ;;  %v1096_v54 = vpop.f32.mrb[7].mxu0 }
 0x2dc   : > { %1715 = vst [vmem:[%s3586_s23 + $0xc8] sm:$0xff] %v2168_v31  ;;  %v2145_v18 = vpack.c.bf16 %v1093_v47, %v1091_v62  ;;  %v1097_v11 = vadd.f32 %v1096_v54, %v3578_v56  ;;  %v1210_v59 = vpop.f32.mrb[4].mxu1 }
 0x2dd   : > { %v1211_v30 = vadd.f32 %v1210_v59, %v3575_v4  ;;  %v1212_v17 = vpop.f32.mrb[5].mxu1 }
 0x2de   : > { %1692 = vst [vmem:[%s3586_s23 + $0x10] sm:$0xff] %v2145_v18  ;;  %v2146_v36 = vpack.c.bf16 %v1097_v11, %v1095_v57  ;;  %v1213_v0 = vadd.f32 %v1212_v17, %v3578_v56  ;;  %v1214_v60 = vpop.f32.mrb[6].mxu1  ;;  %v3635_v57 = vrot.slane %v1242_v53, %v3435_v52  ;;  %v3640_v11 = vrot.slane %v1246_v45, %v3435_v52 }
 0x2df   : > { %v1215_v40 = vadd.f32 %v1214_v60, %v3575_v4  ;;  %v1216_v63 = vpop.f32.mrb[7].mxu1 }
 0x2e0   : > { %1693 = vst [vmem:[%s3586_s23 + $0x18] sm:$0xff] %v2146_v36  ;;  %v2169_v24 = vpack.c.bf16 %v1213_v0, %v1211_v30  ;;  %v1217_v2 = vadd.f32 %v1216_v63, %v3578_v56  ;;  %v1100_v25 = vpop.f32.mrb[8].mxu0 }
 0x2e1   : > { %v1101_v16 = vadd.f32 %v1100_v25, %v3575_v4  ;;  %v1102_v38 = vpop.f32.mrb[9].mxu0 }
 0x2e2   : > { %1716 = vst [vmem:[%s3586_s23 + $0xd0] sm:$0xff] %v2169_v24  ;;  %v2170_v7 = vpack.c.bf16 %v1217_v2, %v1215_v40  ;;  %v1103_v39 = vadd.f32 %v1102_v38, %v3578_v56  ;;  %v1104_v12 = vpop.f32.mrb[10].mxu0 }
 0x2e3   : > { %v1105_v43 = vadd.f32 %v1104_v12, %v3575_v4  ;;  %v1106_v3 = vpop.f32.mrb[11].mxu0 }
 0x2e4   : > { %1717 = vst [vmem:[%s3586_s23 + $0xd8] sm:$0xff] %v2170_v7  ;;  %v2147_v20 = vpack.c.bf16 %v1103_v39, %v1101_v16  ;;  %v1107_v1 = vadd.f32 %v1106_v3, %v3578_v56  ;;  %v1220_v29 = vpop.f32.mrb[8].mxu1 }
 0x2e5   : > { %v1221_v61 = vadd.f32 %v1220_v29, %v3575_v4  ;;  %v1222_v10 = vpop.f32.mrb[9].mxu1 }
 0x2e6   : > { %1694 = vst [vmem:[%s3586_s23 + $0x20] sm:$0xff] %v2147_v20  ;;  %v2148_v42 = vpack.c.bf16 %v1107_v1, %v1105_v43  ;;  %v1223_v51 = vadd.f32 %v1222_v10, %v3578_v56  ;;  %v1224_v58 = vpop.f32.mrb[10].mxu1 }
 0x2e7   : > { %v1225_v19 = vadd.f32 %v1224_v58, %v3575_v4  ;;  %v1226_v41 = vpop.f32.mrb[11].mxu1 }
 0x2e8   : > { %1695 = vst [vmem:[%s3586_s23 + $0x28] sm:$0xff] %v2148_v42  ;;  %v2171_v8 = vpack.c.bf16 %v1223_v51, %v1221_v61  ;;  %v1227_v50 = vadd.f32 %v1226_v41, %v3578_v56  ;;  %v1110_v28 = vpop.f32.mrb[12].mxu0 }
 0x2e9   : > { %v1111_v55 = vadd.f32 %v1110_v28, %v3575_v4  ;;  %v1112_v14 = vpop.f32.mrb[13].mxu0 }
 0x2ea   : > { %1718 = vst [vmem:[%s3586_s23 + $0xe0] sm:$0xff] %v2171_v8  ;;  %v2172_v5 = vpack.c.bf16 %v1227_v50, %v1225_v19  ;;  %v1113_v44 = vadd.f32 %v1112_v14, %v3578_v56  ;;  %v1114_v15 = vpop.f32.mrb[14].mxu0 }
 0x2eb   : > { %v1115_v21 = vadd.f32 %v1114_v15, %v3575_v4  ;;  %v1116_v46 = vpop.f32.mrb[15].mxu0 }
 0x2ec   : > { %1719 = vst [vmem:[%s3586_s23 + $0xe8] sm:$0xff] %v2172_v5  ;;  %v2149_v33 = vpack.c.bf16 %v1113_v44, %v1111_v55  ;;  %v1117_v32 = vadd.f32 %v1116_v46, %v3578_v56  ;;  %v1230_v23 = vpop.f32.mrb[12].mxu1 }
 0x2ed   : > { %v1231_v48 = vadd.f32 %v1230_v23, %v3575_v4  ;;  %v1232_v6 = vpop.f32.mrb[13].mxu1 }
 0x2ee   : > { %1696 = vst [vmem:[%s3586_s23 + $0x30] sm:$0xff] %v2149_v33  ;;  %v2150_v9 = vpack.c.bf16 %v1117_v32, %v1115_v21  ;;  %v1233_v26 = vadd.f32 %v1232_v6, %v3578_v56  ;;  %v1234_v22 = vpop.f32.mrb[14].mxu1 }
 0x2ef   : > { %v1235_v35 = vadd.f32 %v1234_v22, %v3575_v4  ;;  %v1236_v13 = vpop.f32.mrb[15].mxu1 }
 0x2f0   : > { %1697 = vst [vmem:[%s3586_s23 + $0x38] sm:$0xff] %v2150_v9  ;;  %v2173_v62 = vpack.c.bf16 %v1233_v26, %v1231_v48  ;;  %v1237_v37 = vadd.f32 %v1236_v13, %v3578_v56  ;;  %v1120_v31 = vpop.f32.mrb[16].mxu0 }
 0x2f1   : > { %v1121_v47 = vadd.f32 %v1120_v31, %v3575_v4  ;;  %v1122_v34 = vpop.f32.mrb[17].mxu0 }
 0x2f2   : > { %1720 = vst [vmem:[%s3586_s23 + $0xf0] sm:$0xff] %v2173_v62  ;;  %v2174_v54 = vpack.c.bf16 %v1237_v37, %v1235_v35  ;;  %v1123_v49 = vadd.f32 %v1122_v34, %v3578_v56  ;;  %v1124_v18 = vpop.f32.mrb[18].mxu0 }
 0x2f3   : > { %v1125_v59 = vadd.f32 %v1124_v18, %v3575_v4  ;;  %v1126_v30 = vpop.f32.mrb[19].mxu0 }
 0x2f4   : > { %1721 = vst [vmem:[%s3586_s23 + $0xf8] sm:$0xff] %v2174_v54  ;;  %v2151_v17 = vpack.c.bf16 %v1123_v49, %v1121_v47  ;;  %v1127_v36 = vadd.f32 %v1126_v30, %v3578_v56  ;;  %v1419_v0 = vpop.f32.mrb[16].mxu1 }
 0x2f5   : > { %v1420_v60 = vadd.f32 %v1419_v0, %v3635_v57  ;;  %v1421_v40 = vpop.f32.mrb[17].mxu1 }
 0x2f6   : > { %1698 = vst [vmem:[%s3586_s23 + $0x40] sm:$0xff] %v2151_v17  ;;  %v2152_v63 = vpack.c.bf16 %v1127_v36, %v1125_v59  ;;  %v1422_v24 = vadd.f32 %v1421_v40, %v3640_v11  ;;  %v1423_v2 = vpop.f32.mrb[18].mxu1 }
 0x2f7   : > { %v1424_v52 = vadd.f32 %v1423_v2, %v3635_v57  ;;  %v1425_v25 = vpop.f32.mrb[19].mxu1 }
 0x2f8   : > { %1699 = vst [vmem:[%s3586_s23 + $0x48] sm:$0xff] %v2152_v63  ;;  %v2175_v16 = vpack.c.bf16 %v1422_v24, %v1420_v60  ;;  %v1426_v38 = vadd.f32 %v1425_v25, %v3640_v11  ;;  %v1130_v7 = vpop.f32.mrb[20].mxu0 }
 0x2f9   : > { %v1131_v39 = vadd.f32 %v1130_v7, %v3575_v4  ;;  %v1132_v12 = vpop.f32.mrb[21].mxu0 }
 0x2fa   : > { %1818 = vst [vmem:[%s3654_s0] sm:$0xff] %v2175_v16  ;;  %v2176_v43 = vpack.c.bf16 %v1426_v38, %v1424_v52  ;;  %v1133_v3 = vadd.f32 %v1132_v12, %v3578_v56  ;;  %v1134_v20 = vpop.f32.mrb[22].mxu0 }
 0x2fb   : > { %v1135_v1 = vadd.f32 %v1134_v20, %v3575_v4  ;;  %v1136_v29 = vpop.f32.mrb[23].mxu0 }
 0x2fc   : > { %1819 = vst [vmem:[%s3654_s0 + $0x8] sm:$0xff] %v2176_v43  ;;  %v2153_v61 = vpack.c.bf16 %v1133_v3, %v1131_v39  ;;  %v1137_v10 = vadd.f32 %v1136_v29, %v3578_v56  ;;  %v1429_v42 = vpop.f32.mrb[20].mxu1 }
 0x2fd   : > { %v1430_v51 = vadd.f32 %v1429_v42, %v3635_v57  ;;  %v1431_v58 = vpop.f32.mrb[21].mxu1 }
 0x2fe   : > { %1700 = vst [vmem:[%s3586_s23 + $0x50] sm:$0xff] %v2153_v61  ;;  %v2154_v19 = vpack.c.bf16 %v1137_v10, %v1135_v1  ;;  %v1432_v41 = vadd.f32 %v1431_v58, %v3640_v11  ;;  %v1433_v8 = vpop.f32.mrb[22].mxu1 }
 0x2ff   : > { %v1434_v50 = vadd.f32 %v1433_v8, %v3635_v57  ;;  %v1435_v28 = vpop.f32.mrb[23].mxu1 }
 0x300   : > { %1701 = vst [vmem:[%s3586_s23 + $0x58] sm:$0xff] %v2154_v19  ;;  %v2177_v55 = vpack.c.bf16 %v1432_v41, %v1430_v51  ;;  %v1436_v14 = vadd.f32 %v1435_v28, %v3640_v11  ;;  %v1140_v5 = vpop.f32.mrb[24].mxu0 }
 0x301   : > { %v1141_v44 = vadd.f32 %v1140_v5, %v3575_v4  ;;  %v1142_v15 = vpop.f32.mrb[25].mxu0 }
 0x302   : > { %1820 = vst [vmem:[%s3654_s0 + $0x10] sm:$0xff] %v2177_v55  ;;  %v2178_v27 = vpack.c.bf16 %v1436_v14, %v1434_v50  ;;  %v1143_v21 = vadd.f32 %v1142_v15, %v3578_v56  ;;  %v1144_v46 = vpop.f32.mrb[26].mxu0 }
 0x303   : > { %v1145_v33 = vadd.f32 %v1144_v46, %v3575_v4  ;;  %v1146_v32 = vpop.f32.mrb[27].mxu0 }
 0x304   : > { %1821 = vst [vmem:[%s3654_s0 + $0x18] sm:$0xff] %v2178_v27  ;;  %v2155_v23 = vpack.c.bf16 %v1143_v21, %v1141_v44  ;;  %v1147_v48 = vadd.f32 %v1146_v32, %v3578_v56  ;;  %v1439_v6 = vpop.f32.mrb[24].mxu1 }
 0x305   : > { %v1440_v53 = vadd.f32 %v1439_v6, %v3635_v57  ;;  %v1441_v9 = vpop.f32.mrb[25].mxu1 }
 0x306   : > { %1702 = vst [vmem:[%s3586_s23 + $0x60] sm:$0xff] %v2155_v23  ;;  %v2156_v26 = vpack.c.bf16 %v1147_v48, %v1145_v33  ;;  %v1442_v22 = vadd.f32 %v1441_v9, %v3640_v11  ;;  %v1443_v45 = vpop.f32.mrb[26].mxu1 }
 0x307   : > { %v1444_v35 = vadd.f32 %v1443_v45, %v3635_v57  ;;  %v1445_v13 = vpop.f32.mrb[27].mxu1 }
 0x308   : > { %1703 = vst [vmem:[%s3586_s23 + $0x68] sm:$0xff] %v2156_v26  ;;  %v2179_v62 = vpack.c.bf16 %v1442_v22, %v1440_v53  ;;  %v1446_v37 = vadd.f32 %v1445_v13, %v3640_v11  ;;  %v1150_v31 = vpop.f32.mrb[28].mxu0 }
 0x309   : > { %v1151_v47 = vadd.f32 %v1150_v31, %v3575_v4  ;;  %v1152_v34 = vpop.f32.mrb[29].mxu0 }
 0x30a   : > { %1822 = vst [vmem:[%s3654_s0 + $0x20] sm:$0xff] %v2179_v62  ;;  %v2180_v54 = vpack.c.bf16 %v1446_v37, %v1444_v35  ;;  %v1153_v49 = vadd.f32 %v1152_v34, %v3578_v56  ;;  %v1154_v18 = vpop.f32.mrb[30].mxu0 }
 0x30b   : > { %v1155_v59 = vadd.f32 %v1154_v18, %v3575_v4  ;;  %v1156_v30 = vpop.f32.mrb[31].mxu0 }
 0x30c   : > { %1823 = vst [vmem:[%s3654_s0 + $0x28] sm:$0xff] %v2180_v54  ;;  %v2157_v17 = vpack.c.bf16 %v1153_v49, %v1151_v47  ;;  %v1157_v36 = vadd.f32 %v1156_v30, %v3578_v56  ;;  %v1449_v0 = vpop.f32.mrb[28].mxu1 }
 0x30d   : > { %v1450_v60 = vadd.f32 %v1449_v0, %v3635_v57  ;;  %v1451_v40 = vpop.f32.mrb[29].mxu1 }
 0x30e   : > { %1704 = vst [vmem:[%s3586_s23 + $0x70] sm:$0xff] %v2157_v17  ;;  %v2158_v63 = vpack.c.bf16 %v1157_v36, %v1155_v59  ;;  %v1452_v24 = vadd.f32 %v1451_v40, %v3640_v11  ;;  %v1453_v2 = vpop.f32.mrb[30].mxu1 }
 0x30f   : > { %v1454_v52 = vadd.f32 %v1453_v2, %v3635_v57  ;;  %v1455_v25 = vpop.f32.mrb[31].mxu1 }
 0x310   : > { %1705 = vst [vmem:[%s3586_s23 + $0x78] sm:$0xff] %v2158_v63  ;;  %v2181_v16 = vpack.c.bf16 %v1452_v24, %v1450_v60  ;;  %v1456_v38 = vadd.f32 %v1455_v25, %v3640_v11  ;;  %v1160_v7 = vpop.f32.mrb[32].mxu0 }
 0x311   : > { %v1161_v39 = vadd.f32 %v1160_v7, %v3575_v4  ;;  %v1162_v12 = vpop.f32.mrb[33].mxu0 }
 0x312   : > { %1824 = vst [vmem:[%s3654_s0 + $0x30] sm:$0xff] %v2181_v16  ;;  %v2182_v43 = vpack.c.bf16 %v1456_v38, %v1454_v52  ;;  %v1163_v3 = vadd.f32 %v1162_v12, %v3578_v56  ;;  %v1164_v20 = vpop.f32.mrb[34].mxu0 }
 0x313   : > { %v1165_v1 = vadd.f32 %v1164_v20, %v3575_v4  ;;  %v1166_v29 = vpop.f32.mrb[35].mxu0 }
 0x314   : > { %1825 = vst [vmem:[%s3654_s0 + $0x38] sm:$0xff] %v2182_v43  ;;  %v2159_v61 = vpack.c.bf16 %v1163_v3, %v1161_v39  ;;  %v1167_v10 = vadd.f32 %v1166_v29, %v3578_v56  ;;  %v1459_v42 = vpop.f32.mrb[32].mxu1 }
 0x315   : > { %v1460_v51 = vadd.f32 %v1459_v42, %v3635_v57  ;;  %v1461_v58 = vpop.f32.mrb[33].mxu1 }
 0x316   : > { %1706 = vst [vmem:[%s3586_s23 + $0x80] sm:$0xff] %v2159_v61  ;;  %v2160_v19 = vpack.c.bf16 %v1167_v10, %v1165_v1  ;;  %v1462_v41 = vadd.f32 %v1461_v58, %v3640_v11  ;;  %v1463_v8 = vpop.f32.mrb[34].mxu1 }
 0x317   : > { %v1464_v50 = vadd.f32 %v1463_v8, %v3635_v57  ;;  %v1465_v28 = vpop.f32.mrb[35].mxu1 }
 0x318   : > { %1707 = vst [vmem:[%s3586_s23 + $0x88] sm:$0xff] %v2160_v19  ;;  %v2183_v55 = vpack.c.bf16 %v1462_v41, %v1460_v51  ;;  %v1466_v14 = vadd.f32 %v1465_v28, %v3640_v11  ;;  %v1170_v5 = vpop.f32.mrb[36].mxu0 }
 0x319   : > { %v1171_v44 = vadd.f32 %v1170_v5, %v3575_v4  ;;  %v1172_v15 = vpop.f32.mrb[37].mxu0 }
 0x31a   : > { %1826 = vst [vmem:[%s3654_s0 + $0x40] sm:$0xff] %v2183_v55  ;;  %v2184_v27 = vpack.c.bf16 %v1466_v14, %v1464_v50  ;;  %v1173_v21 = vadd.f32 %v1172_v15, %v3578_v56  ;;  %v1174_v46 = vpop.f32.mrb[38].mxu0 }
 0x31b   : > { %v1175_v33 = vadd.f32 %v1174_v46, %v3575_v4  ;;  %v1176_v32 = vpop.f32.mrb[39].mxu0 }
 0x31c   : > { %1827 = vst [vmem:[%s3654_s0 + $0x48] sm:$0xff] %v2184_v27  ;;  %v2161_v23 = vpack.c.bf16 %v1173_v21, %v1171_v44  ;;  %v1177_v48 = vadd.f32 %v1176_v32, %v3578_v56  ;;  %v1469_v6 = vpop.f32.mrb[36].mxu1 }
 0x31d   : > { %v1470_v53 = vadd.f32 %v1469_v6, %v3635_v57  ;;  %v1471_v9 = vpop.f32.mrb[37].mxu1 }
 0x31e   : > { %1708 = vst [vmem:[%s3586_s23 + $0x90] sm:$0xff] %v2161_v23  ;;  %v2162_v26 = vpack.c.bf16 %v1177_v48, %v1175_v33  ;;  %v1472_v22 = vadd.f32 %v1471_v9, %v3640_v11  ;;  %v1473_v45 = vpop.f32.mrb[38].mxu1 }
 0x31f   : > { %v1474_v35 = vadd.f32 %v1473_v45, %v3635_v57  ;;  %v1475_v13 = vpop.f32.mrb[39].mxu1 }
 0x320   : > { %1709 = vst [vmem:[%s3586_s23 + $0x98] sm:$0xff] %v2162_v26  ;;  %v2185_v62 = vpack.c.bf16 %v1472_v22, %v1470_v53  ;;  %v1476_v37 = vadd.f32 %v1475_v13, %v3640_v11  ;;  %v1180_v31 = vpop.f32.mrb[40].mxu0 }
 0x321   : > { %v1181_v47 = vadd.f32 %v1180_v31, %v3575_v4  ;;  %v1182_v34 = vpop.f32.mrb[41].mxu0 }
 0x322   : > { %1828 = vst [vmem:[%s3654_s0 + $0x50] sm:$0xff] %v2185_v62  ;;  %v2186_v54 = vpack.c.bf16 %v1476_v37, %v1474_v35  ;;  %v1183_v49 = vadd.f32 %v1182_v34, %v3578_v56  ;;  %v1184_v18 = vpop.f32.mrb[42].mxu0 }
 0x323   : > { %v1185_v59 = vadd.f32 %v1184_v18, %v3575_v4  ;;  %v1186_v30 = vpop.f32.mrb[43].mxu0 }
 0x324   : > { %1829 = vst [vmem:[%s3654_s0 + $0x58] sm:$0xff] %v2186_v54  ;;  %v2163_v17 = vpack.c.bf16 %v1183_v49, %v1181_v47  ;;  %v1187_v36 = vadd.f32 %v1186_v30, %v3578_v56  ;;  %v1479_v0 = vpop.f32.mrb[40].mxu1 }
 0x325   : > { %v1480_v60 = vadd.f32 %v1479_v0, %v3635_v57  ;;  %v1481_v40 = vpop.f32.mrb[41].mxu1 }
 0x326   : > { %1710 = vst [vmem:[%s3586_s23 + $0xa0] sm:$0xff] %v2163_v17  ;;  %v2164_v63 = vpack.c.bf16 %v1187_v36, %v1185_v59  ;;  %v1482_v24 = vadd.f32 %v1481_v40, %v3640_v11  ;;  %v1483_v2 = vpop.f32.mrb[42].mxu1 }
 0x327   : > { %v1484_v52 = vadd.f32 %v1483_v2, %v3635_v57  ;;  %v1485_v25 = vpop.f32.mrb[43].mxu1 }
 0x328   : > { %1711 = vst [vmem:[%s3586_s23 + $0xa8] sm:$0xff] %v2164_v63  ;;  %v2187_v16 = vpack.c.bf16 %v1482_v24, %v1480_v60  ;;  %v1486_v38 = vadd.f32 %v1485_v25, %v3640_v11  ;;  %v1190_v7 = vpop.f32.mrb[44].mxu0 }
 0x329   : > { %v1191_v39 = vadd.f32 %v1190_v7, %v3575_v4  ;;  %v1192_v12 = vpop.f32.mrb[45].mxu0 }
 0x32a   : > { %1830 = vst [vmem:[%s3654_s0 + $0x60] sm:$0xff] %v2187_v16  ;;  %v2188_v43 = vpack.c.bf16 %v1486_v38, %v1484_v52  ;;  %v1193_v3 = vadd.f32 %v1192_v12, %v3578_v56  ;;  %v1194_v20 = vpop.f32.mrb[46].mxu0 }
 0x32b   : > { %v1195_v1 = vadd.f32 %v1194_v20, %v3575_v4  ;;  %v1196_v29 = vpop.f32.mrb[47].mxu0 }
 0x32c   : > { %1831 = vst [vmem:[%s3654_s0 + $0x68] sm:$0xff] %v2188_v43  ;;  %v2165_v61 = vpack.c.bf16 %v1193_v3, %v1191_v39  ;;  %v1197_v10 = vadd.f32 %v1196_v29, %v3578_v56  ;;  %v1489_v42 = vpop.f32.mrb[44].mxu1 }
 0x32d   : > { %v1490_v51 = vadd.f32 %v1489_v42, %v3635_v57  ;;  %v1491_v58 = vpop.f32.mrb[45].mxu1 }
 0x32e   : > { %1712 = vst [vmem:[%s3586_s23 + $0xb0] sm:$0xff] %v2165_v61  ;;  %v2166_v4 = vpack.c.bf16 %v1197_v10, %v1195_v1  ;;  %v1492_v19 = vadd.f32 %v1491_v58, %v3640_v11  ;;  %v1493_v56 = vpop.f32.mrb[46].mxu1 }
 0x32f   : > { %v1494_v41 = vadd.f32 %v1493_v56, %v3635_v57  ;;  %v1495_v8 = vpop.f32.mrb[47].mxu1 }
 0x330   : > { %1713 = vst [vmem:[%s3586_s23 + $0xb8] sm:$0xff] %v2166_v4  ;;  %v2189_v50 = vpack.c.bf16 %v1492_v19, %v1490_v51  ;;  %v1496_v28 = vadd.f32 %v1495_v8, %v3640_v11 }
 0x331   : > { %2659 = shalt.err (!%p2656_p3)
}
 0x332   : > { %s2660_s8 = scalar_lea.hbm %s3739_s21, 4096  ;;  %s2664_s12 = scalar_lea.hbm %s3841_s6, 8192 }
 0x333   : > { %p2661_p9 = scmp.ne.s32.totalorder %s3739_s21, %s2660_s8  ;;  %p2665_p7 = scmp.lt.u32.totalorder %s3739_s21, %s3841_s6 }
 0x334   : > { %p2666_p12 = scmp.lt.u32.totalorder %s2664_s12, %s2660_s8  ;;  %p2668_p2 = scmp.lt.u32.totalorder %s2660_s8, %s3739_s21 }
 0x335   : > { %p2662_p13 = pnand %p2661_p9, %p2966_p5 }
 0x336   : > { %p2667_p1 = por %p2666_p12, %p2665_p7 }
 0x337   : > { %p2663_p11 = pneg %p2662_p13 }
 0x338   : > { %p2669_p4 = por %p2668_p2, %p2667_p1 }
 0x33a   : > { %p2670_p0 = pnand %p2669_p4, %p2663_p11 }
 0x33c   : > { %2673 = shalt.err (!%p2670_p0)
}
 0x33d   : > { %s2769_s13 = smov 128   ;;  %s2770_s15 = smov 8   ;;  %1832 = vst [vmem:[%s3654_s0 + $0x70] sm:$0xff] %v2189_v50  ;;  %v2190_v57 = vpack.c.bf16 %v1496_v28, %v1494_v41 }
 0x33e   : > { %2304 = dma.vmem_to_hbm [thread:$0]  (%p2966_p5), %s3741_s14, 4096, %s3739_s21, %s1835_s20, %s2769_s13, %s2769_s13, %s2770_s15  }
 0x33f   : > { %s3783_s4 = scalar_lea.hbm %s3842_s7, %s2192_s29  ;;  %1833 = vst [vmem:[%s3654_s0 + $0x78] sm:$0xff] %v2190_v57  ;;  %s1840_s9 = scalar_lea.sflag [#allocation13], %s3059_s5 }
 0x340   : > { %s2674_s8 = scalar_lea.vmem %s3787_s17, 2048  ;;  %s2771_s14 = smov [#allocation12]  }
 0x341   : > { %p2675_p8 = scmp.ne.s32.totalorder %s3787_s17, %s2674_s8  ;;  %s2678_s28 = sshll.u32 %s2771_s14, 4  ;;  %s2679_s28 = int_to_ptr.vmem [resolvable:$false] %s2678_s28 }
 0x342   : > { %s2680_s21 = scalar_lea.vmem %s2679_s28, 4096  ;;  %p2681_p3 = scmp.lt.s32.totalorder %s3787_s17, %s2679_s28 }
 0x343   : > { %p2676_p6 = pnand %p2675_p8, %p2966_p5  ;;  %p2682_p9 = scmp.lt.s32.totalorder %s2680_s21, %s2674_s8 }
 0x345   : > { %p2677_p10 = pneg %p2676_p6  ;;  %p2683_p13 = por %p2682_p9, %p2681_p3 }
 0x347   : > { %p2684_p11 = pnand %p2683_p13, %p2677_p10 }
 0x349   : > { %2687 = shalt.err (!%p2684_p11)
}
 0x34a   : > { %s2688_s0 = scalar_lea.hbm %s3783_s4, 2048  ;;  %s2692_s30 = scalar_lea.hbm %s3842_s7, 4096 }
 0x34b   : > { %p2689_p7 = scmp.ne.s32.totalorder %s3783_s4, %s2688_s0  ;;  %p2693_p2 = scmp.lt.u32.totalorder %s3783_s4, %s3842_s7 }
 0x34c   : > { %p2694_p4 = scmp.lt.u32.totalorder %s2692_s30, %s2688_s0  ;;  %p2696_p8 = scmp.lt.u32.totalorder %s2688_s0, %s3783_s4 }
 0x34d   : > { %p2690_p12 = pnand %p2689_p7, %p2966_p5 }
 0x34e   : > { %p2695_p0 = por %p2694_p4, %p2693_p2 }
 0x34f   : > { %p2691_p1 = pneg %p2690_p12 }
 0x350   : > { %p2697_p6 = por %p2696_p8, %p2695_p0 }
 0x352   : > { %p2698_p10 = pnand %p2697_p6, %p2691_p1 }
 0x354   : > { %2701 = shalt.err (!%p2698_p10)
}
 0x355   : > { %2305 = dma.vmem_to_hbm [thread:$0]  (%p2966_p5), %s3787_s17, 2048, %s3783_s4, %s1840_s9, %s2769_s13, %s2769_s13, %s2770_s15  }
 0x356 PF: > { %s3870_s23 = sld [smem:[#allocation20_spill]]  ;;  %s1884_s10 = sand.u32 1, %s2744_s24  }
 0x357   : > { %p3872_p9 = scmp.ge.s32.totalorder %s2756_s27, 2  ;;  %s1885_s11 = scalar_lea.sflag [#allocation4], %s1884_s10 }
 0x35c   : > { %p3871_p3 = scmp.ne.s32.totalorder %s3870_s23, 0 }
 0x35e   : > { %p2326_p13 = pnand %p3872_p9, %p3871_p3 }
 0x360   : > { %2735 = dma.done.wait (!%p2326_p13), %s1885_s11, 4096  }
 0x361   : > { %2737 = vsyncadd (!%p2326_p13), %s1885_s11, 4294963200  ;;  %s1894_s19 = scalar_lea.sflag [#allocation13], %s1884_s10 }
 0x362   : > { %2739 = dma.done.wait (!%p2326_p13), %s1894_s19, 2048  }
 0x363   : > { %2741 = vsyncadd (!%p2326_p13), %s1894_s19, 4294965248  ;;  %p28_p5 = scmp.ge.s32.totalorder %s2952_s22, 4   ;;  %s3873_s24 = smov %s2748_s25 }
 0x364   : > { %s3874_s25 = smov %s2752_s26  ;;  %s3875_s26 = smov %s2962_s18 }
 0x365   : > { %s3876_s27 = smov %s2952_s22  ;;  %30 = sbr.rel (!%p28_p5) target bundleno = 15 (0xf), region = 131 }
 0x36c   :  { %1899 = vsyncpa [#allocation3], 1 }
 0x36d   :  { %1901 = vsyncpa [#allocation3 + $0x1], 1 }
 0x36e   :  { %1902 = vsyncpa [#allocation6], 1 }
 0x36f   :  { %1904 = vsyncpa [#allocation6 + $0x1], 1 }
 0x370   :  { %1905 = vsyncpa [#allocation9], 1 }
 0x371   :  { %1906 = vsyncpa [#allocation4], 1 }
 0x372   :  { %1908 = vsyncpa [#allocation4 + $0x1], 1 }
 0x373   :  { %1909 = vsyncpa [#allocation13], 1 }
 0x374   :  { %1911 = vsyncpa [#allocation13 + $0x1], 1 }

// kernel: tpu_custom_call.1
= control target key start
LH: loop header
LB: loop body
LE: loop exit
PB: predicated region body
PF: predicated region fallthrough
CT: control target
= control target key end

     0   :  { %s3835_s0 = inlined_call_operand.hbm [shape: bf16[2,256,128], index: 0, kind: input, shape index: {}]   ;;  %s3836_s1 = inlined_call_operand.hbm [shape: bf16[2,128,128], index: 1, kind: input, shape index: {}]   ;;  %s3837_s2 = inlined_call_operand.hbm [shape: f32[11,128], index: 2, kind: input, shape index: {}]   ;;  %s3838_s3 = inlined_call_operand.vmem [shape: f32[2,256], index: 3, kind: input, shape index: {}]   ;;  %s3839_s4 = inlined_call_operand.hbm [shape: bf16[128,256], index: 4, kind: input, shape index: {}]   ;;  %s3840_s5 = inlined_call_operand.hbm [shape: bf16[128,256], index: 5, kind: input, shape index: {}]   ;;  %s3841_s6 = inlined_call_operand.hbm [shape: bf16[2,256,256], index: 6, kind: output, shape index: {0}]   ;;  %s3842_s7 = inlined_call_operand.hbm [shape: bf16[2,128,256], index: 7, kind: output, shape index: {1}]  }
   0x1   :  { %3847 = sst [smem:[#allocation21_spill]] %s3835_s0 }
   0x2   :  { %3848 = sst [smem:[#allocation22_spill]] %s3837_s2 }
   0x3   :  { %3849 = sst [smem:[#allocation23_spill]] %s3839_s4 }
   0x4   :  { %3850 = sst [smem:[#allocation24_spill]] %s3840_s5 }
   0x5   :  { %13 = vsyncpa [#allocation3], 0 }
   0x6   :  { %15 = vsyncpa [#allocation3 + $0x1], 0 }
   0x7   :  { %16 = vsyncpa [#allocation6], 0 }
   0x8   :  { %18 = vsyncpa [#allocation6 + $0x1], 0 }
   0x9   :  { %19 = vsyncpa [#allocation9], 0 }
   0xa   :  { %20 = vsyncpa [#allocation4], 0 }
   0xb   :  { %22 = vsyncpa [#allocation4 + $0x1], 0 }
   0xc   :  { %23 = vsyncpa [#allocation13], 0 }
   0xd   :  { %25 = vsyncpa [#allocation13 + $0x1], 0  ;;  %s2812_s24 = smov 0   ;;  %s2814_s25 = smov 0  }
   0xe   :  { %s2816_s26 = smov 0   ;;  %s2818_s27 = smov 0  }
   0xf LB: > { %s2833_s28 = sadd.s32 4294967295, %s2756_s27   ;;  %s2025_s29 = sadd.s32 4294967294, %s2756_s27   ;;  %s2756_s27 = sphi %s2818_s27, %s3876_s27   ;;  %s2752_s26 = sphi %s2816_s26, %s3875_s26   ;;  %s2748_s25 = sphi %s2814_s25, %s3874_s25   ;;  %s2744_s24 = sphi %s2812_s24, %s3873_s24  }
  0x10   : > { %p51_p0 = scmp.ne.s32.totalorder %s2748_s25, %s2744_s24  ;;  %p3843_p1 = scmp.eq.s32.totalorder %s2833_s28, 0 }
  0x11   : > { %p191_p3 = scmp.eq.s32.totalorder %s2025_s29, 1  ;;  %p2026_p5 = scmp.ge.s32.totalorder %s2756_s27, 1 }
  0x12   : > { %p2842_p4 = por %p3843_p1, %p51_p0  ;;  %p224_p7 = scmp.lt.s32.totalorder %s2756_s27, 3 }
  0x13   : > { %p2847_p6 = por %p191_p3, %p51_p0  ;;  %s2758_s10 = smov [#allocation7]  }
  0x14   : > { %s3851_s30 = scalar_select %p2842_p4, 1, 0 }
  0x15   : > { %s3852_s8 = scalar_select %p2847_p6, 1, 0 }
  0x16   : > { %p2852_p8 = pnand %p2026_p5, %p224_p7  ;;  %s236_s11 = sshll.u32 %s2758_s10, 4  ;;  %s2856_s11 = int_to_ptr.vmem [resolvable:$true] %s236_s11 }
  0x17   : > { %3853 = sst [smem:[#allocation20_spill]] %s3852_s8  ;;  %s2759_s13 = smov [#allocation8]  }
  0x18   : > { %s3854_s9 = scalar_select %p2852_p8, 1, 0 }
  0x19   : > { %p2308_p9 = pneg %p2852_p8  ;;  %s252_s14 = sshll.u32 %s2759_s13, 4  ;;  %s2867_s14 = int_to_ptr.vmem [resolvable:$true] %s252_s14 }
  0x1a   : > { %s2760_s15 = smov [#allocation10]   ;;  %s3856_s2 = sld [smem:[#allocation22_spill]] }
  0x1b   : > { %p2863_p11 = pnand %p2308_p9, %p3843_p1  ;;  %s2869_s16 = sshll.u32 %s2760_s15, 4  ;;  %s266_s16 = int_to_ptr.vmem [resolvable:$true] %s2869_s16 }
  0x1d   : > { %p2879_p13 = pneg %p2863_p11 }
  0x20   : > { %s2502_s19 = scalar_lea.hbm %s3856_s2, 256 }
  0x21   : > { %p2503_p12 = scmp.ne.s32.totalorder %s3856_s2, %s2502_s19  ;;  %p2509_p5 = scmp.lt.u32.totalorder %s2502_s19, %s3856_s2 }
  0x23   : > { %p2505_p0 = pnand %p2879_p13, %p2503_p12 }
  0x25   : > { %p2506_p3 = pneg %p2505_p0 }
  0x27   : > { %p2511_p7 = pnand %p2509_p5, %p2506_p3 }
  0x29   : > { %2514 = shalt.err (!%p2511_p7)
}
  0x2a   : > { %s2515_s10 = scalar_lea.vmem %s2856_s11, 256  ;;  %p2523_p2 = scmp.lt.s32.totalorder %s2856_s11, %s2856_s11 }
  0x2b   : > { %p2516_p9 = scmp.ne.s32.totalorder %s2856_s11, %s2515_s10  ;;  %p2524_p6 = scmp.lt.s32.totalorder %s2515_s10, %s2515_s10 }
  0x2d   : > { %p2518_p10 = pnand %p2516_p9, %p2879_p13  ;;  %p2525_p12 = por %p2524_p6, %p2523_p2 }
  0x2f   : > { %p2519_p1 = pneg %p2518_p10 }
  0x31   : > { %p2526_p0 = pnand %p2525_p12, %p2519_p1 }
  0x33   : > { %2529 = shalt.err (!%p2526_p0)
}
  0x34   : > { %s2761_s13 = smov 128   ;;  %s2762_s15 = smov 8  }
  0x35   : > { %2311 = dma.hbm_to_vmem [thread:$0]  (!%p2863_p11), %s3856_s2, 256, %s2856_s11, [#allocation6], %s2761_s13, %s2761_s13, %s2762_s15  }
  0x36   : > { %s3858_s4 = sld [smem:[#allocation23_spill]] }
  0x3c   : > { %s2530_s21 = scalar_lea.hbm %s3858_s4, 2048 }
  0x3d   : > { %p2531_p1 = scmp.ne.s32.totalorder %s3858_s4, %s2530_s21  ;;  %p2537_p10 = scmp.lt.u32.totalorder %s2530_s21, %s3858_s4 }
  0x3f   : > { %p2533_p2 = pnand %p2531_p1, %p2879_p13 }
  0x41   : > { %p2534_p6 = pneg %p2533_p2 }
  0x43   : > { %p2539_p3 = pnand %p2537_p10, %p2534_p6 }
  0x45   : > { %2542 = shalt.err (!%p2539_p3)
}
  0x46   : > { %s2543_s11 = scalar_lea.vmem %s2867_s14, 2048  ;;  %p2551_p12 = scmp.lt.s32.totalorder %s2867_s14, %s2867_s14 }
  0x47   : > { %p2544_p5 = scmp.ne.s32.totalorder %s2867_s14, %s2543_s11  ;;  %p2552_p0 = scmp.lt.s32.totalorder %s2543_s11, %s2543_s11 }
  0x49   : > { %p2546_p7 = pnand %p2544_p5, %p2879_p13  ;;  %p2553_p1 = por %p2552_p0, %p2551_p12 }
  0x4b   : > { %p2547_p9 = pneg %p2546_p7 }
  0x4d   : > { %p2554_p2 = pnand %p2553_p1, %p2547_p9 }
  0x4f   : > { %2557 = shalt.err (!%p2554_p2)
}
  0x50   : > { %2314 = dma.hbm_to_vmem [thread:$0]  (!%p2863_p11), %s3858_s4, 2048, %s2867_s14, [#allocation9], %s2761_s13, %s2761_s13, %s2762_s15  }
  0x51   : > { %s3859_s5 = sld [smem:[#allocation24_spill]] }
  0x57   : > { %s2558_s20 = scalar_lea.hbm %s3859_s5, 2048 }
  0x58   : > { %p2559_p6 = scmp.ne.s32.totalorder %s3859_s5, %s2558_s20  ;;  %p2565_p5 = scmp.lt.u32.totalorder %s2558_s20, %s3859_s5 }
  0x5a   : > { %p2561_p10 = pnand %p2559_p6, %p2879_p13 }
  0x5c   : > { %p2562_p3 = pneg %p2561_p10 }
  0x5e   : > { %p2567_p7 = pnand %p2565_p5, %p2562_p3 }
  0x60   : > { %2570 = shalt.err (!%p2567_p7)
}
  0x61   : > { %s2571_s11 = scalar_lea.vmem %s266_s16, 2048  ;;  %p2579_p1 = scmp.lt.s32.totalorder %s266_s16, %s266_s16 }
  0x62   : > { %p2572_p9 = scmp.ne.s32.totalorder %s266_s16, %s2571_s11  ;;  %p2580_p2 = scmp.lt.s32.totalorder %s2571_s11, %s2571_s11 }
  0x64   : > { %p2574_p12 = pnand %p2572_p9, %p2879_p13  ;;  %p2581_p4 = por %p2580_p2, %p2579_p1 }
  0x66   : > { %p2575_p0 = pneg %p2574_p12 }
  0x68   : > { %p2582_p8 = pnand %p2581_p4, %p2575_p0 }
  0x6a   : > { %2585 = shalt.err (!%p2582_p8)
}
  0x6b   : > { %2317 = dma.hbm_to_vmem [thread:$0]  (!%p2863_p11), %s3859_s5, 2048, %s266_s16, [#allocation9], %s2761_s13, %s2761_s13, %s2762_s15  }
  0x6c   : > { %s2952_s22 = sadd.s32 1, %s2756_s27   ;;  %s38_s17 = sadd.s32 1, %s2752_s26 }
  0x6d   : > { %s35_s12 = ssub.s32 %s2756_s27, %s2952_s22  ;;  %p45_p8 = scmp.ne.s32.totalorder %s2752_s26, %s2748_s25 }
  0x6e   : > { %p36_p4 = scmp.eq.s32.totalorder %s35_s12, 0  ;;  %p46_p13 = scmp.eq.s32.totalorder %s2756_s27, 0 }
  0x6f   : > { %p2335_p6 = scmp.lt.s32.totalorder %s2756_s27, 2  ;;  %p3860_p3 = scmp.eq.s32.totalorder %s2833_s28, 1 }
  0x70   : > { %s2962_s18 = scalar_select %p36_p4, %s2752_s26, %s38_s17  }
  0x71   : > { %p47_p10 = por %p46_p13, %p45_p8  ;;  %p2966_p5 = por %p3860_p3, %p45_p8 }
  0x72   : > { %s2971_s20 = sand.u32 1, %s2752_s26   ;;  %s2141_s16 = sshll.u32 %s2756_s27, 11 }
  0x73   : > { %s2031_s13 = sshll.u32 %s2971_s20, 7  ;;  %s3862_s0 = sld [smem:[#allocation21_spill]] }
  0x74   : > { %s283_s29 = scalar_lea.vmem [#allocation2], %s2031_s13  ;;  %p2980_p11 = pnand %p2335_p6, %p47_p10 }
  0x75   : > { %s290_s10 = sshll.u32 %s283_s29, 4  ;;  %s280_s14 = scalar_lea.sflag [#allocation3], %s2971_s20  ;;  %s2984_s10 = int_to_ptr.vmem [resolvable:$true] %s290_s10 }
  0x76   : > { %p2588_p9 = pneg %p2980_p11 }
  0x79   : > { %s2978_s23 = scalar_lea.hbm %s3862_s0, %s2141_s16  ;;  %s2591_s16 = scalar_lea.hbm %s3862_s0, 4096 }
  0x7a   : > { %s2586_s8 = scalar_lea.hbm %s2978_s23, 2048  ;;  %p2592_p1 = scmp.lt.u32.totalorder %s2978_s23, %s3862_s0 }
  0x7b   : > { %p2587_p7 = scmp.ne.s32.totalorder %s2978_s23, %s2586_s8  ;;  %p2593_p2 = scmp.lt.u32.totalorder %s2591_s16, %s2586_s8 }
  0x7c   : > { %p2595_p8 = scmp.lt.u32.totalorder %s2586_s8, %s2978_s23 }
  0x7d   : > { %p2589_p12 = pnand %p2588_p9, %p2587_p7  ;;  %p2594_p4 = por %p2593_p2, %p2592_p1 }
  0x7f   : > { %p2590_p0 = pneg %p2589_p12  ;;  %p2596_p13 = por %p2595_p8, %p2594_p4 }
  0x81   : > { %p2597_p6 = pnand %p2596_p13, %p2590_p0 }
  0x83   : > { %2600 = shalt.err (!%p2597_p6)
}
  0x84   : > { %s2601_s21 = scalar_lea.vmem %s2984_s10, 2048  ;;  %s2763_s29 = smov [#allocation2]  }
  0x85   : > { %p2602_p10 = scmp.ne.s32.totalorder %s2984_s10, %s2601_s21  ;;  %s2606_s12 = sshll.u32 %s2763_s29, 4  ;;  %s2607_s12 = int_to_ptr.vmem [resolvable:$false] %s2606_s12 }
  0x86   : > { %s2608_s17 = scalar_lea.vmem %s2607_s12, 4096  ;;  %p2609_p12 = scmp.lt.s32.totalorder %s2984_s10, %s2607_s12 }
  0x87   : > { %p2604_p3 = pnand %p2602_p10, %p2588_p9  ;;  %p2610_p1 = scmp.lt.s32.totalorder %s2608_s17, %s2601_s21 }
  0x89   : > { %p2605_p7 = pneg %p2604_p3  ;;  %p2611_p2 = por %p2610_p1, %p2609_p12 }
  0x8b   : > { %p2612_p4 = pnand %p2611_p2, %p2605_p7 }
  0x8d   : > { %2615 = shalt.err (!%p2612_p4)
}
  0x8e   : > { %s2764_s8 = smov 64   ;;  %s2765_s16 = smov 4  }
  0x8f   : > { %2321 = dma.hbm_to_vmem [thread:$0]  (!%p2980_p11), %s2978_s23, 2048, %s2984_s10, %s280_s14, %s2764_s8, %s2764_s8, %s2765_s16  }
  0x90   : > { %s300_s13 = sand.u32 1, %s2756_s27   ;;  %s2034_s15 = sshll.u32 %s2971_s20, 6 }
  0x91   : > { %s2142_s21 = sshll.u32 %s2756_s27, 10  ;;  %s304_s29 = scalar_lea.vmem [#allocation5], %s2034_s15 }
  0x92   : > { %s311_s12 = sshll.u32 %s304_s29, 4  ;;  %s3023_s2 = scalar_lea.hbm %s3836_s1, %s2142_s21  ;;  %s3025_s12 = int_to_ptr.vmem [resolvable:$true] %s311_s12 }
  0x93   : > { %s3027_s4 = scalar_lea.sflag [#allocation6], %s300_s13  ;;  %s2616_s5 = scalar_lea.hbm %s3023_s2, 1024 }
  0x94   : > { %p2617_p0 = scmp.ne.s32.totalorder %s3023_s2, %s2616_s5  ;;  %s2621_s0 = scalar_lea.hbm %s3836_s1, 2048 }
  0x95   : > { %p2622_p6 = scmp.lt.u32.totalorder %s3023_s2, %s3836_s1  ;;  %p2623_p10 = scmp.lt.u32.totalorder %s2621_s0, %s2616_s5 }
  0x96   : > { %p2619_p8 = pnand %p2617_p0, %p2588_p9  ;;  %p2625_p7 = scmp.lt.u32.totalorder %s2616_s5, %s3023_s2 }
  0x97   : > { %p2624_p3 = por %p2623_p10, %p2622_p6 }
  0x98   : > { %p2620_p13 = pneg %p2619_p8 }
  0x99   : > { %p2626_p12 = por %p2625_p7, %p2624_p3 }
  0x9b   : > { %p2627_p1 = pnand %p2626_p12, %p2620_p13 }
  0x9d   : > { %2630 = shalt.err (!%p2627_p1)
}
  0x9e   : > { %s2631_s13 = scalar_lea.vmem %s3025_s12, 1024  ;;  %s2766_s15 = smov [#allocation5]  }
  0x9f   : > { %p2632_p2 = scmp.ne.s32.totalorder %s3025_s12, %s2631_s13  ;;  %s2636_s21 = sshll.u32 %s2766_s15, 4  ;;  %s2637_s21 = int_to_ptr.vmem [resolvable:$false] %s2636_s21 }
  0xa0   : > { %s2638_s29 = scalar_lea.vmem %s2637_s21, 2048  ;;  %p2639_p8 = scmp.lt.s32.totalorder %s3025_s12, %s2637_s21 }
  0xa1   : > { %p2634_p4 = pnand %p2632_p2, %p2588_p9  ;;  %p2640_p6 = scmp.lt.s32.totalorder %s2638_s29, %s2631_s13 }
  0xa3   : > { %p2635_p0 = pneg %p2634_p4  ;;  %p2641_p10 = por %p2640_p6, %p2639_p8 }
  0xa5   : > { %p2642_p3 = pnand %p2641_p10, %p2635_p0 }
  0xa7   : > { %2645 = shalt.err (!%p2642_p3)
}
  0xa8   : > { %2324 = dma.hbm_to_vmem [thread:$0]  (!%p2980_p11), %s3023_s2, 1024, %s3025_s12, %s3027_s4, %s2764_s8, %s2764_s8, %s2765_s16  }
  0xa9   : > { %p3864_p9 = scmp.ne.s32.totalorder %s3854_s9, 0 }
  0xaa   : > { %s3059_s5 = sand.u32 (!%p3864_p9), 1, %s2748_s25   ;;  %p3865_p13 = scmp.ne.s32.totalorder (!%p3864_p9), %s3851_s30, 0 }
  0xab   : > { %323 = sbr.rel (%p3864_p9) target bundleno = 854 (0x356), region = 44  ;;  %s2038_s17 = sshll.u32 (!%p3864_p9), %s3059_s5, 7 }
  0xac   : > { %s326_s20 = scalar_lea.sflag (!%p3864_p9), [#allocation3], %s3059_s5  ;;  %s3065_s11 = scalar_lea.vmem (!%p3864_p9), [#allocation2], %s2038_s17 }
  0xb2   : > { %2719 = dma.done.wait (%p3865_p13), %s326_s20, 2048  }
  0xb3   : > { %2721 = vsyncadd (%p3865_p13), %s326_s20, 4294965248  ;;  %s334_s2 = sand.u32 1, %s2833_s28   ;;  %s2039_s4 = sshll.u32 %s3059_s5, 6 }
  0xb4   : > { %s335_s9 = scalar_lea.sflag [#allocation6], %s334_s2  ;;  %s3073_s8 = scalar_lea.vmem [#allocation5], %s2039_s4 }
  0xb5   : > { %2723 = dma.done.wait (%p3865_p13), %s335_s9, 1024  }
  0xb6   : > { %2725 = vsyncadd (%p3865_p13), %s335_s9, 4294966272  ;;  %p3866_p11 = scmp.eq.s32.totalorder %s2833_s28, 0 }
  0xb8   : > { %2727 = dma.done.wait (%p3866_p11), [#allocation6], 256   ;;  %p3867_p7 = pmov %p3866_p11 }
  0xba   : > { %2729 = vsyncadd (%p3867_p7), [#allocation6], 4294967040  ;;  %p3868_p12 = pmov %p3867_p7 }
  0xbb   : > { %p3869_p1 = pmov %p3867_p7 }
  0xbc   : > { %2731 = dma.done.wait (%p3868_p12), [#allocation9], 4096  }
  0xbd   : > { %2733 = vsyncadd (%p3869_p1), [#allocation9], 4294963200  ;;  %v3088_v0 = vld [vmem:[%s3065_s11] sm:$0xff]   ;;  %v3102_v6 = vld [vmem:[%s3065_s11 + $0x8] sm:$0xff]   ;;  %s2043_s12 = sshll.u32 %s3059_s5, 8  ;;  %s3654_s0 = scalar_lea.vmem [#allocation12], %s2038_s17 }
  0xbe   : > { %v3091_v1 = vld [vmem:[%s3065_s11 + $0x60] sm:$0xff]   ;;  %v2195_v2 = vunpack.c.l.bf16 %v3088_v0  ;;  %v2196_v4 = vunpack.c.h.bf16 %v3088_v0  ;;  %v3105_v7 = vld [vmem:[%s3065_s11 + $0x68] sm:$0xff]   ;;  %v2199_v8 = vunpack.c.l.bf16 %v3102_v6  ;;  %v2200_v9 = vunpack.c.h.bf16 %v3102_v6  ;;  %v3114_v10 = vld [vmem:[%s3065_s11 + $0x10] sm:$0xff]   ;;  %s3586_s23 = scalar_lea.vmem [#allocation11], %s2043_s12  ;;  %s2191_s10 = sshll.u32 %s2833_s28, 12 }
  0xbf   : > { %v2243_v3 = vunpack.c.l.bf16 %v3091_v1  ;;  %v2244_v5 = vunpack.c.h.bf16 %v3091_v1  ;;  %v2247_v11 = vunpack.c.l.bf16 %v3105_v7  ;;  %v2248_v12 = vunpack.c.h.bf16 %v3105_v7  ;;  %v3123_v13 = vld [vmem:[%s3065_s11 + $0x70] sm:$0xff]   ;;  %v3132_v16 = vld [vmem:[%s3065_s11 + $0x18] sm:$0xff]   ;;  %v3156_v24 = vld [vmem:[%s3065_s11 + $0x20] sm:$0xff]   ;;  %s1853_s14 = sshll.u32 %s3586_s23, 4  ;;  %s3739_s21 = scalar_lea.hbm %s3841_s6, %s2191_s10  ;;  %s3741_s14 = int_to_ptr.vmem [resolvable:$true] %s1853_s14 }
  0xc0   : > { %506 = vadd.xlane.f32.xlu0 %v2195_v2  ;;  %v2203_v14 = vunpack.c.l.bf16 %v3114_v10  ;;  %v2204_v15 = vunpack.c.h.bf16 %v3114_v10  ;;  %v2251_v17 = vunpack.c.l.bf16 %v3123_v13  ;;  %v2252_v18 = vunpack.c.h.bf16 %v3123_v13  ;;  %v3147_v21 = vld [vmem:[%s3065_s11 + $0x78] sm:$0xff]   ;;  %v3165_v27 = vld [vmem:[%s3065_s11 + $0x28] sm:$0xff]   ;;  %v3174_v30 = vld [vmem:[%s3065_s11 + $0x30] sm:$0xff]   ;;  %s2192_s29 = sshll.u32 %s2833_s28, 11  ;;  %s1869_s17 = sshll.u32 %s3654_s0, 4  ;;  %s3787_s17 = int_to_ptr.vmem [resolvable:$true] %s1869_s17 }
  0xc1   : > { %554 = vadd.xlane.f32.xlu1 %v2243_v3  ;;  %v2207_v19 = vunpack.c.l.bf16 %v3132_v16  ;;  %v2208_v20 = vunpack.c.h.bf16 %v3132_v16  ;;  %v2255_v22 = vunpack.c.l.bf16 %v3147_v21  ;;  %v2256_v23 = vunpack.c.h.bf16 %v3147_v21  ;;  %v3183_v33 = vld [vmem:[%s3065_s11 + $0x38] sm:$0xff]   ;;  %v3192_v36 = vld [vmem:[%s3065_s11 + $0x40] sm:$0xff]   ;;  %v3201_v39 = vld [vmem:[%s3065_s11 + $0x48] sm:$0xff]   ;;  %s1835_s20 = scalar_lea.sflag [#allocation4], %s3059_s5  ;;  %s2768_s2 = smov [#allocation11]  }
  0xc2   : > { %v2211_v25 = vunpack.c.l.bf16 %v3156_v24  ;;  %v2212_v26 = vunpack.c.h.bf16 %v3156_v24  ;;  %v2215_v28 = vunpack.c.l.bf16 %v3165_v27  ;;  %v2216_v29 = vunpack.c.h.bf16 %v3165_v27  ;;  %v3210_v42 = vld [vmem:[%s3065_s11 + $0x50] sm:$0xff]   ;;  %v3219_v45 = vld [vmem:[%s3065_s11 + $0x58] sm:$0xff]   ;;  %s2646_s11 = scalar_lea.vmem %s3741_s14, 4096  ;;  %s2650_s4 = sshll.u32 %s2768_s2, 4  ;;  %s2651_s4 = int_to_ptr.vmem [resolvable:$false] %s2650_s4 }
  0xc3   : > { %v2219_v31 = vunpack.c.l.bf16 %v3174_v30  ;;  %v2220_v32 = vunpack.c.h.bf16 %v3174_v30  ;;  %v2223_v34 = vunpack.c.l.bf16 %v3183_v33  ;;  %v2224_v35 = vunpack.c.h.bf16 %v3183_v33  ;;  %v2382_v48 = vld [vmem:[#allocation8 + $0x4] ss:$8 sps:$4 sm:$0xff]   ;;  %v2384_v49 = vld [vmem:[#allocation8] ss:$8 sps:$4 sm:$0xff]   ;;  %p2647_p2 = scmp.ne.s32.totalorder %s3741_s14, %s2646_s11  ;;  %s2652_s9 = scalar_lea.vmem %s2651_s4, 8192 }
  0xc4   : > { %508 = vadd.xlane.f32.xlu0 %v2196_v4  ;;  %v2227_v37 = vunpack.c.l.bf16 %v3192_v36  ;;  %v2228_v38 = vunpack.c.h.bf16 %v3192_v36  ;;  %v2231_v40 = vunpack.c.l.bf16 %v3201_v39  ;;  %v2232_v41 = vunpack.c.h.bf16 %v3201_v39  ;;  %1046 = vmatprep.subr.bf16.mxu0 %v2382_v48  ;;  %p2653_p8 = scmp.lt.s32.totalorder %s3741_s14, %s2651_s4  ;;  %p2654_p6 = scmp.lt.s32.totalorder %s2652_s9, %s2646_s11 }
  0xc5   : > { %556 = vadd.xlane.f32.xlu1 %v2244_v5  ;;  %v2235_v43 = vunpack.c.l.bf16 %v3210_v42  ;;  %v2236_v44 = vunpack.c.h.bf16 %v3210_v42  ;;  %v2239_v46 = vunpack.c.l.bf16 %v3219_v45  ;;  %v2240_v47 = vunpack.c.h.bf16 %v3219_v45  ;;  %2272 = vmatprep.subr.bf16.mxu1 %v2382_v48  ;;  %p2648_p4 = pnand %p2647_p2, %p2966_p5 }
  0xc6   : > { %1047 = vmatpush1.bf16.msra.mxu0 %v2384_v49  ;;  %2280 = vmatpush1.bf16.msra.mxu1 %v2384_v49  ;;  %v859_v45 = vlaneseq  ;;  %p2655_p10 = por %p2654_p6, %p2653_p8 }
  0xc7   : > { %p2649_p0 = pneg %p2648_p4 }
  0xc8   : > { %510 = vadd.xlane.f32.xlu0 %v2199_v8 }
  0xc9   : > { %512 = vadd.xlane.f32.xlu1 %v2200_v9  ;;  %p2656_p3 = pnand %p2655_p10, %p2649_p0 }
  0xcc   : > { %558 = vadd.xlane.f32.xlu0 %v2247_v11 }
  0xcd   : > { %560 = vadd.xlane.f32.xlu1 %v2248_v12 }
  0xd0   : > { %514 = vadd.xlane.f32.xlu0 %v2203_v14 }
  0xd1   : > { %516 = vadd.xlane.f32.xlu1 %v2204_v15 }
  0xd4   : > { %562 = vadd.xlane.f32.xlu0 %v2251_v17 }
  0xd5   : > { %564 = vadd.xlane.f32.xlu1 %v2252_v18 }
  0xd8   : > { %518 = vadd.xlane.f32.xlu0 %v2207_v19 }
  0xd9   : > { %520 = vadd.xlane.f32.xlu1 %v2208_v20 }
  0xdc   : > { %566 = vadd.xlane.f32.xlu0 %v2255_v22 }
  0xdd   : > { %568 = vadd.xlane.f32.xlu1 %v2256_v23 }
  0xe0   : > { %522 = vadd.xlane.f32.xlu0 %v2211_v25 }
  0xe1   : > { %524 = vadd.xlane.f32.xlu1 %v2212_v26 }
  0xe4   : > { %526 = vadd.xlane.f32.xlu0 %v2215_v28 }
  0xe5   : > { %528 = vadd.xlane.f32.xlu1 %v2216_v29 }
  0xe8   : > { %530 = vadd.xlane.f32.xlu0 %v2219_v31 }
  0xe9   : > { %532 = vadd.xlane.f32.xlu1 %v2220_v32 }
  0xec   : > { %534 = vadd.xlane.f32.xlu0 %v2223_v34 }
  0xed   : > { %536 = vadd.xlane.f32.xlu1 %v2224_v35 }
  0xf0   : > { %538 = vadd.xlane.f32.xlu0 %v2227_v37 }
  0xf1   : > { %540 = vadd.xlane.f32.xlu1 %v2228_v38 }
  0xf4   : > { %542 = vadd.xlane.f32.xlu0 %v2231_v40 }
  0xf5   : > { %544 = vadd.xlane.f32.xlu1 %v2232_v41 }
  0xf8   : > { %546 = vadd.xlane.f32.xlu0 %v2235_v43 }
  0xf9   : > { %548 = vadd.xlane.f32.xlu1 %v2236_v44 }
  0xfc   : > { %550 = vadd.xlane.f32.xlu0 %v2239_v46 }
  0xfd   : > { %552 = vadd.xlane.f32.xlu1 %v2240_v47 }
 0x14d   : > { %v507_v50 = vpop.xlane.xlu0 %506 }
 0x14e   : > { %v555_v51 = vpop.xlane.xlu1 %554  ;;  %v571_v52 = vmul.f32 0.0078125, %v507_v50 }
 0x14f   : > { %v595_v53 = vmul.f32 0.0078125, %v555_v51 }
 0x150   : > { %v3233_v54 = vsub.f32 %v2195_v2, %v571_v52 }
 0x151   : > { %v3237_v55 = vsub.f32 %v2243_v3, %v595_v53  ;;  %v509_v56 = vpop.xlane.xlu0 %508 }
 0x152   : > { %v557_v57 = vpop.xlane.xlu1 %556  ;;  %v572_v58 = vmul.f32 0.0078125, %v509_v56  ;;  %v635_v59 = vmul.f32 %v3233_v54, %v3233_v54 }
 0x153   : > { %v596_v60 = vmul.f32 0.0078125, %v557_v57  ;;  %v659_v63 = vmul.f32 %v3237_v55, %v3237_v55 }
 0x154   : > { %v3243_v61 = vsub.f32 %v2196_v4, %v572_v58  ;;  %667 = vadd.xlane.f32.xlu0 %v635_v59 }
 0x155   : > { %v3247_v62 = vsub.f32 %v2244_v5, %v596_v60  ;;  %v511_v2 = vpop.xlane.xlu0 %510 }
 0x156   : > { %v513_v3 = vpop.xlane.xlu1 %512  ;;  %v573_v48 = vmul.f32 0.0078125, %v511_v2  ;;  %v636_v49 = vmul.f32 %v3243_v61, %v3243_v61  ;;  %v2385_v2 = vld [vmem:[#allocation8 + $0x14] ss:$8 sps:$4 sm:$0xff]  }
 0x157   : > { %v574_v50 = vmul.f32 0.0078125, %v513_v3  ;;  %v660_v4 = vmul.f32 %v3247_v62, %v3247_v62  ;;  %v2387_v3 = vld [vmem:[#allocation8 + $0x10] ss:$8 sps:$4 sm:$0xff]   ;;  %1048 = vmatprep.subr.bf16.mxu0 %v2385_v2  ;;  %2273 = vmatprep.subr.bf16.mxu1 %v2385_v2 }
 0x158   : > { %v3255_v0 = vsub.f32 %v2199_v8, %v573_v48  ;;  %715 = vadd.xlane.f32.xlu0 %v659_v63  ;;  %669 = vadd.xlane.f32.xlu1 %v636_v49  ;;  %v2393_v2 = vld [vmem:[#allocation8 + $0x30] ss:$8 sps:$4 sm:$0xff]  }
 0x159   : > { %v3259_v1 = vsub.f32 %v2200_v9, %v574_v50  ;;  %v559_v5 = vpop.xlane.xlu0 %558  ;;  %1049 = vmatpush1.bf16.msra.mxu0 %v2387_v3  ;;  %2281 = vmatpush1.bf16.msra.mxu1 %v2387_v3 }
 0x15a   : > { %v561_v51 = vpop.xlane.xlu1 %560  ;;  %v597_v52 = vmul.f32 0.0078125, %v559_v5  ;;  %v637_v53 = vmul.f32 %v3255_v0, %v3255_v0 }
 0x15b   : > { %v598_v56 = vmul.f32 0.0078125, %v561_v51  ;;  %v638_v9 = vmul.f32 %v3259_v1, %v3259_v1  ;;  %v2388_v51 = vld [vmem:[#allocation8 + $0x24] ss:$8 sps:$4 sm:$0xff]  }
 0x15c   : > { %v3267_v8 = vsub.f32 %v2247_v11, %v597_v52  ;;  %717 = vadd.xlane.f32.xlu1 %v660_v4  ;;  %671 = vadd.xlane.f32.xlu0 %v637_v53 }
 0x15d   : > { %v3271_v6 = vsub.f32 %v2248_v12, %v598_v56  ;;  %v515_v57 = vpop.xlane.xlu0 %514  ;;  %v2390_v56 = vld [vmem:[#allocation8 + $0x20] ss:$8 sps:$4 sm:$0xff]   ;;  %1050 = vmatprep.subr.bf16.mxu0 %v2388_v51  ;;  %2274 = vmatprep.subr.bf16.mxu1 %v2388_v51 }
 0x15e   : > { %v517_v58 = vpop.xlane.xlu1 %516  ;;  %v575_v59 = vmul.f32 0.0078125, %v515_v57  ;;  %v661_v60 = vmul.f32 %v3267_v8, %v3267_v8  ;;  %1051 = vmatpush1.bf16.msra.mxu0 %v2390_v56  ;;  %2282 = vmatpush1.bf16.msra.mxu1 %v2390_v56 }
 0x15f   : > { %v576_v63 = vmul.f32 0.0078125, %v517_v58  ;;  %v662_v12 = vmul.f32 %v3271_v6, %v3271_v6 }
 0x160   : > { %v3279_v11 = vsub.f32 %v2203_v14, %v575_v59  ;;  %673 = vadd.xlane.f32.xlu1 %v638_v9  ;;  %719 = vadd.xlane.f32.xlu0 %v661_v60  ;;  %v2391_v59 = vld [vmem:[#allocation8 + $0x34] ss:$8 sps:$4 sm:$0xff]  }
 0x161   : > { %v3283_v7 = vsub.f32 %v2204_v15, %v576_v63  ;;  %v563_v48 = vpop.xlane.xlu0 %562  ;;  %1052 = vmatprep.subr.bf16.mxu0 %v2391_v59  ;;  %2275 = vmatprep.subr.bf16.mxu1 %v2391_v59 }
 0x162   : > { %v565_v49 = vpop.xlane.xlu1 %564  ;;  %v599_v50 = vmul.f32 0.0078125, %v563_v48  ;;  %v639_v4 = vmul.f32 %v3279_v11, %v3279_v11  ;;  %1053 = vmatpush1.bf16.msra.mxu0 %v2393_v2  ;;  %2283 = vmatpush1.bf16.msra.mxu1 %v2393_v2 }
 0x163   : > { %v600_v14 = vmul.f32 0.0078125, %v565_v49  ;;  %v640_v5 = vmul.f32 %v3283_v7, %v3283_v7  ;;  %v2394_v49 = vld [vmem:[#allocation8 + $0x44] ss:$8 sps:$4 sm:$0xff]  }
 0x164   : > { %v3291_v10 = vsub.f32 %v2251_v17, %v599_v50  ;;  %721 = vadd.xlane.f32.xlu1 %v662_v12  ;;  %675 = vadd.xlane.f32.xlu0 %v639_v4 }
 0x165   : > { %v3295_v15 = vsub.f32 %v2252_v18, %v600_v14  ;;  %v519_v52 = vpop.xlane.xlu0 %518  ;;  %v2396_v14 = vld [vmem:[#allocation8 + $0x40] ss:$8 sps:$4 sm:$0xff]   ;;  %1054 = vmatprep.subr.bf16.mxu0 %v2394_v49  ;;  %2276 = vmatprep.subr.bf16.mxu1 %v2394_v49  ;;  %v2403_v49 = vld [vmem:[#allocation8 + $0x74] ss:$8 sps:$4 sm:$0xff]  }
 0x166   : > { %v521_v53 = vpop.xlane.xlu1 %520  ;;  %v577_v9 = vmul.f32 0.0078125, %v519_v52  ;;  %v663_v57 = vmul.f32 %v3291_v10, %v3291_v10  ;;  %1055 = vmatpush1.bf16.msra.mxu0 %v2396_v14  ;;  %2284 = vmatpush1.bf16.msra.mxu1 %v2396_v14  ;;  %v2405_v14 = vld [vmem:[#allocation8 + $0x70] ss:$8 sps:$4 sm:$0xff]  }
 0x167   : > { %v578_v58 = vmul.f32 0.0078125, %v521_v53  ;;  %v664_v18 = vmul.f32 %v3295_v15, %v3295_v15  ;;  %v2397_v53 = vld [vmem:[#allocation8 + $0x54] ss:$8 sps:$4 sm:$0xff]  }
 0x168   : > { %v3303_v13 = vsub.f32 %v2207_v19, %v577_v9  ;;  %677 = vadd.xlane.f32.xlu1 %v640_v5  ;;  %723 = vadd.xlane.f32.xlu0 %v663_v57  ;;  %v2399_v57 = vld [vmem:[#allocation8 + $0x50] ss:$8 sps:$4 sm:$0xff]  }
 0x169   : > { %v3307_v17 = vsub.f32 %v2208_v20, %v578_v58  ;;  %v567_v60 = vpop.xlane.xlu0 %566  ;;  %1056 = vmatprep.subr.bf16.mxu0 %v2397_v53  ;;  %2277 = vmatprep.subr.bf16.mxu1 %v2397_v53 }
 0x16a   : > { %v569_v63 = vpop.xlane.xlu1 %568  ;;  %v601_v12 = vmul.f32 0.0078125, %v567_v60  ;;  %v641_v3 = vmul.f32 %v3303_v13, %v3303_v13  ;;  %1057 = vmatpush1.bf16.msra.mxu0 %v2399_v57  ;;  %2285 = vmatpush1.bf16.msra.mxu1 %v2399_v57  ;;  %v2400_v60 = vld [vmem:[#allocation8 + $0x64] ss:$8 sps:$4 sm:$0xff]  }
 0x16b   : > { %v602_v48 = vmul.f32 0.0078125, %v569_v63  ;;  %v642_v20 = vmul.f32 %v3307_v17, %v3307_v17  ;;  %1058 = vmatprep.subr.bf16.mxu0 %v2400_v60  ;;  %2278 = vmatprep.subr.bf16.mxu1 %v2400_v60 }
 0x16c   : > { %v3315_v16 = vsub.f32 %v2255_v22, %v601_v12  ;;  %725 = vadd.xlane.f32.xlu1 %v664_v18  ;;  %679 = vadd.xlane.f32.xlu0 %v641_v3  ;;  %v2402_v12 = vld [vmem:[#allocation8 + $0x60] ss:$8 sps:$4 sm:$0xff]  }
 0x16d   : > { %v3319_v19 = vsub.f32 %v2256_v23, %v602_v48  ;;  %v523_v50 = vpop.xlane.xlu0 %522 }
 0x16e   : > { %v525_v4 = vpop.xlane.xlu1 %524  ;;  %v579_v5 = vmul.f32 0.0078125, %v523_v50  ;;  %v665_v51 = vmul.f32 %v3315_v16, %v3315_v16  ;;  %1059 = vmatpush1.bf16.msra.mxu0 %v2402_v12  ;;  %2286 = vmatpush1.bf16.msra.mxu1 %v2402_v12 }
 0x16f   : > { %v580_v52 = vmul.f32 0.0078125, %v525_v4  ;;  %v666_v23 = vmul.f32 %v3319_v19, %v3319_v19  ;;  %1060 = vmatprep.subr.bf16.mxu0 %v2403_v49  ;;  %2279 = vmatprep.subr.bf16.mxu1 %v2403_v49 }
 0x170   : > { %v3327_v21 = vsub.f32 %v2211_v25, %v579_v5  ;;  %681 = vadd.xlane.f32.xlu1 %v642_v20  ;;  %727 = vadd.xlane.f32.xlu0 %v665_v51 }
 0x171   : > { %v3331_v22 = vsub.f32 %v2212_v26, %v580_v52  ;;  %v527_v56 = vpop.xlane.xlu0 %526 }
 0x172   : > { %v529_v9 = vpop.xlane.xlu1 %528  ;;  %v581_v58 = vmul.f32 0.0078125, %v527_v56  ;;  %v643_v18 = vmul.f32 %v3327_v21, %v3327_v21  ;;  %1061 = vmatpush1.bf16.msra.mxu0 %v2405_v14  ;;  %2287 = vmatpush1.bf16.msra.mxu1 %v2405_v14  ;;  %v2767_v56 = vmov 0  }
 0x173   : > { %v582_v59 = vmul.f32 0.0078125, %v529_v9  ;;  %v644_v26 = vmul.f32 %v3331_v22, %v3331_v22  ;;  %1078 = vmatprep.mubr.bf16.mxu0 %v2767_v56  ;;  %1198 = vmatprep.mubr.bf16.mxu1 %v2767_v56 }
 0x174   : > { %v3339_v24 = vsub.f32 %v2215_v28, %v581_v58  ;;  %729 = vadd.xlane.f32.xlu1 %v666_v23  ;;  %683 = vadd.xlane.f32.xlu0 %v643_v18  ;;  %v2408_v18 = vld [vmem:[#allocation10 + $0x4] ss:$8 sps:$4 sm:$0xff]  }
 0x175   : > { %v3343_v25 = vsub.f32 %v2216_v29, %v582_v59  ;;  %v531_v63 = vpop.xlane.xlu0 %530  ;;  %1385 = vmatprep.subr.bf16.mxu1 %v2408_v18 }
 0x176   : > { %v533_v2 = vpop.xlane.xlu1 %532  ;;  %v583_v3 = vmul.f32 0.0078125, %v531_v63  ;;  %v645_v48 = vmul.f32 %v3339_v24, %v3339_v24 }
 0x177   : > { %v584_v20 = vmul.f32 0.0078125, %v533_v2  ;;  %v646_v29 = vmul.f32 %v3343_v25, %v3343_v25 }
 0x178   : > { %v3351_v27 = vsub.f32 %v2219_v31, %v583_v3  ;;  %685 = vadd.xlane.f32.xlu1 %v644_v26  ;;  %687 = vadd.xlane.f32.xlu0 %v645_v48 }
 0x179   : > { %v3355_v28 = vsub.f32 %v2220_v32, %v584_v20  ;;  %v535_v50 = vpop.xlane.xlu0 %534 }
 0x17a   : > { %v537_v4 = vpop.xlane.xlu1 %536  ;;  %v585_v5 = vmul.f32 0.0078125, %v535_v50  ;;  %v647_v51 = vmul.f32 %v3351_v27, %v3351_v27 }
 0x17b   : > { %v586_v52 = vmul.f32 0.0078125, %v537_v4  ;;  %v648_v32 = vmul.f32 %v3355_v28, %v3355_v28 }
 0x17c   : > { %v3363_v30 = vsub.f32 %v2223_v34, %v585_v5  ;;  %689 = vadd.xlane.f32.xlu1 %v646_v29  ;;  %691 = vadd.xlane.f32.xlu0 %v647_v51 }
 0x17d   : > { %v3367_v31 = vsub.f32 %v2224_v35, %v586_v52  ;;  %v539_v23 = vpop.xlane.xlu0 %538 }
 0x17e   : > { %v541_v53 = vpop.xlane.xlu1 %540  ;;  %v587_v9 = vmul.f32 0.0078125, %v539_v23  ;;  %v649_v34 = vmul.f32 %v3363_v30, %v3363_v30 }
 0x17f   : > { %v588_v57 = vmul.f32 0.0078125, %v541_v53  ;;  %v650_v58 = vmul.f32 %v3367_v31, %v3367_v31 }
 0x180   : > { %v3377_v33 = vsub.f32 %v2227_v37, %v587_v9  ;;  %693 = vadd.xlane.f32.xlu1 %v648_v32  ;;  %695 = vadd.xlane.f32.xlu0 %v649_v34 }
 0x181   : > { %v3381_v35 = vsub.f32 %v2228_v38, %v588_v57  ;;  %v543_v59 = vpop.xlane.xlu0 %542 }
 0x182   : > { %v545_v26 = vpop.xlane.xlu1 %544  ;;  %v589_v60 = vmul.f32 0.0078125, %v543_v59  ;;  %v651_v63 = vmul.f32 %v3377_v33, %v3377_v33 }
 0x183   : > { %v590_v2 = vmul.f32 0.0078125, %v545_v26  ;;  %v652_v38 = vmul.f32 %v3381_v35, %v3381_v35  ;;  %v3425_v26 = vshrl.u32 %v859_v45, 7 }
 0x184   : > { %v3389_v37 = vsub.f32 %v2231_v40, %v589_v60  ;;  %697 = vadd.xlane.f32.xlu1 %v650_v58  ;;  %699 = vadd.xlane.f32.xlu0 %v651_v63 }
 0x185   : > { %v3393_v36 = vsub.f32 %v2232_v41, %v590_v2  ;;  %v547_v12 = vpop.xlane.xlu0 %546 }
 0x186   : > { %v549_v3 = vpop.xlane.xlu1 %548  ;;  %v591_v48 = vmul.f32 0.0078125, %v547_v12  ;;  %v653_v20 = vmul.f32 %v3389_v37, %v3389_v37 }
 0x187   : > { %v592_v29 = vmul.f32 0.0078125, %v549_v3  ;;  %v654_v41 = vmul.f32 %v3393_v36, %v3393_v36 }
 0x188   : > { %v3401_v40 = vsub.f32 %v2235_v43, %v591_v48  ;;  %701 = vadd.xlane.f32.xlu1 %v652_v38  ;;  %703 = vadd.xlane.f32.xlu0 %v653_v20  ;;  %v3428_v48 = vsub.s32 0, %v3425_v26 }
 0x189   : > { %v3405_v39 = vsub.f32 %v2236_v44, %v592_v29  ;;  %v551_v49 = vpop.xlane.xlu0 %550 }
 0x18a   : > { %v553_v50 = vpop.xlane.xlu1 %552  ;;  %v593_v4 = vmul.f32 0.0078125, %v551_v49  ;;  %v655_v14 = vmul.f32 %v3401_v40, %v3401_v40 }
 0x18b   : > { %v594_v5 = vmul.f32 0.0078125, %v553_v50  ;;  %v656_v44 = vmul.f32 %v3405_v39, %v3405_v39 }
 0x18c   : > { %v3413_v43 = vsub.f32 %v2239_v46, %v593_v4  ;;  %705 = vadd.xlane.f32.xlu1 %v654_v41  ;;  %707 = vadd.xlane.f32.xlu0 %v655_v14  ;;  %v392_v41 = vld [vmem:[#allocation7] sm:$0xff] }
 0x18d   : > { %v3417_v42 = vsub.f32 %v2240_v47, %v594_v5 }
 0x18e   : > { %v657_v51 = vmul.f32 %v3413_v43, %v3413_v43 }
 0x18f   : > { %v658_v52 = vmul.f32 %v3417_v42, %v3417_v42 }
 0x190   : > { %709 = vadd.xlane.f32.xlu1 %v656_v44  ;;  %711 = vadd.xlane.f32.xlu0 %v657_v51  ;;  %v3432_v51 = vrot.slane %v392_v41, %v3428_v48 }
 0x194   : > { %713 = vadd.xlane.f32.xlu1 %v658_v52  ;;  %v3435_v52 = vsub.s32 1, %v3425_v26 }
 0x1e1   : > { %v668_v46 = vpop.xlane.xlu0 %667 }
 0x1e2   : > { %v731_v32 = vmul.f32 0.0078125, %v668_v46 }
 0x1e4   : > { %v763_v23 = vadd.f32 1e-06, %v731_v32 }
 0x1e5   : > { %v670_v53 = vpop.xlane.xlu1 %669  ;;  %v716_v9 = vpop.xlane.xlu0 %715 }
 0x1e6   : > { %2438 = vrsqrt.f32 %v763_v23  ;;  %v732_v47 = vmul.f32 0.0078125, %v670_v53  ;;  %v755_v34 = vmul.f32 0.0078125, %v716_v9 }
 0x1e8   : > { %v764_v57 = vadd.f32 1e-06, %v732_v47  ;;  %v787_v58 = vadd.f32 1e-06, %v755_v34 }
 0x1e9   : > { %v718_v18 = vpop.xlane.xlu1 %717  ;;  %v672_v59 = vpop.xlane.xlu0 %671 }
 0x1ea   : > { %2440 = vrsqrt.f32 %v764_v57  ;;  %v756_v60 = vmul.f32 0.0078125, %v718_v18  ;;  %v733_v63 = vmul.f32 0.0078125, %v672_v59 }
 0x1eb   : > { %2442 = vrsqrt.f32 %v787_v58  ;;  %v3440_v58 = vrot.slane %v392_v41, %v3435_v52 }
 0x1ec   : > { %v788_v2 = vadd.f32 1e-06, %v756_v60  ;;  %v765_v38 = vadd.f32 1e-06, %v733_v63 }
 0x1ed   : > { %v674_v12 = vpop.xlane.xlu1 %673  ;;  %v720_v3 = vpop.xlane.xlu0 %719 }
 0x1ee   : > { %2444 = vrsqrt.f32 %v788_v2  ;;  %v734_v20 = vmul.f32 0.0078125, %v674_v12  ;;  %v757_v29 = vmul.f32 0.0078125, %v720_v3 }
 0x1ef   : > { %2446 = vrsqrt.f32 %v765_v38 }
 0x1f0   : > { %v2439_v49 = vpop.eup %2438  ;;  %v766_v50 = vadd.f32 1e-06, %v734_v20  ;;  %v789_v4 = vadd.f32 1e-06, %v757_v29 }
 0x1f1   : > { %v722_v14 = vpop.xlane.xlu1 %721  ;;  %v676_v5 = vpop.xlane.xlu0 %675  ;;  %v827_v44 = vmul.f32 %v2439_v49, %v3233_v54 }
 0x1f2   : > { %2448 = vrsqrt.f32 %v766_v50  ;;  %v758_v46 = vmul.f32 0.0078125, %v722_v14  ;;  %v735_v32 = vmul.f32 0.0078125, %v676_v5 }
 0x1f3   : > { %2450 = vrsqrt.f32 %v789_v4  ;;  %v863_v54 = vmul.f32 %v3432_v51, %v827_v44 }
 0x1f4   : > { %v2441_v23 = vpop.eup %2440  ;;  %v790_v53 = vadd.f32 1e-06, %v758_v46  ;;  %v767_v9 = vadd.f32 1e-06, %v735_v32 }
 0x1f5   : > { %v2443_v45 = vpop.eup %2442  ;;  %v678_v47 = vpop.xlane.xlu1 %677  ;;  %v828_v57 = vmul.f32 %v2441_v23, %v3243_v61  ;;  %v899_v61 = vadd.f32 %v3440_v58, %v863_v54 }
 0x1f6   : > { %v724_v34 = vpop.xlane.xlu0 %723  ;;  %2452 = vrsqrt.f32 %v790_v53  ;;  %v736_v18 = vmul.f32 0.0078125, %v678_v47  ;;  %v851_v60 = vmul.f32 %v2443_v45, %v3237_v55 }
 0x1f7   : > { %v759_v59 = vmul.f32 0.0078125, %v724_v34  ;;  %2454 = vrsqrt.f32 %v767_v9  ;;  %v864_v63 = vmul.f32 %v3432_v51, %v828_v57 }
 0x1f8   : > { %v2445_v2 = vpop.eup %2444  ;;  %v768_v38 = vadd.f32 1e-06, %v736_v18  ;;  %v887_v50 = vmul.f32 %v3432_v51, %v851_v60 }
 0x1f9   : > { %v791_v12 = vadd.f32 1e-06, %v759_v59  ;;  %v2447_v3 = vpop.eup %2446  ;;  %v726_v20 = vpop.xlane.xlu1 %725  ;;  %v900_v49 = vadd.f32 %v3440_v58, %v864_v63  ;;  %v852_v41 = vmul.f32 %v2445_v2, %v3247_v62  ;;  %v2406_v59 = vld [vmem:[#allocation10] ss:$8 sps:$4 sm:$0xff]   ;;  %v2411_v63 = vld [vmem:[#allocation10 + $0x14] ss:$8 sps:$4 sm:$0xff]  }
 0x1fa   : > { %v680_v29 = vpop.xlane.xlu0 %679  ;;  %2456 = vrsqrt.f32 %v768_v38  ;;  %v760_v4 = vmul.f32 0.0078125, %v726_v20  ;;  %v829_v44 = vmul.f32 %v2447_v3, %v3255_v0  ;;  %v923_v62 = vadd.f32 %v3440_v58, %v887_v50 }
 0x1fb   : > { %v737_v55 = vmul.f32 0.0078125, %v680_v29  ;;  %2458 = vrsqrt.f32 %v791_v12  ;;  %v931_v14 = vpack.c.bf16 %v900_v49, %v899_v61  ;;  %v888_v5 = vmul.f32 %v3432_v51, %v852_v41 }
 0x1fc   : > { %v2449_v46 = vpop.eup %2448  ;;  %v792_v32 = vadd.f32 1e-06, %v760_v4  ;;  %v865_v57 = vmul.f32 %v3432_v51, %v829_v44 }
 0x1fd   : > { %v769_v23 = vadd.f32 1e-06, %v737_v55  ;;  %v2451_v53 = vpop.eup %2450  ;;  %v682_v9 = vpop.xlane.xlu1 %681  ;;  %1079 = vmatmul.mubr.bf16.vlgmr.msra.gmra.mrb[0].mxu0 %v931_v14  ;;  %v924_v47 = vadd.f32 %v3440_v58, %v888_v5  ;;  %v830_v34 = vmul.f32 %v2449_v46, %v3259_v1  ;;  %v2409_v55 = vld [vmem:[#allocation10 + $0x10] ss:$8 sps:$4 sm:$0xff]   ;;  %v2414_v5 = vld [vmem:[#allocation10 + $0x24] ss:$8 sps:$4 sm:$0xff]  }
 0x1fe   : > { %v728_v45 = vpop.xlane.xlu0 %727  ;;  %2460 = vrsqrt.f32 %v792_v32  ;;  %v738_v54 = vmul.f32 0.0078125, %v682_v9  ;;  %1088 = vmatprep.mubr.bf16.mxu0 %v2767_v56  ;;  %v853_v0 = vmul.f32 %v2451_v53, %v3267_v8  ;;  %v901_v61 = vadd.f32 %v3440_v58, %v865_v57 }
 0x1ff   : > { %v761_v18 = vmul.f32 0.0078125, %v728_v45  ;;  %2462 = vrsqrt.f32 %v769_v23  ;;  %v943_v60 = vpack.c.bf16 %v924_v47, %v923_v62  ;;  %v866_v2 = vmul.f32 %v3432_v51, %v830_v34 }
 0x200   : > { %v2453_v38 = vpop.eup %2452  ;;  %v770_v12 = vadd.f32 1e-06, %v738_v54  ;;  %v889_v8 = vmul.f32 %v3432_v51, %v853_v0 }
 0x201   : > { %v793_v3 = vadd.f32 1e-06, %v761_v18  ;;  %v2455_v20 = vpop.eup %2454  ;;  %v730_v1 = vpop.xlane.xlu1 %729  ;;  %1199 = vmatmul.mubr.bf16.vlgmr.msra.gmra.mrb[0].mxu1 %v943_v60  ;;  %v902_v49 = vadd.f32 %v3440_v58, %v866_v2  ;;  %v854_v41 = vmul.f32 %v2453_v38, %v3271_v6  ;;  %v2417_v60 = vld [vmem:[#allocation10 + $0x34] ss:$8 sps:$4 sm:$0xff]  }
 0x202   : > { %v684_v29 = vpop.xlane.xlu0 %683  ;;  %2464 = vrsqrt.f32 %v770_v12  ;;  %v762_v50 = vmul.f32 0.0078125, %v730_v1  ;;  %1386 = vmatpush1.bf16.msra.mxu1 %v2406_v59  ;;  %1208 = vmatprep.mubr.bf16.mxu1 %v2767_v56  ;;  %v831_v46 = vmul.f32 %v2455_v20, %v3279_v11  ;;  %v925_v62 = vadd.f32 %v3440_v58, %v889_v8  ;;  %v2412_v11 = vld [vmem:[#allocation10 + $0x20] ss:$8 sps:$4 sm:$0xff]  }
 0x203   : > { %v739_v4 = vmul.f32 0.0078125, %v684_v29  ;;  %2466 = vrsqrt.f32 %v793_v3  ;;  %1387 = vmatprep.subr.bf16.mxu1 %v2411_v63  ;;  %v932_v14 = vpack.c.bf16 %v902_v49, %v901_v61  ;;  %v890_v44 = vmul.f32 %v3432_v51, %v854_v41  ;;  %v2415_v41 = vld [vmem:[#allocation10 + $0x30] ss:$8 sps:$4 sm:$0xff]  }
 0x204   : > { %v2457_v32 = vpop.eup %2456  ;;  %v794_v23 = vadd.f32 1e-06, %v762_v50  ;;  %v867_v57 = vmul.f32 %v3432_v51, %v831_v46  ;;  %v2420_v50 = vld [vmem:[#allocation10 + $0x44] ss:$8 sps:$4 sm:$0xff]  }
 0x205   : > { %v771_v6 = vadd.f32 1e-06, %v739_v4  ;;  %v2459_v53 = vpop.eup %2458  ;;  %v686_v9 = vpop.xlane.xlu1 %685  ;;  %1089 = vmatmul.mubr.bf16.gmra.mrb[4].mxu0 %v932_v14  ;;  %v926_v47 = vadd.f32 %v3440_v58, %v890_v44  ;;  %v832_v34 = vmul.f32 %v2457_v32, %v3283_v7 }
 0x206   : > { %v688_v45 = vpop.xlane.xlu0 %687  ;;  %2468 = vrsqrt.f32 %v794_v23  ;;  %v740_v54 = vmul.f32 0.0078125, %v686_v9  ;;  %1388 = vmatpush1.bf16.msra.mxu1 %v2409_v55  ;;  %1098 = vmatprep.mubr.bf16.mxu0 %v2767_v56  ;;  %v855_v59 = vmul.f32 %v2459_v53, %v3291_v10  ;;  %v903_v1 = vadd.f32 %v3440_v58, %v867_v57 }
 0x207   : > { %v741_v18 = vmul.f32 0.0078125, %v688_v45  ;;  %2470 = vrsqrt.f32 %v771_v6  ;;  %1389 = vmatprep.subr.bf16.mxu1 %v2414_v5  ;;  %v944_v0 = vpack.c.bf16 %v926_v47, %v925_v62  ;;  %v868_v63 = vmul.f32 %v3432_v51, %v832_v34  ;;  %v2423_v34 = vld [vmem:[#allocation10 + $0x54] ss:$8 sps:$4 sm:$0xff]  }
 0x208   : > { %v2461_v2 = vpop.eup %2460  ;;  %v772_v38 = vadd.f32 1e-06, %v740_v54  ;;  %v891_v10 = vmul.f32 %v3432_v51, %v855_v59 }
 0x209   : > { %v773_v7 = vadd.f32 1e-06, %v741_v18  ;;  %v2463_v12 = vpop.eup %2462  ;;  %v690_v3 = vpop.xlane.xlu1 %689  ;;  %1209 = vmatmul.mubr.bf16.gmra.mrb[4].mxu1 %v944_v0  ;;  %v904_v29 = vadd.f32 %v3440_v58, %v868_v63  ;;  %v856_v61 = vmul.f32 %v2461_v2, %v3295_v15 }
 0x20a   : > { %v692_v20 = vpop.xlane.xlu0 %691  ;;  %2472 = vrsqrt.f32 %v772_v38  ;;  %v742_v49 = vmul.f32 0.0078125, %v690_v3  ;;  %1390 = vmatpush1.bf16.msra.mxu1 %v2412_v11  ;;  %1218 = vmatprep.mubr.bf16.mxu1 %v2767_v56  ;;  %v833_v55 = vmul.f32 %v2463_v12, %v3303_v13  ;;  %v927_v23 = vadd.f32 %v3440_v58, %v891_v10  ;;  %v2418_v13 = vld [vmem:[#allocation10 + $0x40] ss:$8 sps:$4 sm:$0xff]   ;;  %v2421_v12 = vld [vmem:[#allocation10 + $0x50] ss:$8 sps:$4 sm:$0xff]  }
 0x20b   : > { %1391 = vmatprep.subr.bf16.mxu1 %v2417_v60  ;;  %v933_v8 = vpack.c.bf16 %v904_v29, %v903_v1  ;;  %v892_v4 = vmul.f32 %v3432_v51, %v856_v61  ;;  %2474 = vrsqrt.f32 %v773_v7  ;;  %v743_v44 = vmul.f32 0.0078125, %v692_v20  ;;  %v2426_v20 = vld [vmem:[#allocation10 + $0x64] ss:$8 sps:$4 sm:$0xff]  }
 0x20c   : > { %v2465_v14 = vpop.eup %2464  ;;  %v774_v5 = vadd.f32 1e-06, %v742_v49  ;;  %v869_v9 = vmul.f32 %v3432_v51, %v833_v55 }
 0x20d   : > { %v2467_v15 = vpop.eup %2466  ;;  %v694_v46 = vpop.xlane.xlu1 %693  ;;  %1099 = vmatmul.mubr.bf16.gmra.mrb[8].mxu0 %v933_v8  ;;  %v928_v6 = vadd.f32 %v3440_v58, %v892_v4  ;;  %v834_v53 = vmul.f32 %v2465_v14, %v3307_v17  ;;  %v775_v18 = vadd.f32 1e-06, %v743_v44 }
 0x20e   : > { %v696_v32 = vpop.xlane.xlu0 %695  ;;  %2476 = vrsqrt.f32 %v774_v5  ;;  %v744_v45 = vmul.f32 0.0078125, %v694_v46  ;;  %1392 = vmatpush1.bf16.msra.mxu1 %v2415_v41  ;;  %1108 = vmatprep.mubr.bf16.mxu0 %v2767_v56  ;;  %v857_v62 = vmul.f32 %v2467_v15, %v3315_v16  ;;  %v905_v60 = vadd.f32 %v3440_v58, %v869_v9 }
 0x20f   : > { %1393 = vmatprep.subr.bf16.mxu1 %v2420_v50  ;;  %v945_v47 = vpack.c.bf16 %v928_v6, %v927_v23  ;;  %v870_v57 = vmul.f32 %v3432_v51, %v834_v53  ;;  %v745_v10 = vmul.f32 0.0078125, %v696_v32  ;;  %v2429_v32 = vld [vmem:[#allocation10 + $0x74] ss:$8 sps:$4 sm:$0xff]  }
 0x210   : > { %v2469_v54 = vpop.eup %2468  ;;  %v776_v11 = vadd.f32 1e-06, %v744_v45  ;;  %v893_v16 = vmul.f32 %v3432_v51, %v857_v62 }
 0x211   : > { %v2471_v59 = vpop.eup %2470  ;;  %v698_v17 = vpop.xlane.xlu1 %697  ;;  %1219 = vmatmul.mubr.bf16.gmra.mrb[8].mxu1 %v945_v47  ;;  %v906_v63 = vadd.f32 %v3440_v58, %v870_v57  ;;  %v858_v2 = vmul.f32 %v2469_v54, %v3319_v19  ;;  %v777_v53 = vadd.f32 1e-06, %v745_v10 }
 0x212   : > { %v700_v0 = vpop.xlane.xlu0 %699  ;;  %2478 = vrsqrt.f32 %v776_v11  ;;  %v746_v38 = vmul.f32 0.0078125, %v698_v17  ;;  %1394 = vmatpush1.bf16.msra.mxu1 %v2418_v13  ;;  %1228 = vmatprep.mubr.bf16.mxu1 %v2767_v56  ;;  %v835_v29 = vmul.f32 %v2471_v59, %v3327_v21  ;;  %v929_v50 = vadd.f32 %v3440_v58, %v893_v16  ;;  %v2424_v21 = vld [vmem:[#allocation10 + $0x60] ss:$8 sps:$4 sm:$0xff]   ;;  %v2427_v11 = vld [vmem:[#allocation10 + $0x70] ss:$8 sps:$4 sm:$0xff]  }
 0x213   : > { %v747_v7 = vmul.f32 0.0078125, %v700_v0  ;;  %1395 = vmatprep.subr.bf16.mxu1 %v2423_v34  ;;  %v934_v3 = vpack.c.bf16 %v906_v63, %v905_v60  ;;  %v894_v1 = vmul.f32 %v3432_v51, %v858_v2  ;;  %2480 = vrsqrt.f32 %v775_v18 }
 0x214   : > { %v2473_v61 = vpop.eup %2472  ;;  %v778_v19 = vadd.f32 1e-06, %v746_v38  ;;  %v871_v14 = vmul.f32 %v3432_v51, %v835_v29 }
 0x215   : > { %v779_v49 = vadd.f32 1e-06, %v747_v7  ;;  %v702_v41 = vpop.xlane.xlu1 %701  ;;  %1109 = vmatmul.mubr.bf16.gmra.mrb[12].mxu0 %v934_v3  ;;  %v930_v4 = vadd.f32 %v3440_v58, %v894_v1  ;;  %v836_v55 = vmul.f32 %v2473_v61, %v3331_v22  ;;  %v2475_v5 = vpop.eup %2474 }
 0x216   : > { %v704_v8 = vpop.xlane.xlu0 %703  ;;  %v748_v44 = vmul.f32 0.0078125, %v702_v41  ;;  %1396 = vmatpush1.bf16.msra.mxu1 %v2421_v12  ;;  %1118 = vmatprep.mubr.bf16.mxu0 %v2767_v56  ;;  %v907_v62 = vadd.f32 %v3440_v58, %v871_v14  ;;  %v837_v34 = vmul.f32 %v2475_v5, %v3339_v24 }
 0x217   : > { %v749_v15 = vmul.f32 0.0078125, %v704_v8  ;;  %2482 = vrsqrt.f32 %v779_v49  ;;  %1397 = vmatprep.subr.bf16.mxu1 %v2426_v20  ;;  %v946_v46 = vpack.c.bf16 %v930_v4, %v929_v50  ;;  %v872_v23 = vmul.f32 %v3432_v51, %v836_v55 }
 0x218   : > { %v2477_v6 = vpop.eup %2476  ;;  %2484 = vrsqrt.f32 %v778_v19  ;;  %v780_v9 = vadd.f32 1e-06, %v748_v44  ;;  %v873_v16 = vmul.f32 %v3432_v51, %v837_v34 }
 0x219   : > { %v781_v22 = vadd.f32 1e-06, %v749_v15  ;;  %v706_v45 = vpop.xlane.xlu1 %705  ;;  %1229 = vmatmul.mubr.bf16.gmra.mrb[12].mxu1 %v946_v46  ;;  %v908_v47 = vadd.f32 %v3440_v58, %v872_v23  ;;  %v838_v57 = vmul.f32 %v2477_v6, %v3343_v25  ;;  %v2430_v25 = vld [vmem:[%s3073_s8] sm:$0xff]   ;;  %v2431_v15 = vld [vmem:[%s3073_s8 + $0x8] sm:$0xff]  }
 0x21a   : > { %v708_v13 = vpop.xlane.xlu0 %707  ;;  %2486 = vrsqrt.f32 %v780_v9  ;;  %v750_v54 = vmul.f32 0.0078125, %v706_v45  ;;  %1398 = vmatpush1.bf16.msra.mxu1 %v2424_v21  ;;  %1417 = vmatprep.mubr.bf16.mxu1 %v2767_v56  ;;  %v909_v19 = vadd.f32 %v3440_v58, %v873_v16 }
 0x21b   : > { %v751_v18 = vmul.f32 0.0078125, %v708_v13  ;;  %2488 = vrsqrt.f32 %v781_v22  ;;  %1399 = vmatprep.subr.bf16.mxu1 %v2429_v32  ;;  %v935_v59 = vpack.c.bf16 %v908_v47, %v907_v62  ;;  %v874_v17 = vmul.f32 %v3432_v51, %v838_v57 }
 0x21c   : > { %v2479_v0 = vpop.eup %2478  ;;  %2490 = vrsqrt.f32 %v777_v53  ;;  %v782_v60 = vadd.f32 1e-06, %v750_v54 }
 0x21d   : > { %v783_v63 = vadd.f32 1e-06, %v751_v18  ;;  %v710_v24 = vpop.xlane.xlu1 %709  ;;  %1119 = vmatmul.mubr.bf16.gmra.mrb[16].mxu0 %v935_v59  ;;  %v2481_v38 = vpop.eup %2480  ;;  %v910_v3 = vadd.f32 %v3440_v58, %v874_v17  ;;  %v840_v20 = vmul.f32 %v2479_v0, %v3355_v28  ;;  %v2432_v17 = vld [vmem:[%s3073_s8 + $0x10] sm:$0xff]  }
 0x21e   : > { %v712_v2 = vpop.xlane.xlu0 %711  ;;  %2492 = vrsqrt.f32 %v782_v60  ;;  %v752_v7 = vmul.f32 0.0078125, %v710_v24  ;;  %1400 = vmatpush1.bf16.msra.mxu1 %v2427_v11  ;;  %1128 = vmatprep.mubr.bf16.mxu0 %v2767_v56  ;;  %v839_v49 = vmul.f32 %v2481_v38, %v3351_v27 }
 0x21f   : > { %v753_v12 = vmul.f32 0.0078125, %v712_v2  ;;  %2494 = vrsqrt.f32 %v783_v63  ;;  %v936_v4 = vpack.c.bf16 %v910_v3, %v909_v19  ;;  %v876_v28 = vmul.f32 %v3432_v51, %v840_v20  ;;  %v2437_v19 = vld [vmem:[%s3073_s8 + $0x38] sm:$0xff]  }
 0x220   : > { %v784_v1 = vadd.f32 1e-06, %v752_v7  ;;  %v875_v27 = vmul.f32 %v3432_v51, %v839_v49  ;;  %v3568_v49 = vld [vmem:[%s3838_s3] sm:$0xf] }
 0x221   : > { %v785_v29 = vadd.f32 1e-06, %v753_v12  ;;  %v2483_v61 = vpop.eup %2482  ;;  %v714_v10 = vpop.xlane.xlu1 %713  ;;  %1418 = vmatmul.mubr.bf16.vlgmr.msra.gmra.mrb[16].mxu1 %v2430_v25  ;;  %v912_v23 = vadd.f32 %v3440_v58, %v876_v28 }
 0x222   : > { %v2485_v41 = vpop.eup %2484  ;;  %2496 = vrsqrt.f32 %v784_v1  ;;  %v754_v8 = vmul.f32 0.0078125, %v714_v10  ;;  %1427 = vmatprep.mubr.bf16.mxu1 %v2767_v56  ;;  %v843_v50 = vmul.f32 %v2483_v61, %v3377_v33 }
 0x223   : > { %2498 = vrsqrt.f32 %v785_v29  ;;  %v842_v6 = vmul.f32 %v2485_v41, %v3367_v31  ;;  %v2433_v29 = vld [vmem:[%s3073_s8 + $0x18] sm:$0xff]   ;;  %v954_v41 = vsub.s32 2, %v3425_v26 }
 0x224   : > { %v2487_v55 = vpop.eup %2486  ;;  %v786_v14 = vadd.f32 1e-06, %v754_v8  ;;  %v879_v5 = vmul.f32 %v3432_v51, %v843_v50  ;;  %v951_v8 = vrot.slane %v3568_v49, %v3428_v48 }
 0x225   : > { %v2489_v44 = vpop.eup %2488  ;;  %1129 = vmatmul.mubr.bf16.gmra.mrb[20].mxu0 %v936_v4  ;;  %v844_v21 = vmul.f32 %v2487_v55, %v3381_v35  ;;  %v911_v35 = vadd.f32 %v3440_v58, %v875_v27  ;;  %v878_v57 = vmul.f32 %v3432_v51, %v842_v6  ;;  %v955_v50 = vrot.slane %v3568_v49, %v954_v41 }
 0x226   : > { %v2491_v46 = vpop.eup %2490  ;;  %2500 = vrsqrt.f32 %v786_v14  ;;  %1138 = vmatprep.mubr.bf16.mxu0 %v2767_v56  ;;  %v915_v33 = vadd.f32 %v3440_v58, %v879_v5  ;;  %v845_v32 = vmul.f32 %v2489_v44, %v3389_v37  ;;  %v3575_v4 = vrot.slane %v951_v8, %v3428_v48 }
 0x227   : > { %v880_v53 = vmul.f32 %v3432_v51, %v844_v21  ;;  %v841_v13 = vmul.f32 %v2491_v46, %v3363_v30  ;;  %v937_v34 = vpack.c.bf16 %v912_v23, %v911_v35  ;;  %v914_v24 = vadd.f32 %v3440_v58, %v878_v57 }
 0x228   : > { %v2493_v9 = vpop.eup %2492  ;;  %v881_v22 = vmul.f32 %v3432_v51, %v845_v32 }
 0x229   : > { %v2495_v45 = vpop.eup %2494  ;;  %1428 = vmatmul.mubr.bf16.gmra.mrb[20].mxu1 %v2431_v15  ;;  %v916_v62 = vadd.f32 %v3440_v58, %v880_v53  ;;  %v846_v37 = vmul.f32 %v2493_v9, %v3393_v36  ;;  %v877_v36 = vmul.f32 %v3432_v51, %v841_v13 }
 0x22a   : > { %1437 = vmatprep.mubr.bf16.mxu1 %v2767_v56  ;;  %v917_v31 = vadd.f32 %v3440_v58, %v881_v22  ;;  %v847_v47 = vmul.f32 %v2495_v45, %v3401_v40 }
 0x22b   : > { %v939_v54 = vpack.c.bf16 %v916_v62, %v915_v33  ;;  %v882_v18 = vmul.f32 %v3432_v51, %v846_v37  ;;  %v913_v7 = vadd.f32 %v3440_v58, %v877_v36 }
 0x22c   : > { %v2497_v11 = vpop.eup %2496  ;;  %v883_v59 = vmul.f32 %v3432_v51, %v847_v47 }
 0x22d   : > { %v2499_v30 = vpop.eup %2498  ;;  %1139 = vmatmul.mubr.bf16.gmra.mrb[24].mxu0 %v937_v34  ;;  %v918_v0 = vadd.f32 %v3440_v58, %v882_v18  ;;  %v848_v60 = vmul.f32 %v2497_v11, %v3405_v39  ;;  %v938_v3 = vpack.c.bf16 %v914_v24, %v913_v7 }
 0x22e   : > { %1148 = vmatprep.mubr.bf16.mxu0 %v2767_v56  ;;  %v919_v40 = vadd.f32 %v3440_v58, %v883_v59  ;;  %v849_v63 = vmul.f32 %v2499_v30, %v3413_v43 }
 0x22f   : > { %v940_v2 = vpack.c.bf16 %v918_v0, %v917_v31  ;;  %v884_v25 = vmul.f32 %v3432_v51, %v848_v60 }
 0x230   : > { %v2501_v16 = vpop.eup %2500  ;;  %v885_v38 = vmul.f32 %v3432_v51, %v849_v63 }
 0x231   : > { %1438 = vmatmul.mubr.bf16.gmra.mrb[24].mxu1 %v2432_v17  ;;  %v920_v39 = vadd.f32 %v3440_v58, %v884_v25  ;;  %v850_v12 = vmul.f32 %v2501_v16, %v3417_v42  ;;  %v2434_v42 = vld [vmem:[%s3073_s8 + $0x20] sm:$0xff]  }
 0x232   : > { %1447 = vmatprep.mubr.bf16.mxu1 %v2767_v56  ;;  %v921_v43 = vadd.f32 %v3440_v58, %v885_v38 }
 0x233   : > { %v941_v20 = vpack.c.bf16 %v920_v39, %v919_v40  ;;  %v886_v1 = vmul.f32 %v3432_v51, %v850_v12  ;;  %v2435_v51 = vld [vmem:[%s3073_s8 + $0x28] sm:$0xff]  }
 0x235   : > { %1149 = vmatmul.mubr.bf16.gmra.mrb[28].mxu0 %v938_v3  ;;  %v922_v61 = vadd.f32 %v3440_v58, %v886_v1  ;;  %v2436_v58 = vld [vmem:[%s3073_s8 + $0x30] sm:$0xff]  }
 0x236   : > { %1158 = vmatprep.mubr.bf16.mxu0 %v2767_v56 }
 0x237   : > { %v942_v10 = vpack.c.bf16 %v922_v61, %v921_v43 }
 0x239   : > { %1448 = vmatmul.mubr.bf16.gmra.mrb[28].mxu1 %v2433_v29 }
 0x23a   : > { %1457 = vmatprep.mubr.bf16.mxu1 %v2767_v56 }
 0x23d   : > { %1159 = vmatmul.mubr.bf16.gmra.mrb[32].mxu0 %v939_v54 }
 0x23e   : > { %1168 = vmatprep.mubr.bf16.mxu0 %v2767_v56 }
 0x241   : > { %1458 = vmatmul.mubr.bf16.gmra.mrb[32].mxu1 %v2434_v42 }
 0x242   : > { %1467 = vmatprep.mubr.bf16.mxu1 %v2767_v56 }
 0x245   : > { %1169 = vmatmul.mubr.bf16.gmra.mrb[36].mxu0 %v940_v2 }
 0x246   : > { %1178 = vmatprep.mubr.bf16.mxu0 %v2767_v56 }
 0x249   : > { %1468 = vmatmul.mubr.bf16.gmra.mrb[36].mxu1 %v2435_v51 }
 0x24a   : > { %1477 = vmatprep.mubr.bf16.mxu1 %v2767_v56 }
 0x24d   : > { %1179 = vmatmul.mubr.bf16.gmra.mrb[40].mxu0 %v941_v20 }
 0x24e   : > { %1188 = vmatprep.mubr.bf16.mxu0 %v2767_v56 }
 0x251   : > { %1478 = vmatmul.mubr.bf16.gmra.mrb[40].mxu1 %v2436_v58 }
 0x252   : > { %1487 = vmatprep.mubr.bf16.mxu1 %v2767_v56  ;;  %v3578_v56 = vrot.slane %v955_v50, %v3428_v48 }
 0x255   : > { %1189 = vmatmul.mubr.bf16.gmra.mrb[44].mxu0 %v942_v10 }
 0x259   : > { %1488 = vmatmul.mubr.bf16.gmra.mrb[44].mxu1 %v2437_v19 }
 0x2d0   : > { %v1080_v28 = vpop.f32.mrb[0].mxu0 }
 0x2d1   : > { %v1081_v55 = vadd.f32 %v1080_v28, %v3575_v4  ;;  %v1082_v14 = vpop.f32.mrb[1].mxu0 }
 0x2d2   : > { %v1083_v5 = vadd.f32 %v1082_v14, %v3578_v56  ;;  %v1084_v44 = vpop.f32.mrb[2].mxu0 }
 0x2d3   : > { %v1085_v15 = vadd.f32 %v1084_v44, %v3575_v4  ;;  %v1086_v27 = vpop.f32.mrb[3].mxu0 }
 0x2d4   : > { %v2143_v21 = vpack.c.bf16 %v1083_v5, %v1081_v55  ;;  %v1087_v46 = vadd.f32 %v1086_v27, %v3578_v56  ;;  %v1200_v33 = vpop.f32.mrb[0].mxu1  ;;  %v1245_v27 = vsub.s32 3, %v3425_v26 }
 0x2d5   : > { %v1201_v32 = vadd.f32 %v1200_v33, %v3575_v4  ;;  %v1202_v23 = vpop.f32.mrb[1].mxu1 }
 0x2d6   : > { %1690 = vst [vmem:[%s3586_s23] sm:$0xff] %v2143_v21  ;;  %v2144_v48 = vpack.c.bf16 %v1087_v46, %v1085_v15  ;;  %v1203_v6 = vadd.f32 %v1202_v23, %v3578_v56  ;;  %v1204_v53 = vpop.f32.mrb[2].mxu1 }
 0x2d7   : > { %v1205_v9 = vadd.f32 %v1204_v53, %v3575_v4  ;;  %v1206_v22 = vpop.f32.mrb[3].mxu1  ;;  %v1242_v53 = vrot.slane %v3568_v49, %v3435_v52 }
 0x2d8   : > { %1691 = vst [vmem:[%s3586_s23 + $0x8] sm:$0xff] %v2144_v48  ;;  %v2167_v45 = vpack.c.bf16 %v1203_v6, %v1201_v32  ;;  %v1207_v35 = vadd.f32 %v1206_v22, %v3578_v56  ;;  %v1090_v13 = vpop.f32.mrb[4].mxu0 }
 0x2d9   : > { %v1091_v62 = vadd.f32 %v1090_v13, %v3575_v4  ;;  %v1092_v37 = vpop.f32.mrb[5].mxu0 }
 0x2da   : > { %1714 = vst [vmem:[%s3586_s23 + $0xc0] sm:$0xff] %v2167_v45  ;;  %v2168_v31 = vpack.c.bf16 %v1207_v35, %v1205_v9  ;;  %v1093_v47 = vadd.f32 %v1092_v37, %v3578_v56  ;;  %v1094_v34 = vpop.f32.mrb[6].mxu0  ;;  %v1246_v45 = vrot.slane %v3568_v49, %v1245_v27 }
 0x2db   : > { %v1095_v57 = vadd.f32 %v1094_v34, %v3575_v4  ;;  %v1096_v54 = vpop.f32.mrb[7].mxu0 }
 0x2dc   : > { %1715 = vst [vmem:[%s3586_s23 + $0xc8] sm:$0xff] %v2168_v31  ;;  %v2145_v18 = vpack.c.bf16 %v1093_v47, %v1091_v62  ;;  %v1097_v11 = vadd.f32 %v1096_v54, %v3578_v56  ;;  %v1210_v59 = vpop.f32.mrb[4].mxu1 }
 0x2dd   : > { %v1211_v30 = vadd.f32 %v1210_v59, %v3575_v4  ;;  %v1212_v17 = vpop.f32.mrb[5].mxu1 }
 0x2de   : > { %1692 = vst [vmem:[%s3586_s23 + $0x10] sm:$0xff] %v2145_v18  ;;  %v2146_v36 = vpack.c.bf16 %v1097_v11, %v1095_v57  ;;  %v1213_v0 = vadd.f32 %v1212_v17, %v3578_v56  ;;  %v1214_v60 = vpop.f32.mrb[6].mxu1  ;;  %v3635_v57 = vrot.slane %v1242_v53, %v3435_v52  ;;  %v3640_v11 = vrot.slane %v1246_v45, %v3435_v52 }
 0x2df   : > { %v1215_v40 = vadd.f32 %v1214_v60, %v3575_v4  ;;  %v1216_v63 = vpop.f32.mrb[7].mxu1 }
 0x2e0   : > { %1693 = vst [vmem:[%s3586_s23 + $0x18] sm:$0xff] %v2146_v36  ;;  %v2169_v24 = vpack.c.bf16 %v1213_v0, %v1211_v30  ;;  %v1217_v2 = vadd.f32 %v1216_v63, %v3578_v56  ;;  %v1100_v25 = vpop.f32.mrb[8].mxu0 }
 0x2e1   : > { %v1101_v16 = vadd.f32 %v1100_v25, %v3575_v4  ;;  %v1102_v38 = vpop.f32.mrb[9].mxu0 }
 0x2e2   : > { %1716 = vst [vmem:[%s3586_s23 + $0xd0] sm:$0xff] %v2169_v24  ;;  %v2170_v7 = vpack.c.bf16 %v1217_v2, %v1215_v40  ;;  %v1103_v39 = vadd.f32 %v1102_v38, %v3578_v56  ;;  %v1104_v12 = vpop.f32.mrb[10].mxu0 }
 0x2e3   : > { %v1105_v43 = vadd.f32 %v1104_v12, %v3575_v4  ;;  %v1106_v3 = vpop.f32.mrb[11].mxu0 }
 0x2e4   : > { %1717 = vst [vmem:[%s3586_s23 + $0xd8] sm:$0xff] %v2170_v7  ;;  %v2147_v20 = vpack.c.bf16 %v1103_v39, %v1101_v16  ;;  %v1107_v1 = vadd.f32 %v1106_v3, %v3578_v56  ;;  %v1220_v29 = vpop.f32.mrb[8].mxu1 }
 0x2e5   : > { %v1221_v61 = vadd.f32 %v1220_v29, %v3575_v4  ;;  %v1222_v10 = vpop.f32.mrb[9].mxu1 }
 0x2e6   : > { %1694 = vst [vmem:[%s3586_s23 + $0x20] sm:$0xff] %v2147_v20  ;;  %v2148_v42 = vpack.c.bf16 %v1107_v1, %v1105_v43  ;;  %v1223_v51 = vadd.f32 %v1222_v10, %v3578_v56  ;;  %v1224_v58 = vpop.f32.mrb[10].mxu1 }
 0x2e7   : > { %v1225_v19 = vadd.f32 %v1224_v58, %v3575_v4  ;;  %v1226_v41 = vpop.f32.mrb[11].mxu1 }
 0x2e8   : > { %1695 = vst [vmem:[%s3586_s23 + $0x28] sm:$0xff] %v2148_v42  ;;  %v2171_v8 = vpack.c.bf16 %v1223_v51, %v1221_v61  ;;  %v1227_v50 = vadd.f32 %v1226_v41, %v3578_v56  ;;  %v1110_v28 = vpop.f32.mrb[12].mxu0 }
 0x2e9   : > { %v1111_v55 = vadd.f32 %v1110_v28, %v3575_v4  ;;  %v1112_v14 = vpop.f32.mrb[13].mxu0 }
 0x2ea   : > { %1718 = vst [vmem:[%s3586_s23 + $0xe0] sm:$0xff] %v2171_v8  ;;  %v2172_v5 = vpack.c.bf16 %v1227_v50, %v1225_v19  ;;  %v1113_v44 = vadd.f32 %v1112_v14, %v3578_v56  ;;  %v1114_v15 = vpop.f32.mrb[14].mxu0 }
 0x2eb   : > { %v1115_v21 = vadd.f32 %v1114_v15, %v3575_v4  ;;  %v1116_v46 = vpop.f32.mrb[15].mxu0 }
 0x2ec   : > { %1719 = vst [vmem:[%s3586_s23 + $0xe8] sm:$0xff] %v2172_v5  ;;  %v2149_v33 = vpack.c.bf16 %v1113_v44, %v1111_v55  ;;  %v1117_v32 = vadd.f32 %v1116_v46, %v3578_v56  ;;  %v1230_v23 = vpop.f32.mrb[12].mxu1 }
 0x2ed   : > { %v1231_v48 = vadd.f32 %v1230_v23, %v3575_v4  ;;  %v1232_v6 = vpop.f32.mrb[13].mxu1 }
 0x2ee   : > { %1696 = vst [vmem:[%s3586_s23 + $0x30] sm:$0xff] %v2149_v33  ;;  %v2150_v9 = vpack.c.bf16 %v1117_v32, %v1115_v21  ;;  %v1233_v26 = vadd.f32 %v1232_v6, %v3578_v56  ;;  %v1234_v22 = vpop.f32.mrb[14].mxu1 }
 0x2ef   : > { %v1235_v35 = vadd.f32 %v1234_v22, %v3575_v4  ;;  %v1236_v13 = vpop.f32.mrb[15].mxu1 }
 0x2f0   : > { %1697 = vst [vmem:[%s3586_s23 + $0x38] sm:$0xff] %v2150_v9  ;;  %v2173_v62 = vpack.c.bf16 %v1233_v26, %v1231_v48  ;;  %v1237_v37 = vadd.f32 %v1236_v13, %v3578_v56  ;;  %v1120_v31 = vpop.f32.mrb[16].mxu0 }
 0x2f1   : > { %v1121_v47 = vadd.f32 %v1120_v31, %v3575_v4  ;;  %v1122_v34 = vpop.f32.mrb[17].mxu0 }
 0x2f2   : > { %1720 = vst [vmem:[%s3586_s23 + $0xf0] sm:$0xff] %v2173_v62  ;;  %v2174_v54 = vpack.c.bf16 %v1237_v37, %v1235_v35  ;;  %v1123_v49 = vadd.f32 %v1122_v34, %v3578_v56  ;;  %v1124_v18 = vpop.f32.mrb[18].mxu0 }
 0x2f3   : > { %v1125_v59 = vadd.f32 %v1124_v18, %v3575_v4  ;;  %v1126_v30 = vpop.f32.mrb[19].mxu0 }
 0x2f4   : > { %1721 = vst [vmem:[%s3586_s23 + $0xf8] sm:$0xff] %v2174_v54  ;;  %v2151_v17 = vpack.c.bf16 %v1123_v49, %v1121_v47  ;;  %v1127_v36 = vadd.f32 %v1126_v30, %v3578_v56  ;;  %v1419_v0 = vpop.f32.mrb[16].mxu1 }
 0x2f5   : > { %v1420_v60 = vadd.f32 %v1419_v0, %v3635_v57  ;;  %v1421_v40 = vpop.f32.mrb[17].mxu1 }
 0x2f6   : > { %1698 = vst [vmem:[%s3586_s23 + $0x40] sm:$0xff] %v2151_v17  ;;  %v2152_v63 = vpack.c.bf16 %v1127_v36, %v1125_v59  ;;  %v1422_v24 = vadd.f32 %v1421_v40, %v3640_v11  ;;  %v1423_v2 = vpop.f32.mrb[18].mxu1 }
 0x2f7   : > { %v1424_v52 = vadd.f32 %v1423_v2, %v3635_v57  ;;  %v1425_v25 = vpop.f32.mrb[19].mxu1 }
 0x2f8   : > { %1699 = vst [vmem:[%s3586_s23 + $0x48] sm:$0xff] %v2152_v63  ;;  %v2175_v16 = vpack.c.bf16 %v1422_v24, %v1420_v60  ;;  %v1426_v38 = vadd.f32 %v1425_v25, %v3640_v11  ;;  %v1130_v7 = vpop.f32.mrb[20].mxu0 }
 0x2f9   : > { %v1131_v39 = vadd.f32 %v1130_v7, %v3575_v4  ;;  %v1132_v12 = vpop.f32.mrb[21].mxu0 }
 0x2fa   : > { %1818 = vst [vmem:[%s3654_s0] sm:$0xff] %v2175_v16  ;;  %v2176_v43 = vpack.c.bf16 %v1426_v38, %v1424_v52  ;;  %v1133_v3 = vadd.f32 %v1132_v12, %v3578_v56  ;;  %v1134_v20 = vpop.f32.mrb[22].mxu0 }
 0x2fb   : > { %v1135_v1 = vadd.f32 %v1134_v20, %v3575_v4  ;;  %v1136_v29 = vpop.f32.mrb[23].mxu0 }
 0x2fc   : > { %1819 = vst [vmem:[%s3654_s0 + $0x8] sm:$0xff] %v2176_v43  ;;  %v2153_v61 = vpack.c.bf16 %v1133_v3, %v1131_v39  ;;  %v1137_v10 = vadd.f32 %v1136_v29, %v3578_v56  ;;  %v1429_v42 = vpop.f32.mrb[20].mxu1 }
 0x2fd   : > { %v1430_v51 = vadd.f32 %v1429_v42, %v3635_v57  ;;  %v1431_v58 = vpop.f32.mrb[21].mxu1 }
 0x2fe   : > { %1700 = vst [vmem:[%s3586_s23 + $0x50] sm:$0xff] %v2153_v61  ;;  %v2154_v19 = vpack.c.bf16 %v1137_v10, %v1135_v1  ;;  %v1432_v41 = vadd.f32 %v1431_v58, %v3640_v11  ;;  %v1433_v8 = vpop.f32.mrb[22].mxu1 }
 0x2ff   : > { %v1434_v50 = vadd.f32 %v1433_v8, %v3635_v57  ;;  %v1435_v28 = vpop.f32.mrb[23].mxu1 }
 0x300   : > { %1701 = vst [vmem:[%s3586_s23 + $0x58] sm:$0xff] %v2154_v19  ;;  %v2177_v55 = vpack.c.bf16 %v1432_v41, %v1430_v51  ;;  %v1436_v14 = vadd.f32 %v1435_v28, %v3640_v11  ;;  %v1140_v5 = vpop.f32.mrb[24].mxu0 }
 0x301   : > { %v1141_v44 = vadd.f32 %v1140_v5, %v3575_v4  ;;  %v1142_v15 = vpop.f32.mrb[25].mxu0 }
 0x302   : > { %1820 = vst [vmem:[%s3654_s0 + $0x10] sm:$0xff] %v2177_v55  ;;  %v2178_v27 = vpack.c.bf16 %v1436_v14, %v1434_v50  ;;  %v1143_v21 = vadd.f32 %v1142_v15, %v3578_v56  ;;  %v1144_v46 = vpop.f32.mrb[26].mxu0 }
 0x303   : > { %v1145_v33 = vadd.f32 %v1144_v46, %v3575_v4  ;;  %v1146_v32 = vpop.f32.mrb[27].mxu0 }
 0x304   : > { %1821 = vst [vmem:[%s3654_s0 + $0x18] sm:$0xff] %v2178_v27  ;;  %v2155_v23 = vpack.c.bf16 %v1143_v21, %v1141_v44  ;;  %v1147_v48 = vadd.f32 %v1146_v32, %v3578_v56  ;;  %v1439_v6 = vpop.f32.mrb[24].mxu1 }
 0x305   : > { %v1440_v53 = vadd.f32 %v1439_v6, %v3635_v57  ;;  %v1441_v9 = vpop.f32.mrb[25].mxu1 }
 0x306   : > { %1702 = vst [vmem:[%s3586_s23 + $0x60] sm:$0xff] %v2155_v23  ;;  %v2156_v26 = vpack.c.bf16 %v1147_v48, %v1145_v33  ;;  %v1442_v22 = vadd.f32 %v1441_v9, %v3640_v11  ;;  %v1443_v45 = vpop.f32.mrb[26].mxu1 }
 0x307   : > { %v1444_v35 = vadd.f32 %v1443_v45, %v3635_v57  ;;  %v1445_v13 = vpop.f32.mrb[27].mxu1 }
 0x308   : > { %1703 = vst [vmem:[%s3586_s23 + $0x68] sm:$0xff] %v2156_v26  ;;  %v2179_v62 = vpack.c.bf16 %v1442_v22, %v1440_v53  ;;  %v1446_v37 = vadd.f32 %v1445_v13, %v3640_v11  ;;  %v1150_v31 = vpop.f32.mrb[28].mxu0 }
 0x309   : > { %v1151_v47 = vadd.f32 %v1150_v31, %v3575_v4  ;;  %v1152_v34 = vpop.f32.mrb[29].mxu0 }
 0x30a   : > { %1822 = vst [vmem:[%s3654_s0 + $0x20] sm:$0xff] %v2179_v62  ;;  %v2180_v54 = vpack.c.bf16 %v1446_v37, %v1444_v35  ;;  %v1153_v49 = vadd.f32 %v1152_v34, %v3578_v56  ;;  %v1154_v18 = vpop.f32.mrb[30].mxu0 }
 0x30b   : > { %v1155_v59 = vadd.f32 %v1154_v18, %v3575_v4  ;;  %v1156_v30 = vpop.f32.mrb[31].mxu0 }
 0x30c   : > { %1823 = vst [vmem:[%s3654_s0 + $0x28] sm:$0xff] %v2180_v54  ;;  %v2157_v17 = vpack.c.bf16 %v1153_v49, %v1151_v47  ;;  %v1157_v36 = vadd.f32 %v1156_v30, %v3578_v56  ;;  %v1449_v0 = vpop.f32.mrb[28].mxu1 }
 0x30d   : > { %v1450_v60 = vadd.f32 %v1449_v0, %v3635_v57  ;;  %v1451_v40 = vpop.f32.mrb[29].mxu1 }
 0x30e   : > { %1704 = vst [vmem:[%s3586_s23 + $0x70] sm:$0xff] %v2157_v17  ;;  %v2158_v63 = vpack.c.bf16 %v1157_v36, %v1155_v59  ;;  %v1452_v24 = vadd.f32 %v1451_v40, %v3640_v11  ;;  %v1453_v2 = vpop.f32.mrb[30].mxu1 }
 0x30f   : > { %v1454_v52 = vadd.f32 %v1453_v2, %v3635_v57  ;;  %v1455_v25 = vpop.f32.mrb[31].mxu1 }
 0x310   : > { %1705 = vst [vmem:[%s3586_s23 + $0x78] sm:$0xff] %v2158_v63  ;;  %v2181_v16 = vpack.c.bf16 %v1452_v24, %v1450_v60  ;;  %v1456_v38 = vadd.f32 %v1455_v25, %v3640_v11  ;;  %v1160_v7 = vpop.f32.mrb[32].mxu0 }
 0x311   : > { %v1161_v39 = vadd.f32 %v1160_v7, %v3575_v4  ;;  %v1162_v12 = vpop.f32.mrb[33].mxu0 }
 0x312   : > { %1824 = vst [vmem:[%s3654_s0 + $0x30] sm:$0xff] %v2181_v16  ;;  %v2182_v43 = vpack.c.bf16 %v1456_v38, %v1454_v52  ;;  %v1163_v3 = vadd.f32 %v1162_v12, %v3578_v56  ;;  %v1164_v20 = vpop.f32.mrb[34].mxu0 }
 0x313   : > { %v1165_v1 = vadd.f32 %v1164_v20, %v3575_v4  ;;  %v1166_v29 = vpop.f32.mrb[35].mxu0 }
 0x314   : > { %1825 = vst [vmem:[%s3654_s0 + $0x38] sm:$0xff] %v2182_v43  ;;  %v2159_v61 = vpack.c.bf16 %v1163_v3, %v1161_v39  ;;  %v1167_v10 = vadd.f32 %v1166_v29, %v3578_v56  ;;  %v1459_v42 = vpop.f32.mrb[32].mxu1 }
 0x315   : > { %v1460_v51 = vadd.f32 %v1459_v42, %v3635_v57  ;;  %v1461_v58 = vpop.f32.mrb[33].mxu1 }
 0x316   : > { %1706 = vst [vmem:[%s3586_s23 + $0x80] sm:$0xff] %v2159_v61  ;;  %v2160_v19 = vpack.c.bf16 %v1167_v10, %v1165_v1  ;;  %v1462_v41 = vadd.f32 %v1461_v58, %v3640_v11  ;;  %v1463_v8 = vpop.f32.mrb[34].mxu1 }
 0x317   : > { %v1464_v50 = vadd.f32 %v1463_v8, %v3635_v57  ;;  %v1465_v28 = vpop.f32.mrb[35].mxu1 }
 0x318   : > { %1707 = vst [vmem:[%s3586_s23 + $0x88] sm:$0xff] %v2160_v19  ;;  %v2183_v55 = vpack.c.bf16 %v1462_v41, %v1460_v51  ;;  %v1466_v14 = vadd.f32 %v1465_v28, %v3640_v11  ;;  %v1170_v5 = vpop.f32.mrb[36].mxu0 }
 0x319   : > { %v1171_v44 = vadd.f32 %v1170_v5, %v3575_v4  ;;  %v1172_v15 = vpop.f32.mrb[37].mxu0 }
 0x31a   : > { %1826 = vst [vmem:[%s3654_s0 + $0x40] sm:$0xff] %v2183_v55  ;;  %v2184_v27 = vpack.c.bf16 %v1466_v14, %v1464_v50  ;;  %v1173_v21 = vadd.f32 %v1172_v15, %v3578_v56  ;;  %v1174_v46 = vpop.f32.mrb[38].mxu0 }
 0x31b   : > { %v1175_v33 = vadd.f32 %v1174_v46, %v3575_v4  ;;  %v1176_v32 = vpop.f32.mrb[39].mxu0 }
 0x31c   : > { %1827 = vst [vmem:[%s3654_s0 + $0x48] sm:$0xff] %v2184_v27  ;;  %v2161_v23 = vpack.c.bf16 %v1173_v21, %v1171_v44  ;;  %v1177_v48 = vadd.f32 %v1176_v32, %v3578_v56  ;;  %v1469_v6 = vpop.f32.mrb[36].mxu1 }
 0x31d   : > { %v1470_v53 = vadd.f32 %v1469_v6, %v3635_v57  ;;  %v1471_v9 = vpop.f32.mrb[37].mxu1 }
 0x31e   : > { %1708 = vst [vmem:[%s3586_s23 + $0x90] sm:$0xff] %v2161_v23  ;;  %v2162_v26 = vpack.c.bf16 %v1177_v48, %v1175_v33  ;;  %v1472_v22 = vadd.f32 %v1471_v9, %v3640_v11  ;;  %v1473_v45 = vpop.f32.mrb[38].mxu1 }
 0x31f   : > { %v1474_v35 = vadd.f32 %v1473_v45, %v3635_v57  ;;  %v1475_v13 = vpop.f32.mrb[39].mxu1 }
 0x320   : > { %1709 = vst [vmem:[%s3586_s23 + $0x98] sm:$0xff] %v2162_v26  ;;  %v2185_v62 = vpack.c.bf16 %v1472_v22, %v1470_v53  ;;  %v1476_v37 = vadd.f32 %v1475_v13, %v3640_v11  ;;  %v1180_v31 = vpop.f32.mrb[40].mxu0 }
 0x321   : > { %v1181_v47 = vadd.f32 %v1180_v31, %v3575_v4  ;;  %v1182_v34 = vpop.f32.mrb[41].mxu0 }
 0x322   : > { %1828 = vst [vmem:[%s3654_s0 + $0x50] sm:$0xff] %v2185_v62  ;;  %v2186_v54 = vpack.c.bf16 %v1476_v37, %v1474_v35  ;;  %v1183_v49 = vadd.f32 %v1182_v34, %v3578_v56  ;;  %v1184_v18 = vpop.f32.mrb[42].mxu0 }
 0x323   : > { %v1185_v59 = vadd.f32 %v1184_v18, %v3575_v4  ;;  %v1186_v30 = vpop.f32.mrb[43].mxu0 }
 0x324   : > { %1829 = vst [vmem:[%s3654_s0 + $0x58] sm:$0xff] %v2186_v54  ;;  %v2163_v17 = vpack.c.bf16 %v1183_v49, %v1181_v47  ;;  %v1187_v36 = vadd.f32 %v1186_v30, %v3578_v56  ;;  %v1479_v0 = vpop.f32.mrb[40].mxu1 }
 0x325   : > { %v1480_v60 = vadd.f32 %v1479_v0, %v3635_v57  ;;  %v1481_v40 = vpop.f32.mrb[41].mxu1 }
 0x326   : > { %1710 = vst [vmem:[%s3586_s23 + $0xa0] sm:$0xff] %v2163_v17  ;;  %v2164_v63 = vpack.c.bf16 %v1187_v36, %v1185_v59  ;;  %v1482_v24 = vadd.f32 %v1481_v40, %v3640_v11  ;;  %v1483_v2 = vpop.f32.mrb[42].mxu1 }
 0x327   : > { %v1484_v52 = vadd.f32 %v1483_v2, %v3635_v57  ;;  %v1485_v25 = vpop.f32.mrb[43].mxu1 }
 0x328   : > { %1711 = vst [vmem:[%s3586_s23 + $0xa8] sm:$0xff] %v2164_v63  ;;  %v2187_v16 = vpack.c.bf16 %v1482_v24, %v1480_v60  ;;  %v1486_v38 = vadd.f32 %v1485_v25, %v3640_v11  ;;  %v1190_v7 = vpop.f32.mrb[44].mxu0 }
 0x329   : > { %v1191_v39 = vadd.f32 %v1190_v7, %v3575_v4  ;;  %v1192_v12 = vpop.f32.mrb[45].mxu0 }
 0x32a   : > { %1830 = vst [vmem:[%s3654_s0 + $0x60] sm:$0xff] %v2187_v16  ;;  %v2188_v43 = vpack.c.bf16 %v1486_v38, %v1484_v52  ;;  %v1193_v3 = vadd.f32 %v1192_v12, %v3578_v56  ;;  %v1194_v20 = vpop.f32.mrb[46].mxu0 }
 0x32b   : > { %v1195_v1 = vadd.f32 %v1194_v20, %v3575_v4  ;;  %v1196_v29 = vpop.f32.mrb[47].mxu0 }
 0x32c   : > { %1831 = vst [vmem:[%s3654_s0 + $0x68] sm:$0xff] %v2188_v43  ;;  %v2165_v61 = vpack.c.bf16 %v1193_v3, %v1191_v39  ;;  %v1197_v10 = vadd.f32 %v1196_v29, %v3578_v56  ;;  %v1489_v42 = vpop.f32.mrb[44].mxu1 }
 0x32d   : > { %v1490_v51 = vadd.f32 %v1489_v42, %v3635_v57  ;;  %v1491_v58 = vpop.f32.mrb[45].mxu1 }
 0x32e   : > { %1712 = vst [vmem:[%s3586_s23 + $0xb0] sm:$0xff] %v2165_v61  ;;  %v2166_v4 = vpack.c.bf16 %v1197_v10, %v1195_v1  ;;  %v1492_v19 = vadd.f32 %v1491_v58, %v3640_v11  ;;  %v1493_v56 = vpop.f32.mrb[46].mxu1 }
 0x32f   : > { %v1494_v41 = vadd.f32 %v1493_v56, %v3635_v57  ;;  %v1495_v8 = vpop.f32.mrb[47].mxu1 }
 0x330   : > { %1713 = vst [vmem:[%s3586_s23 + $0xb8] sm:$0xff] %v2166_v4  ;;  %v2189_v50 = vpack.c.bf16 %v1492_v19, %v1490_v51  ;;  %v1496_v28 = vadd.f32 %v1495_v8, %v3640_v11 }
 0x331   : > { %2659 = shalt.err (!%p2656_p3)
}
 0x332   : > { %s2660_s8 = scalar_lea.hbm %s3739_s21, 4096  ;;  %s2664_s12 = scalar_lea.hbm %s3841_s6, 8192 }
 0x333   : > { %p2661_p9 = scmp.ne.s32.totalorder %s3739_s21, %s2660_s8  ;;  %p2665_p7 = scmp.lt.u32.totalorder %s3739_s21, %s3841_s6 }
 0x334   : > { %p2666_p12 = scmp.lt.u32.totalorder %s2664_s12, %s2660_s8  ;;  %p2668_p2 = scmp.lt.u32.totalorder %s2660_s8, %s3739_s21 }
 0x335   : > { %p2662_p13 = pnand %p2661_p9, %p2966_p5 }
 0x336   : > { %p2667_p1 = por %p2666_p12, %p2665_p7 }
 0x337   : > { %p2663_p11 = pneg %p2662_p13 }
 0x338   : > { %p2669_p4 = por %p2668_p2, %p2667_p1 }
 0x33a   : > { %p2670_p0 = pnand %p2669_p4, %p2663_p11 }
 0x33c   : > { %2673 = shalt.err (!%p2670_p0)
}
 0x33d   : > { %s2769_s13 = smov 128   ;;  %s2770_s15 = smov 8   ;;  %1832 = vst [vmem:[%s3654_s0 + $0x70] sm:$0xff] %v2189_v50  ;;  %v2190_v57 = vpack.c.bf16 %v1496_v28, %v1494_v41 }
 0x33e   : > { %2304 = dma.vmem_to_hbm [thread:$0]  (%p2966_p5), %s3741_s14, 4096, %s3739_s21, %s1835_s20, %s2769_s13, %s2769_s13, %s2770_s15  }
 0x33f   : > { %s3783_s4 = scalar_lea.hbm %s3842_s7, %s2192_s29  ;;  %1833 = vst [vmem:[%s3654_s0 + $0x78] sm:$0xff] %v2190_v57  ;;  %s1840_s9 = scalar_lea.sflag [#allocation13], %s3059_s5 }
 0x340   : > { %s2674_s8 = scalar_lea.vmem %s3787_s17, 2048  ;;  %s2771_s14 = smov [#allocation12]  }
 0x341   : > { %p2675_p8 = scmp.ne.s32.totalorder %s3787_s17, %s2674_s8  ;;  %s2678_s28 = sshll.u32 %s2771_s14, 4  ;;  %s2679_s28 = int_to_ptr.vmem [resolvable:$false] %s2678_s28 }
 0x342   : > { %s2680_s21 = scalar_lea.vmem %s2679_s28, 4096  ;;  %p2681_p3 = scmp.lt.s32.totalorder %s3787_s17, %s2679_s28 }
 0x343   : > { %p2676_p6 = pnand %p2675_p8, %p2966_p5  ;;  %p2682_p9 = scmp.lt.s32.totalorder %s2680_s21, %s2674_s8 }
 0x345   : > { %p2677_p10 = pneg %p2676_p6  ;;  %p2683_p13 = por %p2682_p9, %p2681_p3 }
 0x347   : > { %p2684_p11 = pnand %p2683_p13, %p2677_p10 }
 0x349   : > { %2687 = shalt.err (!%p2684_p11)
}
 0x34a   : > { %s2688_s0 = scalar_lea.hbm %s3783_s4, 2048  ;;  %s2692_s30 = scalar_lea.hbm %s3842_s7, 4096 }
 0x34b   : > { %p2689_p7 = scmp.ne.s32.totalorder %s3783_s4, %s2688_s0  ;;  %p2693_p2 = scmp.lt.u32.totalorder %s3783_s4, %s3842_s7 }
 0x34c   : > { %p2694_p4 = scmp.lt.u32.totalorder %s2692_s30, %s2688_s0  ;;  %p2696_p8 = scmp.lt.u32.totalorder %s2688_s0, %s3783_s4 }
 0x34d   : > { %p2690_p12 = pnand %p2689_p7, %p2966_p5 }
 0x34e   : > { %p2695_p0 = por %p2694_p4, %p2693_p2 }
 0x34f   : > { %p2691_p1 = pneg %p2690_p12 }
 0x350   : > { %p2697_p6 = por %p2696_p8, %p2695_p0 }
 0x352   : > { %p2698_p10 = pnand %p2697_p6, %p2691_p1 }
 0x354   : > { %2701 = shalt.err (!%p2698_p10)
}
 0x355   : > { %2305 = dma.vmem_to_hbm [thread:$0]  (%p2966_p5), %s3787_s17, 2048, %s3783_s4, %s1840_s9, %s2769_s13, %s2769_s13, %s2770_s15  }
 0x356 PF: > { %s3870_s23 = sld [smem:[#allocation20_spill]]  ;;  %s1884_s10 = sand.u32 1, %s2744_s24  }
 0x357   : > { %p3872_p9 = scmp.ge.s32.totalorder %s2756_s27, 2  ;;  %s1885_s11 = scalar_lea.sflag [#allocation4], %s1884_s10 }
 0x35c   : > { %p3871_p3 = scmp.ne.s32.totalorder %s3870_s23, 0 }
 0x35e   : > { %p2326_p13 = pnand %p3872_p9, %p3871_p3 }
 0x360   : > { %2735 = dma.done.wait (!%p2326_p13), %s1885_s11, 4096  }
 0x361   : > { %2737 = vsyncadd (!%p2326_p13), %s1885_s11, 4294963200  ;;  %s1894_s19 = scalar_lea.sflag [#allocation13], %s1884_s10 }
 0x362   : > { %2739 = dma.done.wait (!%p2326_p13), %s1894_s19, 2048  }
 0x363   : > { %2741 = vsyncadd (!%p2326_p13), %s1894_s19, 4294965248  ;;  %p28_p5 = scmp.ge.s32.totalorder %s2952_s22, 4   ;;  %s3873_s24 = smov %s2748_s25 }
 0x364   : > { %s3874_s25 = smov %s2752_s26  ;;  %s3875_s26 = smov %s2962_s18 }
 0x365   : > { %s3876_s27 = smov %s2952_s22  ;;  %30 = sbr.rel (!%p28_p5) target bundleno = 15 (0xf), region = 131 }
 0x36c   :  { %1899 = vsyncpa [#allocation3], 1 }
 0x36d   :  { %1901 = vsyncpa [#allocation3 + $0x1], 1 }
 0x36e   :  { %1902 = vsyncpa [#allocation6], 1 }
 0x36f   :  { %1904 = vsyncpa [#allocation6 + $0x1], 1 }
 0x370   :  { %1905 = vsyncpa [#allocation9], 1 }
 0x371   :  { %1906 = vsyncpa [#allocation4], 1 }
 0x372   :  { %1908 = vsyncpa [#allocation4 + $0x1], 1 }
 0x373   :  { %1909 = vsyncpa [#allocation13], 1 }
 0x374   :  { %1911 = vsyncpa [#allocation13 + $0x1], 1 }

// kernel: tpu_custom_call.1
= control target key start
LH: loop header
LB: loop body
LE: loop exit
PB: predicated region body
PF: predicated region fallthrough
CT: control target
= control target key end

     0   :  { %s3835_s0 = inlined_call_operand.hbm [shape: bf16[2,256,128], index: 0, kind: input, shape index: {}]   ;;  %s3836_s1 = inlined_call_operand.hbm [shape: bf16[2,128,128], index: 1, kind: input, shape index: {}]   ;;  %s3837_s2 = inlined_call_operand.hbm [shape: f32[11,128], index: 2, kind: input, shape index: {}]   ;;  %s3838_s3 = inlined_call_operand.vmem [shape: f32[2,256], index: 3, kind: input, shape index: {}]   ;;  %s3839_s4 = inlined_call_operand.hbm [shape: bf16[128,256], index: 4, kind: input, shape index: {}]   ;;  %s3840_s5 = inlined_call_operand.hbm [shape: bf16[128,256], index: 5, kind: input, shape index: {}]   ;;  %s3841_s6 = inlined_call_operand.hbm [shape: bf16[2,256,256], index: 6, kind: output, shape index: {0}]   ;;  %s3842_s7 = inlined_call_operand.hbm [shape: bf16[2,128,256], index: 7, kind: output, shape index: {1}]  }
   0x1   :  { %3847 = sst [smem:[#allocation21_spill]] %s3835_s0 }
   0x2   :  { %3848 = sst [smem:[#allocation22_spill]] %s3837_s2 }
   0x3   :  { %3849 = sst [smem:[#allocation23_spill]] %s3839_s4 }
   0x4   :  { %3850 = sst [smem:[#allocation24_spill]] %s3840_s5 }
   0x5   :  { %13 = vsyncpa [#allocation3], 0 }
   0x6   :  { %15 = vsyncpa [#allocation3 + $0x1], 0 }
   0x7   :  { %16 = vsyncpa [#allocation6], 0 }
   0x8   :  { %18 = vsyncpa [#allocation6 + $0x1], 0 }
   0x9   :  { %19 = vsyncpa [#allocation9], 0 }
   0xa   :  { %20 = vsyncpa [#allocation4], 0 }
   0xb   :  { %22 = vsyncpa [#allocation4 + $0x1], 0 }
   0xc   :  { %23 = vsyncpa [#allocation13], 0 }
   0xd   :  { %25 = vsyncpa [#allocation13 + $0x1], 0  ;;  %s2812_s24 = smov 0   ;;  %s2814_s25 = smov 0  }
   0xe   :  { %s2816_s26 = smov 0   ;;  %s2818_s27 = smov 0  }
   0xf LB: > { %s2833_s28 = sadd.s32 4294967295, %s2756_s27   ;;  %s2025_s29 = sadd.s32 4294967294, %s2756_s27   ;;  %s2756_s27 = sphi %s2818_s27, %s3876_s27   ;;  %s2752_s26 = sphi %s2816_s26, %s3875_s26   ;;  %s2748_s25 = sphi %s2814_s25, %s3874_s25   ;;  %s2744_s24 = sphi %s2812_s24, %s3873_s24  }
  0x10   : > { %p51_p0 = scmp.ne.s32.totalorder %s2748_s25, %s2744_s24  ;;  %p3843_p1 = scmp.eq.s32.totalorder %s2833_s28, 0 }
  0x11   : > { %p191_p3 = scmp.eq.s32.totalorder %s2025_s29, 1  ;;  %p2026_p5 = scmp.ge.s32.totalorder %s2756_s27, 1 }
  0x12   : > { %p2842_p4 = por %p3843_p1, %p51_p0  ;;  %p224_p7 = scmp.lt.s32.totalorder %s2756_s27, 3 }
  0x13   : > { %p2847_p6 = por %p191_p3, %p51_p0  ;;  %s2758_s10 = smov [#allocation7]  }
  0x14   : > { %s3851_s30 = scalar_select %p2842_p4, 1, 0 }
  0x15   : > { %s3852_s8 = scalar_select %p2847_p6, 1, 0 }
  0x16   : > { %p2852_p8 = pnand %p2026_p5, %p224_p7  ;;  %s236_s11 = sshll.u32 %s2758_s10, 4  ;;  %s2856_s11 = int_to_ptr.vmem [resolvable:$true] %s236_s11 }
  0x17   : > { %3853 = sst [smem:[#allocation20_spill]] %s3852_s8  ;;  %s2759_s13 = smov [#allocation8]  }
  0x18   : > { %s3854_s9 = scalar_select %p2852_p8, 1, 0 }
  0x19   : > { %p2308_p9 = pneg %p2852_p8  ;;  %s252_s14 = sshll.u32 %s2759_s13, 4  ;;  %s2867_s14 = int_to_ptr.vmem [resolvable:$true] %s252_s14 }
  0x1a   : > { %s2760_s15 = smov [#allocation10]   ;;  %s3856_s2 = sld [smem:[#allocation22_spill]] }
  0x1b   : > { %p2863_p11 = pnand %p2308_p9, %p3843_p1  ;;  %s2869_s16 = sshll.u32 %s2760_s15, 4  ;;  %s266_s16 = int_to_ptr.vmem [resolvable:$true] %s2869_s16 }
  0x1d   : > { %p2879_p13 = pneg %p2863_p11 }
  0x20   : > { %s2502_s19 = scalar_lea.hbm %s3856_s2, 256 }
  0x21   : > { %p2503_p12 = scmp.ne.s32.totalorder %s3856_s2, %s2502_s19  ;;  %p2509_p5 = scmp.lt.u32.totalorder %s2502_s19, %s3856_s2 }
  0x23   : > { %p2505_p0 = pnand %p2879_p13, %p2503_p12 }
  0x25   : > { %p2506_p3 = pneg %p2505_p0 }
  0x27   : > { %p2511_p7 = pnand %p2509_p5, %p2506_p3 }
  0x29   : > { %2514 = shalt.err (!%p2511_p7)
}
  0x2a   : > { %s2515_s10 = scalar_lea.vmem %s2856_s11, 256  ;;  %p2523_p2 = scmp.lt.s32.totalorder %s2856_s11, %s2856_s11 }
  0x2b   : > { %p2516_p9 = scmp.ne.s32.totalorder %s2856_s11, %s2515_s10  ;;  %p2524_p6 = scmp.lt.s32.totalorder %s2515_s10, %s2515_s10 }
  0x2d   : > { %p2518_p10 = pnand %p2516_p9, %p2879_p13  ;;  %p2525_p12 = por %p2524_p6, %p2523_p2 }
  0x2f   : > { %p2519_p1 = pneg %p2518_p10 }
  0x31   : > { %p2526_p0 = pnand %p2525_p12, %p2519_p1 }
  0x33   : > { %2529 = shalt.err (!%p2526_p0)
}
  0x34   : > { %s2761_s13 = smov 128   ;;  %s2762_s15 = smov 8  }
  0x35   : > { %2311 = dma.hbm_to_vmem [thread:$0]  (!%p2863_p11), %s3856_s2, 256, %s2856_s11, [#allocation6], %s2761_s13, %s2761_s13, %s2762_s15  }
  0x36   : > { %s3858_s4 = sld [smem:[#allocation23_spill]] }
  0x3c   : > { %s2530_s21 = scalar_lea.hbm %s3858_s4, 2048 }
  0x3d   : > { %p2531_p1 = scmp.ne.s32.totalorder %s3858_s4, %s2530_s21  ;;  %p2537_p10 = scmp.lt.u32.totalorder %s2530_s21, %s3858_s4 }
  0x3f   : > { %p2533_p2 = pnand %p2531_p1, %p2879_p13 }
  0x41   : > { %p2534_p6 = pneg %p2533_p2 }
  0x43   : > { %p2539_p3 = pnand %p2537_p10, %p2534_p6 }
  0x45   : > { %2542 = shalt.err (!%p2539_p3)
}
  0x46   : > { %s2543_s11 = scalar_lea.vmem %s2867_s14, 2048  ;;  %p2551_p12 = scmp.lt.s32.totalorder %s2867_s14, %s2867_s14 }
  0x47   : > { %p2544_p5 = scmp.ne.s32.totalorder %s2867_s14, %s2543_s11  ;;  %p2552_p0 = scmp.lt.s32.totalorder %s2543_s11, %s2543_s11 }
  0x49   : > { %p2546_p7 = pnand %p2544_p5, %p2879_p13  ;;  %p2553_p1 = por %p2552_p0, %p2551_p12 }
  0x4b   : > { %p2547_p9 = pneg %p2546_p7 }
  0x4d   : > { %p2554_p2 = pnand %p2553_p1, %p2547_p9 }
  0x4f   : > { %2557 = shalt.err (!%p2554_p2)
}
  0x50   : > { %2314 = dma.hbm_to_vmem [thread:$0]  (!%p2863_p11), %s3858_s4, 2048, %s2867_s14, [#allocation9], %s2761_s13, %s2761_s13, %s2762_s15  }
  0x51   : > { %s3859_s5 = sld [smem:[#allocation24_spill]] }
  0x57   : > { %s2558_s20 = scalar_lea.hbm %s3859_s5, 2048 }
  0x58   : > { %p2559_p6 = scmp.ne.s32.totalorder %s3859_s5, %s2558_s20  ;;  %p2565_p5 = scmp.lt.u32.totalorder %s2558_s20, %s3859_s5 }
  0x5a   : > { %p2561_p10 = pnand %p2559_p6, %p2879_p13 }
  0x5c   : > { %p2562_p3 = pneg %p2561_p10 }
  0x5e   : > { %p2567_p7 = pnand %p2565_p5, %p2562_p3 }
  0x60   : > { %2570 = shalt.err (!%p2567_p7)
}
  0x61   : > { %s2571_s11 = scalar_lea.vmem %s266_s16, 2048  ;;  %p2579_p1 = scmp.lt.s32.totalorder %s266_s16, %s266_s16 }
  0x62   : > { %p2572_p9 = scmp.ne.s32.totalorder %s266_s16, %s2571_s11  ;;  %p2580_p2 = scmp.lt.s32.totalorder %s2571_s11, %s2571_s11 }
  0x64   : > { %p2574_p12 = pnand %p2572_p9, %p2879_p13  ;;  %p2581_p4 = por %p2580_p2, %p2579_p1 }
  0x66   : > { %p2575_p0 = pneg %p2574_p12 }
  0x68   : > { %p2582_p8 = pnand %p2581_p4, %p2575_p0 }
  0x6a   : > { %2585 = shalt.err (!%p2582_p8)
}
  0x6b   : > { %2317 = dma.hbm_to_vmem [thread:$0]  (!%p2863_p11), %s3859_s5, 2048, %s266_s16, [#allocation9], %s2761_s13, %s2761_s13, %s2762_s15  }
  0x6c   : > { %s2952_s22 = sadd.s32 1, %s2756_s27   ;;  %s38_s17 = sadd.s32 1, %s2752_s26 }
  0x6d   : > { %s35_s12 = ssub.s32 %s2756_s27, %s2952_s22  ;;  %p45_p8 = scmp.ne.s32.totalorder %s2752_s26, %s2748_s25 }
  0x6e   : > { %p36_p4 = scmp.eq.s32.totalorder %s35_s12, 0  ;;  %p46_p13 = scmp.eq.s32.totalorder %s2756_s27, 0 }
  0x6f   : > { %p2335_p6 = scmp.lt.s32.totalorder %s2756_s27, 2  ;;  %p3860_p3 = scmp.eq.s32.totalorder %s2833_s28, 1 }
  0x70   : > { %s2962_s18 = scalar_select %p36_p4, %s2752_s26, %s38_s17  }
  0x71   : > { %p47_p10 = por %p46_p13, %p45_p8  ;;  %p2966_p5 = por %p3860_p3, %p45_p8 }
  0x72   : > { %s2971_s20 = sand.u32 1, %s2752_s26   ;;  %s2141_s16 = sshll.u32 %s2756_s27, 11 }
  0x73   : > { %s2031_s13 = sshll.u32 %s2971_s20, 7  ;;  %s3862_s0 = sld [smem:[#allocation21_spill]] }
  0x74   : > { %s283_s29 = scalar_lea.vmem [#allocation2], %s2031_s13  ;;  %p2980_p11 = pnand %p2335_p6, %p47_p10 }
  0x75   : > { %s290_s10 = sshll.u32 %s283_s29, 4  ;;  %s280_s14 = scalar_lea.sflag [#allocation3], %s2971_s20  ;;  %s2984_s10 = int_to_ptr.vmem [resolvable:$true] %s290_s10 }
  0x76   : > { %p2588_p9 = pneg %p2980_p11 }
  0x79   : > { %s2978_s23 = scalar_lea.hbm %s3862_s0, %s2141_s16  ;;  %s2591_s16 = scalar_lea.hbm %s3862_s0, 4096 }
  0x7a   : > { %s2586_s8 = scalar_lea.hbm %s2978_s23, 2048  ;;  %p2592_p1 = scmp.lt.u32.totalorder %s2978_s23, %s3862_s0 }
  0x7b   : > { %p2587_p7 = scmp.ne.s32.totalorder %s2978_s23, %s2586_s8  ;;  %p2593_p2 = scmp.lt.u32.totalorder %s2591_s16, %s2586_s8 }
  0x7c   : > { %p2595_p8 = scmp.lt.u32.totalorder %s2586_s8, %s2978_s23 }
  0x7d   : > { %p2589_p12 = pnand %p2588_p9, %p2587_p7  ;;  %p2594_p4 = por %p2593_p2, %p2592_p1 }
  0x7f   : > { %p2590_p0 = pneg %p2589_p12  ;;  %p2596_p13 = por %p2595_p8, %p2594_p4 }
  0x81   : > { %p2597_p6 = pnand %p2596_p13, %p2590_p0 }
  0x83   : > { %2600 = shalt.err (!%p2597_p6)
}
  0x84   : > { %s2601_s21 = scalar_lea.vmem %s2984_s10, 2048  ;;  %s2763_s29 = smov [#allocation2]  }
  0x85   : > { %p2602_p10 = scmp.ne.s32.totalorder %s2984_s10, %s2601_s21  ;;  %s2606_s12 = sshll.u32 %s2763_s29, 4  ;;  %s2607_s12 = int_to_ptr.vmem [resolvable:$false] %s2606_s12 }
  0x86   : > { %s2608_s17 = scalar_lea.vmem %s2607_s12, 4096  ;;  %p2609_p12 = scmp.lt.s32.totalorder %s2984_s10, %s2607_s12 }
  0x87   : > { %p2604_p3 = pnand %p2602_p10, %p2588_p9  ;;  %p2610_p1 = scmp.lt.s32.totalorder %s2608_s17, %s2601_s21 }
  0x89   : > { %p2605_p7 = pneg %p2604_p3  ;;  %p2611_p2 = por %p2610_p1, %p2609_p12 }
  0x8b   : > { %p2612_p4 = pnand %p2611_p2, %p2605_p7 }
  0x8d   : > { %2615 = shalt.err (!%p2612_p4)
}
  0x8e   : > { %s2764_s8 = smov 64   ;;  %s2765_s16 = smov 4  }
  0x8f   : > { %2321 = dma.hbm_to_vmem [thread:$0]  (!%p2980_p11), %s2978_s23, 2048, %s2984_s10, %s280_s14, %s2764_s8, %s2764_s8, %s2765_s16  }
  0x90   : > { %s300_s13 = sand.u32 1, %s2756_s27   ;;  %s2034_s15 = sshll.u32 %s2971_s20, 6 }
  0x91   : > { %s2142_s21 = sshll.u32 %s2756_s27, 10  ;;  %s304_s29 = scalar_lea.vmem [#allocation5], %s2034_s15 }
  0x92   : > { %s311_s12 = sshll.u32 %s304_s29, 4  ;;  %s3023_s2 = scalar_lea.hbm %s3836_s1, %s2142_s21  ;;  %s3025_s12 = int_to_ptr.vmem [resolvable:$true] %s311_s12 }
  0x93   : > { %s3027_s4 = scalar_lea.sflag [#allocation6], %s300_s13  ;;  %s2616_s5 = scalar_lea.hbm %s3023_s2, 1024 }
  0x94   : > { %p2617_p0 = scmp.ne.s32.totalorder %s3023_s2, %s2616_s5  ;;  %s2621_s0 = scalar_lea.hbm %s3836_s1, 2048 }
  0x95   : > { %p2622_p6 = scmp.lt.u32.totalorder %s3023_s2, %s3836_s1  ;;  %p2623_p10 = scmp.lt.u32.totalorder %s2621_s0, %s2616_s5 }
  0x96   : > { %p2619_p8 = pnand %p2617_p0, %p2588_p9  ;;  %p2625_p7 = scmp.lt.u32.totalorder %s2616_s5, %s3023_s2 }
  0x97   : > { %p2624_p3 = por %p2623_p10, %p2622_p6 }
  0x98   : > { %p2620_p13 = pneg %p2619_p8 }
  0x99   : > { %p2626_p12 = por %p2625_p7, %p2624_p3 }
  0x9b   : > { %p2627_p1 = pnand %p2626_p12, %p2620_p13 }
  0x9d   : > { %2630 = shalt.err (!%p2627_p1)
}
  0x9e   : > { %s2631_s13 = scalar_lea.vmem %s3025_s12, 1024  ;;  %s2766_s15 = smov [#allocation5]  }
  0x9f   : > { %p2632_p2 = scmp.ne.s32.totalorder %s3025_s12, %s2631_s13  ;;  %s2636_s21 = sshll.u32 %s2766_s15, 4  ;;  %s2637_s21 = int_to_ptr.vmem [resolvable:$false] %s2636_s21 }
  0xa0   : > { %s2638_s29 = scalar_lea.vmem %s2637_s21, 2048  ;;  %p2639_p8 = scmp.lt.s32.totalorder %s3025_s12, %s2637_s21 }
  0xa1   : > { %p2634_p4 = pnand %p2632_p2, %p2588_p9  ;;  %p2640_p6 = scmp.lt.s32.totalorder %s2638_s29, %s2631_s13 }
  0xa3   : > { %p2635_p0 = pneg %p2634_p4  ;;  %p2641_p10 = por %p2640_p6, %p2639_p8 }
  0xa5   : > { %p2642_p3 = pnand %p2641_p10, %p2635_p0 }
  0xa7   : > { %2645 = shalt.err (!%p2642_p3)
}
  0xa8   : > { %2324 = dma.hbm_to_vmem [thread:$0]  (!%p2980_p11), %s3023_s2, 1024, %s3025_s12, %s3027_s4, %s2764_s8, %s2764_s8, %s2765_s16  }
  0xa9   : > { %p3864_p9 = scmp.ne.s32.totalorder %s3854_s9, 0 }
  0xaa   : > { %s3059_s5 = sand.u32 (!%p3864_p9), 1, %s2748_s25   ;;  %p3865_p13 = scmp.ne.s32.totalorder (!%p3864_p9), %s3851_s30, 0 }
  0xab   : > { %323 = sbr.rel (%p3864_p9) target bundleno = 854 (0x356), region = 44  ;;  %s2038_s17 = sshll.u32 (!%p3864_p9), %s3059_s5, 7 }
  0xac   : > { %s326_s20 = scalar_lea.sflag (!%p3864_p9), [#allocation3], %s3059_s5  ;;  %s3065_s11 = scalar_lea.vmem (!%p3864_p9), [#allocation2], %s2038_s17 }
  0xb2   : > { %2719 = dma.done.wait (%p3865_p13), %s326_s20, 2048  }
  0xb3   : > { %2721 = vsyncadd (%p3865_p13), %s326_s20, 4294965248  ;;  %s334_s2 = sand.u32 1, %s2833_s28   ;;  %s2039_s4 = sshll.u32 %s3059_s5, 6 }
  0xb4   : > { %s335_s9 = scalar_lea.sflag [#allocation6], %s334_s2  ;;  %s3073_s8 = scalar_lea.vmem [#allocation5], %s2039_s4 }
  0xb5   : > { %2723 = dma.done.wait (%p3865_p13), %s335_s9, 1024  }
  0xb6   : > { %2725 = vsyncadd (%p3865_p13), %s335_s9, 4294966272  ;;  %p3866_p11 = scmp.eq.s32.totalorder %s2833_s28, 0 }
  0xb8   : > { %2727 = dma.done.wait (%p3866_p11), [#allocation6], 256   ;;  %p3867_p7 = pmov %p3866_p11 }
  0xba   : > { %2729 = vsyncadd (%p3867_p7), [#allocation6], 4294967040  ;;  %p3868_p12 = pmov %p3867_p7 }
  0xbb   : > { %p3869_p1 = pmov %p3867_p7 }
  0xbc   : > { %2731 = dma.done.wait (%p3868_p12), [#allocation9], 4096  }
  0xbd   : > { %2733 = vsyncadd (%p3869_p1), [#allocation9], 4294963200  ;;  %v3088_v0 = vld [vmem:[%s3065_s11] sm:$0xff]   ;;  %v3102_v6 = vld [vmem:[%s3065_s11 + $0x8] sm:$0xff]   ;;  %s2043_s12 = sshll.u32 %s3059_s5, 8  ;;  %s3654_s0 = scalar_lea.vmem [#allocation12], %s2038_s17 }
  0xbe   : > { %v3091_v1 = vld [vmem:[%s3065_s11 + $0x60] sm:$0xff]   ;;  %v2195_v2 = vunpack.c.l.bf16 %v3088_v0  ;;  %v2196_v4 = vunpack.c.h.bf16 %v3088_v0  ;;  %v3105_v7 = vld [vmem:[%s3065_s11 + $0x68] sm:$0xff]   ;;  %v2199_v8 = vunpack.c.l.bf16 %v3102_v6  ;;  %v2200_v9 = vunpack.c.h.bf16 %v3102_v6  ;;  %v3114_v10 = vld [vmem:[%s3065_s11 + $0x10] sm:$0xff]   ;;  %s3586_s23 = scalar_lea.vmem [#allocation11], %s2043_s12  ;;  %s2191_s10 = sshll.u32 %s2833_s28, 12 }
  0xbf   : > { %v2243_v3 = vunpack.c.l.bf16 %v3091_v1  ;;  %v2244_v5 = vunpack.c.h.bf16 %v3091_v1  ;;  %v2247_v11 = vunpack.c.l.bf16 %v3105_v7  ;;  %v2248_v12 = vunpack.c.h.bf16 %v3105_v7  ;;  %v3123_v13 = vld [vmem:[%s3065_s11 + $0x70] sm:$0xff]   ;;  %v3132_v16 = vld [vmem:[%s3065_s11 + $0x18] sm:$0xff]   ;;  %v3156_v24 = vld [vmem:[%s3065_s11 + $0x20] sm:$0xff]   ;;  %s1853_s14 = sshll.u32 %s3586_s23, 4  ;;  %s3739_s21 = scalar_lea.hbm %s3841_s6, %s2191_s10  ;;  %s3741_s14 = int_to_ptr.vmem [resolvable:$true] %s1853_s14 }
  0xc0   : > { %506 = vadd.xlane.f32.xlu0 %v2195_v2  ;;  %v2203_v14 = vunpack.c.l.bf16 %v3114_v10  ;;  %v2204_v15 = vunpack.c.h.bf16 %v3114_v10  ;;  %v2251_v17 = vunpack.c.l.bf16 %v3123_v13  ;;  %v2252_v18 = vunpack.c.h.bf16 %v3123_v13  ;;  %v3147_v21 = vld [vmem:[%s3065_s11 + $0x78] sm:$0xff]   ;;  %v3165_v27 = vld [vmem:[%s3065_s11 + $0x28] sm:$0xff]   ;;  %v3174_v30 = vld [vmem:[%s3065_s11 + $0x30] sm:$0xff]   ;;  %s2192_s29 = sshll.u32 %s2833_s28, 11  ;;  %s1869_s17 = sshll.u32 %s3654_s0, 4  ;;  %s3787_s17 = int_to_ptr.vmem [resolvable:$true] %s1869_s17 }
  0xc1   : > { %554 = vadd.xlane.f32.xlu1 %v2243_v3  ;;  %v2207_v19 = vunpack.c.l.bf16 %v3132_v16  ;;  %v2208_v20 = vunpack.c.h.bf16 %v3132_v16  ;;  %v2255_v22 = vunpack.c.l.bf16 %v3147_v21  ;;  %v2256_v23 = vunpack.c.h.bf16 %v3147_v21  ;;  %v3183_v33 = vld [vmem:[%s3065_s11 + $0x38] sm:$0xff]   ;;  %v3192_v36 = vld [vmem:[%s3065_s11 + $0x40] sm:$0xff]   ;;  %v3201_v39 = vld [vmem:[%s3065_s11 + $0x48] sm:$0xff]   ;;  %s1835_s20 = scalar_lea.sflag [#allocation4], %s3059_s5  ;;  %s2768_s2 = smov [#allocation11]  }
  0xc2   : > { %v2211_v25 = vunpack.c.l.bf16 %v3156_v24  ;;  %v2212_v26 = vunpack.c.h.bf16 %v3156_v24  ;;  %v2215_v28 = vunpack.c.l.bf16 %v3165_v27  ;;  %v2216_v29 = vunpack.c.h.bf16 %v3165_v27  ;;  %v3210_v42 = vld [vmem:[%s3065_s11 + $0x50] sm:$0xff]   ;;  %v3219_v45 = vld [vmem:[%s3065_s11 + $0x58] sm:$0xff]   ;;  %s2646_s11 = scalar_lea.vmem %s3741_s14, 4096  ;;  %s2650_s4 = sshll.u32 %s2768_s2, 4  ;;  %s2651_s4 = int_to_ptr.vmem [resolvable:$false] %s2650_s4 }
  0xc3   : > { %v2219_v31 = vunpack.c.l.bf16 %v3174_v30  ;;  %v2220_v32 = vunpack.c.h.bf16 %v3174_v30  ;;  %v2223_v34 = vunpack.c.l.bf16 %v3183_v33  ;;  %v2224_v35 = vunpack.c.h.bf16 %v3183_v33  ;;  %v2382_v48 = vld [vmem:[#allocation8 + $0x4] ss:$8 sps:$4 sm:$0xff]   ;;  %v2384_v49 = vld [vmem:[#allocation8] ss:$8 sps:$4 sm:$0xff]   ;;  %p2647_p2 = scmp.ne.s32.totalorder %s3741_s14, %s2646_s11  ;;  %s2652_s9 = scalar_lea.vmem %s2651_s4, 8192 }
  0xc4   : > { %508 = vadd.xlane.f32.xlu0 %v2196_v4  ;;  %v2227_v37 = vunpack.c.l.bf16 %v3192_v36  ;;  %v2228_v38 = vunpack.c.h.bf16 %v3192_v36  ;;  %v2231_v40 = vunpack.c.l.bf16 %v3201_v39  ;;  %v2232_v41 = vunpack.c.h.bf16 %v3201_v39  ;;  %1046 = vmatprep.subr.bf16.mxu0 %v2382_v48  ;;  %p2653_p8 = scmp.lt.s32.totalorder %s3741_s14, %s2651_s4  ;;  %p2654_p6 = scmp.lt.s32.totalorder %s2652_s9, %s2646_s11 }
  0xc5   : > { %556 = vadd.xlane.f32.xlu1 %v2244_v5  ;;  %v2235_v43 = vunpack.c.l.bf16 %v3210_v42  ;;  %v2236_v44 = vunpack.c.h.bf16 %v3210_v42  ;;  %v2239_v46 = vunpack.c.l.bf16 %v3219_v45  ;;  %v2240_v47 = vunpack.c.h.bf16 %v3219_v45  ;;  %2272 = vmatprep.subr.bf16.mxu1 %v2382_v48  ;;  %p2648_p4 = pnand %p2647_p2, %p2966_p5 }
  0xc6   : > { %1047 = vmatpush1.bf16.msra.mxu0 %v2384_v49  ;;  %2280 = vmatpush1.bf16.msra.mxu1 %v2384_v49  ;;  %v859_v45 = vlaneseq  ;;  %p2655_p10 = por %p2654_p6, %p2653_p8 }
  0xc7   : > { %p2649_p0 = pneg %p2648_p4 }
  0xc8   : > { %510 = vadd.xlane.f32.xlu0 %v2199_v8 }
  0xc9   : > { %512 = vadd.xlane.f32.xlu1 %v2200_v9  ;;  %p2656_p3 = pnand %p2655_p10, %p2649_p0 }
  0xcc   : > { %558 = vadd.xlane.f32.xlu0 %v2247_v11 }
  0xcd   : > { %560 = vadd.xlane.f32.xlu1 %v2248_v12 }
  0xd0   : > { %514 = vadd.xlane.f32.xlu0 %v2203_v14 }
  0xd1   : > { %516 = vadd.xlane.f32.xlu1 %v2204_v15 }
  0xd4   : > { %562 = vadd.xlane.f32.xlu0 %v2251_v17 }
  0xd5   : > { %564 = vadd.xlane.f32.xlu1 %v2252_v18 }
  0xd8   : > { %518 = vadd.xlane.f32.xlu0 %v2207_v19 }
  0xd9   : > { %520 = vadd.xlane.f32.xlu1 %v2208_v20 }
  0xdc   : > { %566 = vadd.xlane.f32.xlu0 %v2255_v22 }
  0xdd   : > { %568 = vadd.xlane.f32.xlu1 %v2256_v23 }
  0xe0   : > { %522 = vadd.xlane.f32.xlu0 %v2211_v25 }
  0xe1   : > { %524 = vadd.xlane.f32.xlu1 %v2212_v26 }
  0xe4   : > { %526 = vadd.xlane.f32.xlu0 %v2215_v28 }
  0xe5   : > { %528 = vadd.xlane.f32.xlu1 %v2216_v29 }
  0xe8   : > { %530 = vadd.xlane.f32.xlu0 %v2219_v31 }
  0xe9   : > { %532 = vadd.xlane.f32.xlu1 %v2220_v32 }
  0xec   : > { %534 = vadd.xlane.f32.xlu0 %v2223_v34 }
  0xed   : > { %536 = vadd.xlane.f32.xlu1 %v2224_v35 }
  0xf0   : > { %538 = vadd.xlane.f32.xlu0 %v2227_v37 }
  0xf1   : > { %540 = vadd.xlane.f32.xlu1 %v2228_v38 }
  0xf4   : > { %542 = vadd.xlane.f32.xlu0 %v2231_v40 }
  0xf5   : > { %544 = vadd.xlane.f32.xlu1 %v2232_v41 }
  0xf8   : > { %546 = vadd.xlane.f32.xlu0 %v2235_v43 }
  0xf9   : > { %548 = vadd.xlane.f32.xlu1 %v2236_v44 }
  0xfc   : > { %550 = vadd.xlane.f32.xlu0 %v2239_v46 }
  0xfd   : > { %552 = vadd.xlane.f32.xlu1 %v2240_v47 }
 0x14d   : > { %v507_v50 = vpop.xlane.xlu0 %506 }
 0x14e   : > { %v555_v51 = vpop.xlane.xlu1 %554  ;;  %v571_v52 = vmul.f32 0.0078125, %v507_v50 }
 0x14f   : > { %v595_v53 = vmul.f32 0.0078125, %v555_v51 }
 0x150   : > { %v3233_v54 = vsub.f32 %v2195_v2, %v571_v52 }
 0x151   : > { %v3237_v55 = vsub.f32 %v2243_v3, %v595_v53  ;;  %v509_v56 = vpop.xlane.xlu0 %508 }
 0x152   : > { %v557_v57 = vpop.xlane.xlu1 %556  ;;  %v572_v58 = vmul.f32 0.0078125, %v509_v56  ;;  %v635_v59 = vmul.f32 %v3233_v54, %v3233_v54 }
 0x153   : > { %v596_v60 = vmul.f32 0.0078125, %v557_v57  ;;  %v659_v63 = vmul.f32 %v3237_v55, %v3237_v55 }
 0x154   : > { %v3243_v61 = vsub.f32 %v2196_v4, %v572_v58  ;;  %667 = vadd.xlane.f32.xlu0 %v635_v59 }
 0x155   : > { %v3247_v62 = vsub.f32 %v2244_v5, %v596_v60  ;;  %v511_v2 = vpop.xlane.xlu0 %510 }
 0x156   : > { %v513_v3 = vpop.xlane.xlu1 %512  ;;  %v573_v48 = vmul.f32 0.0078125, %v511_v2  ;;  %v636_v49 = vmul.f32 %v3243_v61, %v3243_v61  ;;  %v2385_v2 = vld [vmem:[#allocation8 + $0x14] ss:$8 sps:$4 sm:$0xff]  }
 0x157   : > { %v574_v50 = vmul.f32 0.0078125, %v513_v3  ;;  %v660_v4 = vmul.f32 %v3247_v62, %v3247_v62  ;;  %v2387_v3 = vld [vmem:[#allocation8 + $0x10] ss:$8 sps:$4 sm:$0xff]   ;;  %1048 = vmatprep.subr.bf16.mxu0 %v2385_v2  ;;  %2273 = vmatprep.subr.bf16.mxu1 %v2385_v2 }
 0x158   : > { %v3255_v0 = vsub.f32 %v2199_v8, %v573_v48  ;;  %715 = vadd.xlane.f32.xlu0 %v659_v63  ;;  %669 = vadd.xlane.f32.xlu1 %v636_v49  ;;  %v2393_v2 = vld [vmem:[#allocation8 + $0x30] ss:$8 sps:$4 sm:$0xff]  }
 0x159   : > { %v3259_v1 = vsub.f32 %v2200_v9, %v574_v50  ;;  %v559_v5 = vpop.xlane.xlu0 %558  ;;  %1049 = vmatpush1.bf16.msra.mxu0 %v2387_v3  ;;  %2281 = vmatpush1.bf16.msra.mxu1 %v2387_v3 }
 0x15a   : > { %v561_v51 = vpop.xlane.xlu1 %560  ;;  %v597_v52 = vmul.f32 0.0078125, %v559_v5  ;;  %v637_v53 = vmul.f32 %v3255_v0, %v3255_v0 }
 0x15b   : > { %v598_v56 = vmul.f32 0.0078125, %v561_v51  ;;  %v638_v9 = vmul.f32 %v3259_v1, %v3259_v1  ;;  %v2388_v51 = vld [vmem:[#allocation8 + $0x24] ss:$8 sps:$4 sm:$0xff]  }
 0x15c   : > { %v3267_v8 = vsub.f32 %v2247_v11, %v597_v52  ;;  %717 = vadd.xlane.f32.xlu1 %v660_v4  ;;  %671 = vadd.xlane.f32.xlu0 %v637_v53 }
 0x15d   : > { %v3271_v6 = vsub.f32 %v2248_v12, %v598_v56  ;;  %v515_v57 = vpop.xlane.xlu0 %514  ;;  %v2390_v56 = vld [vmem:[#allocation8 + $0x20] ss:$8 sps:$4 sm:$0xff]   ;;  %1050 = vmatprep.subr.bf16.mxu0 %v2388_v51  ;;  %2274 = vmatprep.subr.bf16.mxu1 %v2388_v51 }
 0x15e   : > { %v517_v58 = vpop.xlane.xlu1 %516  ;;  %v575_v59 = vmul.f32 0.0078125, %v515_v57  ;;  %v661_v60 = vmul.f32 %v3267_v8, %v3267_v8  ;;  %1051 = vmatpush1.bf16.msra.mxu0 %v2390_v56  ;;  %2282 = vmatpush1.bf16.msra.mxu1 %v2390_v56 }
 0x15f   : > { %v576_v63 = vmul.f32 0.0078125, %v517_v58  ;;  %v662_v12 = vmul.f32 %v3271_v6, %v3271_v6 }
 0x160   : > { %v3279_v11 = vsub.f32 %v2203_v14, %v575_v59  ;;  %673 = vadd.xlane.f32.xlu1 %v638_v9  ;;  %719 = vadd.xlane.f32.xlu0 %v661_v60  ;;  %v2391_v59 = vld [vmem:[#allocation8 + $0x34] ss:$8 sps:$4 sm:$0xff]  }
 0x161   : > { %v3283_v7 = vsub.f32 %v2204_v15, %v576_v63  ;;  %v563_v48 = vpop.xlane.xlu0 %562  ;;  %1052 = vmatprep.subr.bf16.mxu0 %v2391_v59  ;;  %2275 = vmatprep.subr.bf16.mxu1 %v2391_v59 }
 0x162   : > { %v565_v49 = vpop.xlane.xlu1 %564  ;;  %v599_v50 = vmul.f32 0.0078125, %v563_v48  ;;  %v639_v4 = vmul.f32 %v3279_v11, %v3279_v11  ;;  %1053 = vmatpush1.bf16.msra.mxu0 %v2393_v2  ;;  %2283 = vmatpush1.bf16.msra.mxu1 %v2393_v2 }
 0x163   : > { %v600_v14 = vmul.f32 0.0078125, %v565_v49  ;;  %v640_v5 = vmul.f32 %v3283_v7, %v3283_v7  ;;  %v2394_v49 = vld [vmem:[#allocation8 + $0x44] ss:$8 sps:$4 sm:$0xff]  }
 0x164   : > { %v3291_v10 = vsub.f32 %v2251_v17, %v599_v50  ;;  %721 = vadd.xlane.f32.xlu1 %v662_v12  ;;  %675 = vadd.xlane.f32.xlu0 %v639_v4 }
 0x165   : > { %v3295_v15 = vsub.f32 %v2252_v18, %v600_v14  ;;  %v519_v52 = vpop.xlane.xlu0 %518  ;;  %v2396_v14 = vld [vmem:[#allocation8 + $0x40] ss:$8 sps:$4 sm:$0xff]   ;;  %1054 = vmatprep.subr.bf16.mxu0 %v2394_v49  ;;  %2276 = vmatprep.subr.bf16.mxu1 %v2394_v49  ;;  %v2403_v49 = vld [vmem:[#allocation8 + $0x74] ss:$8 sps:$4 sm:$0xff]  }
 0x166   : > { %v521_v53 = vpop.xlane.xlu1 %520  ;;  %v577_v9 = vmul.f32 0.0078125, %v519_v52  ;;  %v663_v57 = vmul.f32 %v3291_v10, %v3291_v10  ;;  %1055 = vmatpush1.bf16.msra.mxu0 %v2396_v14  ;;  %2284 = vmatpush1.bf16.msra.mxu1 %v2396_v14  ;;  %v2405_v14 = vld [vmem:[#allocation8 + $0x70] ss:$8 sps:$4 sm:$0xff]  }
 0x167   : > { %v578_v58 = vmul.f32 0.0078125, %v521_v53  ;;  %v664_v18 = vmul.f32 %v3295_v15, %v3295_v15  ;;  %v2397_v53 = vld [vmem:[#allocation8 + $0x54] ss:$8 sps:$4 sm:$0xff]  }
 0x168   : > { %v3303_v13 = vsub.f32 %v2207_v19, %v577_v9  ;;  %677 = vadd.xlane.f32.xlu1 %v640_v5  ;;  %723 = vadd.xlane.f32.xlu0 %v663_v57  ;;  %v2399_v57 = vld [vmem:[#allocation8 + $0x50] ss:$8 sps:$4 sm:$0xff]  }
 0x169   : > { %v3307_v17 = vsub.f32 %v2208_v20, %v578_v58  ;;  %v567_v60 = vpop.xlane.xlu0 %566  ;;  %1056 = vmatprep.subr.bf16.mxu0 %v2397_v53  ;;  %2277 = vmatprep.subr.bf16.mxu1 %v2397_v53 }
 0x16a   : > { %v569_v63 = vpop.xlane.xlu1 %568  ;;  %v601_v12 = vmul.f32 0.0078125, %v567_v60  ;;  %v641_v3 = vmul.f32 %v3303_v13, %v3303_v13  ;;  %1057 = vmatpush1.bf16.msra.mxu0 %v2399_v57  ;;  %2285 = vmatpush1.bf16.msra.mxu1 %v2399_v57  ;;  %v2400_v60 = vld [vmem:[#allocation8 + $0x64] ss:$8 sps:$4 sm:$0xff]  }
 0x16b   : > { %v602_v48 = vmul.f32 0.0078125, %v569_v63  ;;  %v642_v20 = vmul.f32 %v3307_v17, %v3307_v17  ;;  %1058 = vmatprep.subr.bf16.mxu0 %v2400_v60  ;;  %2278 = vmatprep.subr.bf16.mxu1 %v2400_v60 }
 0x16c   : > { %v3315_v16 = vsub.f32 %v2255_v22, %v601_v12  ;;  %725 = vadd.xlane.f32.xlu1 %v664_v18  ;;  %679 = vadd.xlane.f32.xlu0 %v641_v3  ;;  %v2402_v12 = vld [vmem:[#allocation8 + $0x60] ss:$8 sps:$4 sm:$0xff]  }
 0x16d   : > { %v3319_v19 = vsub.f32 %v2256_v23, %v602_v48  ;;  %v523_v50 = vpop.xlane.xlu0 %522 }
 0x16e   : > { %v525_v4 = vpop.xlane.xlu1 %524  ;;  %v579_v5 = vmul.f32 0.0078125, %v523_v50  ;;  %v665_v51 = vmul.f32 %v3315_v16, %v3315_v16  ;;  %1059 = vmatpush1.bf16.msra.mxu0 %v2402_v12  ;;  %2286 = vmatpush1.bf16.msra.mxu1 %v2402_v12 }
 0x16f   : > { %v580_v52 = vmul.f32 0.0078125, %v525_v4  ;;  %v666_v23 = vmul.f32 %v3319_v19, %v3319_v19  ;;  %1060 = vmatprep.subr.bf16.mxu0 %v2403_v49  ;;  %2279 = vmatprep.subr.bf16.mxu1 %v2403_v49 }
 0x170   : > { %v3327_v21 = vsub.f32 %v2211_v25, %v579_v5  ;;  %681 = vadd.xlane.f32.xlu1 %v642_v20  ;;  %727 = vadd.xlane.f32.xlu0 %v665_v51 }
 0x171   : > { %v3331_v22 = vsub.f32 %v2212_v26, %v580_v52  ;;  %v527_v56 = vpop.xlane.xlu0 %526 }
 0x172   : > { %v529_v9 = vpop.xlane.xlu1 %528  ;;  %v581_v58 = vmul.f32 0.0078125, %v527_v56  ;;  %v643_v18 = vmul.f32 %v3327_v21, %v3327_v21  ;;  %1061 = vmatpush1.bf16.msra.mxu0 %v2405_v14  ;;  %2287 = vmatpush1.bf16.msra.mxu1 %v2405_v14  ;;  %v2767_v56 = vmov 0  }
 0x173   : > { %v582_v59 = vmul.f32 0.0078125, %v529_v9  ;;  %v644_v26 = vmul.f32 %v3331_v22, %v3331_v22  ;;  %1078 = vmatprep.mubr.bf16.mxu0 %v2767_v56  ;;  %1198 = vmatprep.mubr.bf16.mxu1 %v2767_v56 }
 0x174   : > { %v3339_v24 = vsub.f32 %v2215_v28, %v581_v58  ;;  %729 = vadd.xlane.f32.xlu1 %v666_v23  ;;  %683 = vadd.xlane.f32.xlu0 %v643_v18  ;;  %v2408_v18 = vld [vmem:[#allocation10 + $0x4] ss:$8 sps:$4 sm:$0xff]  }
 0x175   : > { %v3343_v25 = vsub.f32 %v2216_v29, %v582_v59  ;;  %v531_v63 = vpop.xlane.xlu0 %530  ;;  %1385 = vmatprep.subr.bf16.mxu1 %v2408_v18 }
 0x176   : > { %v533_v2 = vpop.xlane.xlu1 %532  ;;  %v583_v3 = vmul.f32 0.0078125, %v531_v63  ;;  %v645_v48 = vmul.f32 %v3339_v24, %v3339_v24 }
 0x177   : > { %v584_v20 = vmul.f32 0.0078125, %v533_v2  ;;  %v646_v29 = vmul.f32 %v3343_v25, %v3343_v25 }
 0x178   : > { %v3351_v27 = vsub.f32 %v2219_v31, %v583_v3  ;;  %685 = vadd.xlane.f32.xlu1 %v644_v26  ;;  %687 = vadd.xlane.f32.xlu0 %v645_v48 }
 0x179   : > { %v3355_v28 = vsub.f32 %v2220_v32, %v584_v20  ;;  %v535_v50 = vpop.xlane.xlu0 %534 }
 0x17a   : > { %v537_v4 = vpop.xlane.xlu1 %536  ;;  %v585_v5 = vmul.f32 0.0078125, %v535_v50  ;;  %v647_v51 = vmul.f32 %v3351_v27, %v3351_v27 }
 0x17b   : > { %v586_v52 = vmul.f32 0.0078125, %v537_v4  ;;  %v648_v32 = vmul.f32 %v3355_v28, %v3355_v28 }
 0x17c   : > { %v3363_v30 = vsub.f32 %v2223_v34, %v585_v5  ;;  %689 = vadd.xlane.f32.xlu1 %v646_v29  ;;  %691 = vadd.xlane.f32.xlu0 %v647_v51 }
 0x17d   : > { %v3367_v31 = vsub.f32 %v2224_v35, %v586_v52  ;;  %v539_v23 = vpop.xlane.xlu0 %538 }
 0x17e   : > { %v541_v53 = vpop.xlane.xlu1 %540  ;;  %v587_v9 = vmul.f32 0.0078125, %v539_v23  ;;  %v649_v34 = vmul.f32 %v3363_v30, %v3363_v30 }
 0x17f   : > { %v588_v57 = vmul.f32 0.0078125, %v541_v53  ;;  %v650_v58 = vmul.f32 %v3367_v31, %v3367_v31 }
 0x180   : > { %v3377_v33 = vsub.f32 %v2227_v37, %v587_v9  ;;  %693 = vadd.xlane.f32.xlu1 %v648_v32  ;;  %695 = vadd.xlane.f32.xlu0 %v649_v34 }
 0x181   : > { %v3381_v35 = vsub.f32 %v2228_v38, %v588_v57  ;;  %v543_v59 = vpop.xlane.xlu0 %542 }
 0x182   : > { %v545_v26 = vpop.xlane.xlu1 %544  ;;  %v589_v60 = vmul.f32 0.0078125, %v543_v59  ;;  %v651_v63 = vmul.f32 %v3377_v33, %v3377_v33 }
 0x183   : > { %v590_v2 = vmul.f32 0.0078125, %v545_v26  ;;  %v652_v38 = vmul.f32 %v3381_v35, %v3381_v35  ;;  %v3425_v26 = vshrl.u32 %v859_v45, 7 }
 0x184   : > { %v3389_v37 = vsub.f32 %v2231_v40, %v589_v60  ;;  %697 = vadd.xlane.f32.xlu1 %v650_v58  ;;  %699 = vadd.xlane.f32.xlu0 %v651_v63 }
 0x185   : > { %v3393_v36 = vsub.f32 %v2232_v41, %v590_v2  ;;  %v547_v12 = vpop.xlane.xlu0 %546 }
 0x186   : > { %v549_v3 = vpop.xlane.xlu1 %548  ;;  %v591_v48 = vmul.f32 0.0078125, %v547_v12  ;;  %v653_v20 = vmul.f32 %v3389_v37, %v3389_v37 }
 0x187   : > { %v592_v29 = vmul.f32 0.0078125, %v549_v3  ;;  %v654_v41 = vmul.f32 %v3393_v36, %v3393_v36 }
 0x188   : > { %v3401_v40 = vsub.f32 %v2235_v43, %v591_v48  ;;  %701 = vadd.xlane.f32.xlu1 %v652_v38  ;;  %703 = vadd.xlane.f32.xlu0 %v653_v20  ;;  %v3428_v48 = vsub.s32 0, %v3425_v26 }
 0x189   : > { %v3405_v39 = vsub.f32 %v2236_v44, %v592_v29  ;;  %v551_v49 = vpop.xlane.xlu0 %550 }
 0x18a   : > { %v553_v50 = vpop.xlane.xlu1 %552  ;;  %v593_v4 = vmul.f32 0.0078125, %v551_v49  ;;  %v655_v14 = vmul.f32 %v3401_v40, %v3401_v40 }
 0x18b   : > { %v594_v5 = vmul.f32 0.0078125, %v553_v50  ;;  %v656_v44 = vmul.f32 %v3405_v39, %v3405_v39 }
 0x18c   : > { %v3413_v43 = vsub.f32 %v2239_v46, %v593_v4  ;;  %705 = vadd.xlane.f32.xlu1 %v654_v41  ;;  %707 = vadd.xlane.f32.xlu0 %v655_v14  ;;  %v392_v41 = vld [vmem:[#allocation7] sm:$0xff] }
 0x18d   : > { %v3417_v42 = vsub.f32 %v2240_v47, %v594_v5 }
 0x18e   : > { %v657_v51 = vmul.f32 %v3413_v43, %v3413_v43 }
 0x18f   : > { %v658_v52 = vmul.f32 %v3417_v42, %v3417_v42 }
 0x190   : > { %709 = vadd.xlane.f32.xlu1 %v656_v44  ;;  %711 = vadd.xlane.f32.xlu0 %v657_v51  ;;  %v3432_v51 = vrot.slane %v392_v41, %v3428_v48 }
 0x194   : > { %713 = vadd.xlane.f32.xlu1 %v658_v52  ;;  %v3435_v52 = vsub.s32 1, %v3425_v26 }
 0x1e1   : > { %v668_v46 = vpop.xlane.xlu0 %667 }
 0x1e2   : > { %v731_v32 = vmul.f32 0.0078125, %v668_v46 }
 0x1e4   : > { %v763_v23 = vadd.f32 1e-06, %v731_v32 }
 0x1e5   : > { %v670_v53 = vpop.xlane.xlu1 %669  ;;  %v716_v9 = vpop.xlane.xlu0 %715 }
 0x1e6   : > { %2438 = vrsqrt.f32 %v763_v23  ;;  %v732_v47 = vmul.f32 0.0078125, %v670_v53  ;;  %v755_v34 = vmul.f32 0.0078125, %v716_v9 }
 0x1e8   : > { %v764_v57 = vadd.f32 1e-06, %v732_v47  ;;  %v787_v58 = vadd.f32 1e-06, %v755_v34 }
 0x1e9   : > { %v718_v18 = vpop.xlane.xlu1 %717  ;;  %v672_v59 = vpop.xlane.xlu0 %671 }
 0x1ea   : > { %2440 = vrsqrt.f32 %v764_v57  ;;  %v756_v60 = vmul.f32 0.0078125, %v718_v18  ;;  %v733_v63 = vmul.f32 0.0078125, %v672_v59 }
 0x1eb   : > { %2442 = vrsqrt.f32 %v787_v58  ;;  %v3440_v58 = vrot.slane %v392_v41, %v3435_v52 }
 0x1ec   : > { %v788_v2 = vadd.f32 1e-06, %v756_v60  ;;  %v765_v38 = vadd.f32 1e-06, %v733_v63 }
 0x1ed   : > { %v674_v12 = vpop.xlane.xlu1 %673  ;;  %v720_v3 = vpop.xlane.xlu0 %719 }
 0x1ee   : > { %2444 = vrsqrt.f32 %v788_v2  ;;  %v734_v20 = vmul.f32 0.0078125, %v674_v12  ;;  %v757_v29 = vmul.f32 0.0078125, %v720_v3 }
 0x1ef   : > { %2446 = vrsqrt.f32 %v765_v38 }
 0x1f0   : > { %v2439_v49 = vpop.eup %2438  ;;  %v766_v50 = vadd.f32 1e-06, %v734_v20  ;;  %v789_v4 = vadd.f32 1e-06, %v757_v29 }
 0x1f1   : > { %v722_v14 = vpop.xlane.xlu1 %721  ;;  %v676_v5 = vpop.xlane.xlu0 %675  ;;  %v827_v44 = vmul.f32 %v2439_v49, %v3233_v54 }
 0x1f2   : > { %2448 = vrsqrt.f32 %v766_v50  ;;  %v758_v46 = vmul.f32 0.0078125, %v722_v14  ;;  %v735_v32 = vmul.f32 0.0078125, %v676_v5 }
 0x1f3   : > { %2450 = vrsqrt.f32 %v789_v4  ;;  %v863_v54 = vmul.f32 %v3432_v51, %v827_v44 }
 0x1f4   : > { %v2441_v23 = vpop.eup %2440  ;;  %v790_v53 = vadd.f32 1e-06, %v758_v46  ;;  %v767_v9 = vadd.f32 1e-06, %v735_v32 }
 0x1f5   : > { %v2443_v45 = vpop.eup %2442  ;;  %v678_v47 = vpop.xlane.xlu1 %677  ;;  %v828_v57 = vmul.f32 %v2441_v23, %v3243_v61  ;;  %v899_v61 = vadd.f32 %v3440_v58, %v863_v54 }
 0x1f6   : > { %v724_v34 = vpop.xlane.xlu0 %723  ;;  %2452 = vrsqrt.f32 %v790_v53  ;;  %v736_v18 = vmul.f32 0.0078125, %v678_v47  ;;  %v851_v60 = vmul.f32 %v2443_v45, %v3237_v55 }
 0x1f7   : > { %v759_v59 = vmul.f32 0.0078125, %v724_v34  ;;  %2454 = vrsqrt.f32 %v767_v9  ;;  %v864_v63 = vmul.f32 %v3432_v51, %v828_v57 }
 0x1f8   : > { %v2445_v2 = vpop.eup %2444  ;;  %v768_v38 = vadd.f32 1e-06, %v736_v18  ;;  %v887_v50 = vmul.f32 %v3432_v51, %v851_v60 }
 0x1f9   : > { %v791_v12 = vadd.f32 1e-06, %v759_v59  ;;  %v2447_v3 = vpop.eup %2446  ;;  %v726_v20 = vpop.xlane.xlu1 %725  ;;  %v900_v49 = vadd.f32 %v3440_v58, %v864_v63  ;;  %v852_v41 = vmul.f32 %v2445_v2, %v3247_v62  ;;  %v2406_v59 = vld [vmem:[#allocation10] ss:$8 sps:$4 sm:$0xff]   ;;  %v2411_v63 = vld [vmem:[#allocation10 + $0x14] ss:$8 sps:$4 sm:$0xff]  }
 0x1fa   : > { %v680_v29 = vpop.xlane.xlu0 %679  ;;  %2456 = vrsqrt.f32 %v768_v38  ;;  %v760_v4 = vmul.f32 0.0078125, %v726_v20  ;;  %v829_v44 = vmul.f32 %v2447_v3, %v3255_v0  ;;  %v923_v62 = vadd.f32 %v3440_v58, %v887_v50 }
 0x1fb   : > { %v737_v55 = vmul.f32 0.0078125, %v680_v29  ;;  %2458 = vrsqrt.f32 %v791_v12  ;;  %v931_v14 = vpack.c.bf16 %v900_v49, %v899_v61  ;;  %v888_v5 = vmul.f32 %v3432_v51, %v852_v41 }
 0x1fc   : > { %v2449_v46 = vpop.eup %2448  ;;  %v792_v32 = vadd.f32 1e-06, %v760_v4  ;;  %v865_v57 = vmul.f32 %v3432_v51, %v829_v44 }
 0x1fd   : > { %v769_v23 = vadd.f32 1e-06, %v737_v55  ;;  %v2451_v53 = vpop.eup %2450  ;;  %v682_v9 = vpop.xlane.xlu1 %681  ;;  %1079 = vmatmul.mubr.bf16.vlgmr.msra.gmra.mrb[0].mxu0 %v931_v14  ;;  %v924_v47 = vadd.f32 %v3440_v58, %v888_v5  ;;  %v830_v34 = vmul.f32 %v2449_v46, %v3259_v1  ;;  %v2409_v55 = vld [vmem:[#allocation10 + $0x10] ss:$8 sps:$4 sm:$0xff]   ;;  %v2414_v5 = vld [vmem:[#allocation10 + $0x24] ss:$8 sps:$4 sm:$0xff]  }
 0x1fe   : > { %v728_v45 = vpop.xlane.xlu0 %727  ;;  %2460 = vrsqrt.f32 %v792_v32  ;;  %v738_v54 = vmul.f32 0.0078125, %v682_v9  ;;  %1088 = vmatprep.mubr.bf16.mxu0 %v2767_v56  ;;  %v853_v0 = vmul.f32 %v2451_v53, %v3267_v8  ;;  %v901_v61 = vadd.f32 %v3440_v58, %v865_v57 }
 0x1ff   : > { %v761_v18 = vmul.f32 0.0078125, %v728_v45  ;;  %2462 = vrsqrt.f32 %v769_v23  ;;  %v943_v60 = vpack.c.bf16 %v924_v47, %v923_v62  ;;  %v866_v2 = vmul.f32 %v3432_v51, %v830_v34 }
 0x200   : > { %v2453_v38 = vpop.eup %2452  ;;  %v770_v12 = vadd.f32 1e-06, %v738_v54  ;;  %v889_v8 = vmul.f32 %v3432_v51, %v853_v0 }
 0x201   : > { %v793_v3 = vadd.f32 1e-06, %v761_v18  ;;  %v2455_v20 = vpop.eup %2454  ;;  %v730_v1 = vpop.xlane.xlu1 %729  ;;  %1199 = vmatmul.mubr.bf16.vlgmr.msra.gmra.mrb[0].mxu1 %v943_v60  ;;  %v902_v49 = vadd.f32 %v3440_v58, %v866_v2  ;;  %v854_v41 = vmul.f32 %v2453_v38, %v3271_v6  ;;  %v2417_v60 = vld [vmem:[#allocation10 + $0x34] ss:$8 sps:$4 sm:$0xff]  }
 0x202   : > { %v684_v29 = vpop.xlane.xlu0 %683  ;;  %2464 = vrsqrt.f32 %v770_v12  ;;  %v762_v50 = vmul.f32 0.0078125, %v730_v1  ;;  %1386 = vmatpush1.bf16.msra.mxu1 %v2406_v59  ;;  %1208 = vmatprep.mubr.bf16.mxu1 %v2767_v56  ;;  %v831_v46 = vmul.f32 %v2455_v20, %v3279_v11  ;;  %v925_v62 = vadd.f32 %v3440_v58, %v889_v8  ;;  %v2412_v11 = vld [vmem:[#allocation10 + $0x20] ss:$8 sps:$4 sm:$0xff]  }
 0x203   : > { %v739_v4 = vmul.f32 0.0078125, %v684_v29  ;;  %2466 = vrsqrt.f32 %v793_v3  ;;  %1387 = vmatprep.subr.bf16.mxu1 %v2411_v63  ;;  %v932_v14 = vpack.c.bf16 %v902_v49, %v901_v61  ;;  %v890_v44 = vmul.f32 %v3432_v51, %v854_v41  ;;  %v2415_v41 = vld [vmem:[#allocation10 + $0x30] ss:$8 sps:$4 sm:$0xff]  }
 0x204   : > { %v2457_v32 = vpop.eup %2456  ;;  %v794_v23 = vadd.f32 1e-06, %v762_v50  ;;  %v867_v57 = vmul.f32 %v3432_v51, %v831_v46  ;;  %v2420_v50 = vld [vmem:[#allocation10 + $0x44] ss:$8 sps:$4 sm:$0xff]  }
 0x205   : > { %v771_v6 = vadd.f32 1e-06, %v739_v4  ;;  %v2459_v53 = vpop.eup %2458  ;;  %v686_v9 = vpop.xlane.xlu1 %685  ;;  %1089 = vmatmul.mubr.bf16.gmra.mrb[4].mxu0 %v932_v14  ;;  %v926_v47 = vadd.f32 %v3440_v58, %v890_v44  ;;  %v832_v34 = vmul.f32 %v2457_v32, %v3283_v7 }
 0x206   : > { %v688_v45 = vpop.xlane.xlu0 %687  ;;  %2468 = vrsqrt.f32 %v794_v23  ;;  %v740_v54 = vmul.f32 0.0078125, %v686_v9  ;;  %1388 = vmatpush1.bf16.msra.mxu1 %v2409_v55  ;;  %1098 = vmatprep.mubr.bf16.mxu0 %v2767_v56  ;;  %v855_v59 = vmul.f32 %v2459_v53, %v3291_v10  ;;  %v903_v1 = vadd.f32 %v3440_v58, %v867_v57 }
 0x207   : > { %v741_v18 = vmul.f32 0.0078125, %v688_v45  ;;  %2470 = vrsqrt.f32 %v771_v6  ;;  %1389 = vmatprep.subr.bf16.mxu1 %v2414_v5  ;;  %v944_v0 = vpack.c.bf16 %v926_v47, %v925_v62  ;;  %v868_v63 = vmul.f32 %v3432_v51, %v832_v34  ;;  %v2423_v34 = vld [vmem:[#allocation10 + $0x54] ss:$8 sps:$4 sm:$0xff]  }
 0x208   : > { %v2461_v2 = vpop.eup %2460  ;;  %v772_v38 = vadd.f32 1e-06, %v740_v54  ;;  %v891_v10 = vmul.f32 %v3432_v51, %v855_v59 }
 0x209   : > { %v773_v7 = vadd.f32 1e-06, %v741_v18  ;;  %v2463_v12 = vpop.eup %2462  ;;  %v690_v3 = vpop.xlane.xlu1 %689  ;;  %1209 = vmatmul.mubr.bf16.gmra.mrb[4].mxu1 %v944_v0  ;;  %v904_v29 = vadd.f32 %v3440_v58, %v868_v63  ;;  %v856_v61 = vmul.f32 %v2461_v2, %v3295_v15 }
 0x20a   : > { %v692_v20 = vpop.xlane.xlu0 %691  ;;  %2472 = vrsqrt.f32 %v772_v38  ;;  %v742_v49 = vmul.f32 0.0078125, %v690_v3  ;;  %1390 = vmatpush1.bf16.msra.mxu1 %v2412_v11  ;;  %1218 = vmatprep.mubr.bf16.mxu1 %v2767_v56  ;;  %v833_v55 = vmul.f32 %v2463_v12, %v3303_v13  ;;  %v927_v23 = vadd.f32 %v3440_v58, %v891_v10  ;;  %v2418_v13 = vld [vmem:[#allocation10 + $0x40] ss:$8 sps:$4 sm:$0xff]   ;;  %v2421_v12 = vld [vmem:[#allocation10 + $0x50] ss:$8 sps:$4 sm:$0xff]  }
 0x20b   : > { %1391 = vmatprep.subr.bf16.mxu1 %v2417_v60  ;;  %v933_v8 = vpack.c.bf16 %v904_v29, %v903_v1  ;;  %v892_v4 = vmul.f32 %v3432_v51, %v856_v61  ;;  %2474 = vrsqrt.f32 %v773_v7  ;;  %v743_v44 = vmul.f32 0.0078125, %v692_v20  ;;  %v2426_v20 = vld [vmem:[#allocation10 + $0x64] ss:$8 sps:$4 sm:$0xff]  }
 0x20c   : > { %v2465_v14 = vpop.eup %2464  ;;  %v774_v5 = vadd.f32 1e-06, %v742_v49  ;;  %v869_v9 = vmul.f32 %v3432_v51, %v833_v55 }
 0x20d   : > { %v2467_v15 = vpop.eup %2466  ;;  %v694_v46 = vpop.xlane.xlu1 %693  ;;  %1099 = vmatmul.mubr.bf16.gmra.mrb[8].mxu0 %v933_v8  ;;  %v928_v6 = vadd.f32 %v3440_v58, %v892_v4  ;;  %v834_v53 = vmul.f32 %v2465_v14, %v3307_v17  ;;  %v775_v18 = vadd.f32 1e-06, %v743_v44 }
 0x20e   : > { %v696_v32 = vpop.xlane.xlu0 %695  ;;  %2476 = vrsqrt.f32 %v774_v5  ;;  %v744_v45 = vmul.f32 0.0078125, %v694_v46  ;;  %1392 = vmatpush1.bf16.msra.mxu1 %v2415_v41  ;;  %1108 = vmatprep.mubr.bf16.mxu0 %v2767_v56  ;;  %v857_v62 = vmul.f32 %v2467_v15, %v3315_v16  ;;  %v905_v60 = vadd.f32 %v3440_v58, %v869_v9 }
 0x20f   : > { %1393 = vmatprep.subr.bf16.mxu1 %v2420_v50  ;;  %v945_v47 = vpack.c.bf16 %v928_v6, %v927_v23  ;;  %v870_v57 = vmul.f32 %v3432_v51, %v834_v53  ;;  %v745_v10 = vmul.f32 0.0078125, %v696_v32  ;;  %v2429_v32 = vld [vmem:[#allocation10 + $0x74] ss:$8 sps:$4 sm:$0xff]  }
 0x210   : > { %v2469_v54 = vpop.eup %2468  ;;  %v776_v11 = vadd.f32 1e-06, %v744_v45  ;;  %v893_v16 = vmul.f32 %v3432_v51, %v857_v62 }
 0x211   : > { %v2471_v59 = vpop.eup %2470  ;;  %v698_v17 = vpop.xlane.xlu1 %697  ;;  %1219 = vmatmul.mubr.bf16.gmra.mrb[8].mxu1 %v945_v47  ;;  %v906_v63 = vadd.f32 %v3440_v58, %v870_v57  ;;  %v858_v2 = vmul.f32 %v2469_v54, %v3319_v19  ;;  %v777_v53 = vadd.f32 1e-06, %v745_v10 }
 0x212   : > { %v700_v0 = vpop.xlane.xlu0 %699  ;;  %2478 = vrsqrt.f32 %v776_v11  ;;  %v746_v38 = vmul.f32 0.0078125, %v698_v17  ;;  %1394 = vmatpush1.bf16.msra.mxu1 %v2418_v13  ;;  %1228 = vmatprep.mubr.bf16.mxu1 %v2767_v56  ;;  %v835_v29 = vmul.f32 %v2471_v59, %v3327_v21  ;;  %v929_v50 = vadd.f32 %v3440_v58, %v893_v16  ;;  %v2424_v21 = vld [vmem:[#allocation10 + $0x60] ss:$8 sps:$4 sm:$0xff]   ;;  %v2427_v11 = vld [vmem:[#allocation10 + $0x70] ss:$8 sps:$4 sm:$0xff]  }
 0x213   : > { %v747_v7 = vmul.f32 0.0078125, %v700_v0  ;;  %1395 = vmatprep.subr.bf16.mxu1 %v2423_v34  ;;  %v934_v3 = vpack.c.bf16 %v906_v63, %v905_v60  ;;  %v894_v1 = vmul.f32 %v3432_v51, %v858_v2  ;;  %2480 = vrsqrt.f32 %v775_v18 }
 0x214   : > { %v2473_v61 = vpop.eup %2472  ;;  %v778_v19 = vadd.f32 1e-06, %v746_v38  ;;  %v871_v14 = vmul.f32 %v3432_v51, %v835_v29 }
 0x215   : > { %v779_v49 = vadd.f32 1e-06, %v747_v7  ;;  %v702_v41 = vpop.xlane.xlu1 %701  ;;  %1109 = vmatmul.mubr.bf16.gmra.mrb[12].mxu0 %v934_v3  ;;  %v930_v4 = vadd.f32 %v3440_v58, %v894_v1  ;;  %v836_v55 = vmul.f32 %v2473_v61, %v3331_v22  ;;  %v2475_v5 = vpop.eup %2474 }
 0x216   : > { %v704_v8 = vpop.xlane.xlu0 %703  ;;  %v748_v44 = vmul.f32 0.0078125, %v702_v41  ;;  %1396 = vmatpush1.bf16.msra.mxu1 %v2421_v12  ;;  %1118 = vmatprep.mubr.bf16.mxu0 %v2767_v56  ;;  %v907_v62 = vadd.f32 %v3440_v58, %v871_v14  ;;  %v837_v34 = vmul.f32 %v2475_v5, %v3339_v24 }
 0x217   : > { %v749_v15 = vmul.f32 0.0078125, %v704_v8  ;;  %2482 = vrsqrt.f32 %v779_v49  ;;  %1397 = vmatprep.subr.bf16.mxu1 %v2426_v20  ;;  %v946_v46 = vpack.c.bf16 %v930_v4, %v929_v50  ;;  %v872_v23 = vmul.f32 %v3432_v51, %v836_v55 }
 0x218   : > { %v2477_v6 = vpop.eup %2476  ;;  %2484 = vrsqrt.f32 %v778_v19  ;;  %v780_v9 = vadd.f32 1e-06, %v748_v44  ;;  %v873_v16 = vmul.f32 %v3432_v51, %v837_v34 }
 0x219   : > { %v781_v22 = vadd.f32 1e-06, %v749_v15  ;;  %v706_v45 = vpop.xlane.xlu1 %705  ;;  %1229 = vmatmul.mubr.bf16.gmra.mrb[12].mxu1 %v946_v46  ;;  %v908_v47 = vadd.f32 %v3440_v58, %v872_v23  ;;  %v838_v57 = vmul.f32 %v2477_v6, %v3343_v25  ;;  %v2430_v25 = vld [vmem:[%s3073_s8] sm:$0xff]   ;;  %v2431_v15 = vld [vmem:[%s3073_s8 + $0x8] sm:$0xff]  }
 0x21a   : > { %v708_v13 = vpop.xlane.xlu0 %707  ;;  %2486 = vrsqrt.f32 %v780_v9  ;;  %v750_v54 = vmul.f32 0.0078125, %v706_v45  ;;  %1398 = vmatpush1.bf16.msra.mxu1 %v2424_v21  ;;  %1417 = vmatprep.mubr.bf16.mxu1 %v2767_v56  ;;  %v909_v19 = vadd.f32 %v3440_v58, %v873_v16 }
 0x21b   : > { %v751_v18 = vmul.f32 0.0078125, %v708_v13  ;;  %2488 = vrsqrt.f32 %v781_v22  ;;  %1399 = vmatprep.subr.bf16.mxu1 %v2429_v32  ;;  %v935_v59 = vpack.c.bf16 %v908_v47, %v907_v62  ;;  %v874_v17 = vmul.f32 %v3432_v51, %v838_v57 }
 0x21c   : > { %v2479_v0 = vpop.eup %2478  ;;  %2490 = vrsqrt.f32 %v777_v53  ;;  %v782_v60 = vadd.f32 1e-06, %v750_v54 }
 0x21d   : > { %v783_v63 = vadd.f32 1e-06, %v751_v18  ;;  %v710_v24 = vpop.xlane.xlu1 %709  ;;  %1119 = vmatmul.mubr.bf16.gmra.mrb[16].mxu0 %v935_v59  ;;  %v2481_v38 = vpop.eup %2480  ;;  %v910_v3 = vadd.f32 %v3440_v58, %v874_v17  ;;  %v840_v20 = vmul.f32 %v2479_v0, %v3355_v28  ;;  %v2432_v17 = vld [vmem:[%s3073_s8 + $0x10] sm:$0xff]  }
 0x21e   : > { %v712_v2 = vpop.xlane.xlu0 %711  ;;  %2492 = vrsqrt.f32 %v782_v60  ;;  %v752_v7 = vmul.f32 0.0078125, %v710_v24  ;;  %1400 = vmatpush1.bf16.msra.mxu1 %v2427_v11  ;;  %1128 = vmatprep.mubr.bf16.mxu0 %v2767_v56  ;;  %v839_v49 = vmul.f32 %v2481_v38, %v3351_v27 }
 0x21f   : > { %v753_v12 = vmul.f32 0.0078125, %v712_v2  ;;  %2494 = vrsqrt.f32 %v783_v63  ;;  %v936_v4 = vpack.c.bf16 %v910_v3, %v909_v19  ;;  %v876_v28 = vmul.f32 %v3432_v51, %v840_v20  ;;  %v2437_v19 = vld [vmem:[%s3073_s8 + $0x38] sm:$0xff]  }
 0x220   : > { %v784_v1 = vadd.f32 1e-06, %v752_v7  ;;  %v875_v27 = vmul.f32 %v3432_v51, %v839_v49  ;;  %v3568_v49 = vld [vmem:[%s3838_s3] sm:$0xf] }
 0x221   : > { %v785_v29 = vadd.f32 1e-06, %v753_v12  ;;  %v2483_v61 = vpop.eup %2482  ;;  %v714_v10 = vpop.xlane.xlu1 %713  ;;  %1418 = vmatmul.mubr.bf16.vlgmr.msra.gmra.mrb[16].mxu1 %v2430_v25  ;;  %v912_v23 = vadd.f32 %v3440_v58, %v876_v28 }
 0x222   : > { %v2485_v41 = vpop.eup %2484  ;;  %2496 = vrsqrt.f32 %v784_v1  ;;  %v754_v8 = vmul.f32 0.0078125, %v714_v10  ;;  %1427 = vmatprep.mubr.bf16.mxu1 %v2767_v56  ;;  %v843_v50 = vmul.f32 %v2483_v61, %v3377_v33 }
 0x223   : > { %2498 = vrsqrt.f32 %v785_v29  ;;  %v842_v6 = vmul.f32 %v2485_v41, %v3367_v31  ;;  %v2433_v29 = vld [vmem:[%s3073_s8 + $0x18] sm:$0xff]   ;;  %v954_v41 = vsub.s32 2, %v3425_v26 }
 0x224   : > { %v2487_v55 = vpop.eup %2486  ;;  %v786_v14 = vadd.f32 1e-06, %v754_v8  ;;  %v879_v5 = vmul.f32 %v3432_v51, %v843_v50  ;;  %v951_v8 = vrot.slane %v3568_v49, %v3428_v48 }
 0x225   : > { %v2489_v44 = vpop.eup %2488  ;;  %1129 = vmatmul.mubr.bf16.gmra.mrb[20].mxu0 %v936_v4  ;;  %v844_v21 = vmul.f32 %v2487_v55, %v3381_v35  ;;  %v911_v35 = vadd.f32 %v3440_v58, %v875_v27  ;;  %v878_v57 = vmul.f32 %v3432_v51, %v842_v6  ;;  %v955_v50 = vrot.slane %v3568_v49, %v954_v41 }
 0x226   : > { %v2491_v46 = vpop.eup %2490  ;;  %2500 = vrsqrt.f32 %v786_v14  ;;  %1138 = vmatprep.mubr.bf16.mxu0 %v2767_v56  ;;  %v915_v33 = vadd.f32 %v3440_v58, %v879_v5  ;;  %v845_v32 = vmul.f32 %v2489_v44, %v3389_v37  ;;  %v3575_v4 = vrot.slane %v951_v8, %v3428_v48 }
 0x227   : > { %v880_v53 = vmul.f32 %v3432_v51, %v844_v21  ;;  %v841_v13 = vmul.f32 %v2491_v46, %v3363_v30  ;;  %v937_v34 = vpack.c.bf16 %v912_v23, %v911_v35  ;;  %v914_v24 = vadd.f32 %v3440_v58, %v878_v57 }
 0x228   : > { %v2493_v9 = vpop.eup %2492  ;;  %v881_v22 = vmul.f32 %v3432_v51, %v845_v32 }
 0x229   : > { %v2495_v45 = vpop.eup %2494  ;;  %1428 = vmatmul.mubr.bf16.gmra.mrb[20].mxu1 %v2431_v15  ;;  %v916_v62 = vadd.f32 %v3440_v58, %v880_v53  ;;  %v846_v37 = vmul.f32 %v2493_v9, %v3393_v36  ;;  %v877_v36 = vmul.f32 %v3432_v51, %v841_v13 }
 0x22a   : > { %1437 = vmatprep.mubr.bf16.mxu1 %v2767_v56  ;;  %v917_v31 = vadd.f32 %v3440_v58, %v881_v22  ;;  %v847_v47 = vmul.f32 %v2495_v45, %v3401_v40 }
 0x22b   : > { %v939_v54 = vpack.c.bf16 %v916_v62, %v915_v33  ;;  %v882_v18 = vmul.f32 %v3432_v51, %v846_v37  ;;  %v913_v7 = vadd.f32 %v3440_v58, %v877_v36 }
 0x22c   : > { %v2497_v11 = vpop.eup %2496  ;;  %v883_v59 = vmul.f32 %v3432_v51, %v847_v47 }
 0x22d   : > { %v2499_v30 = vpop.eup %2498  ;;  %1139 = vmatmul.mubr.bf16.gmra.mrb[24].mxu0 %v937_v34  ;;  %v918_v0 = vadd.f32 %v3440_v58, %v882_v18  ;;  %v848_v60 = vmul.f32 %v2497_v11, %v3405_v39  ;;  %v938_v3 = vpack.c.bf16 %v914_v24, %v913_v7 }
 0x22e   : > { %1148 = vmatprep.mubr.bf16.mxu0 %v2767_v56  ;;  %v919_v40 = vadd.f32 %v3440_v58, %v883_v59  ;;  %v849_v63 = vmul.f32 %v2499_v30, %v3413_v43 }
 0x22f   : > { %v940_v2 = vpack.c.bf16 %v918_v0, %v917_v31  ;;  %v884_v25 = vmul.f32 %v3432_v51, %v848_v60 }
 0x230   : > { %v2501_v16 = vpop.eup %2500  ;;  %v885_v38 = vmul.f32 %v3432_v51, %v849_v63 }
 0x231   : > { %1438 = vmatmul.mubr.bf16.gmra.mrb[24].mxu1 %v2432_v17  ;;  %v920_v39 = vadd.f32 %v3440_v58, %v884_v25  ;;  %v850_v12 = vmul.f32 %v2501_v16, %v3417_v42  ;;  %v2434_v42 = vld [vmem:[%s3073_s8 + $0x20] sm:$0xff]  }
 0x232   : > { %1447 = vmatprep.mubr.bf16.mxu1 %v2767_v56  ;;  %v921_v43 = vadd.f32 %v3440_v58, %v885_v38 }
 0x233   : > { %v941_v20 = vpack.c.bf16 %v920_v39, %v919_v40  ;;  %v886_v1 = vmul.f32 %v3432_v51, %v850_v12  ;;  %v2435_v51 = vld [vmem:[%s3073_s8 + $0x28] sm:$0xff]  }
 0x235   : > { %1149 = vmatmul.mubr.bf16.gmra.mrb[28].mxu0 %v938_v3  ;;  %v922_v61 = vadd.f32 %v3440_v58, %v886_v1  ;;  %v2436_v58 = vld [vmem:[%s3073_s8 + $0x30] sm:$0xff]  }
 0x236   : > { %1158 = vmatprep.mubr.bf16.mxu0 %v2767_v56 }
 0x237   : > { %v942_v10 = vpack.c.bf16 %v922_v61, %v921_v43 }
 0x239   : > { %1448 = vmatmul.mubr.bf16.gmra.mrb[28].mxu1 %v2433_v29 }
 0x23a   : > { %1457 = vmatprep.mubr.bf16.mxu1 %v2767_v56 }
 0x23d   : > { %1159 = vmatmul.mubr.bf16.gmra.mrb[32].mxu0 %v939_v54 }
 0x23e   : > { %1168 = vmatprep.mubr.bf16.mxu0 %v2767_v56 }
 0x241   : > { %1458 = vmatmul.mubr.bf16.gmra.mrb[32].mxu1 %v2434_v42 }
 0x242   : > { %1467 = vmatprep.mubr.bf16.mxu1 %v2767_v56 }
 0x245   : > { %1169 = vmatmul.mubr.bf16.gmra.mrb[36].mxu0 %v940_v2 }
 0x246   : > { %1178 = vmatprep.mubr.bf16.mxu0 %v2767_v56 }
 0x249   : > { %1468 = vmatmul.mubr.bf16.gmra.mrb[36].mxu1 %v2435_v51 }
 0x24a   : > { %1477 = vmatprep.mubr.bf16.mxu1 %v2767_v56 }
 0x24d   : > { %1179 = vmatmul.mubr.bf16.gmra.mrb[40].mxu0 %v941_v20 }
 0x24e   : > { %1188 = vmatprep.mubr.bf16.mxu0 %v2767_v56 }
 0x251   : > { %1478 = vmatmul.mubr.bf16.gmra.mrb[40].mxu1 %v2436_v58 }
 0x252   : > { %1487 = vmatprep.mubr.bf16.mxu1 %v2767_v56  ;;  %v3578_v56 = vrot.slane %v955_v50, %v3428_v48 }
 0x255   : > { %1189 = vmatmul.mubr.bf16.gmra.mrb[44].mxu0 %v942_v10 }
 0x259   : > { %1488 = vmatmul.mubr.bf16.gmra.mrb[44].mxu1 %v2437_v19 }
 0x2d0   : > { %v1080_v28 = vpop.f32.mrb[0].mxu0 }
 0x2d1   : > { %v1081_v55 = vadd.f32 %v1080_v28, %v3575_v4  ;;  %v1082_v14 = vpop.f32.mrb[1].mxu0 }
 0x2d2   : > { %v1083_v5 = vadd.f32 %v1082_v14, %v3578_v56  ;;  %v1084_v44 = vpop.f32.mrb[2].mxu0 }
 0x2d3   : > { %v1085_v15 = vadd.f32 %v1084_v44, %v3575_v4  ;;  %v1086_v27 = vpop.f32.mrb[3].mxu0 }
 0x2d4   : > { %v2143_v21 = vpack.c.bf16 %v1083_v5, %v1081_v55  ;;  %v1087_v46 = vadd.f32 %v1086_v27, %v3578_v56  ;;  %v1200_v33 = vpop.f32.mrb[0].mxu1  ;;  %v1245_v27 = vsub.s32 3, %v3425_v26 }
 0x2d5   : > { %v1201_v32 = vadd.f32 %v1200_v33, %v3575_v4  ;;  %v1202_v23 = vpop.f32.mrb[1].mxu1 }
 0x2d6   : > { %1690 = vst [vmem:[%s3586_s23] sm:$0xff] %v2143_v21  ;;  %v2144_v48 = vpack.c.bf16 %v1087_v46, %v1085_v15  ;;  %v1203_v6 = vadd.f32 %v1202_v23, %v3578_v56  ;;  %v1204_v53 = vpop.f32.mrb[2].mxu1 }
 0x2d7   : > { %v1205_v9 = vadd.f32 %v1204_v53, %v3575_v4  ;;  %v1206_v22 = vpop.f32.mrb[3].mxu1  ;;  %v1242_v53 = vrot.slane %v3568_v49, %v3435_v52 }
 0x2d8   : > { %1691 = vst [vmem:[%s3586_s23 + $0x8] sm:$0xff] %v2144_v48  ;;  %v2167_v45 = vpack.c.bf16 %v1203_v6, %v1201_v32  ;;  %v1207_v35 = vadd.f32 %v1206_v22, %v3578_v56  ;;  %v1090_v13 = vpop.f32.mrb[4].mxu0 }
 0x2d9   : > { %v1091_v62 = vadd.f32 %v1090_v13, %v3575_v4  ;;  %v1092_v37 = vpop.f32.mrb[5].mxu0 }
 0x2da   : > { %1714 = vst [vmem:[%s3586_s23 + $0xc0] sm:$0xff] %v2167_v45  ;;  %v2168_v31 = vpack.c.bf16 %v1207_v35, %v1205_v9  ;;  %v1093_v47 = vadd.f32 %v1092_v37, %v3578_v56  ;;  %v1094_v34 = vpop.f32.mrb[6].mxu0  ;;  %v1246_v45 = vrot.slane %v3568_v49, %v1245_v27 }
 0x2db   : > { %v1095_v57 = vadd.f32 %v1094_v34, %v3575_v4  ;;  %v1096_v54 = vpop.f32.mrb[7].mxu0 }
 0x2dc   : > { %1715 = vst [vmem:[%s3586_s23 + $0xc8] sm:$0xff] %v2168_v31  ;;  %v2145_v18 = vpack.c.bf16 %v1093_v47, %v1091_v62  ;;  %v1097_v11 = vadd.f32 %v1096_v54, %v3578_v56  ;;  %v1210_v59 = vpop.f32.mrb[4].mxu1 }
 0x2dd   : > { %v1211_v30 = vadd.f32 %v1210_v59, %v3575_v4  ;;  %v1212_v17 = vpop.f32.mrb[5].mxu1 }
 0x2de   : > { %1692 = vst [vmem:[%s3586_s23 + $0x10] sm:$0xff] %v2145_v18  ;;  %v2146_v36 = vpack.c.bf16 %v1097_v11, %v1095_v57  ;;  %v1213_v0 = vadd.f32 %v1212_v17, %v3578_v56  ;;  %v1214_v60 = vpop.f32.mrb[6].mxu1  ;;  %v3635_v57 = vrot.slane %v1242_v53, %v3435_v52  ;;  %v3640_v11 = vrot.slane %v1246_v45, %v3435_v52 }
 0x2df   : > { %v1215_v40 = vadd.f32 %v1214_v60, %v3575_v4  ;;  %v1216_v63 = vpop.f32.mrb[7].mxu1 }
 0x2e0   : > { %1693 = vst [vmem:[%s3586_s23 + $0x18] sm:$0xff] %v2146_v36  ;;  %v2169_v24 = vpack.c.bf16 %v1213_v0, %v1211_v30  ;;  %v1217_v2 = vadd.f32 %v1216_v63, %v3578_v56  ;;  %v1100_v25 = vpop.f32.mrb[8].mxu0 }
 0x2e1   : > { %v1101_v16 = vadd.f32 %v1100_v25, %v3575_v4  ;;  %v1102_v38 = vpop.f32.mrb[9].mxu0 }
 0x2e2   : > { %1716 = vst [vmem:[%s3586_s23 + $0xd0] sm:$0xff] %v2169_v24  ;;  %v2170_v7 = vpack.c.bf16 %v1217_v2, %v1215_v40  ;;  %v1103_v39 = vadd.f32 %v1102_v38, %v3578_v56  ;;  %v1104_v12 = vpop.f32.mrb[10].mxu0 }
 0x2e3   : > { %v1105_v43 = vadd.f32 %v1104_v12, %v3575_v4  ;;  %v1106_v3 = vpop.f32.mrb[11].mxu0 }
 0x2e4   : > { %1717 = vst [vmem:[%s3586_s23 + $0xd8] sm:$0xff] %v2170_v7  ;;  %v2147_v20 = vpack.c.bf16 %v1103_v39, %v1101_v16  ;;  %v1107_v1 = vadd.f32 %v1106_v3, %v3578_v56  ;;  %v1220_v29 = vpop.f32.mrb[8].mxu1 }
 0x2e5   : > { %v1221_v61 = vadd.f32 %v1220_v29, %v3575_v4  ;;  %v1222_v10 = vpop.f32.mrb[9].mxu1 }
 0x2e6   : > { %1694 = vst [vmem:[%s3586_s23 + $0x20] sm:$0xff] %v2147_v20  ;;  %v2148_v42 = vpack.c.bf16 %v1107_v1, %v1105_v43  ;;  %v1223_v51 = vadd.f32 %v1222_v10, %v3578_v56  ;;  %v1224_v58 = vpop.f32.mrb[10].mxu1 }
 0x2e7   : > { %v1225_v19 = vadd.f32 %v1224_v58, %v3575_v4  ;;  %v1226_v41 = vpop.f32.mrb[11].mxu1 }
 0x2e8   : > { %1695 = vst [vmem:[%s3586_s23 + $0x28] sm:$0xff] %v2148_v42  ;;  %v2171_v8 = vpack.c.bf16 %v1223_v51, %v1221_v61  ;;  %v1227_v50 = vadd.f32 %v1226_v41, %v3578_v56  ;;  %v1110_v28 = vpop.f32.mrb[12].mxu0 }
 0x2e9   : > { %v1111_v55 = vadd.f32 %v1110_v28, %v3575_v4  ;;  %v1112_v14 = vpop.f32.mrb[13].mxu0 }
 0x2ea   : > { %1718 = vst [vmem:[%s3586_s23 + $0xe0] sm:$0xff] %v2171_v8  ;;  %v2172_v5 = vpack.c.bf16 %v1227_v50, %v1225_v19  ;;  %v1113_v44 = vadd.f32 %v1112_v14, %v3578_v56  ;;  %v1114_v15 = vpop.f32.mrb[14].mxu0 }
 0x2eb   : > { %v1115_v21 = vadd.f32 %v1114_v15, %v3575_v4  ;;  %v1116_v46 = vpop.f32.mrb[15].mxu0 }
 0x2ec   : > { %1719 = vst [vmem:[%s3586_s23 + $0xe8] sm:$0xff] %v2172_v5  ;;  %v2149_v33 = vpack.c.bf16 %v1113_v44, %v1111_v55  ;;  %v1117_v32 = vadd.f32 %v1116_v46, %v3578_v56  ;;  %v1230_v23 = vpop.f32.mrb[12].mxu1 }
 0x2ed   : > { %v1231_v48 = vadd.f32 %v1230_v23, %v3575_v4  ;;  %v1232_v6 = vpop.f32.mrb[13].mxu1 }
 0x2ee   : > { %1696 = vst [vmem:[%s3586_s23 + $0x30] sm:$0xff] %v2149_v33  ;;  %v2150_v9 = vpack.c.bf16 %v1117_v32, %v1115_v21  ;;  %v1233_v26 = vadd.f32 %v1232_v6, %v3578_v56  ;;  %v1234_v22 = vpop.f32.mrb[14].mxu1 }
 0x2ef   : > { %v1235_v35 = vadd.f32 %v1234_v22, %v3575_v4  ;;  %v1236_v13 = vpop.f32.mrb[15].mxu1 }
 0x2f0   : > { %1697 = vst [vmem:[%s3586_s23 + $0x38] sm:$0xff] %v2150_v9  ;;  %v2173_v62 = vpack.c.bf16 %v1233_v26, %v1231_v48  ;;  %v1237_v37 = vadd.f32 %v1236_v13, %v3578_v56  ;;  %v1120_v31 = vpop.f32.mrb[16].mxu0 }
 0x2f1   : > { %v1121_v47 = vadd.f32 %v1120_v31, %v3575_v4  ;;  %v1122_v34 = vpop.f32.mrb[17].mxu0 }
 0x2f2   : > { %1720 = vst [vmem:[%s3586_s23 + $0xf0] sm:$0xff] %v2173_v62  ;;  %v2174_v54 = vpack.c.bf16 %v1237_v37, %v1235_v35  ;;  %v1123_v49 = vadd.f32 %v1122_v34, %v3578_v56  ;;  %v1124_v18 = vpop.f32.mrb[18].mxu0 }
 0x2f3   : > { %v1125_v59 = vadd.f32 %v1124_v18, %v3575_v4  ;;  %v1126_v30 = vpop.f32.mrb[19].mxu0 }
 0x2f4   : > { %1721 = vst [vmem:[%s3586_s23 + $0xf8] sm:$0xff] %v2174_v54  ;;  %v2151_v17 = vpack.c.bf16 %v1123_v49, %v1121_v47  ;;  %v1127_v36 = vadd.f32 %v1126_v30, %v3578_v56  ;;  %v1419_v0 = vpop.f32.mrb[16].mxu1 }
 0x2f5   : > { %v1420_v60 = vadd.f32 %v1419_v0, %v3635_v57  ;;  %v1421_v40 = vpop.f32.mrb[17].mxu1 }
 0x2f6   : > { %1698 = vst [vmem:[%s3586_s23 + $0x40] sm:$0xff] %v2151_v17  ;;  %v2152_v63 = vpack.c.bf16 %v1127_v36, %v1125_v59  ;;  %v1422_v24 = vadd.f32 %v1421_v40, %v3640_v11  ;;  %v1423_v2 = vpop.f32.mrb[18].mxu1 }
 0x2f7   : > { %v1424_v52 = vadd.f32 %v1423_v2, %v3635_v57  ;;  %v1425_v25 = vpop.f32.mrb[19].mxu1 }
 0x2f8   : > { %1699 = vst [vmem:[%s3586_s23 + $0x48] sm:$0xff] %v2152_v63  ;;  %v2175_v16 = vpack.c.bf16 %v1422_v24, %v1420_v60  ;;  %v1426_v38 = vadd.f32 %v1425_v25, %v3640_v11  ;;  %v1130_v7 = vpop.f32.mrb[20].mxu0 }
 0x2f9   : > { %v1131_v39 = vadd.f32 %v1130_v7, %v3575_v4  ;;  %v1132_v12 = vpop.f32.mrb[21].mxu0 }
 0x2fa   : > { %1818 = vst [vmem:[%s3654_s0] sm:$0xff] %v2175_v16  ;;  %v2176_v43 = vpack.c.bf16 %v1426_v38, %v1424_v52  ;;  %v1133_v3 = vadd.f32 %v1132_v12, %v3578_v56  ;;  %v1134_v20 = vpop.f32.mrb[22].mxu0 }
 0x2fb   : > { %v1135_v1 = vadd.f32 %v1134_v20, %v3575_v4  ;;  %v1136_v29 = vpop.f32.mrb[23].mxu0 }
 0x2fc   : > { %1819 = vst [vmem:[%s3654_s0 + $0x8] sm:$0xff] %v2176_v43  ;;  %v2153_v61 = vpack.c.bf16 %v1133_v3, %v1131_v39  ;;  %v1137_v10 = vadd.f32 %v1136_v29, %v3578_v56  ;;  %v1429_v42 = vpop.f32.mrb[20].mxu1 }
 0x2fd   : > { %v1430_v51 = vadd.f32 %v1429_v42, %v3635_v57  ;;  %v1431_v58 = vpop.f32.mrb[21].mxu1 }
 0x2fe   : > { %1700 = vst [vmem:[%s3586_s23 + $0x50] sm:$0xff] %v2153_v61  ;;  %v2154_v19 = vpack.c.bf16 %v1137_v10, %v1135_v1  ;;  %v1432_v41 = vadd.f32 %v1431_v58, %v3640_v11  ;;  %v1433_v8 = vpop.f32.mrb[22].mxu1 }
 0x2ff   : > { %v1434_v50 = vadd.f32 %v1433_v8, %v3635_v57  ;;  %v1435_v28 = vpop.f32.mrb[23].mxu1 }
 0x300   : > { %1701 = vst [vmem:[%s3586_s23 + $0x58] sm:$0xff] %v2154_v19  ;;  %v2177_v55 = vpack.c.bf16 %v1432_v41, %v1430_v51  ;;  %v1436_v14 = vadd.f32 %v1435_v28, %v3640_v11  ;;  %v1140_v5 = vpop.f32.mrb[24].mxu0 }
 0x301   : > { %v1141_v44 = vadd.f32 %v1140_v5, %v3575_v4  ;;  %v1142_v15 = vpop.f32.mrb[25].mxu0 }
 0x302   : > { %1820 = vst [vmem:[%s3654_s0 + $0x10] sm:$0xff] %v2177_v55  ;;  %v2178_v27 = vpack.c.bf16 %v1436_v14, %v1434_v50  ;;  %v1143_v21 = vadd.f32 %v1142_v15, %v3578_v56  ;;  %v1144_v46 = vpop.f32.mrb[26].mxu0 }
 0x303   : > { %v1145_v33 = vadd.f32 %v1144_v46, %v3575_v4  ;;  %v1146_v32 = vpop.f32.mrb[27].mxu0 }
 0x304   : > { %1821 = vst [vmem:[%s3654_s0 + $0x18] sm:$0xff] %v2178_v27  ;;  %v2155_v23 = vpack.c.bf16 %v1143_v21, %v1141_v44  ;;  %v1147_v48 = vadd.f32 %v1146_v32, %v3578_v56  ;;  %v1439_v6 = vpop.f32.mrb[24].mxu1 }
 0x305   : > { %v1440_v53 = vadd.f32 %v1439_v6, %v3635_v57  ;;  %v1441_v9 = vpop.f32.mrb[25].mxu1 }
 0x306   : > { %1702 = vst [vmem:[%s3586_s23 + $0x60] sm:$0xff] %v2155_v23  ;;  %v2156_v26 = vpack.c.bf16 %v1147_v48, %v1145_v33  ;;  %v1442_v22 = vadd.f32 %v1441_v9, %v3640_v11  ;;  %v1443_v45 = vpop.f32.mrb[26].mxu1 }
 0x307   : > { %v1444_v35 = vadd.f32 %v1443_v45, %v3635_v57  ;;  %v1445_v13 = vpop.f32.mrb[27].mxu1 }
 0x308   : > { %1703 = vst [vmem:[%s3586_s23 + $0x68] sm:$0xff] %v2156_v26  ;;  %v2179_v62 = vpack.c.bf16 %v1442_v22, %v1440_v53  ;;  %v1446_v37 = vadd.f32 %v1445_v13, %v3640_v11  ;;  %v1150_v31 = vpop.f32.mrb[28].mxu0 }
 0x309   : > { %v1151_v47 = vadd.f32 %v1150_v31, %v3575_v4  ;;  %v1152_v34 = vpop.f32.mrb[29].mxu0 }
 0x30a   : > { %1822 = vst [vmem:[%s3654_s0 + $0x20] sm:$0xff] %v2179_v62  ;;  %v2180_v54 = vpack.c.bf16 %v1446_v37, %v1444_v35  ;;  %v1153_v49 = vadd.f32 %v1152_v34, %v3578_v56  ;;  %v1154_v18 = vpop.f32.mrb[30].mxu0 }
 0x30b   : > { %v1155_v59 = vadd.f32 %v1154_v18, %v3575_v4  ;;  %v1156_v30 = vpop.f32.mrb[31].mxu0 }
 0x30c   : > { %1823 = vst [vmem:[%s3654_s0 + $0x28] sm:$0xff] %v2180_v54  ;;  %v2157_v17 = vpack.c.bf16 %v1153_v49, %v1151_v47  ;;  %v1157_v36 = vadd.f32 %v1156_v30, %v3578_v56  ;;  %v1449_v0 = vpop.f32.mrb[28].mxu1 }
 0x30d   : > { %v1450_v60 = vadd.f32 %v1449_v0, %v3635_v57  ;;  %v1451_v40 = vpop.f32.mrb[29].mxu1 }
 0x30e   : > { %1704 = vst [vmem:[%s3586_s23 + $0x70] sm:$0xff] %v2157_v17  ;;  %v2158_v63 = vpack.c.bf16 %v1157_v36, %v1155_v59  ;;  %v1452_v24 = vadd.f32 %v1451_v40, %v3640_v11  ;;  %v1453_v2 = vpop.f32.mrb[30].mxu1 }
 0x30f   : > { %v1454_v52 = vadd.f32 %v1453_v2, %v3635_v57  ;;  %v1455_v25 = vpop.f32.mrb[31].mxu1 }
 0x310   : > { %1705 = vst [vmem:[%s3586_s23 + $0x78] sm:$0xff] %v2158_v63  ;;  %v2181_v16 = vpack.c.bf16 %v1452_v24, %v1450_v60  ;;  %v1456_v38 = vadd.f32 %v1455_v25, %v3640_v11  ;;  %v1160_v7 = vpop.f32.mrb[32].mxu0 }
 0x311   : > { %v1161_v39 = vadd.f32 %v1160_v7, %v3575_v4  ;;  %v1162_v12 = vpop.f32.mrb[33].mxu0 }
 0x312   : > { %1824 = vst [vmem:[%s3654_s0 + $0x30] sm:$0xff] %v2181_v16  ;;  %v2182_v43 = vpack.c.bf16 %v1456_v38, %v1454_v52  ;;  %v1163_v3 = vadd.f32 %v1162_v12, %v3578_v56  ;;  %v1164_v20 = vpop.f32.mrb[34].mxu0 }
 0x313   : > { %v1165_v1 = vadd.f32 %v1164_v20, %v3575_v4  ;;  %v1166_v29 = vpop.f32.mrb[35].mxu0 }
 0x314   : > { %1825 = vst [vmem:[%s3654_s0 + $0x38] sm:$0xff] %v2182_v43  ;;  %v2159_v61 = vpack.c.bf16 %v1163_v3, %v1161_v39  ;;  %v1167_v10 = vadd.f32 %v1166_v29, %v3578_v56  ;;  %v1459_v42 = vpop.f32.mrb[32].mxu1 }
 0x315   : > { %v1460_v51 = vadd.f32 %v1459_v42, %v3635_v57  ;;  %v1461_v58 = vpop.f32.mrb[33].mxu1 }
 0x316   : > { %1706 = vst [vmem:[%s3586_s23 + $0x80] sm:$0xff] %v2159_v61  ;;  %v2160_v19 = vpack.c.bf16 %v1167_v10, %v1165_v1  ;;  %v1462_v41 = vadd.f32 %v1461_v58, %v3640_v11  ;;  %v1463_v8 = vpop.f32.mrb[34].mxu1 }
 0x317   : > { %v1464_v50 = vadd.f32 %v1463_v8, %v3635_v57  ;;  %v1465_v28 = vpop.f32.mrb[35].mxu1 }
 0x318   : > { %1707 = vst [vmem:[%s3586_s23 + $0x88] sm:$0xff] %v2160_v19  ;;  %v2183_v55 = vpack.c.bf16 %v1462_v41, %v1460_v51  ;;  %v1466_v14 = vadd.f32 %v1465_v28, %v3640_v11  ;;  %v1170_v5 = vpop.f32.mrb[36].mxu0 }
 0x319   : > { %v1171_v44 = vadd.f32 %v1170_v5, %v3575_v4  ;;  %v1172_v15 = vpop.f32.mrb[37].mxu0 }
 0x31a   : > { %1826 = vst [vmem:[%s3654_s0 + $0x40] sm:$0xff] %v2183_v55  ;;  %v2184_v27 = vpack.c.bf16 %v1466_v14, %v1464_v50  ;;  %v1173_v21 = vadd.f32 %v1172_v15, %v3578_v56  ;;  %v1174_v46 = vpop.f32.mrb[38].mxu0 }
 0x31b   : > { %v1175_v33 = vadd.f32 %v1174_v46, %v3575_v4  ;;  %v1176_v32 = vpop.f32.mrb[39].mxu0 }
 0x31c   : > { %1827 = vst [vmem:[%s3654_s0 + $0x48] sm:$0xff] %v2184_v27  ;;  %v2161_v23 = vpack.c.bf16 %v1173_v21, %v1171_v44  ;;  %v1177_v48 = vadd.f32 %v1176_v32, %v3578_v56  ;;  %v1469_v6 = vpop.f32.mrb[36].mxu1 }
 0x31d   : > { %v1470_v53 = vadd.f32 %v1469_v6, %v3635_v57  ;;  %v1471_v9 = vpop.f32.mrb[37].mxu1 }
 0x31e   : > { %1708 = vst [vmem:[%s3586_s23 + $0x90] sm:$0xff] %v2161_v23  ;;  %v2162_v26 = vpack.c.bf16 %v1177_v48, %v1175_v33  ;;  %v1472_v22 = vadd.f32 %v1471_v9, %v3640_v11  ;;  %v1473_v45 = vpop.f32.mrb[38].mxu1 }
 0x31f   : > { %v1474_v35 = vadd.f32 %v1473_v45, %v3635_v57  ;;  %v1475_v13 = vpop.f32.mrb[39].mxu1 }
 0x320   : > { %1709 = vst [vmem:[%s3586_s23 + $0x98] sm:$0xff] %v2162_v26  ;;  %v2185_v62 = vpack.c.bf16 %v1472_v22, %v1470_v53  ;;  %v1476_v37 = vadd.f32 %v1475_v13, %v3640_v11  ;;  %v1180_v31 = vpop.f32.mrb[40].mxu0 }
 0x321   : > { %v1181_v47 = vadd.f32 %v1180_v31, %v3575_v4  ;;  %v1182_v34 = vpop.f32.mrb[41].mxu0 }
 0x322   : > { %1828 = vst [vmem:[%s3654_s0 + $0x50] sm:$0xff] %v2185_v62  ;;  %v2186_v54 = vpack.c.bf16 %v1476_v37, %v1474_v35  ;;  %v1183_v49 = vadd.f32 %v1182_v34, %v3578_v56  ;;  %v1184_v18 = vpop.f32.mrb[42].mxu0 }
 0x323   : > { %v1185_v59 = vadd.f32 %v1184_v18, %v3575_v4  ;;  %v1186_v30 = vpop.f32.mrb[43].mxu0 }
 0x324   : > { %1829 = vst [vmem:[%s3654_s0 + $0x58] sm:$0xff] %v2186_v54  ;;  %v2163_v17 = vpack.c.bf16 %v1183_v49, %v1181_v47  ;;  %v1187_v36 = vadd.f32 %v1186_v30, %v3578_v56  ;;  %v1479_v0 = vpop.f32.mrb[40].mxu1 }
 0x325   : > { %v1480_v60 = vadd.f32 %v1479_v0, %v3635_v57  ;;  %v1481_v40 = vpop.f32.mrb[41].mxu1 }
 0x326   : > { %1710 = vst [vmem:[%s3586_s23 + $0xa0] sm:$0xff] %v2163_v17  ;;  %v2164_v63 = vpack.c.bf16 %v1187_v36, %v1185_v59  ;;  %v1482_v24 = vadd.f32 %v1481_v40, %v3640_v11  ;;  %v1483_v2 = vpop.f32.mrb[42].mxu1 }
 0x327   : > { %v1484_v52 = vadd.f32 %v1483_v2, %v3635_v57  ;;  %v1485_v25 = vpop.f32.mrb[43].mxu1 }
 0x328   : > { %1711 = vst [vmem:[%s3586_s23 + $0xa8] sm:$0xff] %v2164_v63  ;;  %v2187_v16 = vpack.c.bf16 %v1482_v24, %v1480_v60  ;;  %v1486_v38 = vadd.f32 %v1485_v25, %v3640_v11  ;;  %v1190_v7 = vpop.f32.mrb[44].mxu0 }
 0x329   : > { %v1191_v39 = vadd.f32 %v1190_v7, %v3575_v4  ;;  %v1192_v12 = vpop.f32.mrb[45].mxu0 }
 0x32a   : > { %1830 = vst [vmem:[%s3654_s0 + $0x60] sm:$0xff] %v2187_v16  ;;  %v2188_v43 = vpack.c.bf16 %v1486_v38, %v1484_v52  ;;  %v1193_v3 = vadd.f32 %v1192_v12, %v3578_v56  ;;  %v1194_v20 = vpop.f32.mrb[46].mxu0 }
 0x32b   : > { %v1195_v1 = vadd.f32 %v1194_v20, %v3575_v4  ;;  %v1196_v29 = vpop.f32.mrb[47].mxu0 }
 0x32c   : > { %1831 = vst [vmem:[%s3654_s0 + $0x68] sm:$0xff] %v2188_v43  ;;  %v2165_v61 = vpack.c.bf16 %v1193_v3, %v1191_v39  ;;  %v1197_v10 = vadd.f32 %v1196_v29, %v3578_v56  ;;  %v1489_v42 = vpop.f32.mrb[44].mxu1 }
 0x32d   : > { %v1490_v51 = vadd.f32 %v1489_v42, %v3635_v57  ;;  %v1491_v58 = vpop.f32.mrb[45].mxu1 }
 0x32e   : > { %1712 = vst [vmem:[%s3586_s23 + $0xb0] sm:$0xff] %v2165_v61  ;;  %v2166_v4 = vpack.c.bf16 %v1197_v10, %v1195_v1  ;;  %v1492_v19 = vadd.f32 %v1491_v58, %v3640_v11  ;;  %v1493_v56 = vpop.f32.mrb[46].mxu1 }
 0x32f   : > { %v1494_v41 = vadd.f32 %v1493_v56, %v3635_v57  ;;  %v1495_v8 = vpop.f32.mrb[47].mxu1 }
 0x330   : > { %1713 = vst [vmem:[%s3586_s23 + $0xb8] sm:$0xff] %v2166_v4  ;;  %v2189_v50 = vpack.c.bf16 %v1492_v19, %v1490_v51  ;;  %v1496_v28 = vadd.f32 %v1495_v8, %v3640_v11 }
 0x331   : > { %2659 = shalt.err (!%p2656_p3)
}
 0x332   : > { %s2660_s8 = scalar_lea.hbm %s3739_s21, 4096  ;;  %s2664_s12 = scalar_lea.hbm %s3841_s6, 8192 }
 0x333   : > { %p2661_p9 = scmp.ne.s32.totalorder %s3739_s21, %s2660_s8  ;;  %p2665_p7 = scmp.lt.u32.totalorder %s3739_s21, %s3841_s6 }
 0x334   : > { %p2666_p12 = scmp.lt.u32.totalorder %s2664_s12, %s2660_s8  ;;  %p2668_p2 = scmp.lt.u32.totalorder %s2660_s8, %s3739_s21 }
 0x335   : > { %p2662_p13 = pnand %p2661_p9, %p2966_p5 }
 0x336   : > { %p2667_p1 = por %p2666_p12, %p2665_p7 }
 0x337   : > { %p2663_p11 = pneg %p2662_p13 }
 0x338   : > { %p2669_p4 = por %p2668_p2, %p2667_p1 }
 0x33a   : > { %p2670_p0 = pnand %p2669_p4, %p2663_p11 }
 0x33c   : > { %2673 = shalt.err (!%p2670_p0)
}
 0x33d   : > { %s2769_s13 = smov 128   ;;  %s2770_s15 = smov 8   ;;  %1832 = vst [vmem:[%s3654_s0 + $0x70] sm:$0xff] %v2189_v50  ;;  %v2190_v57 = vpack.c.bf16 %v1496_v28, %v1494_v41 }
 0x33e   : > { %2304 = dma.vmem_to_hbm [thread:$0]  (%p2966_p5), %s3741_s14, 4096, %s3739_s21, %s1835_s20, %s2769_s13, %s2769_s13, %s2770_s15  }
 0x33f   : > { %s3783_s4 = scalar_lea.hbm %s3842_s7, %s2192_s29  ;;  %1833 = vst [vmem:[%s3654_s0 + $0x78] sm:$0xff] %v2190_v57  ;;  %s1840_s9 = scalar_lea.sflag [#allocation13], %s3059_s5 }
 0x340   : > { %s2674_s8 = scalar_lea.vmem %s3787_s17, 2048  ;;  %s2771_s14 = smov [#allocation12]  }
 0x341   : > { %p2675_p8 = scmp.ne.s32.totalorder %s3787_s17, %s2674_s8  ;;  %s2678_s28 = sshll.u32 %s2771_s14, 4  ;;  %s2679_s28 = int_to_ptr.vmem [resolvable:$false] %s2678_s28 }
 0x342   : > { %s2680_s21 = scalar_lea.vmem %s2679_s28, 4096  ;;  %p2681_p3 = scmp.lt.s32.totalorder %s3787_s17, %s2679_s28 }
 0x343   : > { %p2676_p6 = pnand %p2675_p8, %p2966_p5  ;;  %p2682_p9 = scmp.lt.s32.totalorder %s2680_s21, %s2674_s8 }
 0x345   : > { %p2677_p10 = pneg %p2676_p6  ;;  %p2683_p13 = por %p2682_p9, %p2681_p3 }
 0x347   : > { %p2684_p11 = pnand %p2683_p13, %p2677_p10 }
 0x349   : > { %2687 = shalt.err (!%p2684_p11)
}
 0x34a   : > { %s2688_s0 = scalar_lea.hbm %s3783_s4, 2048  ;;  %s2692_s30 = scalar_lea.hbm %s3842_s7, 4096 }
 0x34b   : > { %p2689_p7 = scmp.ne.s32.totalorder %s3783_s4, %s2688_s0  ;;  %p2693_p2 = scmp.lt.u32.totalorder %s3783_s4, %s3842_s7 }
 0x34c   : > { %p2694_p4 = scmp.lt.u32.totalorder %s2692_s30, %s2688_s0  ;;  %p2696_p8 = scmp.lt.u32.totalorder %s2688_s0, %s3783_s4 }
 0x34d   : > { %p2690_p12 = pnand %p2689_p7, %p2966_p5 }
 0x34e   : > { %p2695_p0 = por %p2694_p4, %p2693_p2 }
 0x34f   : > { %p2691_p1 = pneg %p2690_p12 }
 0x350   : > { %p2697_p6 = por %p2696_p8, %p2695_p0 }
 0x352   : > { %p2698_p10 = pnand %p2697_p6, %p2691_p1 }
 0x354   : > { %2701 = shalt.err (!%p2698_p10)
}
 0x355   : > { %2305 = dma.vmem_to_hbm [thread:$0]  (%p2966_p5), %s3787_s17, 2048, %s3783_s4, %s1840_s9, %s2769_s13, %s2769_s13, %s2770_s15  }
 0x356 PF: > { %s3870_s23 = sld [smem:[#allocation20_spill]]  ;;  %s1884_s10 = sand.u32 1, %s2744_s24  }
 0x357   : > { %p3872_p9 = scmp.ge.s32.totalorder %s2756_s27, 2  ;;  %s1885_s11 = scalar_lea.sflag [#allocation4], %s1884_s10 }
 0x35c   : > { %p3871_p3 = scmp.ne.s32.totalorder %s3870_s23, 0 }
 0x35e   : > { %p2326_p13 = pnand %p3872_p9, %p3871_p3 }
 0x360   : > { %2735 = dma.done.wait (!%p2326_p13), %s1885_s11, 4096  }
 0x361   : > { %2737 = vsyncadd (!%p2326_p13), %s1885_s11, 4294963200  ;;  %s1894_s19 = scalar_lea.sflag [#allocation13], %s1884_s10 }
 0x362   : > { %2739 = dma.done.wait (!%p2326_p13), %s1894_s19, 2048  }
 0x363   : > { %2741 = vsyncadd (!%p2326_p13), %s1894_s19, 4294965248  ;;  %p28_p5 = scmp.ge.s32.totalorder %s2952_s22, 4   ;;  %s3873_s24 = smov %s2748_s25 }
 0x364   : > { %s3874_s25 = smov %s2752_s26  ;;  %s3875_s26 = smov %s2962_s18 }
 0x365   : > { %s3876_s27 = smov %s2952_s22  ;;  %30 = sbr.rel (!%p28_p5) target bundleno = 15 (0xf), region = 131 }
 0x36c   :  { %1899 = vsyncpa [#allocation3], 1 }
 0x36d   :  { %1901 = vsyncpa [#allocation3 + $0x1], 1 }
 0x36e   :  { %1902 = vsyncpa [#allocation6], 1 }
 0x36f   :  { %1904 = vsyncpa [#allocation6 + $0x1], 1 }
 0x370   :  { %1905 = vsyncpa [#allocation9], 1 }
 0x371   :  { %1906 = vsyncpa [#allocation4], 1 }
 0x372   :  { %1908 = vsyncpa [#allocation4 + $0x1], 1 }
 0x373   :  { %1909 = vsyncpa [#allocation13], 1 }
 0x374   :  { %1911 = vsyncpa [#allocation13 + $0x1], 1 }

// kernel: tpu_custom_call.1
= control target key start
LH: loop header
LB: loop body
LE: loop exit
PB: predicated region body
PF: predicated region fallthrough
CT: control target
= control target key end

     0   :  { %s3835_s0 = inlined_call_operand.hbm [shape: bf16[2,256,128], index: 0, kind: input, shape index: {}]   ;;  %s3836_s1 = inlined_call_operand.hbm [shape: bf16[2,128,128], index: 1, kind: input, shape index: {}]   ;;  %s3837_s2 = inlined_call_operand.hbm [shape: f32[11,128], index: 2, kind: input, shape index: {}]   ;;  %s3838_s3 = inlined_call_operand.vmem [shape: f32[2,256], index: 3, kind: input, shape index: {}]   ;;  %s3839_s4 = inlined_call_operand.hbm [shape: bf16[128,256], index: 4, kind: input, shape index: {}]   ;;  %s3840_s5 = inlined_call_operand.hbm [shape: bf16[128,256], index: 5, kind: input, shape index: {}]   ;;  %s3841_s6 = inlined_call_operand.hbm [shape: bf16[2,256,256], index: 6, kind: output, shape index: {0}]   ;;  %s3842_s7 = inlined_call_operand.hbm [shape: bf16[2,128,256], index: 7, kind: output, shape index: {1}]  }
   0x1   :  { %3847 = sst [smem:[#allocation21_spill]] %s3835_s0 }
   0x2   :  { %3848 = sst [smem:[#allocation22_spill]] %s3837_s2 }
   0x3   :  { %3849 = sst [smem:[#allocation23_spill]] %s3839_s4 }
   0x4   :  { %3850 = sst [smem:[#allocation24_spill]] %s3840_s5 }
   0x5   :  { %13 = vsyncpa [#allocation3], 0 }
   0x6   :  { %15 = vsyncpa [#allocation3 + $0x1], 0 }
   0x7   :  { %16 = vsyncpa [#allocation6], 0 }
   0x8   :  { %18 = vsyncpa [#allocation6 + $0x1], 0 }
   0x9   :  { %19 = vsyncpa [#allocation9], 0 }
   0xa   :  { %20 = vsyncpa [#allocation4], 0 }
   0xb   :  { %22 = vsyncpa [#allocation4 + $0x1], 0 }
   0xc   :  { %23 = vsyncpa [#allocation13], 0 }
   0xd   :  { %25 = vsyncpa [#allocation13 + $0x1], 0  ;;  %s2812_s24 = smov 0   ;;  %s2814_s25 = smov 0  }
   0xe   :  { %s2816_s26 = smov 0   ;;  %s2818_s27 = smov 0  }
   0xf LB: > { %s2833_s28 = sadd.s32 4294967295, %s2756_s27   ;;  %s2025_s29 = sadd.s32 4294967294, %s2756_s27   ;;  %s2756_s27 = sphi %s2818_s27, %s3876_s27   ;;  %s2752_s26 = sphi %s2816_s26, %s3875_s26   ;;  %s2748_s25 = sphi %s2814_s25, %s3874_s25   ;;  %s2744_s24 = sphi %s2812_s24, %s3873_s24  }
  0x10   : > { %p51_p0 = scmp.ne.s32.totalorder %s2748_s25, %s2744_s24  ;;  %p3843_p1 = scmp.eq.s32.totalorder %s2833_s28, 0 }
  0x11   : > { %p191_p3 = scmp.eq.s32.totalorder %s2025_s29, 1  ;;  %p2026_p5 = scmp.ge.s32.totalorder %s2756_s27, 1 }
  0x12   : > { %p2842_p4 = por %p3843_p1, %p51_p0  ;;  %p224_p7 = scmp.lt.s32.totalorder %s2756_s27, 3 }
  0x13   : > { %p2847_p6 = por %p191_p3, %p51_p0  ;;  %s2758_s10 = smov [#allocation7]  }
  0x14   : > { %s3851_s30 = scalar_select %p2842_p4, 1, 0 }
  0x15   : > { %s3852_s8 = scalar_select %p2847_p6, 1, 0 }
  0x16   : > { %p2852_p8 = pnand %p2026_p5, %p224_p7  ;;  %s236_s11 = sshll.u32 %s2758_s10, 4  ;;  %s2856_s11 = int_to_ptr.vmem [resolvable:$true] %s236_s11 }
  0x17   : > { %3853 = sst [smem:[#allocation20_spill]] %s3852_s8  ;;  %s2759_s13 = smov [#allocation8]  }
  0x18   : > { %s3854_s9 = scalar_select %p2852_p8, 1, 0 }
  0x19   : > { %p2308_p9 = pneg %p2852_p8  ;;  %s252_s14 = sshll.u32 %s2759_s13, 4  ;;  %s2867_s14 = int_to_ptr.vmem [resolvable:$true] %s252_s14 }
  0x1a   : > { %s2760_s15 = smov [#allocation10]   ;;  %s3856_s2 = sld [smem:[#allocation22_spill]] }
  0x1b   : > { %p2863_p11 = pnand %p2308_p9, %p3843_p1  ;;  %s2869_s16 = sshll.u32 %s2760_s15, 4  ;;  %s266_s16 = int_to_ptr.vmem [resolvable:$true] %s2869_s16 }
  0x1d   : > { %p2879_p13 = pneg %p2863_p11 }
  0x20   : > { %s2502_s19 = scalar_lea.hbm %s3856_s2, 256 }
  0x21   : > { %p2503_p12 = scmp.ne.s32.totalorder %s3856_s2, %s2502_s19  ;;  %p2509_p5 = scmp.lt.u32.totalorder %s2502_s19, %s3856_s2 }
  0x23   : > { %p2505_p0 = pnand %p2879_p13, %p2503_p12 }
  0x25   : > { %p2506_p3 = pneg %p2505_p0 }
  0x27   : > { %p2511_p7 = pnand %p2509_p5, %p2506_p3 }
  0x29   : > { %2514 = shalt.err (!%p2511_p7)
}
  0x2a   : > { %s2515_s10 = scalar_lea.vmem %s2856_s11, 256  ;;  %p2523_p2 = scmp.lt.s32.totalorder %s2856_s11, %s2856_s11 }
  0x2b   : > { %p2516_p9 = scmp.ne.s32.totalorder %s2856_s11, %s2515_s10  ;;  %p2524_p6 = scmp.lt.s32.totalorder %s2515_s10, %s2515_s10 }
  0x2d   : > { %p2518_p10 = pnand %p2516_p9, %p2879_p13  ;;  %p2525_p12 = por %p2524_p6, %p2523_p2 }
  0x2f   : > { %p2519_p1 = pneg %p2518_p10 }
  0x31   : > { %p2526_p0 = pnand %p2525_p12, %p2519_p1 }
  0x33   : > { %2529 = shalt.err (!%p2526_p0)
}
  0x34   : > { %s2761_s13 = smov 128   ;;  %s2762_s15 = smov 8  }
  0x35   : > { %2311 = dma.hbm_to_vmem [thread:$0]  (!%p2863_p11), %s3856_s2, 256, %s2856_s11, [#allocation6], %s2761_s13, %s2761_s13, %s2762_s15  }
  0x36   : > { %s3858_s4 = sld [smem:[#allocation23_spill]] }
  0x3c   : > { %s2530_s21 = scalar_lea.hbm %s3858_s4, 2048 }
  0x3d   : > { %p2531_p1 = scmp.ne.s32.totalorder %s3858_s4, %s2530_s21  ;;  %p2537_p10 = scmp.lt.u32.totalorder %s2530_s21, %s3858_s4 }
  0x3f   : > { %p2533_p2 = pnand %p2531_p1, %p2879_p13 }
  0x41   : > { %p2534_p6 = pneg %p2533_p2 }
  0x43   : > { %p2539_p3 = pnand %p2537_p10, %p2534_p6 }
  0x45   : > { %2542 = shalt.err (!%p2539_p3)
}
  0x46   : > { %s2543_s11 = scalar_lea.vmem %s2867_s14, 2048  ;;  %p2551_p12 = scmp.lt.s32.totalorder %s2867_s14, %s2867_s14 }
  0x47   : > { %p2544_p5 = scmp.ne.s32.totalorder %s2867_s14, %s2543_s11  ;;  %p2552_p0 = scmp.lt.s32.totalorder %s2543_s11, %s2543_s11 }
  0x49   : > { %p2546_p7 = pnand %p2544_p5, %p2879_p13  ;;  %p2553_p1 = por %p2552_p0, %p2551_p12 }
  0x4b   : > { %p2547_p9 = pneg %p2546_p7 }
  0x4d   : > { %p2554_p2 = pnand %p2553_p1, %p2547_p9 }
  0x4f   : > { %2557 = shalt.err (!%p2554_p2)
}
  0x50   : > { %2314 = dma.hbm_to_vmem [thread:$0]  (!%p2863_p11), %s3858_s4, 2048, %s2867_s14, [#allocation9], %s2761_s13, %s2761_s13, %s2762_s15  }
  0x51   : > { %s3859_s5 = sld [smem:[#allocation24_spill]] }
  0x57   : > { %s2558_s20 = scalar_lea.hbm %s3859_s5, 2048 }
  0x58   : > { %p2559_p6 = scmp.ne.s32.totalorder %s3859_s5, %s2558_s20  ;;  %p2565_p5 = scmp.lt.u32.totalorder %s2558_s20, %s3859_s5 }
  0x5a   : > { %p2561_p10 = pnand %p2559_p6, %p2879_p13 }
  0x5c   : > { %p2562_p3 = pneg %p2561_p10 }
  0x5e   : > { %p2567_p7 = pnand %p2565_p5, %p2562_p3 }
  0x60   : > { %2570 = shalt.err (!%p2567_p7)
}
  0x61   : > { %s2571_s11 = scalar_lea.vmem %s266_s16, 2048  ;;  %p2579_p1 = scmp.lt.s32.totalorder %s266_s16, %s266_s16 }
  0x62   : > { %p2572_p9 = scmp.ne.s32.totalorder %s266_s16, %s2571_s11  ;;  %p2580_p2 = scmp.lt.s32.totalorder %s2571_s11, %s2571_s11 }
  0x64   : > { %p2574_p12 = pnand %p2572_p9, %p2879_p13  ;;  %p2581_p4 = por %p2580_p2, %p2579_p1 }
  0x66   : > { %p2575_p0 = pneg %p2574_p12 }
  0x68   : > { %p2582_p8 = pnand %p2581_p4, %p2575_p0 }
  0x6a   : > { %2585 = shalt.err (!%p2582_p8)
}
  0x6b   : > { %2317 = dma.hbm_to_vmem [thread:$0]  (!%p2863_p11), %s3859_s5, 2048, %s266_s16, [#allocation9], %s2761_s13, %s2761_s13, %s2762_s15  }
  0x6c   : > { %s2952_s22 = sadd.s32 1, %s2756_s27   ;;  %s38_s17 = sadd.s32 1, %s2752_s26 }
  0x6d   : > { %s35_s12 = ssub.s32 %s2756_s27, %s2952_s22  ;;  %p45_p8 = scmp.ne.s32.totalorder %s2752_s26, %s2748_s25 }
  0x6e   : > { %p36_p4 = scmp.eq.s32.totalorder %s35_s12, 0  ;;  %p46_p13 = scmp.eq.s32.totalorder %s2756_s27, 0 }
  0x6f   : > { %p2335_p6 = scmp.lt.s32.totalorder %s2756_s27, 2  ;;  %p3860_p3 = scmp.eq.s32.totalorder %s2833_s28, 1 }
  0x70   : > { %s2962_s18 = scalar_select %p36_p4, %s2752_s26, %s38_s17  }
  0x71   : > { %p47_p10 = por %p46_p13, %p45_p8  ;;  %p2966_p5 = por %p3860_p3, %p45_p8 }
  0x72   : > { %s2971_s20 = sand.u32 1, %s2752_s26   ;;  %s2141_s16 = sshll.u32 %s2756_s27, 11 }
  0x73   : > { %s2031_s13 = sshll.u32 %s2971_s20, 7  ;;  %s3862_s0 = sld [smem:[#allocation21_spill]] }
  0x74   : > { %s283_s29 = scalar_lea.vmem [#allocation2], %s2031_s13  ;;  %p2980_p11 = pnand %p2335_p6, %p47_p10 }
  0x75   : > { %s290_s10 = sshll.u32 %s283_s29, 4  ;;  %s280_s14 = scalar_lea.sflag [#allocation3], %s2971_s20  ;;  %s2984_s10 = int_to_ptr.vmem [resolvable:$true] %s290_s10 }
  0x76   : > { %p2588_p9 = pneg %p2980_p11 }
  0x79   : > { %s2978_s23 = scalar_lea.hbm %s3862_s0, %s2141_s16  ;;  %s2591_s16 = scalar_lea.hbm %s3862_s0, 4096 }
  0x7a   : > { %s2586_s8 = scalar_lea.hbm %s2978_s23, 2048  ;;  %p2592_p1 = scmp.lt.u32.totalorder %s2978_s23, %s3862_s0 }
  0x7b   : > { %p2587_p7 = scmp.ne.s32.totalorder %s2978_s23, %s2586_s8  ;;  %p2593_p2 = scmp.lt.u32.totalorder %s2591_s16, %s2586_s8 }
  0x7c   : > { %p2595_p8 = scmp.lt.u32.totalorder %s2586_s8, %s2978_s23 }
  0x7d   : > { %p2589_p12 = pnand %p2588_p9, %p2587_p7  ;;  %p2594_p4 = por %p2593_p2, %p2592_p1 }
  0x7f   : > { %p2590_p0 = pneg %p2589_p12  ;;  %p2596_p13 = por %p2595_p8, %p2594_p4 }
  0x81   : > { %p2597_p6 = pnand %p2596_p13, %p2590_p0 }
  0x83   : > { %2600 = shalt.err (!%p2597_p6)
}
  0x84   : > { %s2601_s21 = scalar_lea.vmem %s2984_s10, 2048  ;;  %s2763_s29 = smov [#allocation2]  }
  0x85   : > { %p2602_p10 = scmp.ne.s32.totalorder %s2984_s10, %s2601_s21  ;;  %s2606_s12 = sshll.u32 %s2763_s29, 4  ;;  %s2607_s12 = int_to_ptr.vmem [resolvable:$false] %s2606_s12 }
  0x86   : > { %s2608_s17 = scalar_lea.vmem %s2607_s12, 4096  ;;  %p2609_p12 = scmp.lt.s32.totalorder %s2984_s10, %s2607_s12 }
  0x87   : > { %p2604_p3 = pnand %p2602_p10, %p2588_p9  ;;  %p2610_p1 = scmp.lt.s32.totalorder %s2608_s17, %s2601_s21 }
  0x89   : > { %p2605_p7 = pneg %p2604_p3  ;;  %p2611_p2 = por %p2610_p1, %p2609_p12 }
  0x8b   : > { %p2612_p4 = pnand %p2611_p2, %p2605_p7 }
  0x8d   : > { %2615 = shalt.err (!%p2612_p4)
}
  0x8e   : > { %s2764_s8 = smov 64   ;;  %s2765_s16 = smov 4  }
  0x8f   : > { %2321 = dma.hbm_to_vmem [thread:$0]  (!%p2980_p11), %s2978_s23, 2048, %s2984_s10, %s280_s14, %s2764_s8, %s2764_s8, %s2765_s16  }
  0x90   : > { %s300_s13 = sand.u32 1, %s2756_s27   ;;  %s2034_s15 = sshll.u32 %s2971_s20, 6 }
  0x91   : > { %s2142_s21 = sshll.u32 %s2756_s27, 10  ;;  %s304_s29 = scalar_lea.vmem [#allocation5], %s2034_s15 }
  0x92   : > { %s311_s12 = sshll.u32 %s304_s29, 4  ;;  %s3023_s2 = scalar_lea.hbm %s3836_s1, %s2142_s21  ;;  %s3025_s12 = int_to_ptr.vmem [resolvable:$true] %s311_s12 }
  0x93   : > { %s3027_s4 = scalar_lea.sflag [#allocation6], %s300_s13  ;;  %s2616_s5 = scalar_lea.hbm %s3023_s2, 1024 }
  0x94   : > { %p2617_p0 = scmp.ne.s32.totalorder %s3023_s2, %s2616_s5  ;;  %s2621_s0 = scalar_lea.hbm %s3836_s1, 2048 }
  0x95   : > { %p2622_p6 = scmp.lt.u32.totalorder %s3023_s2, %s3836_s1  ;;  %p2623_p10 = scmp.lt.u32.totalorder %s2621_s0, %s2616_s5 }
  0x96   : > { %p2619_p8 = pnand %p2617_p0, %p2588_p9  ;;  %p2625_p7 = scmp.lt.u32.totalorder %s2616_s5, %s3023_s2 }
  0x97   : > { %p2624_p3 = por %p2623_p10, %p2622_p6 }
  0x98   : > { %p2620_p13 = pneg %p2619_p8 }
  0x99   : > { %p2626_p12 = por %p2625_p7, %p2624_p3 }
  0x9b   : > { %p2627_p1 = pnand %p2626_p12, %p2620_p13 }
  0x9d   : > { %2630 = shalt.err (!%p2627_p1)
}
  0x9e   : > { %s2631_s13 = scalar_lea.vmem %s3025_s12, 1024  ;;  %s2766_s15 = smov [#allocation5]  }
  0x9f   : > { %p2632_p2 = scmp.ne.s32.totalorder %s3025_s12, %s2631_s13  ;;  %s2636_s21 = sshll.u32 %s2766_s15, 4  ;;  %s2637_s21 = int_to_ptr.vmem [resolvable:$false] %s2636_s21 }
  0xa0   : > { %s2638_s29 = scalar_lea.vmem %s2637_s21, 2048  ;;  %p2639_p8 = scmp.lt.s32.totalorder %s3025_s12, %s2637_s21 }
  0xa1   : > { %p2634_p4 = pnand %p2632_p2, %p2588_p9  ;;  %p2640_p6 = scmp.lt.s32.totalorder %s2638_s29, %s2631_s13 }
  0xa3   : > { %p2635_p0 = pneg %p2634_p4  ;;  %p2641_p10 = por %p2640_p6, %p2639_p8 }
  0xa5   : > { %p2642_p3 = pnand %p2641_p10, %p2635_p0 }
  0xa7   : > { %2645 = shalt.err (!%p2642_p3)
}
  0xa8   : > { %2324 = dma.hbm_to_vmem [thread:$0]  (!%p2980_p11), %s3023_s2, 1024, %s3025_s12, %s3027_s4, %s2764_s8, %s2764_s8, %s2765_s16  }
  0xa9   : > { %p3864_p9 = scmp.ne.s32.totalorder %s3854_s9, 0 }
  0xaa   : > { %s3059_s5 = sand.u32 (!%p3864_p9), 1, %s2748_s25   ;;  %p3865_p13 = scmp.ne.s32.totalorder (!%p3864_p9), %s3851_s30, 0 }
  0xab   : > { %323 = sbr.rel (%p3864_p9) target bundleno = 854 (0x356), region = 44  ;;  %s2038_s17 = sshll.u32 (!%p3864_p9), %s3059_s5, 7 }
  0xac   : > { %s326_s20 = scalar_lea.sflag (!%p3864_p9), [#allocation3], %s3059_s5  ;;  %s3065_s11 = scalar_lea.vmem (!%p3864_p9), [#allocation2], %s2038_s17 }
  0xb2   : > { %2719 = dma.done.wait (%p3865_p13), %s326_s20, 2048  }
  0xb3   : > { %2721 = vsyncadd (%p3865_p13), %s326_s20, 4294965248  ;;  %s334_s2 = sand.u32 1, %s2833_s28   ;;  %s2039_s4 = sshll.u32 %s3059_s5, 6 }
  0xb4   : > { %s335_s9 = scalar_lea.sflag [#allocation6], %s334_s2  ;;  %s3073_s8 = scalar_lea.vmem [#allocation5], %s2039_s4 }
  0xb5   : > { %2723 = dma.done.wait (%p3865_p13), %s335_s9, 1024  }
  0xb6   : > { %2725 = vsyncadd (%p3865_p13), %s335_s9, 4294966272  ;;  %p3866_p11 = scmp.eq.s32.totalorder %s2833_s28, 0 }
  0xb8   : > { %2727 = dma.done.wait (%p3866_p11), [#allocation6], 256   ;;  %p3867_p7 = pmov %p3866_p11 }
  0xba   : > { %2729 = vsyncadd (%p3867_p7), [#allocation6], 4294967040  ;;  %p3868_p12 = pmov %p3867_p7 }
  0xbb   : > { %p3869_p1 = pmov %p3867_p7 }
  0xbc   : > { %2731 = dma.done.wait (%p3868_p12), [#allocation9], 4096  }
  0xbd   : > { %2733 = vsyncadd (%p3869_p1), [#allocation9], 4294963200  ;;  %v3088_v0 = vld [vmem:[%s3065_s11] sm:$0xff]   ;;  %v3102_v6 = vld [vmem:[%s3065_s11 + $0x8] sm:$0xff]   ;;  %s2043_s12 = sshll.u32 %s3059_s5, 8  ;;  %s3654_s0 = scalar_lea.vmem [#allocation12], %s2038_s17 }
  0xbe   : > { %v3091_v1 = vld [vmem:[%s3065_s11 + $0x60] sm:$0xff]   ;;  %v2195_v2 = vunpack.c.l.bf16 %v3088_v0  ;;  %v2196_v4 = vunpack.c.h.bf16 %v3088_v0  ;;  %v3105_v7 = vld [vmem:[%s3065_s11 + $0x68] sm:$0xff]   ;;  %v2199_v8 = vunpack.c.l.bf16 %v3102_v6  ;;  %v2200_v9 = vunpack.c.h.bf16 %v3102_v6  ;;  %v3114_v10 = vld [vmem:[%s3065_s11 + $0x10] sm:$0xff]   ;;  %s3586_s23 = scalar_lea.vmem [#allocation11], %s2043_s12  ;;  %s2191_s10 = sshll.u32 %s2833_s28, 12 }
  0xbf   : > { %v2243_v3 = vunpack.c.l.bf16 %v3091_v1  ;;  %v2244_v5 = vunpack.c.h.bf16 %v3091_v1  ;;  %v2247_v11 = vunpack.c.l.bf16 %v3105_v7  ;;  %v2248_v12 = vunpack.c.h.bf16 %v3105_v7  ;;  %v3123_v13 = vld [vmem:[%s3065_s11 + $0x70] sm:$0xff]   ;;  %v3132_v16 = vld [vmem:[%s3065_s11 + $0x18] sm:$0xff]   ;;  %v3156_v24 = vld [vmem:[%s3065_s11 + $0x20] sm:$0xff]   ;;  %s1853_s14 = sshll.u32 %s3586_s23, 4  ;;  %s3739_s21 = scalar_lea.hbm %s3841_s6, %s2191_s10  ;;  %s3741_s14 = int_to_ptr.vmem [resolvable:$true] %s1853_s14 }
  0xc0   : > { %506 = vadd.xlane.f32.xlu0 %v2195_v2  ;;  %v2203_v14 = vunpack.c.l.bf16 %v3114_v10  ;;  %v2204_v15 = vunpack.c.h.bf16 %v3114_v10  ;;  %v2251_v17 = vunpack.c.l.bf16 %v3123_v13  ;;  %v2252_v18 = vunpack.c.h.bf16 %v3123_v13  ;;  %v3147_v21 = vld [vmem:[%s3065_s11 + $0x78] sm:$0xff]   ;;  %v3165_v27 = vld [vmem:[%s3065_s11 + $0x28] sm:$0xff]   ;;  %v3174_v30 = vld [vmem:[%s3065_s11 + $0x30] sm:$0xff]   ;;  %s2192_s29 = sshll.u32 %s2833_s28, 11  ;;  %s1869_s17 = sshll.u32 %s3654_s0, 4  ;;  %s3787_s17 = int_to_ptr.vmem [resolvable:$true] %s1869_s17 }
  0xc1   : > { %554 = vadd.xlane.f32.xlu1 %v2243_v3  ;;  %v2207_v19 = vunpack.c.l.bf16 %v3132_v16  ;;  %v2208_v20 = vunpack.c.h.bf16 %v3132_v16  ;;  %v2255_v22 = vunpack.c.l.bf16 %v3147_v21  ;;  %v2256_v23 = vunpack.c.h.bf16 %v3147_v21  ;;  %v3183_v33 = vld [vmem:[%s3065_s11 + $0x38] sm:$0xff]   ;;  %v3192_v36 = vld [vmem:[%s3065_s11 + $0x40] sm:$0xff]   ;;  %v3201_v39 = vld [vmem:[%s3065_s11 + $0x48] sm:$0xff]   ;;  %s1835_s20 = scalar_lea.sflag [#allocation4], %s3059_s5  ;;  %s2768_s2 = smov [#allocation11]  }
  0xc2   : > { %v2211_v25 = vunpack.c.l.bf16 %v3156_v24  ;;  %v2212_v26 = vunpack.c.h.bf16 %v3156_v24  ;;  %v2215_v28 = vunpack.c.l.bf16 %v3165_v27  ;;  %v2216_v29 = vunpack.c.h.bf16 %v3165_v27  ;;  %v3210_v42 = vld [vmem:[%s3065_s11 + $0x50] sm:$0xff]   ;;  %v3219_v45 = vld [vmem:[%s3065_s11 + $0x58] sm:$0xff]   ;;  %s2646_s11 = scalar_lea.vmem %s3741_s14, 4096  ;;  %s2650_s4 = sshll.u32 %s2768_s2, 4  ;;  %s2651_s4 = int_to_ptr.vmem [resolvable:$false] %s2650_s4 }
  0xc3   : > { %v2219_v31 = vunpack.c.l.bf16 %v3174_v30  ;;  %v2220_v32 = vunpack.c.h.bf16 %v3174_v30  ;;  %v2223_v34 = vunpack.c.l.bf16 %v3183_v33  ;;  %v2224_v35 = vunpack.c.h.bf16 %v3183_v33  ;;  %v2382_v48 = vld [vmem:[#allocation8 + $0x4] ss:$8 sps:$4 sm:$0xff]   ;;  %v2384_v49 = vld [vmem:[#allocation8] ss:$8 sps:$4 sm:$0xff]   ;;  %p2647_p2 = scmp.ne.s32.totalorder %s3741_s14, %s2646_s11  ;;  %s2652_s9 = scalar_lea.vmem %s2651_s4, 8192 }
  0xc4   : > { %508 = vadd.xlane.f32.xlu0 %v2196_v4  ;;  %v2227_v37 = vunpack.c.l.bf16 %v3192_v36  ;;  %v2228_v38 = vunpack.c.h.bf16 %v3192_v36  ;;  %v2231_v40 = vunpack.c.l.bf16 %v3201_v39  ;;  %v2232_v41 = vunpack.c.h.bf16 %v3201_v39  ;;  %1046 = vmatprep.subr.bf16.mxu0 %v2382_v48  ;;  %p2653_p8 = scmp.lt.s32.totalorder %s3741_s14, %s2651_s4  ;;  %p2654_p6 = scmp.lt.s32.totalorder %s2652_s9, %s2646_s11 }
  0xc5   : > { %556 = vadd.xlane.f32.xlu1 %v2244_v5  ;;  %v2235_v43 = vunpack.c.l.bf16 %v3210_v42  ;;  %v2236_v44 = vunpack.c.h.bf16 %v3210_v42  ;;  %v2239_v46 = vunpack.c.l.bf16 %v3219_v45  ;;  %v2240_v47 = vunpack.c.h.bf16 %v3219_v45  ;;  %2272 = vmatprep.subr.bf16.mxu1 %v2382_v48  ;;  %p2648_p4 = pnand %p2647_p2, %p2966_p5 }
  0xc6   : > { %1047 = vmatpush1.bf16.msra.mxu0 %v2384_v49  ;;  %2280 = vmatpush1.bf16.msra.mxu1 %v2384_v49  ;;  %v859_v45 = vlaneseq  ;;  %p2655_p10 = por %p2654_p6, %p2653_p8 }
  0xc7   : > { %p2649_p0 = pneg %p2648_p4 }
  0xc8   : > { %510 = vadd.xlane.f32.xlu0 %v2199_v8 }
  0xc9   : > { %512 = vadd.xlane.f32.xlu1 %v2200_v9  ;;  %p2656_p3 = pnand %p2655_p10, %p2649_p0 }
  0xcc   : > { %558 = vadd.xlane.f32.xlu0 %v2247_v11 }
  0xcd   : > { %560 = vadd.xlane.f32.xlu1 %v2248_v12 }
  0xd0   : > { %514 = vadd.xlane.f32.xlu0 %v2203_v14 }
  0xd1   : > { %516 = vadd.xlane.f32.xlu1 %v2204_v15 }
  0xd4   : > { %562 = vadd.xlane.f32.xlu0 %v2251_v17 }
  0xd5   : > { %564 = vadd.xlane.f32.xlu1 %v2252_v18 }
  0xd8   : > { %518 = vadd.xlane.f32.xlu0 %v2207_v19 }
  0xd9   : > { %520 = vadd.xlane.f32.xlu1 %v2208_v20 }
  0xdc   : > { %566 = vadd.xlane.f32.xlu0 %v2255_v22 }
  0xdd   : > { %568 = vadd.xlane.f32.xlu1 %v2256_v23 }
  0xe0   : > { %522 = vadd.xlane.f32.xlu0 %v2211_v25 }
  0xe1   : > { %524 = vadd.xlane.f32.xlu1 %v2212_v26 }
  0xe4   : > { %526 = vadd.xlane.f32.xlu0 %v2215_v28 }
  0xe5   : > { %528 = vadd.xlane.f32.xlu1 %v2216_v29 }
  0xe8   : > { %530 = vadd.xlane.f32.xlu0 %v2219_v31 }
  0xe9   : > { %532 = vadd.xlane.f32.xlu1 %v2220_v32 }
  0xec   : > { %534 = vadd.xlane.f32.xlu0 %v2223_v34 }
  0xed   : > { %536 = vadd.xlane.f32.xlu1 %v2224_v35 }
  0xf0   : > { %538 = vadd.xlane.f32.xlu0 %v2227_v37 }
  0xf1   : > { %540 = vadd.xlane.f32.xlu1 %v2228_v38 }
  0xf4   : > { %542 = vadd.xlane.f32.xlu0 %v2231_v40 }
  0xf5   : > { %544 = vadd.xlane.f32.xlu1 %v2232_v41 }
  0xf8   : > { %546 = vadd.xlane.f32.xlu0 %v2235_v43 }
  0xf9   : > { %548 = vadd.xlane.f32.xlu1 %v2236_v44 }
  0xfc   : > { %550 = vadd.xlane.f32.xlu0 %v2239_v46 }
  0xfd   : > { %552 = vadd.xlane.f32.xlu1 %v2240_v47 }
 0x14d   : > { %v507_v50 = vpop.xlane.xlu0 %506 }
 0x14e   : > { %v555_v51 = vpop.xlane.xlu1 %554  ;;  %v571_v52 = vmul.f32 0.0078125, %v507_v50 }
 0x14f   : > { %v595_v53 = vmul.f32 0.0078125, %v555_v51 }
 0x150   : > { %v3233_v54 = vsub.f32 %v2195_v2, %v571_v52 }
 0x151   : > { %v3237_v55 = vsub.f32 %v2243_v3, %v595_v53  ;;  %v509_v56 = vpop.xlane.xlu0 %508 }
 0x152   : > { %v557_v57 = vpop.xlane.xlu1 %556  ;;  %v572_v58 = vmul.f32 0.0078125, %v509_v56  ;;  %v635_v59 = vmul.f32 %v3233_v54, %v3233_v54 }
 0x153   : > { %v596_v60 = vmul.f32 0.0078125, %v557_v57  ;;  %v659_v63 = vmul.f32 %v3237_v55, %v3237_v55 }
 0x154   : > { %v3243_v61 = vsub.f32 %v2196_v4, %v572_v58  ;;  %667 = vadd.xlane.f32.xlu0 %v635_v59 }
 0x155   : > { %v3247_v62 = vsub.f32 %v2244_v5, %v596_v60  ;;  %v511_v2 = vpop.xlane.xlu0 %510 }
 0x156   : > { %v513_v3 = vpop.xlane.xlu1 %512  ;;  %v573_v48 = vmul.f32 0.0078125, %v511_v2  ;;  %v636_v49 = vmul.f32 %v3243_v61, %v3243_v61  ;;  %v2385_v2 = vld [vmem:[#allocation8 + $0x14] ss:$8 sps:$4 sm:$0xff]  }
 0x157   : > { %v574_v50 = vmul.f32 0.0078125, %v513_v3  ;;  %v660_v4 = vmul.f32 %v3247_v62, %v3247_v62  ;;  %v2387_v3 = vld [vmem:[#allocation8 + $0x10] ss:$8 sps:$4 sm:$0xff]   ;;  %1048 = vmatprep.subr.bf16.mxu0 %v2385_v2  ;;  %2273 = vmatprep.subr.bf16.mxu1 %v2385_v2 }
 0x158   : > { %v3255_v0 = vsub.f32 %v2199_v8, %v573_v48  ;;  %715 = vadd.xlane.f32.xlu0 %v659_v63  ;;  %669 = vadd.xlane.f32.xlu1 %v636_v49  ;;  %v2393_v2 = vld [vmem:[#allocation8 + $0x30] ss:$8 sps:$4 sm:$0xff]  }
 0x159   : > { %v3259_v1 = vsub.f32 %v2200_v9, %v574_v50  ;;  %v559_v5 = vpop.xlane.xlu0 %558  ;;  %1049 = vmatpush1.bf16.msra.mxu0 %v2387_v3  ;;  %2281 = vmatpush1.bf16.msra.mxu1 %v2387_v3 }
 0x15a   : > { %v561_v51 = vpop.xlane.xlu1 %560  ;;  %v597_v52 = vmul.f32 0.0078125, %v559_v5  ;;  %v637_v53 = vmul.f32 %v3255_v0, %v3255_v0 }
 0x15b   : > { %v598_v56 = vmul.f32 0.0078125, %v561_v51  ;;  %v638_v9 = vmul.f32 %v3259_v1, %v3259_v1  ;;  %v2388_v51 = vld [vmem:[#allocation8 + $0x24] ss:$8 sps:$4 sm:$0xff]  }
 0x15c   : > { %v3267_v8 = vsub.f32 %v2247_v11, %v597_v52  ;;  %717 = vadd.xlane.f32.xlu1 %v660_v4  ;;  %671 = vadd.xlane.f32.xlu0 %v637_v53 }
 0x15d   : > { %v3271_v6 = vsub.f32 %v2248_v12, %v598_v56  ;;  %v515_v57 = vpop.xlane.xlu0 %514  ;;  %v2390_v56 = vld [vmem:[#allocation8 + $0x20] ss:$8 sps:$4 sm:$0xff]   ;;  %1050 = vmatprep.subr.bf16.mxu0 %v2388_v51  ;;  %2274 = vmatprep.subr.bf16.mxu1 %v2388_v51 }
 0x15e   : > { %v517_v58 = vpop.xlane.xlu1 %516  ;;  %v575_v59 = vmul.f32 0.0078125, %v515_v57  ;;  %v661_v60 = vmul.f32 %v3267_v8, %v3267_v8  ;;  %1051 = vmatpush1.bf16.msra.mxu0 %v2390_v56  ;;  %2282 = vmatpush1.bf16.msra.mxu1 %v2390_v56 }
 0x15f   : > { %v576_v63 = vmul.f32 0.0078125, %v517_v58  ;;  %v662_v12 = vmul.f32 %v3271_v6, %v3271_v6 }
 0x160   : > { %v3279_v11 = vsub.f32 %v2203_v14, %v575_v59  ;;  %673 = vadd.xlane.f32.xlu1 %v638_v9  ;;  %719 = vadd.xlane.f32.xlu0 %v661_v60  ;;  %v2391_v59 = vld [vmem:[#allocation8 + $0x34] ss:$8 sps:$4 sm:$0xff]  }
 0x161   : > { %v3283_v7 = vsub.f32 %v2204_v15, %v576_v63  ;;  %v563_v48 = vpop.xlane.xlu0 %562  ;;  %1052 = vmatprep.subr.bf16.mxu0 %v2391_v59  ;;  %2275 = vmatprep.subr.bf16.mxu1 %v2391_v59 }
 0x162   : > { %v565_v49 = vpop.xlane.xlu1 %564  ;;  %v599_v50 = vmul.f32 0.0078125, %v563_v48  ;;  %v639_v4 = vmul.f32 %v3279_v11, %v3279_v11  ;;  %1053 = vmatpush1.bf16.msra.mxu0 %v2393_v2  ;;  %2283 = vmatpush1.bf16.msra.mxu1 %v2393_v2 }
 0x163   : > { %v600_v14 = vmul.f32 0.0078125, %v565_v49  ;;  %v640_v5 = vmul.f32 %v3283_v7, %v3283_v7  ;;  %v2394_v49 = vld [vmem:[#allocation8 + $0x44] ss:$8 sps:$4 sm:$0xff]  }
 0x164   : > { %v3291_v10 = vsub.f32 %v2251_v17, %v599_v50  ;;  %721 = vadd.xlane.f32.xlu1 %v662_v12  ;;  %675 = vadd.xlane.f32.xlu0 %v639_v4 }
 0x165   : > { %v3295_v15 = vsub.f32 %v2252_v18, %v600_v14  ;;  %v519_v52 = vpop.xlane.xlu0 %518  ;;  %v2396_v14 = vld [vmem:[#allocation8 + $0x40] ss:$8 sps:$4 sm:$0xff]   ;;  %1054 = vmatprep.subr.bf16.mxu0 %v2394_v49  ;;  %2276 = vmatprep.subr.bf16.mxu1 %v2394_v49  ;;  %v2403_v49 = vld [vmem:[#allocation8 + $0x74] ss:$8 sps:$4 sm:$0xff]  }
 0x166   : > { %v521_v53 = vpop.xlane.xlu1 %520  ;;  %v577_v9 = vmul.f32 0.0078125, %v519_v52  ;;  %v663_v57 = vmul.f32 %v3291_v10, %v3291_v10  ;;  %1055 = vmatpush1.bf16.msra.mxu0 %v2396_v14  ;;  %2284 = vmatpush1.bf16.msra.mxu1 %v2396_v14  ;;  %v2405_v14 = vld [vmem:[#allocation8 + $0x70] ss:$8 sps:$4 sm:$0xff]  }
 0x167   : > { %v578_v58 = vmul.f32 0.0078125, %v521_v53  ;;  %v664_v18 = vmul.f32 %v3295_v15, %v3295_v15  ;;  %v2397_v53 = vld [vmem:[#allocation8 + $0x54] ss:$8 sps:$4 sm:$0xff]  }
 0x168   : > { %v3303_v13 = vsub.f32 %v2207_v19, %v577_v9  ;;  %677 = vadd.xlane.f32.xlu1 %v640_v5  ;;  %723 = vadd.xlane.f32.xlu0 %v663_v57  ;;  %v2399_v57 = vld [vmem:[#allocation8 + $0x50] ss:$8 sps:$4 sm:$0xff]  }
 0x169   : > { %v3307_v17 = vsub.f32 %v2208_v20, %v578_v58  ;;  %v567_v60 = vpop.xlane.xlu0 %566  ;;  %1056 = vmatprep.subr.bf16.mxu0 %v2397_v53  ;;  %2277 = vmatprep.subr.bf16.mxu1 %v2397_v53 }
 0x16a   : > { %v569_v63 = vpop.xlane.xlu1 %568  ;;  %v601_v12 = vmul.f32 0.0078125, %v567_v60  ;;  %v641_v3 = vmul.f32 %v3303_v13, %v3303_v13  ;;  %1057 = vmatpush1.bf16.msra.mxu0 %v2399_v57  ;;  %2285 = vmatpush1.bf16.msra.mxu1 %v2399_v57  ;;  %v2400_v60 = vld [vmem:[#allocation8 + $0x64] ss:$8 sps:$4 sm:$0xff]  }
 0x16b   : > { %v602_v48 = vmul.f32 0.0078125, %v569_v63  ;;  %v642_v20 = vmul.f32 %v3307_v17, %v3307_v17  ;;  %1058 = vmatprep.subr.bf16.mxu0 %v2400_v60  ;;  %2278 = vmatprep.subr.bf16.mxu1 %v2400_v60 }
 0x16c   : > { %v3315_v16 = vsub.f32 %v2255_v22, %v601_v12  ;;  %725 = vadd.xlane.f32.xlu1 %v664_v18  ;;  %679 = vadd.xlane.f32.xlu0 %v641_v3  ;;  %v2402_v12 = vld [vmem:[#allocation8 + $0x60] ss:$8 sps:$4 sm:$0xff]  }
 0x16d   : > { %v3319_v19 = vsub.f32 %v2256_v23, %v602_v48  ;;  %v523_v50 = vpop.xlane.xlu0 %522 }
 0x16e   : > { %v525_v4 = vpop.xlane.xlu1 %524  ;;  %v579_v5 = vmul.f32 0.0078125, %v523_v50  ;;  %v665_v51 = vmul.f32 %v3315_v16, %v3315_v16  ;;  %1059 = vmatpush1.bf16.msra.mxu0 %v2402_v12  ;;  %2286 = vmatpush1.bf16.msra.mxu1 %v2402_v12 }
 0x16f   : > { %v580_v52 = vmul.f32 0.0078125, %v525_v4  ;;  %v666_v23 = vmul.f32 %v3319_v19, %v3319_v19  ;;  %1060 = vmatprep.subr.bf16.mxu0 %v2403_v49  ;;  %2279 = vmatprep.subr.bf16.mxu1 %v2403_v49 }
 0x170   : > { %v3327_v21 = vsub.f32 %v2211_v25, %v579_v5  ;;  %681 = vadd.xlane.f32.xlu1 %v642_v20  ;;  %727 = vadd.xlane.f32.xlu0 %v665_v51 }
 0x171   : > { %v3331_v22 = vsub.f32 %v2212_v26, %v580_v52  ;;  %v527_v56 = vpop.xlane.xlu0 %526 }
 0x172   : > { %v529_v9 = vpop.xlane.xlu1 %528  ;;  %v581_v58 = vmul.f32 0.0078125, %v527_v56  ;;  %v643_v18 = vmul.f32 %v3327_v21, %v3327_v21  ;;  %1061 = vmatpush1.bf16.msra.mxu0 %v2405_v14  ;;  %2287 = vmatpush1.bf16.msra.mxu1 %v2405_v14  ;;  %v2767_v56 = vmov 0  }
 0x173   : > { %v582_v59 = vmul.f32 0.0078125, %v529_v9  ;;  %v644_v26 = vmul.f32 %v3331_v22, %v3331_v22  ;;  %1078 = vmatprep.mubr.bf16.mxu0 %v2767_v56  ;;  %1198 = vmatprep.mubr.bf16.mxu1 %v2767_v56 }
 0x174   : > { %v3339_v24 = vsub.f32 %v2215_v28, %v581_v58  ;;  %729 = vadd.xlane.f32.xlu1 %v666_v23  ;;  %683 = vadd.xlane.f32.xlu0 %v643_v18  ;;  %v2408_v18 = vld [vmem:[#allocation10 + $0x4] ss:$8 sps:$4 sm:$0xff]  }
 0x175   : > { %v3343_v25 = vsub.f32 %v2216_v29, %v582_v59  ;;  %v531_v63 = vpop.xlane.xlu0 %530  ;;  %1385 = vmatprep.subr.bf16.mxu1 %v2408_v18 }
 0x176   : > { %v533_v2 = vpop.xlane.xlu1 %532  ;;  %v583_v3 = vmul.f32 0.0078125, %v531_v63  ;;  %v645_v48 = vmul.f32 %v3339_v24, %v3339_v24 }
 0x177   : > { %v584_v20 = vmul.f32 0.0078125, %v533_v2  ;;  %v646_v29 = vmul.f32 %v3343_v25, %v3343_v25 }
 0x178   : > { %v3351_v27 = vsub.f32 %v2219_v31, %v583_v3  ;;  %685 = vadd.xlane.f32.xlu1 %v644_v26  ;;  %687 = vadd.xlane.f32.xlu0 %v645_v48 }
 0x179   : > { %v3355_v28 = vsub.f32 %v2220_v32, %v584_v20  ;;  %v535_v50 = vpop.xlane.xlu0 %534 }
 0x17a   : > { %v537_v4 = vpop.xlane.xlu1 %536  ;;  %v585_v5 = vmul.f32 0.0078125, %v535_v50  ;;  %v647_v51 = vmul.f32 %v3351_v27, %v3351_v27 }
 0x17b   : > { %v586_v52 = vmul.f32 0.0078125, %v537_v4  ;;  %v648_v32 = vmul.f32 %v3355_v28, %v3355_v28 }
 0x17c   : > { %v3363_v30 = vsub.f32 %v2223_v34, %v585_v5  ;;  %689 = vadd.xlane.f32.xlu1 %v646_v29  ;;  %691 = vadd.xlane.f32.xlu0 %v647_v51 }
 0x17d   : > { %v3367_v31 = vsub.f32 %v2224_v35, %v586_v52  ;;  %v539_v23 = vpop.xlane.xlu0 %538 }
 0x17e   : > { %v541_v53 = vpop.xlane.xlu1 %540  ;;  %v587_v9 = vmul.f32 0.0078125, %v539_v23  ;;  %v649_v34 = vmul.f32 %v3363_v30, %v3363_v30 }
 0x17f   : > { %v588_v57 = vmul.f32 0.0078125, %v541_v53  ;;  %v650_v58 = vmul.f32 %v3367_v31, %v3367_v31 }
 0x180   : > { %v3377_v33 = vsub.f32 %v2227_v37, %v587_v9  ;;  %693 = vadd.xlane.f32.xlu1 %v648_v32  ;;  %695 = vadd.xlane.f32.xlu0 %v649_v34 }
 0x181   : > { %v3381_v35 = vsub.f32 %v2228_v38, %v588_v57  ;;  %v543_v59 = vpop.xlane.xlu0 %542 }
 0x182   : > { %v545_v26 = vpop.xlane.xlu1 %544  ;;  %v589_v60 = vmul.f32 0.0078125, %v543_v59  ;;  %v651_v63 = vmul.f32 %v3377_v33, %v3377_v33 }
 0x183   : > { %v590_v2 = vmul.f32 0.0078125, %v545_v26  ;;  %v652_v38 = vmul.f32 %v3381_v35, %v3381_v35  ;;  %v3425_v26 = vshrl.u32 %v859_v45, 7 }
 0x184   : > { %v3389_v37 = vsub.f32 %v2231_v40, %v589_v60  ;;  %697 = vadd.xlane.f32.xlu1 %v650_v58  ;;  %699 = vadd.xlane.f32.xlu0 %v651_v63 }
 0x185   : > { %v3393_v36 = vsub.f32 %v2232_v41, %v590_v2  ;;  %v547_v12 = vpop.xlane.xlu0 %546 }
 0x186   : > { %v549_v3 = vpop.xlane.xlu1 %548  ;;  %v591_v48 = vmul.f32 0.0078125, %v547_v12  ;;  %v653_v20 = vmul.f32 %v3389_v37, %v3389_v37 }
 0x187   : > { %v592_v29 = vmul.f32 0.0078125, %v549_v3  ;;  %v654_v41 = vmul.f32 %v3393_v36, %v3393_v36 }
 0x188   : > { %v3401_v40 = vsub.f32 %v2235_v43, %v591_v48  ;;  %701 = vadd.xlane.f32.xlu1 %v652_v38  ;;  %703 = vadd.xlane.f32.xlu0 %v653_v20  ;;  %v3428_v48 = vsub.s32 0, %v3425_v26 }
 0x189   : > { %v3405_v39 = vsub.f32 %v2236_v44, %v592_v29  ;;  %v551_v49 = vpop.xlane.xlu0 %550 }
 0x18a   : > { %v553_v50 = vpop.xlane.xlu1 %552  ;;  %v593_v4 = vmul.f32 0.0078125, %v551_v49  ;;  %v655_v14 = vmul.f32 %v3401_v40, %v3401_v40 }
 0x18b   : > { %v594_v5 = vmul.f32 0.0078125, %v553_v50  ;;  %v656_v44 = vmul.f32 %v3405_v39, %v3405_v39 }
 0x18c   : > { %v3413_v43 = vsub.f32 %v2239_v46, %v593_v4  ;;  %705 = vadd.xlane.f32.xlu1 %v654_v41  ;;  %707 = vadd.xlane.f32.xlu0 %v655_v14  ;;  %v392_v41 = vld [vmem:[#allocation7] sm:$0xff] }
 0x18d   : > { %v3417_v42 = vsub.f32 %v2240_v47, %v594_v5 }
 0x18e   : > { %v657_v51 = vmul.f32 %v3413_v43, %v3413_v43 }
 0x18f   : > { %v658_v52 = vmul.f32 %v3417_v42, %v3417_v42 }
 0x190   : > { %709 = vadd.xlane.f32.xlu1 %v656_v44  ;;  %711 = vadd.xlane.f32.xlu0 %v657_v51  ;;  %v3432_v51 = vrot.slane %v392_v41, %v3428_v48 }
 0x194   : > { %713 = vadd.xlane.f32.xlu1 %v658_v52  ;;  %v3435_v52 = vsub.s32 1, %v3425_v26 }
 0x1e1   : > { %v668_v46 = vpop.xlane.xlu0 %667 }
 0x1e2   : > { %v731_v32 = vmul.f32 0.0078125, %v668_v46 }
 0x1e4   : > { %v763_v23 = vadd.f32 1e-06, %v731_v32 }
 0x1e5   : > { %v670_v53 = vpop.xlane.xlu1 %669  ;;  %v716_v9 = vpop.xlane.xlu0 %715 }
 0x1e6   : > { %2438 = vrsqrt.f32 %v763_v23  ;;  %v732_v47 = vmul.f32 0.0078125, %v670_v53  ;;  %v755_v34 = vmul.f32 0.0078125, %v716_v9 }
 0x1e8   : > { %v764_v57 = vadd.f32 1e-06, %v732_v47  ;;  %v787_v58 = vadd.f32 1e-06, %v755_v34 }
 0x1e9   : > { %v718_v18 = vpop.xlane.xlu1 %717  ;;  %v672_v59 = vpop.xlane.xlu0 %671 }
 0x1ea   : > { %2440 = vrsqrt.f32 %v764_v57  ;;  %v756_v60 = vmul.f32 0.0078125, %v718_v18  ;;  %v733_v63 = vmul.f32 0.0078125, %v672_v59 }
 0x1eb   : > { %2442 = vrsqrt.f32 %v787_v58  ;;  %v3440_v58 = vrot.slane %v392_v41, %v3435_v52 }
 0x1ec   : > { %v788_v2 = vadd.f32 1e-06, %v756_v60  ;;  %v765_v38 = vadd.f32 1e-06, %v733_v63 }
 0x1ed   : > { %v674_v12 = vpop.xlane.xlu1 %673  ;;  %v720_v3 = vpop.xlane.xlu0 %719 }
 0x1ee   : > { %2444 = vrsqrt.f32 %v788_v2  ;;  %v734_v20 = vmul.f32 0.0078125, %v674_v12  ;;  %v757_v29 = vmul.f32 0.0078125, %v720_v3 }
 0x1ef   : > { %2446 = vrsqrt.f32 %v765_v38 }
 0x1f0   : > { %v2439_v49 = vpop.eup %2438  ;;  %v766_v50 = vadd.f32 1e-06, %v734_v20  ;;  %v789_v4 = vadd.f32 1e-06, %v757_v29 }
 0x1f1   : > { %v722_v14 = vpop.xlane.xlu1 %721  ;;  %v676_v5 = vpop.xlane.xlu0 %675  ;;  %v827_v44 = vmul.f32 %v2439_v49, %v3233_v54 }
 0x1f2   : > { %2448 = vrsqrt.f32 %v766_v50  ;;  %v758_v46 = vmul.f32 0.0078125, %v722_v14  ;;  %v735_v32 = vmul.f32 0.0078125, %v676_v5 }
 0x1f3   : > { %2450 = vrsqrt.f32 %v789_v4  ;;  %v863_v54 = vmul.f32 %v3432_v51, %v827_v44 }
 0x1f4   : > { %v2441_v23 = vpop.eup %2440  ;;  %v790_v53 = vadd.f32 1e-06, %v758_v46  ;;  %v767_v9 = vadd.f32 1e-06, %v735_v32 }
 0x1f5   : > { %v2443_v45 = vpop.eup %2442  ;;  %v678_v47 = vpop.xlane.xlu1 %677  ;;  %v828_v57 = vmul.f32 %v2441_v23, %v3243_v61  ;;  %v899_v61 = vadd.f32 %v3440_v58, %v863_v54 }
 0x1f6   : > { %v724_v34 = vpop.xlane.xlu0 %723  ;;  %2452 = vrsqrt.f32 %v790_v53  ;;  %v736_v18 = vmul.f32 0.0078125, %v678_v47  ;;  %v851_v60 = vmul.f32 %v2443_v45, %v3237_v55 }
 0x1f7   : > { %v759_v59 = vmul.f32 0.0078125, %v724_v34  ;;  %2454 = vrsqrt.f32 %v767_v9  ;;  %v864_v63 = vmul.f32 %v3432_v51, %v828_v57 }
 0x1f8   : > { %v2445_v2 = vpop.eup %2444  ;;  %v768_v38 = vadd.f32 1e-06, %v736_v18  ;;  %v887_v50 = vmul.f32 %v3432_v51, %v851_v60 }
 0x1f9   : > { %v791_v12 = vadd.f32 1e-06, %v759_v59  ;;  %v2447_v3 = vpop.eup %2446  ;;  %v726_v20 = vpop.xlane.xlu1 %725  ;;  %v900_v49 = vadd.f32 %v3440_v58, %v864_v63  ;;  %v852_v41 = vmul.f32 %v2445_v2, %v3247_v62  ;;  %v2406_v59 = vld [vmem:[#allocation10] ss:$8 sps:$4 sm:$0xff]   ;;  %v2411_v63 = vld [vmem:[#allocation10 + $0x14] ss:$8 sps:$4 sm:$0xff]  }
 0x1fa   : > { %v680_v29 = vpop.xlane.xlu0 %679  ;;  %2456 = vrsqrt.f32 %v768_v38  ;;  %v760_v4 = vmul.f32 0.0078125, %v726_v20  ;;  %v829_v44 = vmul.f32 %v2447_v3, %v3255_v0  ;;  %v923_v62 = vadd.f32 %v3440_v58, %v887_v50 }
 0x1fb   : > { %v737_v55 = vmul.f32 0.0078125, %v680_v29  ;;  %2458 = vrsqrt.f32 %v791_v12  ;;  %v931_v14 = vpack.c.bf16 %v900_v49, %v899_v61  ;;  %v888_v5 = vmul.f32 %v3432_v51, %v852_v41 }
 0x1fc   : > { %v2449_v46 = vpop.eup %2448  ;;  %v792_v32 = vadd.f32 1e-06, %v760_v4  ;;  %v865_v57 = vmul.f32 %v3432_v51, %v829_v44 }
 0x1fd   : > { %v769_v23 = vadd.f32 1e-06, %v737_v55  ;;  %v2451_v53 = vpop.eup %2450  ;;  %v682_v9 = vpop.xlane.xlu1 %681  ;;  %1079 = vmatmul.mubr.bf16.vlgmr.msra.gmra.mrb[0].mxu0 %v931_v14  ;;  %v924_v47 = vadd.f32 %v3440_v58, %v888_v5  ;;  %v830_v34 = vmul.f32 %v2449_v46, %v3259_v1  ;;  %v2409_v55 = vld [vmem:[#allocation10 + $0x10] ss:$8 sps:$4 sm:$0xff]   ;;  %v2414_v5 = vld [vmem:[#allocation10 + $0x24] ss:$8 sps:$4 sm:$0xff]  }
 0x1fe   : > { %v728_v45 = vpop.xlane.xlu0 %727  ;;  %2460 = vrsqrt.f32 %v792_v32  ;;  %v738_v54 = vmul.f32 0.0078125, %v682_v9  ;;  %1088 = vmatprep.mubr.bf16.mxu0 %v2767_v56  ;;  %v853_v0 = vmul.f32 %v2451_v53, %v3267_v8  ;;  %v901_v61 = vadd.f32 %v3440_v58, %v865_v57 }
 0x1ff   : > { %v761_v18 = vmul.f32 0.0078125, %v728_v45  ;;  %2462 = vrsqrt.f32 %v769_v23  ;;  %v943_v60 = vpack.c.bf16 %v924_v47, %v923_v62  ;;  %v866_v2 = vmul.f32 %v3432_v51, %v830_v34 }
 0x200   : > { %v2453_v38 = vpop.eup %2452  ;;  %v770_v12 = vadd.f32 1e-06, %v738_v54  ;;  %v889_v8 = vmul.f32 %v3432_v51, %v853_v0 }
 0x201   : > { %v793_v3 = vadd.f32 1e-06, %v761_v18  ;;  %v2455_v20 = vpop.eup %2454  ;;  %v730_v1 = vpop.xlane.xlu1 %729  ;;  %1199 = vmatmul.mubr.bf16.vlgmr.msra.gmra.mrb[0].mxu1 %v943_v60  ;;  %v902_v49 = vadd.f32 %v3440_v58, %v866_v2  ;;  %v854_v41 = vmul.f32 %v2453_v38, %v3271_v6  ;;  %v2417_v60 = vld [vmem:[#allocation10 + $0x34] ss:$8 sps:$4 sm:$0xff]  }
 0x202   : > { %v684_v29 = vpop.xlane.xlu0 %683  ;;  %2464 = vrsqrt.f32 %v770_v12  ;;  %v762_v50 = vmul.f32 0.0078125, %v730_v1  ;;  %1386 = vmatpush1.bf16.msra.mxu1 %v2406_v59  ;;  %1208 = vmatprep.mubr.bf16.mxu1 %v2767_v56  ;;  %v831_v46 = vmul.f32 %v2455_v20, %v3279_v11  ;;  %v925_v62 = vadd.f32 %v3440_v58, %v889_v8  ;;  %v2412_v11 = vld [vmem:[#allocation10 + $0x20] ss:$8 sps:$4 sm:$0xff]  }
 0x203   : > { %v739_v4 = vmul.f32 0.0078125, %v684_v29  ;;  %2466 = vrsqrt.f32 %v793_v3  ;;  %1387 = vmatprep.subr.bf16.mxu1 %v2411_v63  ;;  %v932_v14 = vpack.c.bf16 %v902_v49, %v901_v61  ;;  %v890_v44 = vmul.f32 %v3432_v51, %v854_v41  ;;  %v2415_v41 = vld [vmem:[#allocation10 + $0x30] ss:$8 sps:$4 sm:$0xff]  }
 0x204   : > { %v2457_v32 = vpop.eup %2456  ;;  %v794_v23 = vadd.f32 1e-06, %v762_v50  ;;  %v867_v57 = vmul.f32 %v3432_v51, %v831_v46  ;;  %v2420_v50 = vld [vmem:[#allocation10 + $0x44] ss:$8 sps:$4 sm:$0xff]  }
 0x205   : > { %v771_v6 = vadd.f32 1e-06, %v739_v4  ;;  %v2459_v53 = vpop.eup %2458  ;;  %v686_v9 = vpop.xlane.xlu1 %685  ;;  %1089 = vmatmul.mubr.bf16.gmra.mrb[4].mxu0 %v932_v14  ;;  %v926_v47 = vadd.f32 %v3440_v58, %v890_v44  ;;  %v832_v34 = vmul.f32 %v2457_v32, %v3283_v7 }
 0x206   : > { %v688_v45 = vpop.xlane.xlu0 %687  ;;  %2468 = vrsqrt.f32 %v794_v23  ;;  %v740_v54 = vmul.f32 0.0078125, %v686_v9  ;;  %1388 = vmatpush1.bf16.msra.mxu1 %v2409_v55  ;;  %1098 = vmatprep.mubr.bf16.mxu0 %v2767_v56  ;;  %v855_v59 = vmul.f32 %v2459_v53, %v3291_v10  ;;  %v903_v1 = vadd.f32 %v3440_v58, %v867_v57 }
 0x207   : > { %v741_v18 = vmul.f32 0.0078125, %v688_v45  ;;  %2470 = vrsqrt.f32 %v771_v6  ;;  %1389 = vmatprep.subr.bf16.mxu1 %v2414_v5  ;;  %v944_v0 = vpack.c.bf16 %v926_v47, %v925_v62  ;;  %v868_v63 = vmul.f32 %v3432_v51, %v832_v34  ;;  %v2423_v34 = vld [vmem:[#allocation10 + $0x54] ss:$8 sps:$4 sm:$0xff]  }
 0x208   : > { %v2461_v2 = vpop.eup %2460  ;;  %v772_v38 = vadd.f32 1e-06, %v740_v54  ;;  %v891_v10 = vmul.f32 %v3432_v51, %v855_v59 }
 0x209   : > { %v773_v7 = vadd.f32 1e-06, %v741_v18  ;;  %v2463_v12 = vpop.eup %2462  ;;  %v690_v3 = vpop.xlane.xlu1 %689  ;;  %1209 = vmatmul.mubr.bf16.gmra.mrb[4].mxu1 %v944_v0  ;;  %v904_v29 = vadd.f32 %v3440_v58, %v868_v63  ;;  %v856_v61 = vmul.f32 %v2461_v2, %v3295_v15 }
 0x20a   : > { %v692_v20 = vpop.xlane.xlu0 %691  ;;  %2472 = vrsqrt.f32 %v772_v38  ;;  %v742_v49 = vmul.f32 0.0078125, %v690_v3  ;;  %1390 = vmatpush1.bf16.msra.mxu1 %v2412_v11  ;;  %1218 = vmatprep.mubr.bf16.mxu1 %v2767_v56  ;;  %v833_v55 = vmul.f32 %v2463_v12, %v3303_v13  ;;  %v927_v23 = vadd.f32 %v3440_v58, %v891_v10  ;;  %v2418_v13 = vld [vmem:[#allocation10 + $0x40] ss:$8 sps:$4 sm:$0xff]   ;;  %v2421_v12 = vld [vmem:[#allocation10 + $0x50] ss:$8 sps:$4 sm:$0xff]  }
 0x20b   : > { %1391 = vmatprep.subr.bf16.mxu1 %v2417_v60  ;;  %v933_v8 = vpack.c.bf16 %v904_v29, %v903_v1  ;;  %v892_v4 = vmul.f32 %v3432_v51, %v856_v61  ;;  %2474 = vrsqrt.f32 %v773_v7  ;;  %v743_v44 = vmul.f32 0.0078125, %v692_v20  ;;  %v2426_v20 = vld [vmem:[#allocation10 + $0x64] ss:$8 sps:$4 sm:$0xff]  }
 0x20c   : > { %v2465_v14 = vpop.eup %2464  ;;  %v774_v5 = vadd.f32 1e-06, %v742_v49  ;;  %v869_v9 = vmul.f32 %v3432_v51, %v833_v55 }
 0x20d   : > { %v2467_v15 = vpop.eup %2466  ;;  %v694_v46 = vpop.xlane.xlu1 %693  ;;  %1099 = vmatmul.mubr.bf16.gmra.mrb[8].mxu0 %v933_v8  ;;  %v928_v6 = vadd.f32 %v3440_v58, %v892_v4  ;;  %v834_v53 = vmul.f32 %v2465_v14, %v3307_v17  ;;  %v775_v18 = vadd.f32 1e-06, %v743_v44 }
 0x20e   : > { %v696_v32 = vpop.xlane.xlu0 %695  ;;  %2476 = vrsqrt.f32 %v774_v5  ;;  %v744_v45 = vmul.f32 0.0078125, %v694_v46  ;;  %1392 = vmatpush1.bf16.msra.mxu1 %v2415_v41  ;;  %1108 = vmatprep.mubr.bf16.mxu0 %v2767_v56  ;;  %v857_v62 = vmul.f32 %v2467_v15, %v3315_v16  ;;  %v905_v60 = vadd.f32 %v3440_v58, %v869_v9 }
 0x20f   : > { %1393 = vmatprep.subr.bf16.mxu1 %v2420_v50  ;;  %v945_v47 = vpack.c.bf16 %v928_v6, %v927_v23  ;;  %v870_v57 = vmul.f32 %v3432_v51, %v834_v53  ;;  %v745_v10 = vmul.f32 0.0078125, %v696_v32  ;;  %v2429_v32 = vld [vmem:[#allocation10 + $0x74] ss:$8 sps:$4 sm:$0xff]  }
 0x210   : > { %v2469_v54 = vpop.eup %2468  ;;  %v776_v11 = vadd.f32 1e-06, %v744_v45  ;;  %v893_v16 = vmul.f32 %v3432_v51, %v857_v62 }
 0x211   : > { %v2471_v59 = vpop.eup %2470  ;;  %v698_v17 = vpop.xlane.xlu1 %697  ;;  %1219 = vmatmul.mubr.bf16.gmra.mrb[8].mxu1 %v945_v47  ;;  %v906_v63 = vadd.f32 %v3440_v58, %v870_v57  ;;  %v858_v2 = vmul.f32 %v2469_v54, %v3319_v19  ;;  %v777_v53 = vadd.f32 1e-06, %v745_v10 }
 0x212   : > { %v700_v0 = vpop.xlane.xlu0 %699  ;;  %2478 = vrsqrt.f32 %v776_v11  ;;  %v746_v38 = vmul.f32 0.0078125, %v698_v17  ;;  %1394 = vmatpush1.bf16.msra.mxu1 %v2418_v13  ;;  %1228 = vmatprep.mubr.bf16.mxu1 %v2767_v56  ;;  %v835_v29 = vmul.f32 %v2471_v59, %v3327_v21  ;;  %v929_v50 = vadd.f32 %v3440_v58, %v893_v16  ;;  %v2424_v21 = vld [vmem:[#allocation10 + $0x60] ss:$8 sps:$4 sm:$0xff]   ;;  %v2427_v11 = vld [vmem:[#allocation10 + $0x70] ss:$8 sps:$4 sm:$0xff]  }
 0x213   : > { %v747_v7 = vmul.f32 0.0078125, %v700_v0  ;;  %1395 = vmatprep.subr.bf16.mxu1 %v2423_v34  ;;  %v934_v3 = vpack.c.bf16 %v906_v63, %v905_v60  ;;  %v894_v1 = vmul.f32 %v3432_v51, %v858_v2  ;;  %2480 = vrsqrt.f32 %v775_v18 }
 0x214   : > { %v2473_v61 = vpop.eup %2472  ;;  %v778_v19 = vadd.f32 1e-06, %v746_v38  ;;  %v871_v14 = vmul.f32 %v3432_v51, %v835_v29 }
 0x215   : > { %v779_v49 = vadd.f32 1e-06, %v747_v7  ;;  %v702_v41 = vpop.xlane.xlu1 %701  ;;  %1109 = vmatmul.mubr.bf16.gmra.mrb[12].mxu0 %v934_v3  ;;  %v930_v4 = vadd.f32 %v3440_v58, %v894_v1  ;;  %v836_v55 = vmul.f32 %v2473_v61, %v3331_v22  ;;  %v2475_v5 = vpop.eup %2474 }
 0x216   : > { %v704_v8 = vpop.xlane.xlu0 %703  ;;  %v748_v44 = vmul.f32 0.0078125, %v702_v41  ;;  %1396 = vmatpush1.bf16.msra.mxu1 %v2421_v12  ;;  %1118 = vmatprep.mubr.bf16.mxu0 %v2767_v56  ;;  %v907_v62 = vadd.f32 %v3440_v58, %v871_v14  ;;  %v837_v34 = vmul.f32 %v2475_v5, %v3339_v24 }
 0x217   : > { %v749_v15 = vmul.f32 0.0078125, %v704_v8  ;;  %2482 = vrsqrt.f32 %v779_v49  ;;  %1397 = vmatprep.subr.bf16.mxu1 %v2426_v20  ;;  %v946_v46 = vpack.c.bf16 %v930_v4, %v929_v50  ;;  %v872_v23 = vmul.f32 %v3432_v51, %v836_v55 }
 0x218   : > { %v2477_v6 = vpop.eup %2476  ;;  %2484 = vrsqrt.f32 %v778_v19  ;;  %v780_v9 = vadd.f32 1e-06, %v748_v44  ;;  %v873_v16 = vmul.f32 %v3432_v51, %v837_v34 }
 0x219   : > { %v781_v22 = vadd.f32 1e-06, %v749_v15  ;;  %v706_v45 = vpop.xlane.xlu1 %705  ;;  %1229 = vmatmul.mubr.bf16.gmra.mrb[12].mxu1 %v946_v46  ;;  %v908_v47 = vadd.f32 %v3440_v58, %v872_v23  ;;  %v838_v57 = vmul.f32 %v2477_v6, %v3343_v25  ;;  %v2430_v25 = vld [vmem:[%s3073_s8] sm:$0xff]   ;;  %v2431_v15 = vld [vmem:[%s3073_s8 + $0x8] sm:$0xff]  }
 0x21a   : > { %v708_v13 = vpop.xlane.xlu0 %707  ;;  %2486 = vrsqrt.f32 %v780_v9  ;;  %v750_v54 = vmul.f32 0.0078125, %v706_v45  ;;  %1398 = vmatpush1.bf16.msra.mxu1 %v2424_v21  ;;  %1417 = vmatprep.mubr.bf16.mxu1 %v2767_v56  ;;  %v909_v19 = vadd.f32 %v3440_v58, %v873_v16 }
 0x21b   : > { %v751_v18 = vmul.f32 0.0078125, %v708_v13  ;;  %2488 = vrsqrt.f32 %v781_v22  ;;  %1399 = vmatprep.subr.bf16.mxu1 %v2429_v32  ;;  %v935_v59 = vpack.c.bf16 %v908_v47, %v907_v62  ;;  %v874_v17 = vmul.f32 %v3432_v51, %v838_v57 }
 0x21c   : > { %v2479_v0 = vpop.eup %2478  ;;  %2490 = vrsqrt.f32 %v777_v53  ;;  %v782_v60 = vadd.f32 1e-06, %v750_v54 }
 0x21d   : > { %v783_v63 = vadd.f32 1e-06, %v751_v18  ;;  %v710_v24 = vpop.xlane.xlu1 %709  ;;  %1119 = vmatmul.mubr.bf16.gmra.mrb[16].mxu0 %v935_v59  ;;  %v2481_v38 = vpop.eup %2480  ;;  %v910_v3 = vadd.f32 %v3440_v58, %v874_v17  ;;  %v840_v20 = vmul.f32 %v2479_v0, %v3355_v28  ;;  %v2432_v17 = vld [vmem:[%s3073_s8 + $0x10] sm:$0xff]  }
 0x21e   : > { %v712_v2 = vpop.xlane.xlu0 %711  ;;  %2492 = vrsqrt.f32 %v782_v60  ;;  %v752_v7 = vmul.f32 0.0078125, %v710_v24  ;;  %1400 = vmatpush1.bf16.msra.mxu1 %v2427_v11  ;;  %1128 = vmatprep.mubr.bf16.mxu0 %v2767_v56  ;;  %v839_v49 = vmul.f32 %v2481_v38, %v3351_v27 }
 0x21f   : > { %v753_v12 = vmul.f32 0.0078125, %v712_v2  ;;  %2494 = vrsqrt.f32 %v783_v63  ;;  %v936_v4 = vpack.c.bf16 %v910_v3, %v909_v19  ;;  %v876_v28 = vmul.f32 %v3432_v51, %v840_v20  ;;  %v2437_v19 = vld [vmem:[%s3073_s8 + $0x38] sm:$0xff]  }
 0x220   : > { %v784_v1 = vadd.f32 1e-06, %v752_v7  ;;  %v875_v27 = vmul.f32 %v3432_v51, %v839_v49  ;;  %v3568_v49 = vld [vmem:[%s3838_s3] sm:$0xf] }
 0x221   : > { %v785_v29 = vadd.f32 1e-06, %v753_v12  ;;  %v2483_v61 = vpop.eup %2482  ;;  %v714_v10 = vpop.xlane.xlu1 %713  ;;  %1418 = vmatmul.mubr.bf16.vlgmr.msra.gmra.mrb[16].mxu1 %v2430_v25  ;;  %v912_v23 = vadd.f32 %v3440_v58, %v876_v28 }
 0x222   : > { %v2485_v41 = vpop.eup %2484  ;;  %2496 = vrsqrt.f32 %v784_v1  ;;  %v754_v8 = vmul.f32 0.0078125, %v714_v10  ;;  %1427 = vmatprep.mubr.bf16.mxu1 %v2767_v56  ;;  %v843_v50 = vmul.f32 %v2483_v61, %v3377_v33 }
 0x223   : > { %2498 = vrsqrt.f32 %v785_v29  ;;  %v842_v6 = vmul.f32 %v2485_v41, %v3367_v31  ;;  %v2433_v29 = vld [vmem:[%s3073_s8 + $0x18] sm:$0xff]   ;;  %v954_v41 = vsub.s32 2, %v3425_v26 }
 0x224   : > { %v2487_v55 = vpop.eup %2486  ;;  %v786_v14 = vadd.f32 1e-06, %v754_v8  ;;  %v879_v5 = vmul.f32 %v3432_v51, %v843_v50  ;;  %v951_v8 = vrot.slane %v3568_v49, %v3428_v48 }
 0x225   : > { %v2489_v44 = vpop.eup %2488  ;;  %1129 = vmatmul.mubr.bf16.gmra.mrb[20].mxu0 %v936_v4  ;;  %v844_v21 = vmul.f32 %v2487_v55, %v3381_v35  ;;  %v911_v35 = vadd.f32 %v3440_v58, %v875_v27  ;;  %v878_v57 = vmul.f32 %v3432_v51, %v842_v6  ;;  %v955_v50 = vrot.slane %v3568_v49, %v954_v41 }
 0x226   : > { %v2491_v46 = vpop.eup %2490  ;;  %2500 = vrsqrt.f32 %v786_v14  ;;  %1138 = vmatprep.mubr.bf16.mxu0 %v2767_v56  ;;  %v915_v33 = vadd.f32 %v3440_v58, %v879_v5  ;;  %v845_v32 = vmul.f32 %v2489_v44, %v3389_v37  ;;  %v3575_v4 = vrot.slane %v951_v8, %v3428_v48 }
 0x227   : > { %v880_v53 = vmul.f32 %v3432_v51, %v844_v21  ;;  %v841_v13 = vmul.f32 %v2491_v46, %v3363_v30  ;;  %v937_v34 = vpack.c.bf16 %v912_v23, %v911_v35  ;;  %v914_v24 = vadd.f32 %v3440_v58, %v878_v57 }
 0x228   : > { %v2493_v9 = vpop.eup %2492  ;;  %v881_v22 = vmul.f32 %v3432_v51, %v845_v32 }
 0x229   : > { %v2495_v45 = vpop.eup %2494  ;;  %1428 = vmatmul.mubr.bf16.gmra.mrb[20].mxu1 %v2431_v15  ;;  %v916_v62 = vadd.f32 %v3440_v58, %v880_v53  ;;  %v846_v37 = vmul.f32 %v2493_v9, %v3393_v36  ;;  %v877_v36 = vmul.f32 %v3432_v51, %v841_v13 }
 0x22a   : > { %1437 = vmatprep.mubr.bf16.mxu1 %v2767_v56  ;;  %v917_v31 = vadd.f32 %v3440_v58, %v881_v22  ;;  %v847_v47 = vmul.f32 %v2495_v45, %v3401_v40 }
 0x22b   : > { %v939_v54 = vpack.c.bf16 %v916_v62, %v915_v33  ;;  %v882_v18 = vmul.f32 %v3432_v51, %v846_v37  ;;  %v913_v7 = vadd.f32 %v3440_v58, %v877_v36 }
 0x22c   : > { %v2497_v11 = vpop.eup %2496  ;;  %v883_v59 = vmul.f32 %v3432_v51, %v847_v47 }
 0x22d   : > { %v2499_v30 = vpop.eup %2498  ;;  %1139 = vmatmul.mubr.bf16.gmra.mrb[24].mxu0 %v937_v34  ;;  %v918_v0 = vadd.f32 %v3440_v58, %v882_v18  ;;  %v848_v60 = vmul.f32 %v2497_v11, %v3405_v39  ;;  %v938_v3 = vpack.c.bf16 %v914_v24, %v913_v7 }
 0x22e   : > { %1148 = vmatprep.mubr.bf16.mxu0 %v2767_v56  ;;  %v919_v40 = vadd.f32 %v3440_v58, %v883_v59  ;;  %v849_v63 = vmul.f32 %v2499_v30, %v3413_v43 }
 0x22f   : > { %v940_v2 = vpack.c.bf16 %v918_v0, %v917_v31  ;;  %v884_v25 = vmul.f32 %v3432_v51, %v848_v60 }
 0x230   : > { %v2501_v16 = vpop.eup %2500  ;;  %v885_v38 = vmul.f32 %v3432_v51, %v849_v63 }
 0x231   : > { %1438 = vmatmul.mubr.bf16.gmra.mrb[24].mxu1 %v2432_v17  ;;  %v920_v39 = vadd.f32 %v3440_v58, %v884_v25  ;;  %v850_v12 = vmul.f32 %v2501_v16, %v3417_v42  ;;  %v2434_v42 = vld [vmem:[%s3073_s8 + $0x20] sm:$0xff]  }
 0x232   : > { %1447 = vmatprep.mubr.bf16.mxu1 %v2767_v56  ;;  %v921_v43 = vadd.f32 %v3440_v58, %v885_v38 }
 0x233   : > { %v941_v20 = vpack.c.bf16 %v920_v39, %v919_v40  ;;  %v886_v1 = vmul.f32 %v3432_v51, %v850_v12  ;;  %v2435_v51 = vld [vmem:[%s3073_s8 + $0x28] sm:$0xff]  }
 0x235   : > { %1149 = vmatmul.mubr.bf16.gmra.mrb[28].mxu0 %v938_v3  ;;  %v922_v61 = vadd.f32 %v3440_v58, %v886_v1  ;;  %v2436_v58 = vld [vmem:[%s3073_s8 + $0x30] sm:$0xff]  }
 0x236   : > { %1158 = vmatprep.mubr.bf16.mxu0 %v2767_v56 }
 0x237   : > { %v942_v10 = vpack.c.bf16 %v922_v61, %v921_v43 }
 0x239   : > { %1448 = vmatmul.mubr.bf16.gmra.mrb[28].mxu1 %v2433_v29 }
 0x23a   : > { %1457 = vmatprep.mubr.bf16.mxu1 %v2767_v56 }
 0x23d   : > { %1159 = vmatmul.mubr.bf16.gmra.mrb[32].mxu0 %v939_v54 }
 0x23e   : > { %1168 = vmatprep.mubr.bf16.mxu0 %v2767_v56 }
 0x241   : > { %1458 = vmatmul.mubr.bf16.gmra.mrb[32].mxu1 %v2434_v42 }
 0x242   : > { %1467 = vmatprep.mubr.bf16.mxu1 %v2767_v56 }
 0x245   : > { %1169 = vmatmul.mubr.bf16.gmra.mrb[36].mxu0 %v940_v2 }
 0x246   : > { %1178 = vmatprep.mubr.bf16.mxu0 %v2767_v56 }
 0x249   : > { %1468 = vmatmul.mubr.bf16.gmra.mrb[36].mxu1 %v2435_v51 }
 0x24a   : > { %1477 = vmatprep.mubr.bf16.mxu1 %v2767_v56 }
 0x24d   : > { %1179 = vmatmul.mubr.bf16.gmra.mrb[40].mxu0 %v941_v20 }
 0x24e   : > { %1188 = vmatprep.mubr.bf16.mxu0 %v2767_v56 }
 0x251   : > { %1478 = vmatmul.mubr.bf16.gmra.mrb[40].mxu1 %v2436_v58 }
 0x252   : > { %1487 = vmatprep.mubr.bf16.mxu1 %v2767_v56  ;;  %v3578_v56 = vrot.slane %v955_v50, %v3428_v48 }
 0x255   : > { %1189 = vmatmul.mubr.bf16.gmra.mrb[44].mxu0 %v942_v10 }
 0x259   : > { %1488 = vmatmul.mubr.bf16.gmra.mrb[44].mxu1 %v2437_v19 }
 0x2d0   : > { %v1080_v28 = vpop.f32.mrb[0].mxu0 }
 0x2d1   : > { %v1081_v55 = vadd.f32 %v1080_v28, %v3575_v4  ;;  %v1082_v14 = vpop.f32.mrb[1].mxu0 }
 0x2d2   : > { %v1083_v5 = vadd.f32 %v1082_v14, %v3578_v56  ;;  %v1084_v44 = vpop.f32.mrb[2].mxu0 }
 0x2d3   : > { %v1085_v15 = vadd.f32 %v1084_v44, %v3575_v4  ;;  %v1086_v27 = vpop.f32.mrb[3].mxu0 }
 0x2d4   : > { %v2143_v21 = vpack.c.bf16 %v1083_v5, %v1081_v55  ;;  %v1087_v46 = vadd.f32 %v1086_v27, %v3578_v56  ;;  %v1200_v33 = vpop.f32.mrb[0].mxu1  ;;  %v1245_v27 = vsub.s32 3, %v3425_v26 }
 0x2d5   : > { %v1201_v32 = vadd.f32 %v1200_v33, %v3575_v4  ;;  %v1202_v23 = vpop.f32.mrb[1].mxu1 }
 0x2d6   : > { %1690 = vst [vmem:[%s3586_s23] sm:$0xff] %v2143_v21  ;;  %v2144_v48 = vpack.c.bf16 %v1087_v46, %v1085_v15  ;;  %v1203_v6 = vadd.f32 %v1202_v23, %v3578_v56  ;;  %v1204_v53 = vpop.f32.mrb[2].mxu1 }
 0x2d7   : > { %v1205_v9 = vadd.f32 %v1204_v53, %v3575_v4  ;;  %v1206_v22 = vpop.f32.mrb[3].mxu1  ;;  %v1242_v53 = vrot.slane %v3568_v49, %v3435_v52 }
 0x2d8   : > { %1691 = vst [vmem:[%s3586_s23 + $0x8] sm:$0xff] %v2144_v48  ;;  %v2167_v45 = vpack.c.bf16 %v1203_v6, %v1201_v32  ;;  %v1207_v35 = vadd.f32 %v1206_v22, %v3578_v56  ;;  %v1090_v13 = vpop.f32.mrb[4].mxu0 }
 0x2d9   : > { %v1091_v62 = vadd.f32 %v1090_v13, %v3575_v4  ;;  %v1092_v37 = vpop.f32.mrb[5].mxu0 }
 0x2da   : > { %1714 = vst [vmem:[%s3586_s23 + $0xc0] sm:$0xff] %v2167_v45  ;;  %v2168_v31 = vpack.c.bf16 %v1207_v35, %v1205_v9  ;;  %v1093_v47 = vadd.f32 %v1092_v37, %v3578_v56  ;;  %v1094_v34 = vpop.f32.mrb[6].mxu0  ;;  %v1246_v45 = vrot.slane %v3568_v49, %v1245_v27 }
 0x2db   : > { %v1095_v57 = vadd.f32 %v1094_v34, %v3575_v4  ;;  %v1096_v54 = vpop.f32.mrb[7].mxu0 }
 0x2dc   : > { %1715 = vst [vmem:[%s3586_s23 + $0xc8] sm:$0xff] %v2168_v31  ;;  %v2145_v18 = vpack.c.bf16 %v1093_v47, %v1091_v62  ;;  %v1097_v11 = vadd.f32 %v1096_v54, %v3578_v56  ;;  %v1210_v59 = vpop.f32.mrb[4].mxu1 }
 0x2dd   : > { %v1211_v30 = vadd.f32 %v1210_v59, %v3575_v4  ;;  %v1212_v17 = vpop.f32.mrb[5].mxu1 }
 0x2de   : > { %1692 = vst [vmem:[%s3586_s23 + $0x10] sm:$0xff] %v2145_v18  ;;  %v2146_v36 = vpack.c.bf16 %v1097_v11, %v1095_v57  ;;  %v1213_v0 = vadd.f32 %v1212_v17, %v3578_v56  ;;  %v1214_v60 = vpop.f32.mrb[6].mxu1  ;;  %v3635_v57 = vrot.slane %v1242_v53, %v3435_v52  ;;  %v3640_v11 = vrot.slane %v1246_v45, %v3435_v52 }
 0x2df   : > { %v1215_v40 = vadd.f32 %v1214_v60, %v3575_v4  ;;  %v1216_v63 = vpop.f32.mrb[7].mxu1 }
 0x2e0   : > { %1693 = vst [vmem:[%s3586_s23 + $0x18] sm:$0xff] %v2146_v36  ;;  %v2169_v24 = vpack.c.bf16 %v1213_v0, %v1211_v30  ;;  %v1217_v2 = vadd.f32 %v1216_v63, %v3578_v56  ;;  %v1100_v25 = vpop.f32.mrb[8].mxu0 }
 0x2e1   : > { %v1101_v16 = vadd.f32 %v1100_v25, %v3575_v4  ;;  %v1102_v38 = vpop.f32.mrb[9].mxu0 }
 0x2e2   : > { %1716 = vst [vmem:[%s3586_s23 + $0xd0] sm:$0xff] %v2169_v24  ;;  %v2170_v7 = vpack.c.bf16 %v1217_v2, %v1215_v40  ;;  %v1103_v39 = vadd.f32 %v1102_v38, %v3578_v56  ;;  %v1104_v12 = vpop.f32.mrb[10].mxu0 }
 0x2e3   : > { %v1105_v43 = vadd.f32 %v1104_v12, %v3575_v4  ;;  %v1106_v3 = vpop.f32.mrb[11].mxu0 }
 0x2e4   : > { %1717 = vst [vmem:[%s3586_s23 + $0xd8] sm:$0xff] %v2170_v7  ;;  %v2147_v20 = vpack.c.bf16 %v1103_v39, %v1101_v16  ;;  %v1107_v1 = vadd.f32 %v1106_v3, %v3578_v56  ;;  %v1220_v29 = vpop.f32.mrb[8].mxu1 }
 0x2e5   : > { %v1221_v61 = vadd.f32 %v1220_v29, %v3575_v4  ;;  %v1222_v10 = vpop.f32.mrb[9].mxu1 }
 0x2e6   : > { %1694 = vst [vmem:[%s3586_s23 + $0x20] sm:$0xff] %v2147_v20  ;;  %v2148_v42 = vpack.c.bf16 %v1107_v1, %v1105_v43  ;;  %v1223_v51 = vadd.f32 %v1222_v10, %v3578_v56  ;;  %v1224_v58 = vpop.f32.mrb[10].mxu1 }
 0x2e7   : > { %v1225_v19 = vadd.f32 %v1224_v58, %v3575_v4  ;;  %v1226_v41 = vpop.f32.mrb[11].mxu1 }
 0x2e8   : > { %1695 = vst [vmem:[%s3586_s23 + $0x28] sm:$0xff] %v2148_v42  ;;  %v2171_v8 = vpack.c.bf16 %v1223_v51, %v1221_v61  ;;  %v1227_v50 = vadd.f32 %v1226_v41, %v3578_v56  ;;  %v1110_v28 = vpop.f32.mrb[12].mxu0 }
 0x2e9   : > { %v1111_v55 = vadd.f32 %v1110_v28, %v3575_v4  ;;  %v1112_v14 = vpop.f32.mrb[13].mxu0 }
 0x2ea   : > { %1718 = vst [vmem:[%s3586_s23 + $0xe0] sm:$0xff] %v2171_v8  ;;  %v2172_v5 = vpack.c.bf16 %v1227_v50, %v1225_v19  ;;  %v1113_v44 = vadd.f32 %v1112_v14, %v3578_v56  ;;  %v1114_v15 = vpop.f32.mrb[14].mxu0 }
 0x2eb   : > { %v1115_v21 = vadd.f32 %v1114_v15, %v3575_v4  ;;  %v1116_v46 = vpop.f32.mrb[15].mxu0 }
 0x2ec   : > { %1719 = vst [vmem:[%s3586_s23 + $0xe8] sm:$0xff] %v2172_v5  ;;  %v2149_v33 = vpack.c.bf16 %v1113_v44, %v1111_v55  ;;  %v1117_v32 = vadd.f32 %v1116_v46, %v3578_v56  ;;  %v1230_v23 = vpop.f32.mrb[12].mxu1 }
 0x2ed   : > { %v1231_v48 = vadd.f32 %v1230_v23, %v3575_v4  ;;  %v1232_v6 = vpop.f32.mrb[13].mxu1 }
 0x2ee   : > { %1696 = vst [vmem:[%s3586_s23 + $0x30] sm:$0xff] %v2149_v33  ;;  %v2150_v9 = vpack.c.bf16 %v1117_v32, %v1115_v21  ;;  %v1233_v26 = vadd.f32 %v1232_v6, %v3578_v56  ;;  %v1234_v22 = vpop.f32.mrb[14].mxu1 }
 0x2ef   : > { %v1235_v35 = vadd.f32 %v1234_v22, %v3575_v4  ;;  %v1236_v13 = vpop.f32.mrb[15].mxu1 }
 0x2f0   : > { %1697 = vst [vmem:[%s3586_s23 + $0x38] sm:$0xff] %v2150_v9  ;;  %v2173_v62 = vpack.c.bf16 %v1233_v26, %v1231_v48  ;;  %v1237_v37 = vadd.f32 %v1236_v13, %v3578_v56  ;;  %v1120_v31 = vpop.f32.mrb[16].mxu0 }
 0x2f1   : > { %v1121_v47 = vadd.f32 %v1120_v31, %v3575_v4  ;;  %v1122_v34 = vpop.f32.mrb[17].mxu0 }
 0x2f2   : > { %1720 = vst [vmem:[%s3586_s23 + $0xf0] sm:$0xff] %v2173_v62  ;;  %v2174_v54 = vpack.c.bf16 %v1237_v37, %v1235_v35  ;;  %v1123_v49 = vadd.f32 %v1122_v34, %v3578_v56  ;;  %v1124_v18 = vpop.f32.mrb[18].mxu0 }
 0x2f3   : > { %v1125_v59 = vadd.f32 %v1124_v18, %v3575_v4  ;;  %v1126_v30 = vpop.f32.mrb[19].mxu0 }
 0x2f4   : > { %1721 = vst [vmem:[%s3586_s23 + $0xf8] sm:$0xff] %v2174_v54  ;;  %v2151_v17 = vpack.c.bf16 %v1123_v49, %v1121_v47  ;;  %v1127_v36 = vadd.f32 %v1126_v30, %v3578_v56  ;;  %v1419_v0 = vpop.f32.mrb[16].mxu1 }
 0x2f5   : > { %v1420_v60 = vadd.f32 %v1419_v0, %v3635_v57  ;;  %v1421_v40 = vpop.f32.mrb[17].mxu1 }
 0x2f6   : > { %1698 = vst [vmem:[%s3586_s23 + $0x40] sm:$0xff] %v2151_v17  ;;  %v2152_v63 = vpack.c.bf16 %v1127_v36, %v1125_v59  ;;  %v1422_v24 = vadd.f32 %v1421_v40, %v3640_v11  ;;  %v1423_v2 = vpop.f32.mrb[18].mxu1 }
 0x2f7   : > { %v1424_v52 = vadd.f32 %v1423_v2, %v3635_v57  ;;  %v1425_v25 = vpop.f32.mrb[19].mxu1 }
 0x2f8   : > { %1699 = vst [vmem:[%s3586_s23 + $0x48] sm:$0xff] %v2152_v63  ;;  %v2175_v16 = vpack.c.bf16 %v1422_v24, %v1420_v60  ;;  %v1426_v38 = vadd.f32 %v1425_v25, %v3640_v11  ;;  %v1130_v7 = vpop.f32.mrb[20].mxu0 }
 0x2f9   : > { %v1131_v39 = vadd.f32 %v1130_v7, %v3575_v4  ;;  %v1132_v12 = vpop.f32.mrb[21].mxu0 }
 0x2fa   : > { %1818 = vst [vmem:[%s3654_s0] sm:$0xff] %v2175_v16  ;;  %v2176_v43 = vpack.c.bf16 %v1426_v38, %v1424_v52  ;;  %v1133_v3 = vadd.f32 %v1132_v12, %v3578_v56  ;;  %v1134_v20 = vpop.f32.mrb[22].mxu0 }
 0x2fb   : > { %v1135_v1 = vadd.f32 %v1134_v20, %v3575_v4  ;;  %v1136_v29 = vpop.f32.mrb[23].mxu0 }
 0x2fc   : > { %1819 = vst [vmem:[%s3654_s0 + $0x8] sm:$0xff] %v2176_v43  ;;  %v2153_v61 = vpack.c.bf16 %v1133_v3, %v1131_v39  ;;  %v1137_v10 = vadd.f32 %v1136_v29, %v3578_v56  ;;  %v1429_v42 = vpop.f32.mrb[20].mxu1 }
 0x2fd   : > { %v1430_v51 = vadd.f32 %v1429_v42, %v3635_v57  ;;  %v1431_v58 = vpop.f32.mrb[21].mxu1 }
 0x2fe   : > { %1700 = vst [vmem:[%s3586_s23 + $0x50] sm:$0xff] %v2153_v61  ;;  %v2154_v19 = vpack.c.bf16 %v1137_v10, %v1135_v1  ;;  %v1432_v41 = vadd.f32 %v1431_v58, %v3640_v11  ;;  %v1433_v8 = vpop.f32.mrb[22].mxu1 }
 0x2ff   : > { %v1434_v50 = vadd.f32 %v1433_v8, %v3635_v57  ;;  %v1435_v28 = vpop.f32.mrb[23].mxu1 }
 0x300   : > { %1701 = vst [vmem:[%s3586_s23 + $0x58] sm:$0xff] %v2154_v19  ;;  %v2177_v55 = vpack.c.bf16 %v1432_v41, %v1430_v51  ;;  %v1436_v14 = vadd.f32 %v1435_v28, %v3640_v11  ;;  %v1140_v5 = vpop.f32.mrb[24].mxu0 }
 0x301   : > { %v1141_v44 = vadd.f32 %v1140_v5, %v3575_v4  ;;  %v1142_v15 = vpop.f32.mrb[25].mxu0 }
 0x302   : > { %1820 = vst [vmem:[%s3654_s0 + $0x10] sm:$0xff] %v2177_v55  ;;  %v2178_v27 = vpack.c.bf16 %v1436_v14, %v1434_v50  ;;  %v1143_v21 = vadd.f32 %v1142_v15, %v3578_v56  ;;  %v1144_v46 = vpop.f32.mrb[26].mxu0 }
 0x303   : > { %v1145_v33 = vadd.f32 %v1144_v46, %v3575_v4  ;;  %v1146_v32 = vpop.f32.mrb[27].mxu0 }
 0x304   : > { %1821 = vst [vmem:[%s3654_s0 + $0x18] sm:$0xff] %v2178_v27  ;;  %v2155_v23 = vpack.c.bf16 %v1143_v21, %v1141_v44  ;;  %v1147_v48 = vadd.f32 %v1146_v32, %v3578_v56  ;;  %v1439_v6 = vpop.f32.mrb[24].mxu1 }
 0x305   : > { %v1440_v53 = vadd.f32 %v1439_v6, %v3635_v57  ;;  %v1441_v9 = vpop.f32.mrb[25].mxu1 }
 0x306   : > { %1702 = vst [vmem:[%s3586_s23 + $0x60] sm:$0xff] %v2155_v23  ;;  %v2156_v26 = vpack.c.bf16 %v1147_v48, %v1145_v33  ;;  %v1442_v22 = vadd.f32 %v1441_v9, %v3640_v11  ;;  %v1443_v45 = vpop.f32.mrb[26].mxu1 }
 0x307   : > { %v1444_v35 = vadd.f32 %v1443_v45, %v3635_v57  ;;  %v1445_v13 = vpop.f32.mrb[27].mxu1 }
 0x308   : > { %1703 = vst [vmem:[%s3586_s23 + $0x68] sm:$0xff] %v2156_v26  ;;  %v2179_v62 = vpack.c.bf16 %v1442_v22, %v1440_v53  ;;  %v1446_v37 = vadd.f32 %v1445_v13, %v3640_v11  ;;  %v1150_v31 = vpop.f32.mrb[28].mxu0 }
 0x309   : > { %v1151_v47 = vadd.f32 %v1150_v31, %v3575_v4  ;;  %v1152_v34 = vpop.f32.mrb[29].mxu0 }
 0x30a   : > { %1822 = vst [vmem:[%s3654_s0 + $0x20] sm:$0xff] %v2179_v62  ;;  %v2180_v54 = vpack.c.bf16 %v1446_v37, %v1444_v35  ;;  %v1153_v49 = vadd.f32 %v1152_v34, %v3578_v56  ;;  %v1154_v18 = vpop.f32.mrb[30].mxu0 }
 0x30b   : > { %v1155_v59 = vadd.f32 %v1154_v18, %v3575_v4  ;;  %v1156_v30 = vpop.f32.mrb[31].mxu0 }
 0x30c   : > { %1823 = vst [vmem:[%s3654_s0 + $0x28] sm:$0xff] %v2180_v54  ;;  %v2157_v17 = vpack.c.bf16 %v1153_v49, %v1151_v47  ;;  %v1157_v36 = vadd.f32 %v1156_v30, %v3578_v56  ;;  %v1449_v0 = vpop.f32.mrb[28].mxu1 }
 0x30d   : > { %v1450_v60 = vadd.f32 %v1449_v0, %v3635_v57  ;;  %v1451_v40 = vpop.f32.mrb[29].mxu1 }
 0x30e   : > { %1704 = vst [vmem:[%s3586_s23 + $0x70] sm:$0xff] %v2157_v17  ;;  %v2158_v63 = vpack.c.bf16 %v1157_v36, %v1155_v59  ;;  %v1452_v24 = vadd.f32 %v1451_v40, %v3640_v11  ;;  %v1453_v2 = vpop.f32.mrb[30].mxu1 }
 0x30f   : > { %v1454_v52 = vadd.f32 %v1453_v2, %v3635_v57  ;;  %v1455_v25 = vpop.f32.mrb[31].mxu1 }
 0x310   : > { %1705 = vst [vmem:[%s3586_s23 + $0x78] sm:$0xff] %v2158_v63  ;;  %v2181_v16 = vpack.c.bf16 %v1452_v24, %v1450_v60  ;;  %v1456_v38 = vadd.f32 %v1455_v25, %v3640_v11  ;;  %v1160_v7 = vpop.f32.mrb[32].mxu0 }
 0x311   : > { %v1161_v39 = vadd.f32 %v1160_v7, %v3575_v4  ;;  %v1162_v12 = vpop.f32.mrb[33].mxu0 }
 0x312   : > { %1824 = vst [vmem:[%s3654_s0 + $0x30] sm:$0xff] %v2181_v16  ;;  %v2182_v43 = vpack.c.bf16 %v1456_v38, %v1454_v52  ;;  %v1163_v3 = vadd.f32 %v1162_v12, %v3578_v56  ;;  %v1164_v20 = vpop.f32.mrb[34].mxu0 }
 0x313   : > { %v1165_v1 = vadd.f32 %v1164_v20, %v3575_v4  ;;  %v1166_v29 = vpop.f32.mrb[35].mxu0 }
 0x314   : > { %1825 = vst [vmem:[%s3654_s0 + $0x38] sm:$0xff] %v2182_v43  ;;  %v2159_v61 = vpack.c.bf16 %v1163_v3, %v1161_v39  ;;  %v1167_v10 = vadd.f32 %v1166_v29, %v3578_v56  ;;  %v1459_v42 = vpop.f32.mrb[32].mxu1 }
 0x315   : > { %v1460_v51 = vadd.f32 %v1459_v42, %v3635_v57  ;;  %v1461_v58 = vpop.f32.mrb[33].mxu1 }
 0x316   : > { %1706 = vst [vmem:[%s3586_s23 + $0x80] sm:$0xff] %v2159_v61  ;;  %v2160_v19 = vpack.c.bf16 %v1167_v10, %v1165_v1  ;;  %v1462_v41 = vadd.f32 %v1461_v58, %v3640_v11  ;;  %v1463_v8 = vpop.f32.mrb[34].mxu1 }
 0x317   : > { %v1464_v50 = vadd.f32 %v1463_v8, %v3635_v57  ;;  %v1465_v28 = vpop.f32.mrb[35].mxu1 }
 0x318   : > { %1707 = vst [vmem:[%s3586_s23 + $0x88] sm:$0xff] %v2160_v19  ;;  %v2183_v55 = vpack.c.bf16 %v1462_v41, %v1460_v51  ;;  %v1466_v14 = vadd.f32 %v1465_v28, %v3640_v11  ;;  %v1170_v5 = vpop.f32.mrb[36].mxu0 }
 0x319   : > { %v1171_v44 = vadd.f32 %v1170_v5, %v3575_v4  ;;  %v1172_v15 = vpop.f32.mrb[37].mxu0 }
 0x31a   : > { %1826 = vst [vmem:[%s3654_s0 + $0x40] sm:$0xff] %v2183_v55  ;;  %v2184_v27 = vpack.c.bf16 %v1466_v14, %v1464_v50  ;;  %v1173_v21 = vadd.f32 %v1172_v15, %v3578_v56  ;;  %v1174_v46 = vpop.f32.mrb[38].mxu0 }
 0x31b   : > { %v1175_v33 = vadd.f32 %v1174_v46, %v3575_v4  ;;  %v1176_v32 = vpop.f32.mrb[39].mxu0 }
 0x31c   : > { %1827 = vst [vmem:[%s3654_s0 + $0x48] sm:$0xff] %v2184_v27  ;;  %v2161_v23 = vpack.c.bf16 %v1173_v21, %v1171_v44  ;;  %v1177_v48 = vadd.f32 %v1176_v32, %v3578_v56  ;;  %v1469_v6 = vpop.f32.mrb[36].mxu1 }
 0x31d   : > { %v1470_v53 = vadd.f32 %v1469_v6, %v3635_v57  ;;  %v1471_v9 = vpop.f32.mrb[37].mxu1 }
 0x31e   : > { %1708 = vst [vmem:[%s3586_s23 + $0x90] sm:$0xff] %v2161_v23  ;;  %v2162_v26 = vpack.c.bf16 %v1177_v48, %v1175_v33  ;;  %v1472_v22 = vadd.f32 %v1471_v9, %v3640_v11  ;;  %v1473_v45 = vpop.f32.mrb[38].mxu1 }
 0x31f   : > { %v1474_v35 = vadd.f32 %v1473_v45, %v3635_v57  ;;  %v1475_v13 = vpop.f32.mrb[39].mxu1 }
 0x320   : > { %1709 = vst [vmem:[%s3586_s23 + $0x98] sm:$0xff] %v2162_v26  ;;  %v2185_v62 = vpack.c.bf16 %v1472_v22, %v1470_v53  ;;  %v1476_v37 = vadd.f32 %v1475_v13, %v3640_v11  ;;  %v1180_v31 = vpop.f32.mrb[40].mxu0 }
 0x321   : > { %v1181_v47 = vadd.f32 %v1180_v31, %v3575_v4  ;;  %v1182_v34 = vpop.f32.mrb[41].mxu0 }
 0x322   : > { %1828 = vst [vmem:[%s3654_s0 + $0x50] sm:$0xff] %v2185_v62  ;;  %v2186_v54 = vpack.c.bf16 %v1476_v37, %v1474_v35  ;;  %v1183_v49 = vadd.f32 %v1182_v34, %v3578_v56  ;;  %v1184_v18 = vpop.f32.mrb[42].mxu0 }
 0x323   : > { %v1185_v59 = vadd.f32 %v1184_v18, %v3575_v4  ;;  %v1186_v30 = vpop.f32.mrb[43].mxu0 }
 0x324   : > { %1829 = vst [vmem:[%s3654_s0 + $0x58] sm:$0xff] %v2186_v54  ;;  %v2163_v17 = vpack.c.bf16 %v1183_v49, %v1181_v47  ;;  %v1187_v36 = vadd.f32 %v1186_v30, %v3578_v56  ;;  %v1479_v0 = vpop.f32.mrb[40].mxu1 }
 0x325   : > { %v1480_v60 = vadd.f32 %v1479_v0, %v3635_v57  ;;  %v1481_v40 = vpop.f32.mrb[41].mxu1 }
 0x326   : > { %1710 = vst [vmem:[%s3586_s23 + $0xa0] sm:$0xff] %v2163_v17  ;;  %v2164_v63 = vpack.c.bf16 %v1187_v36, %v1185_v59  ;;  %v1482_v24 = vadd.f32 %v1481_v40, %v3640_v11  ;;  %v1483_v2 = vpop.f32.mrb[42].mxu1 }
 0x327   : > { %v1484_v52 = vadd.f32 %v1483_v2, %v3635_v57  ;;  %v1485_v25 = vpop.f32.mrb[43].mxu1 }
 0x328   : > { %1711 = vst [vmem:[%s3586_s23 + $0xa8] sm:$0xff] %v2164_v63  ;;  %v2187_v16 = vpack.c.bf16 %v1482_v24, %v1480_v60  ;;  %v1486_v38 = vadd.f32 %v1485_v25, %v3640_v11  ;;  %v1190_v7 = vpop.f32.mrb[44].mxu0 }
 0x329   : > { %v1191_v39 = vadd.f32 %v1190_v7, %v3575_v4  ;;  %v1192_v12 = vpop.f32.mrb[45].mxu0 }
 0x32a   : > { %1830 = vst [vmem:[%s3654_s0 + $0x60] sm:$0xff] %v2187_v16  ;;  %v2188_v43 = vpack.c.bf16 %v1486_v38, %v1484_v52  ;;  %v1193_v3 = vadd.f32 %v1192_v12, %v3578_v56  ;;  %v1194_v20 = vpop.f32.mrb[46].mxu0 }
 0x32b   : > { %v1195_v1 = vadd.f32 %v1194_v20, %v3575_v4  ;;  %v1196_v29 = vpop.f32.mrb[47].mxu0 }
 0x32c   : > { %1831 = vst [vmem:[%s3654_s0 + $0x68] sm:$0xff] %v2188_v43  ;;  %v2165_v61 = vpack.c.bf16 %v1193_v3, %v1191_v39  ;;  %v1197_v10 = vadd.f32 %v1196_v29, %v3578_v56  ;;  %v1489_v42 = vpop.f32.mrb[44].mxu1 }
 0x32d   : > { %v1490_v51 = vadd.f32 %v1489_v42, %v3635_v57  ;;  %v1491_v58 = vpop.f32.mrb[45].mxu1 }
 0x32e   : > { %1712 = vst [vmem:[%s3586_s23 + $0xb0] sm:$0xff] %v2165_v61  ;;  %v2166_v4 = vpack.c.bf16 %v1197_v10, %v1195_v1  ;;  %v1492_v19 = vadd.f32 %v1491_v58, %v3640_v11  ;;  %v1493_v56 = vpop.f32.mrb[46].mxu1 }
 0x32f   : > { %v1494_v41 = vadd.f32 %v1493_v56, %v3635_v57  ;;  %v1495_v8 = vpop.f32.mrb[47].mxu1 }
 0x330   : > { %1713 = vst [vmem:[%s3586_s23 + $0xb8] sm:$0xff] %v2166_v4  ;;  %v2189_v50 = vpack.c.bf16 %v1492_v19, %v1490_v51  ;;  %v1496_v28 = vadd.f32 %v1495_v8, %v3640_v11 }
 0x331   : > { %2659 = shalt.err (!%p2656_p3)
}
 0x332   : > { %s2660_s8 = scalar_lea.hbm %s3739_s21, 4096  ;;  %s2664_s12 = scalar_lea.hbm %s3841_s6, 8192 }
 0x333   : > { %p2661_p9 = scmp.ne.s32.totalorder %s3739_s21, %s2660_s8  ;;  %p2665_p7 = scmp.lt.u32.totalorder %s3739_s21, %s3841_s6 }
 0x334   : > { %p2666_p12 = scmp.lt.u32.totalorder %s2664_s12, %s2660_s8  ;;  %p2668_p2 = scmp.lt.u32.totalorder %s2660_s8, %s3739_s21 }
 0x335   : > { %p2662_p13 = pnand %p2661_p9, %p2966_p5 }
 0x336   : > { %p2667_p1 = por %p2666_p12, %p2665_p7 }
 0x337   : > { %p2663_p11 = pneg %p2662_p13 }
 0x338   : > { %p2669_p4 = por %p2668_p2, %p2667_p1 }
 0x33a   : > { %p2670_p0 = pnand %p2669_p4, %p2663_p11 }
 0x33c   : > { %2673 = shalt.err (!%p2670_p0)
}
 0x33d   : > { %s2769_s13 = smov 128   ;;  %s2770_s15 = smov 8   ;;  %1832 = vst [vmem:[%s3654_s0 + $0x70] sm:$0xff] %v2189_v50  ;;  %v2190_v57 = vpack.c.bf16 %v1496_v28, %v1494_v41 }
 0x33e   : > { %2304 = dma.vmem_to_hbm [thread:$0]  (%p2966_p5), %s3741_s14, 4096, %s3739_s21, %s1835_s20, %s2769_s13, %s2769_s13, %s2770_s15  }
 0x33f   : > { %s3783_s4 = scalar_lea.hbm %s3842_s7, %s2192_s29  ;;  %1833 = vst [vmem:[%s3654_s0 + $0x78] sm:$0xff] %v2190_v57  ;;  %s1840_s9 = scalar_lea.sflag [#allocation13], %s3059_s5 }
 0x340   : > { %s2674_s8 = scalar_lea.vmem %s3787_s17, 2048  ;;  %s2771_s14 = smov [#allocation12]  }
 0x341   : > { %p2675_p8 = scmp.ne.s32.totalorder %s3787_s17, %s2674_s8  ;;  %s2678_s28 = sshll.u32 %s2771_s14, 4  ;;  %s2679_s28 = int_to_ptr.vmem [resolvable:$false] %s2678_s28 }
 0x342   : > { %s2680_s21 = scalar_lea.vmem %s2679_s28, 4096  ;;  %p2681_p3 = scmp.lt.s32.totalorder %s3787_s17, %s2679_s28 }
 0x343   : > { %p2676_p6 = pnand %p2675_p8, %p2966_p5  ;;  %p2682_p9 = scmp.lt.s32.totalorder %s2680_s21, %s2674_s8 }
 0x345   : > { %p2677_p10 = pneg %p2676_p6  ;;  %p2683_p13 = por %p2682_p9, %p2681_p3 }
 0x347   : > { %p2684_p11 = pnand %p2683_p13, %p2677_p10 }
 0x349   : > { %2687 = shalt.err (!%p2684_p11)
}
 0x34a   : > { %s2688_s0 = scalar_lea.hbm %s3783_s4, 2048  ;;  %s2692_s30 = scalar_lea.hbm %s3842_s7, 4096 }
 0x34b   : > { %p2689_p7 = scmp.ne.s32.totalorder %s3783_s4, %s2688_s0  ;;  %p2693_p2 = scmp.lt.u32.totalorder %s3783_s4, %s3842_s7 }
 0x34c   : > { %p2694_p4 = scmp.lt.u32.totalorder %s2692_s30, %s2688_s0  ;;  %p2696_p8 = scmp.lt.u32.totalorder %s2688_s0, %s3783_s4 }
 0x34d   : > { %p2690_p12 = pnand %p2689_p7, %p2966_p5 }
 0x34e   : > { %p2695_p0 = por %p2694_p4, %p2693_p2 }
 0x34f   : > { %p2691_p1 = pneg %p2690_p12 }
 0x350   : > { %p2697_p6 = por %p2696_p8, %p2695_p0 }
 0x352   : > { %p2698_p10 = pnand %p2697_p6, %p2691_p1 }
 0x354   : > { %2701 = shalt.err (!%p2698_p10)
}
 0x355   : > { %2305 = dma.vmem_to_hbm [thread:$0]  (%p2966_p5), %s3787_s17, 2048, %s3783_s4, %s1840_s9, %s2769_s13, %s2769_s13, %s2770_s15  }
 0x356 PF: > { %s3870_s23 = sld [smem:[#allocation20_spill]]  ;;  %s1884_s10 = sand.u32 1, %s2744_s24  }
 0x357   : > { %p3872_p9 = scmp.ge.s32.totalorder %s2756_s27, 2  ;;  %s1885_s11 = scalar_lea.sflag [#allocation4], %s1884_s10 }
 0x35c   : > { %p3871_p3 = scmp.ne.s32.totalorder %s3870_s23, 0 }
 0x35e   : > { %p2326_p13 = pnand %p3872_p9, %p3871_p3 }
 0x360   : > { %2735 = dma.done.wait (!%p2326_p13), %s1885_s11, 4096  }
 0x361   : > { %2737 = vsyncadd (!%p2326_p13), %s1885_s11, 4294963200  ;;  %s1894_s19 = scalar_lea.sflag [#allocation13], %s1884_s10 }
 0x362   : > { %2739 = dma.done.wait (!%p2326_p13), %s1894_s19, 2048  }
 0x363   : > { %2741 = vsyncadd (!%p2326_p13), %s1894_s19, 4294965248  ;;  %p28_p5 = scmp.ge.s32.totalorder %s2952_s22, 4   ;;  %s3873_s24 = smov %s2748_s25 }
 0x364   : > { %s3874_s25 = smov %s2752_s26  ;;  %s3875_s26 = smov %s2962_s18 }
 0x365   : > { %s3876_s27 = smov %s2952_s22  ;;  %30 = sbr.rel (!%p28_p5) target bundleno = 15 (0xf), region = 131 }
 0x36c   :  { %1899 = vsyncpa [#allocation3], 1 }
 0x36d   :  { %1901 = vsyncpa [#allocation3 + $0x1], 1 }
 0x36e   :  { %1902 = vsyncpa [#allocation6], 1 }
 0x36f   :  { %1904 = vsyncpa [#allocation6 + $0x1], 1 }
 0x370   :  { %1905 = vsyncpa [#allocation9], 1 }
 0x371   :  { %1906 = vsyncpa [#allocation4], 1 }
 0x372   :  { %1908 = vsyncpa [#allocation4 + $0x1], 1 }
 0x373   :  { %1909 = vsyncpa [#allocation13], 1 }
 0x374   :  { %1911 = vsyncpa [#allocation13 + $0x1], 1 }

</bundles_post_ra>
